<compile_context>
chip_gen: v6e
topology: v6e:2x2x1
jax: 0.10.0
libtpu: 0.0.40
codegen_flags: <defaults>
</compile_context>

<pallas_src>
import functools

import jax
import jax.numpy as jnp
from jax.experimental import pallas as pl
from jax.experimental.pallas import tpu as pltpu


N_LAYER = 8
# channel progression for n_layer=8 (conv1..conv8) plus lastConv (1024 -> 1)
CHANNELS = [5, 8, 16, 32, 64, 128, 256, 512, 1024, 1]
N_CONV_KERNEL = 7      # conv1..conv7 stay explicit; conv8 + lastConv are fused
BIAS_PAD = 512         # widest remaining Cout (conv7) -> one lane-padded bias slab
WIDE_COUT = 256        # layers with Cout >= this use the bf16 epilogue on v6e/v7x


def _round_up(x, m):
    return (x + m - 1) // m * m


def deep_cnn_kernel(x_ref, *refs, bf16_epilogue):
    """Fused 1x1-conv chain on one (tm, 5) tile of pixel rows.

    refs = (w1..w7 bf16 (Cin,Cout), w_fused f32 (1,512),
            bias_packed f32 (8,512), out_ref (tm,1) f32).
    """
    out_ref = refs[-1]
    b_ref = refs[-2]        # (8, 512) f32; rows 0..6 = conv biases, row 7 col 0 = fused bias
    wf_ref = refs[-3]       # (1, 512) f32; fused conv8 @ lastConv weight as a row
    w_refs = refs[:-3]      # 7 bf16 conv weights

    h = x_ref[...].astype(jnp.bfloat16)           # single narrowing cast of the input
    for i, w_ref in enumerate(w_refs):
        cout = CHANNELS[i + 1]
        # bf16 x bf16 -> f32 accumulate on the MXU (native on all generations)
        acc = jnp.dot(h, w_ref[...], preferred_element_type=jnp.float32)
        b = b_ref[i:i + 1, :cout]                 # (1, cout) f32, static slice
        if bf16_epilogue and cout >= WIDE_COUT:
            # v6e/v7x: bf16-native VPU -> bias add + ReLU on half-width vregs,
            # result is already bf16 for the next dot (no extra cast pass).
            h = jnp.maximum(acc.astype(jnp.bfloat16) + b.astype(jnp.bfloat16), 0)
        else:
            # v5e path: f32 epilogue, then one cast for the next MXU dot.
            h = jnp.maximum(acc + b, 0.0).astype(jnp.bfloat16)

    # conv8 (512->1024, no ReLU) composed with lastConv (1024->1) at init time:
    # a single (tm,512) VPU multiply + XLU lane reduction (MXU N=1 matmul avoided).
    z = jnp.sum(h.astype(jnp.float32) * wf_ref[...], axis=-1, keepdims=True)
    z = z + b_ref[N_CONV_KERNEL:N_CONV_KERNEL + 1, 0:1]
    out_ref[...] = jax.nn.sigmoid(z).astype(out_ref.dtype)


def _device_kind():
    try:
        return jax.devices()[0].device_kind.lower()
    except Exception:
        return ""


def _pick_tm(m_rows):
    # Keep a single grid step: the kernel is latency/DMA-bound after the conv8
    # fusion, so splitting would only duplicate the constant-weight DMA and add
    # per-step overhead for sub-microsecond compute.
    return min(512, _round_up(m_rows, 8))


def _use_bf16_epilogue():
    kind = _device_kind()
    # bf16 VPU is native on v6e / v7x; v5e (and older) lack bf16 VALU.
    return ("v6" in kind) or ("v7" in kind)


def deep_cnn_forward(x_nchw, conv_w_bf16, w_fused_row, bias_packed, *, tm, bf16_epilogue):
    """x_nchw: (N, 5, H, W) f32 -> (N, 1, H, W) f32."""
    N, C, H, W = x_nchw.shape
    assert C == CHANNELS[0]
    # NCHW -> NHWC -> (M, C)
    x2d = jnp.transpose(x_nchw, (0, 2, 3, 1)).reshape(N * H * W, C)
    M = x2d.shape[0]
    Mp = _round_up(M, tm)
    if Mp != M:
        x2d = jnp.pad(x2d, ((0, Mp - M), (0, 0)))

    # Weights/biases never change across grid steps (constant index_map) ->
    # single-buffer them so the pipeliner allocates/DMAs each exactly once.
    def const_spec(shape):
        return pl.BlockSpec(shape, lambda i: (0, 0),
                            pipeline_mode=pl.Buffered(buffer_count=1))

    in_specs = [pl.BlockSpec((tm, C), lambda i: (i, 0))]
    in_specs += [const_spec(w.shape) for w in conv_w_bf16]
    in_specs.append(const_spec(w_fused_row.shape))
    in_specs.append(const_spec(bias_packed.shape))

    kernel = functools.partial(deep_cnn_kernel, bf16_epilogue=bf16_epilogue)
    out2d = pl.pallas_call(
        kernel,
        out_shape=jax.ShapeDtypeStruct((Mp, 1), jnp.float32),
        grid_spec=pltpu.PrefetchScalarGridSpec(
            num_scalar_prefetch=0,
            grid=(Mp // tm,),
            in_specs=in_specs,
            out_specs=pl.BlockSpec((tm, 1), lambda i: (i, 0)),
        ),
        compiler_params=pltpu.CompilerParams(
            dimension_semantics=("arbitrary",),
            vmem_limit_bytes=8 << 20,   # ~0.4 MiB weights + <2 MiB intermediates + headroom
        ),
    )(x2d, *conv_w_bf16, w_fused_row, bias_packed)

    out2d = out2d[:M]
    return jnp.transpose(out2d.reshape(N, H, W, 1), (0, 3, 1, 2))


def deep_cnn_reference(x_nchw, weights_f32, biases_f32):
    """Pure-jnp f32 reference of the ORIGINAL (unfused) forward pass."""
    N, C, H, W = x_nchw.shape
    h = jnp.transpose(x_nchw, (0, 2, 3, 1)).reshape(N * H * W, C)
    for i in range(N_LAYER):
        h = h @ weights_f32[i] + biases_f32[i]
        if i < N_LAYER - 1:
            h = jnp.maximum(h, 0.0)
    h = h @ weights_f32[N_LAYER] + biases_f32[N_LAYER]   # lastConv, no ReLU before it
    out = jax.nn.sigmoid(h)
    return jnp.transpose(out.reshape(N, H, W, 1), (0, 3, 1, 2))


def init_params(key):
    """Deterministic torch-like init: U(-1/sqrt(fan_in), 1/sqrt(fan_in)).

    The PyTorch module creates lastConv with fresh random init inside forward();
    we mirror that with a deterministic in-script init for layer index 8.
    Returns (kernel_params, full_f32_params_for_reference).
    """
    weights, biases = [], []
    for li in range(len(CHANNELS) - 1):
        cin, cout = CHANNELS[li], CHANNELS[li + 1]
        key, kw, kb = jax.random.split(key, 3)
        bound = 1.0 / jnp.sqrt(float(cin))
        # stored as (Cin, Cout) for x @ W (PyTorch (Cout,Cin,1,1) transposed)
        weights.append(jax.random.uniform(kw, (cin, cout), jnp.float32, -bound, bound))
        biases.append(jax.random.uniform(kb, (cout,), jnp.float32, -bound, bound))

    conv_w_bf16 = [w.astype(jnp.bfloat16) for w in weights[:N_CONV_KERNEL]]

    # Algebraic fusion of conv8 + lastConv (exact: no ReLU between them), in f32.
    w8, b8 = weights[7], biases[7]            # (512, 1024), (1024,)
    wl, bl = weights[8], biases[8]            # (1024, 1), (1,)
    w_fused_row = (w8 @ wl).reshape(1, CHANNELS[7])     # (1, 512) f32
    b_fused = (b8 @ wl).reshape(()) + bl[0]             # scalar f32

    # pack the 7 conv biases + fused scalar bias into one (8, 512) f32 slab
    bias_packed = jnp.zeros((N_CONV_KERNEL + 1, BIAS_PAD), jnp.float32)
    for i in range(N_CONV_KERNEL):
        bias_packed = bias_packed.at[i, :biases[i].shape[0]].set(biases[i])
    bias_packed = bias_packed.at[N_CONV_KERNEL, 0].set(b_fused)

    return (conv_w_bf16, w_fused_row, bias_packed), (weights, biases)


if __name__ == "__main__":
    key = jax.random.PRNGKey(0)
    key, kx = jax.random.split(key)
    # shapes consistent with the module: batch=2, in_channels=n_kernel=5, 16x16 spatial
    x = jax.random.normal(kx, (2, 5, 16, 16), jnp.float32)

    (conv_w_bf16, w_fused_row, bias_packed), (weights_f32, biases_f32) = init_params(key)

    tm = _pick_tm(x.shape[0] * x.shape[2] * x.shape[3])
    fwd = jax.jit(functools.partial(deep_cnn_forward, tm=tm,
                                    bf16_epilogue=_use_bf16_epilogue()))
    out = jax.block_until_ready(fwd(x, conv_w_bf16, w_fused_row, bias_packed))

    assert out.shape == (2, 1, 16, 16), out.shape
    assert bool(jnp.all((out >= 0.0) & (out <= 1.0)))  # sigmoid range sanity check

    ref = deep_cnn_reference(x, weights_f32, biases_f32)
    err = float(jnp.max(jnp.abs(out - ref)))
    assert err < 5e-2, err

    print("KERNEL_OK")
</pallas_src>

<mosaic_0001>
module attributes {stable_mosaic.version = 11 : i64} {
  func.func @deep_cnn_kernel(%arg0: i32, %arg1: memref<512x5xf32, #tpu.memory_space<vmem>>, %arg2: memref<5x8xbf16, #tpu.memory_space<vmem>>, %arg3: memref<8x16xbf16, #tpu.memory_space<vmem>>, %arg4: memref<16x32xbf16, #tpu.memory_space<vmem>>, %arg5: memref<32x64xbf16, #tpu.memory_space<vmem>>, %arg6: memref<64x128xbf16, #tpu.memory_space<vmem>>, %arg7: memref<128x256xbf16, #tpu.memory_space<vmem>>, %arg8: memref<256x512xbf16, #tpu.memory_space<vmem>>, %arg9: memref<1x512xf32, #tpu.memory_space<vmem>>, %arg10: memref<8x512xf32, #tpu.memory_space<vmem>>, %arg11: memref<512x1xf32, #tpu.memory_space<vmem>>) attributes {dimension_semantics = [#tpu.dimension_semantics<arbitrary>], iteration_bounds = array<i64: 1>, scalar_prefetch = 0 : i64, scratch_operands = 0 : i64, tpu.core_type = #tpu.core_type<tc>, window_params = [{transform_indices = @transform_0, window_bounds = array<i64: 512, 5>}, {pipeline_mode = #tpu.pipeline_mode<synchronous>, transform_indices = @transform_1, window_bounds = array<i64: 5, 8>}, {pipeline_mode = #tpu.pipeline_mode<synchronous>, transform_indices = @transform_2, window_bounds = array<i64: 8, 16>}, {pipeline_mode = #tpu.pipeline_mode<synchronous>, transform_indices = @transform_3, window_bounds = array<i64: 16, 32>}, {pipeline_mode = #tpu.pipeline_mode<synchronous>, transform_indices = @transform_4, window_bounds = array<i64: 32, 64>}, {pipeline_mode = #tpu.pipeline_mode<synchronous>, transform_indices = @transform_5, window_bounds = array<i64: 64, 128>}, {pipeline_mode = #tpu.pipeline_mode<synchronous>, transform_indices = @transform_6, window_bounds = array<i64: 128, 256>}, {pipeline_mode = #tpu.pipeline_mode<synchronous>, transform_indices = @transform_7, window_bounds = array<i64: 256, 512>}, {pipeline_mode = #tpu.pipeline_mode<synchronous>, transform_indices = @transform_8, window_bounds = array<i64: 1, 512>}, {pipeline_mode = #tpu.pipeline_mode<synchronous>, transform_indices = @transform_9, window_bounds = array<i64: 8, 512>}, {transform_indices = @transform_10, window_bounds = array<i64: 512, 1>}]} {
    %c0 = arith.constant 0 : index
    %c0_0 = arith.constant 0 : index
    %0 = vector.load %arg1[%c0, %c0_0] : memref<512x5xf32, #tpu.memory_space<vmem>>, vector<512x5xf32>
    %1 = arith.truncf %0 : vector<512x5xf32> to vector<512x5xbf16>
    %c0_1 = arith.constant 0 : index
    %c0_2 = arith.constant 0 : index
    %2 = vector.load %arg2[%c0_1, %c0_2] : memref<5x8xbf16, #tpu.memory_space<vmem>>, vector<5x8xbf16>
    %cst = arith.constant dense<0.000000e+00> : vector<512x8xf32>
    %3 = tpu.matmul %1, %2, %cst {dimension_numbers = #tpu.dot_dimension_numbers<[1], [0], [0], [1], [0, 0, 1, 1], [], []>} : vector<512x5xbf16>, vector<5x8xbf16>, vector<512x8xf32> -> vector<512x8xf32>
    %c0_3 = arith.constant 0 : index
    %c0_4 = arith.constant 0 : index
    %4 = vector.load %arg10[%c0_3, %c0_4] : memref<8x512xf32, #tpu.memory_space<vmem>>, vector<1x8xf32>
    %5 = vector.broadcast %4 : vector<1x8xf32> to vector<512x8xf32>
    %6 = arith.addf %3, %5 : vector<512x8xf32>
    %cst_5 = arith.constant 0.000000e+00 : f32
    %7 = vector.broadcast %cst_5 : f32 to vector<512x8xf32>
    %8 = arith.maximumf %6, %7 : vector<512x8xf32>
    %9 = arith.truncf %8 : vector<512x8xf32> to vector<512x8xbf16>
    %c0_6 = arith.constant 0 : index
    %c0_7 = arith.constant 0 : index
    %10 = vector.load %arg3[%c0_6, %c0_7] : memref<8x16xbf16, #tpu.memory_space<vmem>>, vector<8x16xbf16>
    %cst_8 = arith.constant dense<0.000000e+00> : vector<512x16xf32>
    %11 = tpu.matmul %9, %10, %cst_8 {dimension_numbers = #tpu.dot_dimension_numbers<[1], [0], [0], [1], [0, 0, 1, 1], [], []>} : vector<512x8xbf16>, vector<8x16xbf16>, vector<512x16xf32> -> vector<512x16xf32>
    %c1 = arith.constant 1 : index
    %c0_9 = arith.constant 0 : index
    %12 = vector.load %arg10[%c1, %c0_9] : memref<8x512xf32, #tpu.memory_space<vmem>>, vector<1x16xf32>
    %13 = vector.broadcast %12 : vector<1x16xf32> to vector<512x16xf32>
    %14 = arith.addf %11, %13 : vector<512x16xf32>
    %cst_10 = arith.constant 0.000000e+00 : f32
    %15 = vector.broadcast %cst_10 : f32 to vector<512x16xf32>
    %16 = arith.maximumf %14, %15 : vector<512x16xf32>
    %17 = arith.truncf %16 : vector<512x16xf32> to vector<512x16xbf16>
    %c0_11 = arith.constant 0 : index
    %c0_12 = arith.constant 0 : index
    %18 = vector.load %arg4[%c0_11, %c0_12] : memref<16x32xbf16, #tpu.memory_space<vmem>>, vector<16x32xbf16>
    %cst_13 = arith.constant dense<0.000000e+00> : vector<512x32xf32>
    %19 = tpu.matmul %17, %18, %cst_13 {dimension_numbers = #tpu.dot_dimension_numbers<[1], [0], [0], [1], [0, 0, 1, 1], [], []>} : vector<512x16xbf16>, vector<16x32xbf16>, vector<512x32xf32> -> vector<512x32xf32>
    %c2 = arith.constant 2 : index
    %c0_14 = arith.constant 0 : index
    %20 = vector.load %arg10[%c2, %c0_14] : memref<8x512xf32, #tpu.memory_space<vmem>>, vector<1x32xf32>
    %21 = vector.broadcast %20 : vector<1x32xf32> to vector<512x32xf32>
    %22 = arith.addf %19, %21 : vector<512x32xf32>
    %cst_15 = arith.constant 0.000000e+00 : f32
    %23 = vector.broadcast %cst_15 : f32 to vector<512x32xf32>
    %24 = arith.maximumf %22, %23 : vector<512x32xf32>
    %25 = arith.truncf %24 : vector<512x32xf32> to vector<512x32xbf16>
    %c0_16 = arith.constant 0 : index
    %c0_17 = arith.constant 0 : index
    %26 = vector.load %arg5[%c0_16, %c0_17] : memref<32x64xbf16, #tpu.memory_space<vmem>>, vector<32x64xbf16>
    %cst_18 = arith.constant dense<0.000000e+00> : vector<512x64xf32>
    %27 = tpu.matmul %25, %26, %cst_18 {dimension_numbers = #tpu.dot_dimension_numbers<[1], [0], [0], [1], [0, 0, 1, 1], [], []>} : vector<512x32xbf16>, vector<32x64xbf16>, vector<512x64xf32> -> vector<512x64xf32>
    %c3 = arith.constant 3 : index
    %c0_19 = arith.constant 0 : index
    %28 = vector.load %arg10[%c3, %c0_19] : memref<8x512xf32, #tpu.memory_space<vmem>>, vector<1x64xf32>
    %29 = vector.broadcast %28 : vector<1x64xf32> to vector<512x64xf32>
    %30 = arith.addf %27, %29 : vector<512x64xf32>
    %cst_20 = arith.constant 0.000000e+00 : f32
    %31 = vector.broadcast %cst_20 : f32 to vector<512x64xf32>
    %32 = arith.maximumf %30, %31 : vector<512x64xf32>
    %33 = arith.truncf %32 : vector<512x64xf32> to vector<512x64xbf16>
    %c0_21 = arith.constant 0 : index
    %c0_22 = arith.constant 0 : index
    %34 = vector.load %arg6[%c0_21, %c0_22] : memref<64x128xbf16, #tpu.memory_space<vmem>>, vector<64x128xbf16>
    %cst_23 = arith.constant dense<0.000000e+00> : vector<512x128xf32>
    %35 = tpu.matmul %33, %34, %cst_23 {dimension_numbers = #tpu.dot_dimension_numbers<[1], [0], [0], [1], [0, 0, 1, 1], [], []>} : vector<512x64xbf16>, vector<64x128xbf16>, vector<512x128xf32> -> vector<512x128xf32>
    %c4 = arith.constant 4 : index
    %c0_24 = arith.constant 0 : index
    %36 = vector.load %arg10[%c4, %c0_24] : memref<8x512xf32, #tpu.memory_space<vmem>>, vector<1x128xf32>
    %37 = vector.broadcast %36 : vector<1x128xf32> to vector<512x128xf32>
    %38 = arith.addf %35, %37 : vector<512x128xf32>
    %cst_25 = arith.constant 0.000000e+00 : f32
    %39 = vector.broadcast %cst_25 : f32 to vector<512x128xf32>
    %40 = arith.maximumf %38, %39 : vector<512x128xf32>
    %41 = arith.truncf %40 : vector<512x128xf32> to vector<512x128xbf16>
    %c0_26 = arith.constant 0 : index
    %c0_27 = arith.constant 0 : index
    %42 = vector.load %arg7[%c0_26, %c0_27] : memref<128x256xbf16, #tpu.memory_space<vmem>>, vector<128x256xbf16>
    %cst_28 = arith.constant dense<0.000000e+00> : vector<512x256xf32>
    %43 = tpu.matmul %41, %42, %cst_28 {dimension_numbers = #tpu.dot_dimension_numbers<[1], [0], [0], [1], [0, 0, 1, 1], [], []>} : vector<512x128xbf16>, vector<128x256xbf16>, vector<512x256xf32> -> vector<512x256xf32>
    %c5 = arith.constant 5 : index
    %c0_29 = arith.constant 0 : index
    %44 = vector.load %arg10[%c5, %c0_29] : memref<8x512xf32, #tpu.memory_space<vmem>>, vector<1x256xf32>
    %45 = vector.broadcast %44 : vector<1x256xf32> to vector<512x256xf32>
    %46 = arith.addf %43, %45 : vector<512x256xf32>
    %cst_30 = arith.constant 0.000000e+00 : f32
    %47 = vector.broadcast %cst_30 : f32 to vector<512x256xf32>
    %48 = arith.maximumf %46, %47 : vector<512x256xf32>
    %49 = arith.truncf %48 : vector<512x256xf32> to vector<512x256xbf16>
    %c0_31 = arith.constant 0 : index
    %c0_32 = arith.constant 0 : index
    %50 = vector.load %arg8[%c0_31, %c0_32] : memref<256x512xbf16, #tpu.memory_space<vmem>>, vector<256x512xbf16>
    %cst_33 = arith.constant dense<0.000000e+00> : vector<512x512xf32>
    %51 = tpu.matmul %49, %50, %cst_33 {dimension_numbers = #tpu.dot_dimension_numbers<[1], [0], [0], [1], [0, 0, 1, 1], [], []>} : vector<512x256xbf16>, vector<256x512xbf16>, vector<512x512xf32> -> vector<512x512xf32>
    %c6 = arith.constant 6 : index
    %c0_34 = arith.constant 0 : index
    %52 = vector.load %arg10[%c6, %c0_34] : memref<8x512xf32, #tpu.memory_space<vmem>>, vector<1x512xf32>
    %53 = vector.broadcast %52 : vector<1x512xf32> to vector<512x512xf32>
    %54 = arith.addf %51, %53 : vector<512x512xf32>
    %cst_35 = arith.constant 0.000000e+00 : f32
    %55 = vector.broadcast %cst_35 : f32 to vector<512x512xf32>
    %56 = arith.maximumf %54, %55 : vector<512x512xf32>
    %57 = arith.truncf %56 : vector<512x512xf32> to vector<512x512xbf16>
    %58 = arith.extf %57 : vector<512x512xbf16> to vector<512x512xf32>
    %c0_36 = arith.constant 0 : index
    %c0_37 = arith.constant 0 : index
    %59 = vector.load %arg9[%c0_36, %c0_37] : memref<1x512xf32, #tpu.memory_space<vmem>>, vector<1x512xf32>
    %60 = vector.broadcast %59 : vector<1x512xf32> to vector<512x512xf32>
    %61 = arith.mulf %58, %60 : vector<512x512xf32>
    %cst_38 = arith.constant dense<0.000000e+00> : vector<512xf32>
    %62 = vector.multi_reduction <add>, %61, %cst_38 [1] : vector<512x512xf32> to vector<512xf32>
    %63 = vector.shape_cast %62 : vector<512xf32> to vector<512x1xf32>
    %c7 = arith.constant 7 : index
    %c0_39 = arith.constant 0 : index
    %64 = vector.load %arg10[%c7, %c0_39] : memref<8x512xf32, #tpu.memory_space<vmem>>, vector<1x1xf32>
    %65 = vector.broadcast %64 : vector<1x1xf32> to vector<512x1xf32>
    %66 = arith.addf %63, %65 : vector<512x1xf32>
    %67 = arith.negf %66 : vector<512x1xf32>
    %68 = math.exp %67 : vector<512x1xf32>
    %cst_40 = arith.constant 1.000000e+00 : f32
    %69 = vector.broadcast %cst_40 : f32 to vector<512x1xf32>
    %70 = arith.addf %69, %68 : vector<512x1xf32>
    %71 = arith.divf %69, %70 : vector<512x1xf32>
    %c0_41 = arith.constant 0 : index
    %c0_42 = arith.constant 0 : index
    %72 = vector.load %arg11[%c0_41, %c0_42] : memref<512x1xf32, #tpu.memory_space<vmem>>, vector<512x1xf32>
    tpu.vector_store %arg11[%c0_41, %c0_42], %71 {strides = array<i32>} : memref<512x1xf32, #tpu.memory_space<vmem>>, vector<512x1xf32>,
    return
  }
  func.func @transform_0(%arg0: i32) -> (i32, i32) {
    %c0_i32 = arith.constant 0 : i32
    %c0_i32_0 = arith.constant 0 : i32
    return %arg0, %c0_i32 : i32, i32
  }
  func.func @transform_1(%arg0: i32) -> (i32, i32) {
    %c0_i32 = arith.constant 0 : i32
    %c0_i32_0 = arith.constant 0 : i32
    %c0_i32_1 = arith.constant 0 : i32
    return %c0_i32, %c0_i32_0 : i32, i32
  }
  func.func @transform_2(%arg0: i32) -> (i32, i32) {
    %c0_i32 = arith.constant 0 : i32
    %c0_i32_0 = arith.constant 0 : i32
    %c0_i32_1 = arith.constant 0 : i32
    return %c0_i32, %c0_i32_0 : i32, i32
  }
  func.func @transform_3(%arg0: i32) -> (i32, i32) {
    %c0_i32 = arith.constant 0 : i32
    %c0_i32_0 = arith.constant 0 : i32
    %c0_i32_1 = arith.constant 0 : i32
    return %c0_i32, %c0_i32_0 : i32, i32
  }
  func.func @transform_4(%arg0: i32) -> (i32, i32) {
    %c0_i32 = arith.constant 0 : i32
    %c0_i32_0 = arith.constant 0 : i32
    %c0_i32_1 = arith.constant 0 : i32
    return %c0_i32, %c0_i32_0 : i32, i32
  }
  func.func @transform_5(%arg0: i32) -> (i32, i32) {
    %c0_i32 = arith.constant 0 : i32
    %c0_i32_0 = arith.constant 0 : i32
    %c0_i32_1 = arith.constant 0 : i32
    return %c0_i32, %c0_i32_0 : i32, i32
  }
  func.func @transform_6(%arg0: i32) -> (i32, i32) {
    %c0_i32 = arith.constant 0 : i32
    %c0_i32_0 = arith.constant 0 : i32
    %c0_i32_1 = arith.constant 0 : i32
    return %c0_i32, %c0_i32_0 : i32, i32
  }
  func.func @transform_7(%arg0: i32) -> (i32, i32) {
    %c0_i32 = arith.constant 0 : i32
    %c0_i32_0 = arith.constant 0 : i32
    %c0_i32_1 = arith.constant 0 : i32
    return %c0_i32, %c0_i32_0 : i32, i32
  }
  func.func @transform_8(%arg0: i32) -> (i32, i32) {
    %c0_i32 = arith.constant 0 : i32
    %c0_i32_0 = arith.constant 0 : i32
    %c0_i32_1 = arith.constant 0 : i32
    return %c0_i32, %c0_i32_0 : i32, i32
  }
  func.func @transform_9(%arg0: i32) -> (i32, i32) {
    %c0_i32 = arith.constant 0 : i32
    %c0_i32_0 = arith.constant 0 : i32
    %c0_i32_1 = arith.constant 0 : i32
    return %c0_i32, %c0_i32_0 : i32, i32
  }
  func.func @transform_10(%arg0: i32) -> (i32, i32) {
    %c0_i32 = arith.constant 0 : i32
    %c0_i32_0 = arith.constant 0 : i32
    return %arg0, %c0_i32 : i32, i32
  }
}

</mosaic_0001>

<bundles_post_ra>
// kernel: deep_cnn_forward.1
= control target key start
LH: loop header
LB: loop body
LE: loop exit
PB: predicated region body
PF: predicated region fallthrough
CT: control target
= control target key end

     0   :  { %15 = vsyncpa [#allocation3], 0  ;;  %s11063_s0 = inlined_call_operand.vmem [shape: f32[512,5], index: 0, kind: input, shape index: {}]   ;;  %s11064_s1 = inlined_call_operand.hbm [shape: bf16[5,8], index: 1, kind: input, shape index: {}]   ;;  %s11065_s2 = inlined_call_operand.hbm [shape: bf16[8,16], index: 2, kind: input, shape index: {}]   ;;  %s11066_s3 = inlined_call_operand.hbm [shape: bf16[16,32], index: 3, kind: input, shape index: {}]   ;;  %s11067_s4 = inlined_call_operand.vmem [shape: bf16[32,64], index: 4, kind: input, shape index: {}]   ;;  %s11068_s5 = inlined_call_operand.vmem [shape: bf16[64,128], index: 5, kind: input, shape index: {}]   ;;  %s11069_s6 = inlined_call_operand.vmem [shape: bf16[128,256], index: 6, kind: input, shape index: {}]   ;;  %s11070_s7 = inlined_call_operand.vmem [shape: bf16[256,512], index: 7, kind: input, shape index: {}]   ;;  %s11071_s8 = inlined_call_operand.hbm [shape: f32[1,512], index: 8, kind: input, shape index: {}]   ;;  %s11072_s9 = inlined_call_operand.hbm [shape: f32[8,512], index: 9, kind: input, shape index: {}]   ;;  %s11073_s10 = inlined_call_operand.vmem [shape: f32[512,1], index: 10, kind: output, shape index: {}]  }
   0x1   :  { %16 = vsyncpa [#allocation5], 0 }
   0x2   :  { %17 = vsyncpa [#allocation8], 0  ;;  %s7524_s13 = smov [#allocation4]   ;;  %s7525_s15 = smov [#allocation7]  }
   0x3   :  { %s36_s14 = sshll.u32 %s7524_s13, 4  ;;  %s66_s16 = sshll.u32 %s7525_s15, 4  ;;  %s37_s14 = int_to_ptr.vmem [resolvable:$true] %s36_s14  ;;  %s67_s16 = int_to_ptr.vmem [resolvable:$true] %s66_s16 }
   0x4   :  { %s7426_s17 = scalar_lea.vmem %s37_s14, 64  ;;  %p7431_p1 = scmp.lt.s32.totalorder %s37_s14, %s37_s14 }
   0x5   :  { %p7427_p0 = scmp.ne.s32.totalorder %s37_s14, %s7426_s17  ;;  %p7432_p2 = scmp.lt.s32.totalorder %s7426_s17, %s7426_s17 }
   0x7   :  { %p7433_p3 = por %p7432_p2, %p7431_p1 }
   0x9   :  { %p7434_p4 = pnand %p7433_p3, %p7427_p0 }
   0xb   :  { %7437 = shalt.err (!%p7434_p4)
}
   0xc   :  { %39 = dma.hbm_to_vmem [thread:$0]  %s11065_s2, 64, %s37_s14, [#allocation5]  }
   0xd   :  { %s7446_s20 = scalar_lea.vmem %s67_s16, 64  ;;  %p7451_p6 = scmp.lt.s32.totalorder %s67_s16, %s67_s16 }
   0xe   :  { %p7447_p5 = scmp.ne.s32.totalorder %s67_s16, %s7446_s20  ;;  %p7452_p7 = scmp.lt.s32.totalorder %s7446_s20, %s7446_s20 }
  0x10   :  { %p7453_p8 = por %p7452_p7, %p7451_p6 }
  0x12   :  { %p7454_p9 = pnand %p7453_p8, %p7447_p5 }
  0x14   :  { %7457 = shalt.err (!%p7454_p9)
}
  0x15   :  { %69 = dma.hbm_to_vmem [thread:$0]  %s11071_s8, 64, %s67_s16, [#allocation8]  }
  0x16   :  { %s7526_s23 = smov [#allocation2]   ;;  %s7527_s25 = smov [#allocation6]  }
  0x17   :  { %s26_s24 = sshll.u32 %s7526_s23, 4  ;;  %s45_s26 = sshll.u32 %s7527_s25, 4  ;;  %s27_s24 = int_to_ptr.vmem [resolvable:$true] %s26_s24  ;;  %s46_s26 = int_to_ptr.vmem [resolvable:$true] %s45_s26 }
  0x18   :  { %s7466_s27 = scalar_lea.vmem %s27_s24, 64  ;;  %p7471_p11 = scmp.lt.s32.totalorder %s27_s24, %s27_s24 }
  0x19   :  { %p7467_p10 = scmp.ne.s32.totalorder %s27_s24, %s7466_s27  ;;  %p7472_p12 = scmp.lt.s32.totalorder %s7466_s27, %s7466_s27 }
  0x1b   :  { %p7473_p13 = por %p7472_p12, %p7471_p11 }
  0x1d   :  { %p7474_p0 = pnand %p7473_p13, %p7467_p10 }
  0x1f   :  { %7477 = shalt.err (!%p7474_p0)
}
  0x20   :  { %29 = dma.hbm_to_vmem [thread:$0]  %s11064_s1, 64, %s27_s24, [#allocation3]  }
  0x21   :  { %s7486_s29 = scalar_lea.vmem %s46_s26, 128  ;;  %p7491_p2 = scmp.lt.s32.totalorder %s46_s26, %s46_s26 }
  0x22   :  { %p7487_p1 = scmp.ne.s32.totalorder %s46_s26, %s7486_s29  ;;  %p7492_p3 = scmp.lt.s32.totalorder %s7486_s29, %s7486_s29 }
  0x24   :  { %p7493_p4 = por %p7492_p3, %p7491_p2 }
  0x26   :  { %p7494_p5 = pnand %p7493_p4, %p7487_p1 }
  0x28   :  { %7497 = shalt.err (!%p7494_p5)
}
  0x29   :  { %s7528_s8 = smov 64   ;;  %s7529_s30 = smov 4  }
  0x2a   :  { %51 = dma.hbm_to_vmem [thread:$0]  %s11066_s3, 128, %s46_s26, [#allocation5], %s7528_s8, %s7528_s8, %s7529_s30  }
  0x2b   :  { %s7530_s13 = smov [#allocation9]  }
  0x2c   :  { %s76_s14 = sshll.u32 %s7530_s13, 4  ;;  %s77_s14 = int_to_ptr.vmem [resolvable:$true] %s76_s14 }
  0x2d   :  { %s7506_s15 = scalar_lea.vmem %s77_s14, 512  ;;  %p7511_p7 = scmp.lt.s32.totalorder %s77_s14, %s77_s14 }
  0x2e   :  { %p7507_p6 = scmp.ne.s32.totalorder %s77_s14, %s7506_s15  ;;  %p7512_p8 = scmp.lt.s32.totalorder %s7506_s15, %s7506_s15 }
  0x30   :  { %p7513_p9 = por %p7512_p8, %p7511_p7 }
  0x32   :  { %p7514_p10 = pnand %p7513_p9, %p7507_p6 }
  0x34   :  { %7517 = shalt.err (!%p7514_p10)
}
  0x35   :  { %79 = dma.hbm_to_vmem [thread:$0]  %s11072_s9, 512, %s77_s14, [#allocation8]  }
  0x36   :  { %7518 = dma.done.wait [#allocation3], 64  }
  0x37   :  { %7519 = vsyncadd [#allocation3], 4294967232 }
  0x38   :  { %7520 = dma.done.wait [#allocation5], 192  }
  0x39   :  { %7521 = vsyncadd [#allocation5], 4294967104 }
  0x3a   :  { %7522 = dma.done.wait [#allocation8], 576  }
  0x3b   :  { %7523 = vsyncadd [#allocation8], 4294966720  ;;  %vm291_vm0 = vcmask 1041408   ;;  %vm292_vm1 = vcmask 1042432   ;;  %v7531_v0 = vmov 65535   ;;  %v96_v4 = vld [vmem:[%s11063_s0] sm:$0xff] }
  0x3c   :  { %v293_v1 = vsel %vm291_vm0, 4294967295, %v7531_v0  ;;  %v192_v3 = vld [vmem:[#allocation2] sm:$0x7]  ;;  %v97_v5 = vld [vmem:[%s11063_s0 + $0x8] sm:$0xff]  ;;  %vm194_vm2 = vcmask 39936   ;;  %v98_v8 = vld [vmem:[%s11063_s0 + $0x10] sm:$0xff] }
  0x3d   :  { %v294_v2 = vsel %vm292_vm1, %v293_v1, 0  ;;  %v160_v7 = vpack.c.bf16 %v97_v5, %v96_v4  ;;  %v99_v9 = vld [vmem:[%s11063_s0 + $0x18] sm:$0xff]  ;;  %v100_v10 = vld [vmem:[%s11063_s0 + $0x20] sm:$0xff]  ;;  %v101_v11 = vld [vmem:[%s11063_s0 + $0x28] sm:$0xff]  ;;  %vm782_vm3 = vcmask 1043456   ;;  %vm685_vm4 = vcmask 64512  }
  0x3e   :  { %v296_v6 = vand.u32 %v294_v2, %v192_v3  ;;  %v161_v12 = vpack.c.bf16 %v99_v9, %v98_v8  ;;  %v162_v13 = vpack.c.bf16 %v101_v11, %v100_v10  ;;  %v102_v14 = vld [vmem:[%s11063_s0 + $0x30] sm:$0xff]  ;;  %v103_v15 = vld [vmem:[%s11063_s0 + $0x38] sm:$0xff]  ;;  %v104_v16 = vld [vmem:[%s11063_s0 + $0x40] sm:$0xff]  ;;  %vm1180_vm5 = vcmask 130048  }
  0x3f   :  { %6684 = vmatprep.mubr.msk.bf16.mxu0 %vm194_vm2, %v160_v7  ;;  %v105_v17 = vld [vmem:[%s11063_s0 + $0x48] sm:$0xff]  ;;  %v683_v18 = vld [vmem:[#allocation4] sm:$0xf]  ;;  %v163_v19 = vpack.c.bf16 %v103_v15, %v102_v14  ;;  %v106_v22 = vld [vmem:[%s11063_s0 + $0x50] sm:$0xff]  ;;  %vm1679_vm6 = vcmask 261120   ;;  %vm2194_vm7 = vcmask 523264  }
  0x40   :  { %6682 = vmatprep.subr.bf16.mxu0 %v296_v6  ;;  %v784_v20 = vsel %vm782_vm3, %v683_v18, 0  ;;  %7023 = vmatprep.subr.msk.bf16.mxu1 %vm782_vm3, %v683_v18  ;;  %v164_v21 = vpack.c.bf16 %v105_v17, %v104_v16  ;;  %v107_v23 = vld [vmem:[%s11063_s0 + $0x58] sm:$0xff]  ;;  %v108_v24 = vld [vmem:[%s11063_s0 + $0x60] sm:$0xff]  ;;  %v109_v25 = vld [vmem:[%s11063_s0 + $0x68] sm:$0xff]  ;;  %vm6130_vm8 = vcmask 7168  }
  0x41   :  { %6683 = vmatpush3.bf16.msra.mxu0 %v296_v6  ;;  %7021 = vmatpush3.bf16.msra.mxu1 %v784_v20  ;;  %v165_v26 = vpack.c.bf16 %v107_v23, %v106_v22  ;;  %v166_v27 = vpack.c.bf16 %v109_v25, %v108_v24  ;;  %v110_v28 = vld [vmem:[%s11063_s0 + $0x70] sm:$0xff]  ;;  %v111_v29 = vld [vmem:[%s11063_s0 + $0x78] sm:$0xff]  ;;  %v112_v30 = vld [vmem:[%s11063_s0 + $0x80] sm:$0xff] }
  0x42   :  { %7022 = vmatprep.subr.msk.bf16.mxu0 %vm782_vm3, %v683_v18  ;;  %v113_v31 = vld [vmem:[%s11063_s0 + $0x88] sm:$0xff]  ;;  %v167_v32 = vpack.c.bf16 %v111_v29, %v110_v28  ;;  %v114_v34 = vld [vmem:[%s11063_s0 + $0x90] sm:$0xff]  ;;  %v115_v35 = vld [vmem:[%s11063_s0 + $0x98] sm:$0xff] }
  0x43   :  { %v168_v33 = vpack.c.bf16 %v113_v31, %v112_v30  ;;  %v116_v36 = vld [vmem:[%s11063_s0 + $0xa0] sm:$0xff]  ;;  %v117_v37 = vld [vmem:[%s11063_s0 + $0xa8] sm:$0xff]  ;;  %v169_v38 = vpack.c.bf16 %v115_v35, %v114_v34  ;;  %v118_v40 = vld [vmem:[%s11063_s0 + $0xb0] sm:$0xff] }
  0x44   :  { %6685 = vmatmul.mubr.msk.bf16.vlgmr.msra.gmra.mxu0 %vm194_vm2, %v161_v12  ;;  %v170_v39 = vpack.c.bf16 %v117_v37, %v116_v36  ;;  %v119_v41 = vld [vmem:[%s11063_s0 + $0xb8] sm:$0xff]  ;;  %v120_v42 = vld [vmem:[%s11063_s0 + $0xc0] sm:$0xff]  ;;  %v121_v43 = vld [vmem:[%s11063_s0 + $0xc8] sm:$0xff] }
  0x45   :  { %6688 = vmatprep.mubr.msk.bf16.mxu0 %vm194_vm2, %v162_v13  ;;  %6749 = vmatpush3.bf16.msra.mxu0 %v784_v20  ;;  %v171_v44 = vpack.c.bf16 %v119_v41, %v118_v40  ;;  %v172_v45 = vpack.c.bf16 %v121_v43, %v120_v42  ;;  %v122_v46 = vld [vmem:[%s11063_s0 + $0xd0] sm:$0xff]  ;;  %v123_v47 = vld [vmem:[%s11063_s0 + $0xd8] sm:$0xff]  ;;  %v124_v48 = vld [vmem:[%s11063_s0 + $0xe0] sm:$0xff] }
  0x46   :  { %v125_v49 = vld [vmem:[%s11063_s0 + $0xe8] sm:$0xff]  ;;  %v173_v50 = vpack.c.bf16 %v123_v47, %v122_v46  ;;  %v126_v52 = vld [vmem:[%s11063_s0 + $0xf0] sm:$0xff]  ;;  %v127_v53 = vld [vmem:[%s11063_s0 + $0xf8] sm:$0xff] }
  0x47   :  { %v174_v51 = vpack.c.bf16 %v125_v49, %v124_v48  ;;  %v128_v54 = vld [vmem:[%s11063_s0 + $0x100] sm:$0xff]  ;;  %v129_v55 = vld [vmem:[%s11063_s0 + $0x108] sm:$0xff]  ;;  %v175_v56 = vpack.c.bf16 %v127_v53, %v126_v52  ;;  %v130_v58 = vld [vmem:[%s11063_s0 + $0x110] sm:$0xff] }
  0x48   :  { %v176_v57 = vpack.c.bf16 %v129_v55, %v128_v54  ;;  %v131_v59 = vld [vmem:[%s11063_s0 + $0x118] sm:$0xff]  ;;  %v132_v60 = vld [vmem:[%s11063_s0 + $0x120] sm:$0xff]  ;;  %v133_v61 = vld [vmem:[%s11063_s0 + $0x128] sm:$0xff] }
  0x49   :  { %v177_v62 = vpack.c.bf16 %v131_v59, %v130_v58  ;;  %v178_v63 = vpack.c.bf16 %v133_v61, %v132_v60  ;;  %v134_v0 = vld [vmem:[%s11063_s0 + $0x130] sm:$0xff]  ;;  %v135_v1 = vld [vmem:[%s11063_s0 + $0x138] sm:$0xff]  ;;  %v136_v2 = vld [vmem:[%s11063_s0 + $0x140] sm:$0xff] }
  0x4a   :  { %v137_v3 = vld [vmem:[%s11063_s0 + $0x148] sm:$0xff]  ;;  %v179_v4 = vpack.c.bf16 %v135_v1, %v134_v0  ;;  %v138_v6 = vld [vmem:[%s11063_s0 + $0x150] sm:$0xff]  ;;  %v139_v7 = vld [vmem:[%s11063_s0 + $0x158] sm:$0xff] }
  0x4b   :  { %v180_v5 = vpack.c.bf16 %v137_v3, %v136_v2  ;;  %v140_v8 = vld [vmem:[%s11063_s0 + $0x160] sm:$0xff]  ;;  %v141_v9 = vld [vmem:[%s11063_s0 + $0x168] sm:$0xff]  ;;  %v181_v10 = vpack.c.bf16 %v139_v7, %v138_v6  ;;  %v142_v12 = vld [vmem:[%s11063_s0 + $0x170] sm:$0xff] }
  0x4c   :  { %6689 = vmatmul.mubr.msk.bf16.gmra.mxu0 %vm194_vm2, %v163_v19  ;;  %v182_v11 = vpack.c.bf16 %v141_v9, %v140_v8  ;;  %v143_v13 = vld [vmem:[%s11063_s0 + $0x178] sm:$0xff]  ;;  %v144_v14 = vld [vmem:[%s11063_s0 + $0x180] sm:$0xff]  ;;  %v145_v15 = vld [vmem:[%s11063_s0 + $0x188] sm:$0xff] }
  0x4d   :  { %6692 = vmatprep.mubr.msk.bf16.mxu0 %vm194_vm2, %v164_v21  ;;  %v183_v16 = vpack.c.bf16 %v143_v13, %v142_v12  ;;  %v184_v17 = vpack.c.bf16 %v145_v15, %v144_v14  ;;  %v146_v18 = vld [vmem:[%s11063_s0 + $0x190] sm:$0xff]  ;;  %v147_v19 = vld [vmem:[%s11063_s0 + $0x198] sm:$0xff]  ;;  %v148_v20 = vld [vmem:[%s11063_s0 + $0x1a0] sm:$0xff] }
  0x4e   :  { %v149_v21 = vld [vmem:[%s11063_s0 + $0x1a8] sm:$0xff]  ;;  %v185_v22 = vpack.c.bf16 %v147_v19, %v146_v18  ;;  %v150_v24 = vld [vmem:[%s11063_s0 + $0x1b0] sm:$0xff]  ;;  %v151_v25 = vld [vmem:[%s11063_s0 + $0x1b8] sm:$0xff] }
  0x4f   :  { %v186_v23 = vpack.c.bf16 %v149_v21, %v148_v20  ;;  %v187_v28 = vpack.c.bf16 %v151_v25, %v150_v24  ;;  %v154_v30 = vld [vmem:[%s11063_s0 + $0x1d0] sm:$0xff]  ;;  %v155_v31 = vld [vmem:[%s11063_s0 + $0x1d8] sm:$0xff] }
  0x50   :  { %v189_v34 = vpack.c.bf16 %v155_v31, %v154_v30  ;;  %v158_v36 = vld [vmem:[%s11063_s0 + $0x1f0] sm:$0xff]  ;;  %v159_v37 = vld [vmem:[%s11063_s0 + $0x1f8] sm:$0xff] }
  0x51   :  { %v7827_v42 = vld [vmem:[#allocation9] ss:$0 sm:$0xff] }
  0x54   :  { %6693 = vmatmul.mubr.msk.bf16.gmra.mxu0 %vm194_vm2, %v165_v26  ;;  %v152_v26 = vld [vmem:[%s11063_s0 + $0x1c0] sm:$0xff] }
  0x55   :  { %6696 = vmatprep.mubr.msk.bf16.mxu0 %vm194_vm2, %v166_v27  ;;  %v153_v27 = vld [vmem:[%s11063_s0 + $0x1c8] sm:$0xff] }
  0x56   :  { %v188_v29 = vpack.c.bf16 %v153_v27, %v152_v26 }
  0x5c   :  { %6697 = vmatmul.mubr.msk.bf16.gmra.mxu0 %vm194_vm2, %v167_v32  ;;  %v156_v32 = vld [vmem:[%s11063_s0 + $0x1e0] sm:$0xff] }
  0x5d   :  { %6700 = vmatprep.mubr.msk.bf16.mxu0 %vm194_vm2, %v168_v33  ;;  %v157_v33 = vld [vmem:[%s11063_s0 + $0x1e8] sm:$0xff] }
  0x5e   :  { %v190_v35 = vpack.c.bf16 %v157_v33, %v156_v32 }
  0x64   :  { %6701 = vmatmul.mubr.msk.bf16.gmra.mxu0 %vm194_vm2, %v169_v38  ;;  %v191_v38 = vpack.c.bf16 %v159_v37, %v158_v36 }
  0x65   :  { %6704 = vmatprep.mubr.msk.bf16.mxu0 %vm194_vm2, %v170_v39  ;;  %v7033_v39 = vld [vmem:[#allocation6] sm:$0xff]  }
  0x66   :  { %6814 = vmatprep.subr.bf16.mxu0 %v7033_v39 }
  0x6c   :  { %6705 = vmatmul.mubr.msk.bf16.gmra.mxu0 %vm194_vm2, %v171_v44 }
  0x6d   :  { %6708 = vmatprep.mubr.msk.bf16.mxu0 %vm194_vm2, %v172_v45 }
  0x74   :  { %6709 = vmatmul.mubr.msk.bf16.gmra.mxu0 %vm194_vm2, %v173_v50 }
  0x75   :  { %6712 = vmatprep.mubr.msk.bf16.mxu0 %vm194_vm2, %v174_v51 }
  0x7c   :  { %6713 = vmatmul.mubr.msk.bf16.gmra.mxu0 %vm194_vm2, %v175_v56 }
  0x7d   :  { %6716 = vmatprep.mubr.msk.bf16.mxu0 %vm194_vm2, %v176_v57 }
  0x84   :  { %6717 = vmatmul.mubr.msk.bf16.gmra.mxu0 %vm194_vm2, %v177_v62 }
  0x85   :  { %6720 = vmatprep.mubr.msk.bf16.mxu0 %vm194_vm2, %v178_v63 }
  0x8c   :  { %6721 = vmatmul.mubr.msk.bf16.gmra.mxu0 %vm194_vm2, %v179_v4 }
  0x8d   :  { %6724 = vmatprep.mubr.msk.bf16.mxu0 %vm194_vm2, %v180_v5 }
  0x94   :  { %6725 = vmatmul.mubr.msk.bf16.gmra.mxu0 %vm194_vm2, %v181_v10 }
  0x95   :  { %6728 = vmatprep.mubr.msk.bf16.mxu0 %vm194_vm2, %v182_v11 }
  0x9c   :  { %6729 = vmatmul.mubr.msk.bf16.gmra.mxu0 %vm194_vm2, %v183_v16 }
  0x9d   :  { %6732 = vmatprep.mubr.msk.bf16.mxu0 %vm194_vm2, %v184_v17 }
  0xa4   :  { %6733 = vmatmul.mubr.msk.bf16.gmra.mxu0 %vm194_vm2, %v185_v22 }
  0xa5   :  { %6736 = vmatprep.mubr.msk.bf16.mxu0 %vm194_vm2, %v186_v23 }
  0xac   :  { %6737 = vmatmul.mubr.msk.bf16.gmra.mxu0 %vm194_vm2, %v187_v28 }
  0xad   :  { %6740 = vmatprep.mubr.msk.bf16.mxu0 %vm194_vm2, %v188_v29 }
  0xb4   :  { %6741 = vmatmul.mubr.msk.bf16.gmra.mxu0 %vm194_vm2, %v189_v34 }
  0xb5   :  { %6744 = vmatprep.mubr.msk.bf16.mxu0 %vm194_vm2, %v190_v35 }
  0xbc   :  { %6745 = vmatmul.mubr.msk.bf16.gmra.mxu0 %vm194_vm2, %v191_v38 }
 0x104   :  { %v6686_v40 = vpop.f32.mrf.mxu0 }
 0x105   :  { %v341_v46 = vadd.f32 %v6686_v40, %v7827_v42 }
 0x106   :  { %v332_v41 = vpop.f32.mrf.mxu0 }
 0x107   :  { %v333_v44 = vadd.f32 %v332_v41, %v7827_v42  ;;  %v589_v53 = vmax.f32 %v341_v46, 0.0 }
 0x108   :  { %v6687_v43 = vpop.f32.mrf.mxu0 }
 0x109   :  { %v344_v45 = vadd.f32 %v6687_v43, %v7827_v42  ;;  %v587_v51 = vmax.f32 %v333_v44, 0.0 }
 0x10a   :  { %v335_v47 = vpop.f32.mrf.mxu0 }
 0x10b   :  { %v336_v48 = vadd.f32 %v335_v47, %v7827_v42  ;;  %v590_v49 = vmax.f32 %v344_v45, 0.0 }
 0x10c   :  { %v6690_v50 = vpop.f32.mrf.mxu0 }
 0x10d   :  { %v588_v52 = vmax.f32 %v336_v48, 0.0  ;;  %v357_v54 = vadd.f32 %v6690_v50, %v7827_v42  ;;  %v652_v58 = vpack.c.bf16 %v590_v49, %v589_v53 }
 0x10e   :  { %v348_v55 = vpop.f32.mrf.mxu0 }
 0x10f   :  { %v651_v56 = vpack.c.bf16 %v588_v52, %v587_v51  ;;  %v349_v57 = vadd.f32 %v348_v55, %v7827_v42  ;;  %v593_v61 = vmax.f32 %v357_v54, 0.0 }
 0x110   :  { %v6691_v59 = vpop.f32.mrf.mxu0 }
 0x111   :  { %v360_v60 = vadd.f32 %v6691_v59, %v7827_v42  ;;  %6750 = vmatprep.mubr.msk.bf16.mxu0 %vm685_vm4, %v651_v56  ;;  %v591_v63 = vmax.f32 %v349_v57, 0.0 }
 0x112   :  { %v351_v62 = vpop.f32.mrf.mxu0  ;;  %6751 = vmatmul.mubr.msk.bf16.vlgmr.msra.gmra.mxu0 %vm685_vm4, %v652_v58 }
 0x113   :  { %v594_v0 = vmax.f32 %v360_v60, 0.0  ;;  %v352_v1 = vadd.f32 %v351_v62, %v7827_v42  ;;  %6815 = vmatpush3.bf16.msra.mxu0 %v7033_v39 }
 0x114   :  { %v6694_v2 = vpop.f32.mrf.mxu0 }
 0x115   :  { %v592_v3 = vmax.f32 %v352_v1, 0.0  ;;  %v654_v4 = vpack.c.bf16 %v594_v0, %v593_v61  ;;  %v373_v5 = vadd.f32 %v6694_v2, %v7827_v42 }
 0x116   :  { %v364_v6 = vpop.f32.mrf.mxu0 }
 0x117   :  { %v653_v7 = vpack.c.bf16 %v592_v3, %v591_v63  ;;  %v365_v8 = vadd.f32 %v364_v6, %v7827_v42  ;;  %v597_v11 = vmax.f32 %v373_v5, 0.0 }
 0x118   :  { %v6695_v9 = vpop.f32.mrf.mxu0 }
 0x119   :  { %v376_v10 = vadd.f32 %v6695_v9, %v7827_v42  ;;  %6754 = vmatprep.mubr.msk.bf16.mxu0 %vm685_vm4, %v653_v7  ;;  %v595_v13 = vmax.f32 %v365_v8, 0.0 }
 0x11a   :  { %v367_v12 = vpop.f32.mrf.mxu0  ;;  %6755 = vmatmul.mubr.msk.bf16.gmra.mxu0 %vm685_vm4, %v654_v4 }
 0x11b   :  { %v598_v14 = vmax.f32 %v376_v10, 0.0  ;;  %v368_v15 = vadd.f32 %v367_v12, %v7827_v42 }
 0x11c   :  { %v6698_v16 = vpop.f32.mrf.mxu0 }
 0x11d   :  { %v596_v17 = vmax.f32 %v368_v15, 0.0  ;;  %v656_v18 = vpack.c.bf16 %v598_v14, %v597_v11  ;;  %v389_v19 = vadd.f32 %v6698_v16, %v7827_v42 }
 0x11e   :  { %v380_v20 = vpop.f32.mrf.mxu0 }
 0x11f   :  { %v655_v21 = vpack.c.bf16 %v596_v17, %v595_v13  ;;  %v381_v22 = vadd.f32 %v380_v20, %v7827_v42  ;;  %v601_v25 = vmax.f32 %v389_v19, 0.0 }
 0x120   :  { %v6699_v23 = vpop.f32.mrf.mxu0 }
 0x121   :  { %v392_v24 = vadd.f32 %v6699_v23, %v7827_v42  ;;  %6758 = vmatprep.mubr.msk.bf16.mxu0 %vm685_vm4, %v655_v21  ;;  %v599_v27 = vmax.f32 %v381_v22, 0.0 }
 0x122   :  { %v383_v26 = vpop.f32.mrf.mxu0  ;;  %6759 = vmatmul.mubr.msk.bf16.gmra.mxu0 %vm685_vm4, %v656_v18 }
 0x123   :  { %v602_v28 = vmax.f32 %v392_v24, 0.0  ;;  %v384_v29 = vadd.f32 %v383_v26, %v7827_v42 }
 0x124   :  { %v6702_v30 = vpop.f32.mrf.mxu0 }
 0x125   :  { %v600_v31 = vmax.f32 %v384_v29, 0.0  ;;  %v658_v32 = vpack.c.bf16 %v602_v28, %v601_v25  ;;  %v405_v33 = vadd.f32 %v6702_v30, %v7827_v42 }
 0x126   :  { %v396_v34 = vpop.f32.mrf.mxu0 }
 0x127   :  { %v657_v35 = vpack.c.bf16 %v600_v31, %v599_v27  ;;  %v397_v36 = vadd.f32 %v396_v34, %v7827_v42  ;;  %v605_v39 = vmax.f32 %v405_v33, 0.0 }
 0x128   :  { %v6703_v37 = vpop.f32.mrf.mxu0 }
 0x129   :  { %v408_v38 = vadd.f32 %v6703_v37, %v7827_v42  ;;  %6762 = vmatprep.mubr.msk.bf16.mxu0 %vm685_vm4, %v657_v35  ;;  %v603_v41 = vmax.f32 %v397_v36, 0.0 }
 0x12a   :  { %v399_v40 = vpop.f32.mrf.mxu0  ;;  %6763 = vmatmul.mubr.msk.bf16.gmra.mxu0 %vm685_vm4, %v658_v32 }
 0x12b   :  { %v606_v43 = vmax.f32 %v408_v38, 0.0  ;;  %v400_v44 = vadd.f32 %v399_v40, %v7827_v42 }
 0x12c   :  { %v6706_v45 = vpop.f32.mrf.mxu0 }
 0x12d   :  { %v604_v46 = vmax.f32 %v400_v44, 0.0  ;;  %v660_v47 = vpack.c.bf16 %v606_v43, %v605_v39  ;;  %v421_v48 = vadd.f32 %v6706_v45, %v7827_v42 }
 0x12e   :  { %v412_v49 = vpop.f32.mrf.mxu0 }
 0x12f   :  { %v659_v50 = vpack.c.bf16 %v604_v46, %v603_v41  ;;  %v413_v51 = vadd.f32 %v412_v49, %v7827_v42  ;;  %v609_v54 = vmax.f32 %v421_v48, 0.0 }
 0x130   :  { %v6707_v52 = vpop.f32.mrf.mxu0 }
 0x131   :  { %6766 = vmatprep.mubr.msk.bf16.mxu0 %vm685_vm4, %v659_v50  ;;  %v424_v53 = vadd.f32 %v6707_v52, %v7827_v42  ;;  %v607_v56 = vmax.f32 %v413_v51, 0.0 }
 0x132   :  { %6767 = vmatmul.mubr.msk.bf16.gmra.mxu0 %vm685_vm4, %v660_v47  ;;  %v415_v55 = vpop.f32.mrf.mxu0 }
 0x133   :  { %v610_v57 = vmax.f32 %v424_v53, 0.0  ;;  %v416_v58 = vadd.f32 %v415_v55, %v7827_v42 }
 0x134   :  { %v6710_v59 = vpop.f32.mrf.mxu0 }
 0x135   :  { %v608_v60 = vmax.f32 %v416_v58, 0.0  ;;  %v662_v61 = vpack.c.bf16 %v610_v57, %v609_v54  ;;  %v437_v62 = vadd.f32 %v6710_v59, %v7827_v42 }
 0x136   :  { %v428_v63 = vpop.f32.mrf.mxu0 }
 0x137   :  { %v661_v0 = vpack.c.bf16 %v608_v60, %v607_v56  ;;  %v429_v1 = vadd.f32 %v428_v63, %v7827_v42  ;;  %v613_v4 = vmax.f32 %v437_v62, 0.0 }
 0x138   :  { %v6711_v2 = vpop.f32.mrf.mxu0 }
 0x139   :  { %6770 = vmatprep.mubr.msk.bf16.mxu0 %vm685_vm4, %v661_v0  ;;  %v440_v3 = vadd.f32 %v6711_v2, %v7827_v42  ;;  %v611_v6 = vmax.f32 %v429_v1, 0.0 }
 0x13a   :  { %6771 = vmatmul.mubr.msk.bf16.gmra.mxu0 %vm685_vm4, %v662_v61  ;;  %v431_v5 = vpop.f32.mrf.mxu0 }
 0x13b   :  { %v614_v7 = vmax.f32 %v440_v3, 0.0  ;;  %v432_v8 = vadd.f32 %v431_v5, %v7827_v42 }
 0x13c   :  { %v6714_v9 = vpop.f32.mrf.mxu0 }
 0x13d   :  { %v612_v10 = vmax.f32 %v432_v8, 0.0  ;;  %v664_v11 = vpack.c.bf16 %v614_v7, %v613_v4  ;;  %v453_v12 = vadd.f32 %v6714_v9, %v7827_v42 }
 0x13e   :  { %v444_v13 = vpop.f32.mrf.mxu0 }
 0x13f   :  { %v663_v14 = vpack.c.bf16 %v612_v10, %v611_v6  ;;  %v445_v15 = vadd.f32 %v444_v13, %v7827_v42  ;;  %v617_v18 = vmax.f32 %v453_v12, 0.0 }
 0x140   :  { %v6715_v16 = vpop.f32.mrf.mxu0 }
 0x141   :  { %6774 = vmatprep.mubr.msk.bf16.mxu0 %vm685_vm4, %v663_v14  ;;  %v456_v17 = vadd.f32 %v6715_v16, %v7827_v42  ;;  %v615_v20 = vmax.f32 %v445_v15, 0.0 }
 0x142   :  { %6775 = vmatmul.mubr.msk.bf16.gmra.mxu0 %vm685_vm4, %v664_v11  ;;  %v447_v19 = vpop.f32.mrf.mxu0 }
 0x143   :  { %v618_v21 = vmax.f32 %v456_v17, 0.0  ;;  %v448_v22 = vadd.f32 %v447_v19, %v7827_v42 }
 0x144   :  { %v6718_v23 = vpop.f32.mrf.mxu0 }
 0x145   :  { %v616_v24 = vmax.f32 %v448_v22, 0.0  ;;  %v666_v25 = vpack.c.bf16 %v618_v21, %v617_v18  ;;  %v469_v26 = vadd.f32 %v6718_v23, %v7827_v42 }
 0x146   :  { %v460_v27 = vpop.f32.mrf.mxu0 }
 0x147   :  { %v665_v28 = vpack.c.bf16 %v616_v24, %v615_v20  ;;  %v461_v29 = vadd.f32 %v460_v27, %v7827_v42  ;;  %v621_v32 = vmax.f32 %v469_v26, 0.0 }
 0x148   :  { %v6719_v30 = vpop.f32.mrf.mxu0 }
 0x149   :  { %6778 = vmatprep.mubr.msk.bf16.mxu0 %vm685_vm4, %v665_v28  ;;  %v472_v31 = vadd.f32 %v6719_v30, %v7827_v42  ;;  %v619_v34 = vmax.f32 %v461_v29, 0.0 }
 0x14a   :  { %6779 = vmatmul.mubr.msk.bf16.gmra.mxu0 %vm685_vm4, %v666_v25  ;;  %v463_v33 = vpop.f32.mrf.mxu0 }
 0x14b   :  { %v622_v35 = vmax.f32 %v472_v31, 0.0  ;;  %v464_v36 = vadd.f32 %v463_v33, %v7827_v42 }
 0x14c   :  { %v6722_v37 = vpop.f32.mrf.mxu0 }
 0x14d   :  { %v620_v38 = vmax.f32 %v464_v36, 0.0  ;;  %v668_v39 = vpack.c.bf16 %v622_v35, %v621_v32  ;;  %v485_v40 = vadd.f32 %v6722_v37, %v7827_v42 }
 0x14e   :  { %v476_v41 = vpop.f32.mrf.mxu0 }
 0x14f   :  { %v667_v43 = vpack.c.bf16 %v620_v38, %v619_v34  ;;  %v477_v44 = vadd.f32 %v476_v41, %v7827_v42  ;;  %v625_v47 = vmax.f32 %v485_v40, 0.0 }
 0x150   :  { %v6723_v45 = vpop.f32.mrf.mxu0 }
 0x151   :  { %6782 = vmatprep.mubr.msk.bf16.mxu1 %vm685_vm4, %v667_v43  ;;  %v488_v46 = vadd.f32 %v6723_v45, %v7827_v42  ;;  %v623_v49 = vmax.f32 %v477_v44, 0.0 }
 0x152   :  { %6783 = vmatmul.mubr.msk.bf16.vlgmr.msra.gmra.mxu1 %vm685_vm4, %v668_v39  ;;  %v479_v48 = vpop.f32.mrf.mxu0 }
 0x153   :  { %v626_v50 = vmax.f32 %v488_v46, 0.0  ;;  %v480_v51 = vadd.f32 %v479_v48, %v7827_v42 }
 0x154   :  { %v6726_v52 = vpop.f32.mrf.mxu0 }
 0x155   :  { %v624_v53 = vmax.f32 %v480_v51, 0.0  ;;  %v670_v54 = vpack.c.bf16 %v626_v50, %v625_v47  ;;  %v501_v55 = vadd.f32 %v6726_v52, %v7827_v42 }
 0x156   :  { %v492_v56 = vpop.f32.mrf.mxu0 }
 0x157   :  { %v669_v57 = vpack.c.bf16 %v624_v53, %v623_v49  ;;  %v493_v58 = vadd.f32 %v492_v56, %v7827_v42  ;;  %v629_v61 = vmax.f32 %v501_v55, 0.0 }
 0x158   :  { %v6727_v59 = vpop.f32.mrf.mxu0 }
 0x159   :  { %6786 = vmatprep.mubr.msk.bf16.mxu1 %vm685_vm4, %v669_v57  ;;  %v504_v60 = vadd.f32 %v6727_v59, %v7827_v42  ;;  %v627_v63 = vmax.f32 %v493_v58, 0.0 }
 0x15a   :  { %6787 = vmatmul.mubr.msk.bf16.gmra.mxu1 %vm685_vm4, %v670_v54  ;;  %v495_v62 = vpop.f32.mrf.mxu0 }
 0x15b   :  { %v630_v0 = vmax.f32 %v504_v60, 0.0  ;;  %v496_v1 = vadd.f32 %v495_v62, %v7827_v42 }
 0x15c   :  { %v6730_v2 = vpop.f32.mrf.mxu0 }
 0x15d   :  { %v628_v3 = vmax.f32 %v496_v1, 0.0  ;;  %v672_v4 = vpack.c.bf16 %v630_v0, %v629_v61  ;;  %v517_v5 = vadd.f32 %v6730_v2, %v7827_v42 }
 0x15e   :  { %v508_v6 = vpop.f32.mrf.mxu0 }
 0x15f   :  { %v671_v7 = vpack.c.bf16 %v628_v3, %v627_v63  ;;  %v509_v8 = vadd.f32 %v508_v6, %v7827_v42  ;;  %v633_v11 = vmax.f32 %v517_v5, 0.0 }
 0x160   :  { %v6731_v9 = vpop.f32.mrf.mxu0 }
 0x161   :  { %v520_v10 = vadd.f32 %v6731_v9, %v7827_v42  ;;  %6790 = vmatprep.mubr.msk.bf16.mxu1 %vm685_vm4, %v671_v7  ;;  %v631_v13 = vmax.f32 %v509_v8, 0.0 }
 0x162   :  { %v511_v12 = vpop.f32.mrf.mxu0  ;;  %6791 = vmatmul.mubr.msk.bf16.gmra.mxu1 %vm685_vm4, %v672_v4 }
 0x163   :  { %v634_v14 = vmax.f32 %v520_v10, 0.0  ;;  %v512_v15 = vadd.f32 %v511_v12, %v7827_v42  ;;  %v7034_v12 = vld [vmem:[%s11067_s4 + $0x8] sm:$0xff]  }
 0x164   :  { %v6734_v16 = vpop.f32.mrf.mxu0  ;;  %6880 = vmatprep.subr.bf16.mxu1 %v7034_v12 }
 0x165   :  { %v632_v17 = vmax.f32 %v512_v15, 0.0  ;;  %v674_v18 = vpack.c.bf16 %v634_v14, %v633_v11  ;;  %v533_v19 = vadd.f32 %v6734_v16, %v7827_v42  ;;  %6881 = vmatpush3.bf16.msra.mxu1 %v7034_v12  ;;  %v7928_v15 = vld [vmem:[#allocation9 + $0x1] ss:$0 sm:$0xff] }
 0x166   :  { %v524_v20 = vpop.f32.mrf.mxu0 }
 0x167   :  { %v673_v21 = vpack.c.bf16 %v632_v17, %v631_v13  ;;  %v525_v22 = vadd.f32 %v524_v20, %v7827_v42  ;;  %v637_v25 = vmax.f32 %v533_v19, 0.0  ;;  %v7035_v20 = vld [vmem:[%s11067_s4] sm:$0xff]  }
 0x168   :  { %v6735_v23 = vpop.f32.mrf.mxu0  ;;  %6882 = vmatprep.subr.bf16.mxu1 %v7035_v20 }
 0x169   :  { %v536_v24 = vadd.f32 %v6735_v23, %v7827_v42  ;;  %6794 = vmatprep.mubr.msk.bf16.mxu1 %vm685_vm4, %v673_v21  ;;  %v635_v27 = vmax.f32 %v525_v22, 0.0  ;;  %6883 = vmatpush3.bf16.msra.mxu1 %v7035_v20 }
 0x16a   :  { %v527_v26 = vpop.f32.mrf.mxu0  ;;  %6795 = vmatmul.mubr.msk.bf16.gmra.mxu1 %vm685_vm4, %v674_v18 }
 0x16b   :  { %v638_v28 = vmax.f32 %v536_v24, 0.0  ;;  %v528_v29 = vadd.f32 %v527_v26, %v7827_v42 }
 0x16c   :  { %v6738_v30 = vpop.f32.mrf.mxu0 }
 0x16d   :  { %v636_v31 = vmax.f32 %v528_v29, 0.0  ;;  %v676_v32 = vpack.c.bf16 %v638_v28, %v637_v25  ;;  %v549_v33 = vadd.f32 %v6738_v30, %v7827_v42 }
 0x16e   :  { %v540_v34 = vpop.f32.mrf.mxu0 }
 0x16f   :  { %v675_v35 = vpack.c.bf16 %v636_v31, %v635_v27  ;;  %v541_v36 = vadd.f32 %v540_v34, %v7827_v42  ;;  %v641_v39 = vmax.f32 %v549_v33, 0.0 }
 0x170   :  { %v6739_v37 = vpop.f32.mrf.mxu0 }
 0x171   :  { %v552_v38 = vadd.f32 %v6739_v37, %v7827_v42  ;;  %6798 = vmatprep.mubr.msk.bf16.mxu1 %vm685_vm4, %v675_v35  ;;  %v639_v41 = vmax.f32 %v541_v36, 0.0 }
 0x172   :  { %v543_v40 = vpop.f32.mrf.mxu0  ;;  %6799 = vmatmul.mubr.msk.bf16.gmra.mxu1 %vm685_vm4, %v676_v32 }
 0x173   :  { %v642_v43 = vmax.f32 %v552_v38, 0.0  ;;  %v544_v44 = vadd.f32 %v543_v40, %v7827_v42 }
 0x174   :  { %v6742_v45 = vpop.f32.mrf.mxu0 }
 0x175   :  { %v640_v46 = vmax.f32 %v544_v44, 0.0  ;;  %v678_v47 = vpack.c.bf16 %v642_v43, %v641_v39  ;;  %v565_v48 = vadd.f32 %v6742_v45, %v7827_v42 }
 0x176   :  { %v556_v49 = vpop.f32.mrf.mxu0 }
 0x177   :  { %v677_v50 = vpack.c.bf16 %v640_v46, %v639_v41  ;;  %v557_v51 = vadd.f32 %v556_v49, %v7827_v42  ;;  %v645_v54 = vmax.f32 %v565_v48, 0.0 }
 0x178   :  { %v6743_v52 = vpop.f32.mrf.mxu0 }
 0x179   :  { %v568_v53 = vadd.f32 %v6743_v52, %v7827_v42  ;;  %6802 = vmatprep.mubr.msk.bf16.mxu1 %vm685_vm4, %v677_v50  ;;  %v643_v56 = vmax.f32 %v557_v51, 0.0 }
 0x17a   :  { %v559_v55 = vpop.f32.mrf.mxu0  ;;  %6803 = vmatmul.mubr.msk.bf16.gmra.mxu1 %vm685_vm4, %v678_v47 }
 0x17b   :  { %v646_v57 = vmax.f32 %v568_v53, 0.0  ;;  %v560_v58 = vadd.f32 %v559_v55, %v7827_v42 }
 0x17c   :  { %v6746_v59 = vpop.f32.mrf.mxu0 }
 0x17d   :  { %v644_v60 = vmax.f32 %v560_v58, 0.0  ;;  %v680_v61 = vpack.c.bf16 %v646_v57, %v645_v54  ;;  %v581_v62 = vadd.f32 %v6746_v59, %v7827_v42 }
 0x17e   :  { %v572_v63 = vpop.f32.mrf.mxu0 }
 0x17f   :  { %v679_v0 = vpack.c.bf16 %v644_v60, %v643_v56  ;;  %v573_v1 = vadd.f32 %v572_v63, %v7827_v42  ;;  %v649_v4 = vmax.f32 %v581_v62, 0.0 }
 0x180   :  { %v6747_v2 = vpop.f32.mrf.mxu0 }
 0x181   :  { %v584_v3 = vadd.f32 %v6747_v2, %v7827_v42  ;;  %6806 = vmatprep.mubr.msk.bf16.mxu1 %vm685_vm4, %v679_v0  ;;  %v647_v6 = vmax.f32 %v573_v1, 0.0 }
 0x182   :  { %v575_v5 = vpop.f32.mrf.mxu0  ;;  %6807 = vmatmul.mubr.msk.bf16.gmra.mxu1 %vm685_vm4, %v680_v61 }
 0x183   :  { %v650_v7 = vmax.f32 %v584_v3, 0.0  ;;  %v576_v8 = vadd.f32 %v575_v5, %v7827_v42 }
 0x185   :  { %v648_v9 = vmax.f32 %v576_v8, 0.0  ;;  %v682_v10 = vpack.c.bf16 %v650_v7, %v649_v4 }
 0x187   :  { %v681_v11 = vpack.c.bf16 %v648_v9, %v647_v6 }
 0x189   :  { %6810 = vmatprep.mubr.msk.bf16.mxu1 %vm685_vm4, %v681_v11 }
 0x18a   :  { %6811 = vmatmul.mubr.msk.bf16.gmra.mxu1 %vm685_vm4, %v682_v10 }
 0x1d2   :  { %v6752_v13 = vpop.f32.mrf.mxu0 }
 0x1d3   :  { %v829_v18 = vadd.f32 %v6752_v13, %v7928_v15 }
 0x1d4   :  { %v820_v14 = vpop.f32.mrf.mxu0 }
 0x1d5   :  { %v821_v42 = vadd.f32 %v820_v14, %v7928_v15  ;;  %v1077_v26 = vmax.f32 %v829_v18, 0.0 }
 0x1d6   :  { %v6753_v16 = vpop.f32.mrf.mxu0 }
 0x1d7   :  { %v832_v17 = vadd.f32 %v6753_v16, %v7928_v15  ;;  %v1075_v24 = vmax.f32 %v821_v42, 0.0 }
 0x1d8   :  { %v823_v19 = vpop.f32.mrf.mxu0 }
 0x1d9   :  { %v824_v21 = vadd.f32 %v823_v19, %v7928_v15  ;;  %v1078_v22 = vmax.f32 %v832_v17, 0.0 }
 0x1da   :  { %v6756_v23 = vpop.f32.mrf.mxu0 }
 0x1db   :  { %v1076_v25 = vmax.f32 %v824_v21, 0.0  ;;  %v1140_v29 = vpack.c.bf16 %v1078_v22, %v1077_v26  ;;  %v845_v33 = vadd.f32 %v6756_v23, %v7928_v15 }
 0x1dc   :  { %v836_v27 = vpop.f32.mrf.mxu0 }
 0x1dd   :  { %v1139_v28 = vpack.c.bf16 %v1076_v25, %v1075_v24  ;;  %v837_v31 = vadd.f32 %v836_v27, %v7928_v15  ;;  %v1081_v40 = vmax.f32 %v845_v33, 0.0 }
 0x1de   :  { %v6757_v30 = vpop.f32.mrf.mxu0 }
 0x1df   :  { %v848_v32 = vadd.f32 %v6757_v30, %v7928_v15  ;;  %6816 = vmatprep.mubr.msk.bf16.mxu0 %vm1180_vm5, %v1139_v28  ;;  %v1079_v38 = vmax.f32 %v837_v31, 0.0 }
 0x1e0   :  { %v839_v34 = vpop.f32.mrf.mxu0  ;;  %6817 = vmatmul.mubr.msk.bf16.vlgmr.msra.gmra.mxu0 %vm1180_vm5, %v1140_v29 }
 0x1e1   :  { %v840_v35 = vadd.f32 %v839_v34, %v7928_v15  ;;  %v1082_v36 = vmax.f32 %v848_v32, 0.0 }
 0x1e2   :  { %v6760_v37 = vpop.f32.mrf.mxu0 }
 0x1e3   :  { %v1080_v39 = vmax.f32 %v840_v35, 0.0  ;;  %v861_v41 = vadd.f32 %v6760_v37, %v7928_v15  ;;  %v1142_v46 = vpack.c.bf16 %v1082_v36, %v1081_v40 }
 0x1e4   :  { %v852_v43 = vpop.f32.mrf.mxu0 }
 0x1e5   :  { %v1141_v44 = vpack.c.bf16 %v1080_v39, %v1079_v38  ;;  %v853_v45 = vadd.f32 %v852_v43, %v7928_v15  ;;  %v1085_v49 = vmax.f32 %v861_v41, 0.0 }
 0x1e6   :  { %v6761_v47 = vpop.f32.mrf.mxu0 }
 0x1e7   :  { %v864_v48 = vadd.f32 %v6761_v47, %v7928_v15  ;;  %6820 = vmatprep.mubr.msk.bf16.mxu0 %vm1180_vm5, %v1141_v44  ;;  %v1083_v51 = vmax.f32 %v853_v45, 0.0 }
 0x1e8   :  { %v855_v50 = vpop.f32.mrf.mxu0  ;;  %6821 = vmatmul.mubr.msk.bf16.gmra.mxu0 %vm1180_vm5, %v1142_v46 }
 0x1e9   :  { %v1086_v52 = vmax.f32 %v864_v48, 0.0  ;;  %v856_v53 = vadd.f32 %v855_v50, %v7928_v15 }
 0x1ea   :  { %v6764_v54 = vpop.f32.mrf.mxu0 }
 0x1eb   :  { %v1084_v55 = vmax.f32 %v856_v53, 0.0  ;;  %v1144_v56 = vpack.c.bf16 %v1086_v52, %v1085_v49  ;;  %v877_v57 = vadd.f32 %v6764_v54, %v7928_v15 }
 0x1ec   :  { %v868_v58 = vpop.f32.mrf.mxu0 }
 0x1ed   :  { %v1143_v59 = vpack.c.bf16 %v1084_v55, %v1083_v51  ;;  %v869_v60 = vadd.f32 %v868_v58, %v7928_v15  ;;  %v1089_v63 = vmax.f32 %v877_v57, 0.0 }
 0x1ee   :  { %v6765_v61 = vpop.f32.mrf.mxu0 }
 0x1ef   :  { %v880_v62 = vadd.f32 %v6765_v61, %v7928_v15  ;;  %6824 = vmatprep.mubr.msk.bf16.mxu0 %vm1180_vm5, %v1143_v59  ;;  %v1087_v1 = vmax.f32 %v869_v60, 0.0 }
 0x1f0   :  { %v871_v0 = vpop.f32.mrf.mxu0  ;;  %6825 = vmatmul.mubr.msk.bf16.gmra.mxu0 %vm1180_vm5, %v1144_v56 }
 0x1f1   :  { %v1090_v2 = vmax.f32 %v880_v62, 0.0  ;;  %v872_v3 = vadd.f32 %v871_v0, %v7928_v15 }
 0x1f2   :  { %v6768_v4 = vpop.f32.mrf.mxu0 }
 0x1f3   :  { %v1088_v5 = vmax.f32 %v872_v3, 0.0  ;;  %v1146_v6 = vpack.c.bf16 %v1090_v2, %v1089_v63  ;;  %v893_v7 = vadd.f32 %v6768_v4, %v7928_v15 }
 0x1f4   :  { %v884_v8 = vpop.f32.mrf.mxu0 }
 0x1f5   :  { %v1145_v9 = vpack.c.bf16 %v1088_v5, %v1087_v1  ;;  %v885_v10 = vadd.f32 %v884_v8, %v7928_v15  ;;  %v1093_v13 = vmax.f32 %v893_v7, 0.0 }
 0x1f6   :  { %v6769_v11 = vpop.f32.mrf.mxu0 }
 0x1f7   :  { %v896_v12 = vadd.f32 %v6769_v11, %v7928_v15  ;;  %6828 = vmatprep.mubr.msk.bf16.mxu0 %vm1180_vm5, %v1145_v9  ;;  %v1091_v16 = vmax.f32 %v885_v10, 0.0 }
 0x1f8   :  { %v887_v14 = vpop.f32.mrf.mxu0  ;;  %6829 = vmatmul.mubr.msk.bf16.gmra.mxu0 %vm1180_vm5, %v1146_v6 }
 0x1f9   :  { %v1094_v42 = vmax.f32 %v896_v12, 0.0  ;;  %v888_v17 = vadd.f32 %v887_v14, %v7928_v15 }
 0x1fa   :  { %v6772_v18 = vpop.f32.mrf.mxu0 }
 0x1fb   :  { %v1092_v19 = vmax.f32 %v888_v17, 0.0  ;;  %v1148_v20 = vpack.c.bf16 %v1094_v42, %v1093_v13  ;;  %v909_v21 = vadd.f32 %v6772_v18, %v7928_v15 }
 0x1fc   :  { %v900_v22 = vpop.f32.mrf.mxu0 }
 0x1fd   :  { %v1147_v23 = vpack.c.bf16 %v1092_v19, %v1091_v16  ;;  %v901_v24 = vadd.f32 %v900_v22, %v7928_v15  ;;  %v1097_v27 = vmax.f32 %v909_v21, 0.0 }
 0x1fe   :  { %v6773_v25 = vpop.f32.mrf.mxu0 }
 0x1ff   :  { %6832 = vmatprep.mubr.msk.bf16.mxu0 %vm1180_vm5, %v1147_v23  ;;  %v912_v26 = vadd.f32 %v6773_v25, %v7928_v15  ;;  %v1095_v29 = vmax.f32 %v901_v24, 0.0 }
 0x200   :  { %6833 = vmatmul.mubr.msk.bf16.gmra.mxu0 %vm1180_vm5, %v1148_v20  ;;  %v903_v28 = vpop.f32.mrf.mxu0 }
 0x201   :  { %v1098_v30 = vmax.f32 %v912_v26, 0.0  ;;  %v904_v31 = vadd.f32 %v903_v28, %v7928_v15 }
 0x202   :  { %v6776_v32 = vpop.f32.mrf.mxu0 }
 0x203   :  { %v1096_v33 = vmax.f32 %v904_v31, 0.0  ;;  %v1150_v34 = vpack.c.bf16 %v1098_v30, %v1097_v27  ;;  %v925_v35 = vadd.f32 %v6776_v32, %v7928_v15 }
 0x204   :  { %v916_v36 = vpop.f32.mrf.mxu0 }
 0x205   :  { %v1149_v37 = vpack.c.bf16 %v1096_v33, %v1095_v29  ;;  %v917_v38 = vadd.f32 %v916_v36, %v7928_v15  ;;  %v1101_v41 = vmax.f32 %v925_v35, 0.0 }
 0x206   :  { %v6777_v39 = vpop.f32.mrf.mxu0 }
 0x207   :  { %6836 = vmatprep.mubr.msk.bf16.mxu0 %vm1180_vm5, %v1149_v37  ;;  %v928_v40 = vadd.f32 %v6777_v39, %v7928_v15  ;;  %v1099_v44 = vmax.f32 %v917_v38, 0.0 }
 0x208   :  { %6837 = vmatmul.mubr.msk.bf16.gmra.mxu0 %vm1180_vm5, %v1150_v34  ;;  %v919_v43 = vpop.f32.mrf.mxu0 }
 0x209   :  { %v1102_v45 = vmax.f32 %v928_v40, 0.0  ;;  %v920_v46 = vadd.f32 %v919_v43, %v7928_v15 }
 0x20a   :  { %v6780_v47 = vpop.f32.mrf.mxu0 }
 0x20b   :  { %v1100_v48 = vmax.f32 %v920_v46, 0.0  ;;  %v1152_v49 = vpack.c.bf16 %v1102_v45, %v1101_v41  ;;  %v941_v50 = vadd.f32 %v6780_v47, %v7928_v15 }
 0x20c   :  { %v932_v51 = vpop.f32.mrf.mxu0 }
 0x20d   :  { %v1151_v52 = vpack.c.bf16 %v1100_v48, %v1099_v44  ;;  %v933_v53 = vadd.f32 %v932_v51, %v7928_v15  ;;  %v1105_v56 = vmax.f32 %v941_v50, 0.0 }
 0x20e   :  { %v6781_v54 = vpop.f32.mrf.mxu0 }
 0x20f   :  { %6840 = vmatprep.mubr.msk.bf16.mxu0 %vm1180_vm5, %v1151_v52  ;;  %v944_v55 = vadd.f32 %v6781_v54, %v7928_v15  ;;  %v1103_v58 = vmax.f32 %v933_v53, 0.0 }
 0x210   :  { %6841 = vmatmul.mubr.msk.bf16.gmra.mxu0 %vm1180_vm5, %v1152_v49  ;;  %v935_v57 = vpop.f32.mrf.mxu0 }
 0x211   :  { %v1106_v59 = vmax.f32 %v944_v55, 0.0  ;;  %v936_v60 = vadd.f32 %v935_v57, %v7928_v15 }
 0x212   :  { %v6784_v61 = vpop.f32.mrf.mxu1 }
 0x213   :  { %v1104_v62 = vmax.f32 %v936_v60, 0.0  ;;  %v1154_v63 = vpack.c.bf16 %v1106_v59, %v1105_v56  ;;  %v957_v0 = vadd.f32 %v6784_v61, %v7928_v15 }
 0x214   :  { %v948_v1 = vpop.f32.mrf.mxu1 }
 0x215   :  { %v1153_v2 = vpack.c.bf16 %v1104_v62, %v1103_v58  ;;  %v949_v3 = vadd.f32 %v948_v1, %v7928_v15  ;;  %v1109_v6 = vmax.f32 %v957_v0, 0.0 }
 0x216   :  { %v6785_v4 = vpop.f32.mrf.mxu1 }
 0x217   :  { %6844 = vmatprep.mubr.msk.bf16.mxu0 %vm1180_vm5, %v1153_v2  ;;  %v960_v5 = vadd.f32 %v6785_v4, %v7928_v15  ;;  %v1107_v8 = vmax.f32 %v949_v3, 0.0 }
 0x218   :  { %6845 = vmatmul.mubr.msk.bf16.gmra.mxu0 %vm1180_vm5, %v1154_v63  ;;  %v951_v7 = vpop.f32.mrf.mxu1 }
 0x219   :  { %v1110_v9 = vmax.f32 %v960_v5, 0.0  ;;  %v952_v10 = vadd.f32 %v951_v7, %v7928_v15 }
 0x21a   :  { %v6788_v11 = vpop.f32.mrf.mxu1 }
 0x21b   :  { %v1108_v12 = vmax.f32 %v952_v10, 0.0  ;;  %v1156_v13 = vpack.c.bf16 %v1110_v9, %v1109_v6  ;;  %v973_v14 = vadd.f32 %v6788_v11, %v7928_v15 }
 0x21c   :  { %v964_v16 = vpop.f32.mrf.mxu1 }
 0x21d   :  { %v1155_v42 = vpack.c.bf16 %v1108_v12, %v1107_v8  ;;  %v965_v17 = vadd.f32 %v964_v16, %v7928_v15  ;;  %v1113_v20 = vmax.f32 %v973_v14, 0.0 }
 0x21e   :  { %v6789_v18 = vpop.f32.mrf.mxu1 }
 0x21f   :  { %6848 = vmatprep.mubr.msk.bf16.mxu0 %vm1180_vm5, %v1155_v42  ;;  %v976_v19 = vadd.f32 %v6789_v18, %v7928_v15  ;;  %v1111_v22 = vmax.f32 %v965_v17, 0.0 }
 0x220   :  { %6849 = vmatmul.mubr.msk.bf16.gmra.mxu0 %vm1180_vm5, %v1156_v13  ;;  %v967_v21 = vpop.f32.mrf.mxu1 }
 0x221   :  { %v1114_v23 = vmax.f32 %v976_v19, 0.0  ;;  %v968_v24 = vadd.f32 %v967_v21, %v7928_v15 }
 0x222   :  { %v6792_v25 = vpop.f32.mrf.mxu1 }
 0x223   :  { %v1112_v26 = vmax.f32 %v968_v24, 0.0  ;;  %v1158_v27 = vpack.c.bf16 %v1114_v23, %v1113_v20  ;;  %v989_v28 = vadd.f32 %v6792_v25, %v7928_v15 }
 0x224   :  { %v980_v29 = vpop.f32.mrf.mxu1 }
 0x225   :  { %v1157_v30 = vpack.c.bf16 %v1112_v26, %v1111_v22  ;;  %v981_v31 = vadd.f32 %v980_v29, %v7928_v15  ;;  %v1117_v34 = vmax.f32 %v989_v28, 0.0 }
 0x226   :  { %v6793_v32 = vpop.f32.mrf.mxu1 }
 0x227   :  { %6852 = vmatprep.mubr.msk.bf16.mxu0 %vm1180_vm5, %v1157_v30  ;;  %v992_v33 = vadd.f32 %v6793_v32, %v7928_v15  ;;  %v1115_v36 = vmax.f32 %v981_v31, 0.0 }
 0x228   :  { %6853 = vmatmul.mubr.msk.bf16.gmra.mxu0 %vm1180_vm5, %v1158_v27  ;;  %v983_v35 = vpop.f32.mrf.mxu1 }
 0x229   :  { %v1118_v37 = vmax.f32 %v992_v33, 0.0  ;;  %v984_v38 = vadd.f32 %v983_v35, %v7928_v15 }
 0x22a   :  { %v6796_v39 = vpop.f32.mrf.mxu1 }
 0x22b   :  { %v1116_v40 = vmax.f32 %v984_v38, 0.0  ;;  %v1160_v41 = vpack.c.bf16 %v1118_v37, %v1117_v34  ;;  %v1005_v43 = vadd.f32 %v6796_v39, %v7928_v15 }
 0x22c   :  { %v996_v44 = vpop.f32.mrf.mxu1 }
 0x22d   :  { %v1159_v45 = vpack.c.bf16 %v1116_v40, %v1115_v36  ;;  %v997_v46 = vadd.f32 %v996_v44, %v7928_v15  ;;  %v1121_v49 = vmax.f32 %v1005_v43, 0.0 }
 0x22e   :  { %v6797_v47 = vpop.f32.mrf.mxu1 }
 0x22f   :  { %v1008_v48 = vadd.f32 %v6797_v47, %v7928_v15  ;;  %6856 = vmatprep.mubr.msk.bf16.mxu0 %vm1180_vm5, %v1159_v45  ;;  %v1119_v51 = vmax.f32 %v997_v46, 0.0 }
 0x230   :  { %v999_v50 = vpop.f32.mrf.mxu1  ;;  %6857 = vmatmul.mubr.msk.bf16.gmra.mxu0 %vm1180_vm5, %v1160_v41 }
 0x231   :  { %v1122_v52 = vmax.f32 %v1008_v48, 0.0  ;;  %v1000_v53 = vadd.f32 %v999_v50, %v7928_v15  ;;  %v7036_v50 = vld [vmem:[%s11068_s5 + $0x18] sm:$0xff]  }
 0x232   :  { %v6800_v54 = vpop.f32.mrf.mxu1  ;;  %6948 = vmatprep.subr.bf16.mxu0 %v7036_v50 }
 0x233   :  { %v1120_v55 = vmax.f32 %v1000_v53, 0.0  ;;  %v1162_v56 = vpack.c.bf16 %v1122_v52, %v1121_v49  ;;  %v1021_v57 = vadd.f32 %v6800_v54, %v7928_v15  ;;  %6949 = vmatpush3.bf16.msra.mxu0 %v7036_v50  ;;  %v8038_v54 = vld [vmem:[#allocation9 + $0x2] ss:$0 sm:$0xff] }
 0x234   :  { %v1012_v58 = vpop.f32.mrf.mxu1 }
 0x235   :  { %v1161_v59 = vpack.c.bf16 %v1120_v55, %v1119_v51  ;;  %v1013_v60 = vadd.f32 %v1012_v58, %v7928_v15  ;;  %v1125_v63 = vmax.f32 %v1021_v57, 0.0  ;;  %v7037_v51 = vld [vmem:[%s11068_s5 + $0x10] sm:$0xff]  }
 0x236   :  { %v6801_v61 = vpop.f32.mrf.mxu1  ;;  %6950 = vmatprep.subr.bf16.mxu0 %v7037_v51 }
 0x237   :  { %v1024_v62 = vadd.f32 %v6801_v61, %v7928_v15  ;;  %6860 = vmatprep.mubr.msk.bf16.mxu0 %vm1180_vm5, %v1161_v59  ;;  %v1123_v1 = vmax.f32 %v1013_v60, 0.0  ;;  %6951 = vmatpush3.bf16.msra.mxu0 %v7037_v51  ;;  %v7039_v60 = vld [vmem:[%s11068_s5] sm:$0xff]  }
 0x238   :  { %v1015_v0 = vpop.f32.mrf.mxu1  ;;  %6861 = vmatmul.mubr.msk.bf16.gmra.mxu0 %vm1180_vm5, %v1162_v56 }
 0x239   :  { %v1126_v2 = vmax.f32 %v1024_v62, 0.0  ;;  %v1016_v3 = vadd.f32 %v1015_v0, %v7928_v15 }
 0x23a   :  { %v6804_v4 = vpop.f32.mrf.mxu1 }
 0x23b   :  { %v1124_v5 = vmax.f32 %v1016_v3, 0.0  ;;  %v1164_v6 = vpack.c.bf16 %v1126_v2, %v1125_v63  ;;  %v1037_v7 = vadd.f32 %v6804_v4, %v7928_v15 }
 0x23c   :  { %v1028_v8 = vpop.f32.mrf.mxu1 }
 0x23d   :  { %v1163_v9 = vpack.c.bf16 %v1124_v5, %v1123_v1  ;;  %v1029_v10 = vadd.f32 %v1028_v8, %v7928_v15  ;;  %v1129_v13 = vmax.f32 %v1037_v7, 0.0 }
 0x23e   :  { %v6805_v11 = vpop.f32.mrf.mxu1 }
 0x23f   :  { %v1040_v12 = vadd.f32 %v6805_v11, %v7928_v15  ;;  %6864 = vmatprep.mubr.msk.bf16.mxu0 %vm1180_vm5, %v1163_v9  ;;  %v1127_v16 = vmax.f32 %v1029_v10, 0.0 }
 0x240   :  { %v1031_v14 = vpop.f32.mrf.mxu1  ;;  %6865 = vmatmul.mubr.msk.bf16.gmra.mxu0 %vm1180_vm5, %v1164_v6 }
 0x241   :  { %v1130_v42 = vmax.f32 %v1040_v12, 0.0  ;;  %v1032_v17 = vadd.f32 %v1031_v14, %v7928_v15 }
 0x242   :  { %v6808_v18 = vpop.f32.mrf.mxu1 }
 0x243   :  { %v1128_v19 = vmax.f32 %v1032_v17, 0.0  ;;  %v1166_v20 = vpack.c.bf16 %v1130_v42, %v1129_v13  ;;  %v1053_v21 = vadd.f32 %v6808_v18, %v7928_v15 }
 0x244   :  { %v1044_v22 = vpop.f32.mrf.mxu1 }
 0x245   :  { %v1165_v23 = vpack.c.bf16 %v1128_v19, %v1127_v16  ;;  %v1045_v24 = vadd.f32 %v1044_v22, %v7928_v15  ;;  %v1133_v27 = vmax.f32 %v1053_v21, 0.0 }
 0x246   :  { %v6809_v25 = vpop.f32.mrf.mxu1 }
 0x247   :  { %v1056_v26 = vadd.f32 %v6809_v25, %v7928_v15  ;;  %6868 = vmatprep.mubr.msk.bf16.mxu0 %vm1180_vm5, %v1165_v23  ;;  %v1131_v29 = vmax.f32 %v1045_v24, 0.0 }
 0x248   :  { %v1047_v28 = vpop.f32.mrf.mxu1  ;;  %6869 = vmatmul.mubr.msk.bf16.gmra.mxu0 %vm1180_vm5, %v1166_v20 }
 0x249   :  { %v1134_v30 = vmax.f32 %v1056_v26, 0.0  ;;  %v1048_v31 = vadd.f32 %v1047_v28, %v7928_v15 }
 0x24a   :  { %v6812_v32 = vpop.f32.mrf.mxu1 }
 0x24b   :  { %v1132_v33 = vmax.f32 %v1048_v31, 0.0  ;;  %v1168_v34 = vpack.c.bf16 %v1134_v30, %v1133_v27  ;;  %v1069_v35 = vadd.f32 %v6812_v32, %v7928_v15 }
 0x24c   :  { %v1060_v36 = vpop.f32.mrf.mxu1 }
 0x24d   :  { %v1167_v37 = vpack.c.bf16 %v1132_v33, %v1131_v29  ;;  %v1061_v38 = vadd.f32 %v1060_v36, %v7928_v15  ;;  %v1137_v41 = vmax.f32 %v1069_v35, 0.0 }
 0x24e   :  { %v6813_v39 = vpop.f32.mrf.mxu1 }
 0x24f   :  { %v1072_v40 = vadd.f32 %v6813_v39, %v7928_v15  ;;  %6872 = vmatprep.mubr.msk.bf16.mxu0 %vm1180_vm5, %v1167_v37  ;;  %v1135_v44 = vmax.f32 %v1061_v38, 0.0 }
 0x250   :  { %v1063_v43 = vpop.f32.mrf.mxu1  ;;  %6873 = vmatmul.mubr.msk.bf16.gmra.mxu0 %vm1180_vm5, %v1168_v34 }
 0x251   :  { %v1138_v45 = vmax.f32 %v1072_v40, 0.0  ;;  %v1064_v46 = vadd.f32 %v1063_v43, %v7928_v15  ;;  %v7038_v15 = vld [vmem:[%s11068_s5 + $0x8] sm:$0xff]  }
 0x252   :  { %6952 = vmatprep.subr.bf16.mxu0 %v7038_v15 }
 0x253   :  { %v1136_v47 = vmax.f32 %v1064_v46, 0.0  ;;  %v1170_v48 = vpack.c.bf16 %v1138_v45, %v1137_v41  ;;  %6953 = vmatpush3.bf16.msra.mxu0 %v7038_v15 }
 0x254   :  { %6954 = vmatprep.subr.bf16.mxu0 %v7039_v60 }
 0x255   :  { %v1169_v49 = vpack.c.bf16 %v1136_v47, %v1135_v44 }
 0x257   :  { %6876 = vmatprep.mubr.msk.bf16.mxu0 %vm1180_vm5, %v1169_v49  ;;  %6955 = vmatpush3.bf16.msra.mxu0 %v7039_v60 }
 0x258   :  { %6877 = vmatmul.mubr.msk.bf16.gmra.mxu0 %vm1180_vm5, %v1170_v48 }
 0x2a0   :  { %v6818_v52 = vpop.f32.mrf.mxu0 }
 0x2a1   :  { %v1320_v58 = vadd.f32 %v6818_v52, %v8038_v54 }
 0x2a2   :  { %v1311_v53 = vpop.f32.mrf.mxu0 }
 0x2a3   :  { %v1312_v56 = vadd.f32 %v1311_v53, %v8038_v54  ;;  %v1568_v2 = vmax.f32 %v1320_v58, 0.0 }
 0x2a4   :  { %v6819_v55 = vpop.f32.mrf.mxu0 }
 0x2a5   :  { %v1323_v57 = vadd.f32 %v6819_v55, %v8038_v54  ;;  %v1566_v0 = vmax.f32 %v1312_v56, 0.0 }
 0x2a6   :  { %v1314_v59 = vpop.f32.mrf.mxu0 }
 0x2a7   :  { %v1315_v61 = vadd.f32 %v1314_v59, %v8038_v54  ;;  %v1569_v62 = vmax.f32 %v1323_v57, 0.0 }
 0x2a8   :  { %v6822_v63 = vpop.f32.mrf.mxu0 }
 0x2a9   :  { %v1567_v1 = vmax.f32 %v1315_v61, 0.0  ;;  %v1631_v5 = vpack.c.bf16 %v1569_v62, %v1568_v2  ;;  %v1336_v9 = vadd.f32 %v6822_v63, %v8038_v54 }
 0x2aa   :  { %v1327_v3 = vpop.f32.mrf.mxu0 }
 0x2ab   :  { %v1630_v4 = vpack.c.bf16 %v1567_v1, %v1566_v0  ;;  %v1328_v7 = vadd.f32 %v1327_v3, %v8038_v54  ;;  %v1572_v42 = vmax.f32 %v1336_v9, 0.0 }
 0x2ac   :  { %v6823_v6 = vpop.f32.mrf.mxu0 }
 0x2ad   :  { %v1339_v8 = vadd.f32 %v6823_v6, %v8038_v54  ;;  %6884 = vmatprep.mubr.msk.bf16.mxu1 %vm1679_vm6, %v1630_v4  ;;  %v1570_v14 = vmax.f32 %v1328_v7, 0.0 }
 0x2ae   :  { %v1330_v10 = vpop.f32.mrf.mxu0  ;;  %6885 = vmatmul.mubr.msk.bf16.vlgmr.msra.gmra.mxu1 %vm1679_vm6, %v1631_v5 }
 0x2af   :  { %v1331_v11 = vadd.f32 %v1330_v10, %v8038_v54  ;;  %v1573_v12 = vmax.f32 %v1339_v8, 0.0 }
 0x2b0   :  { %v6826_v13 = vpop.f32.mrf.mxu0 }
 0x2b1   :  { %v1571_v16 = vmax.f32 %v1331_v11, 0.0  ;;  %v1633_v19 = vpack.c.bf16 %v1573_v12, %v1572_v42  ;;  %v1352_v23 = vadd.f32 %v6826_v13, %v8038_v54 }
 0x2b2   :  { %v1343_v17 = vpop.f32.mrf.mxu0 }
 0x2b3   :  { %v1632_v18 = vpack.c.bf16 %v1571_v16, %v1570_v14  ;;  %v1344_v21 = vadd.f32 %v1343_v17, %v8038_v54  ;;  %v1576_v30 = vmax.f32 %v1352_v23, 0.0 }
 0x2b4   :  { %v6827_v20 = vpop.f32.mrf.mxu0 }
 0x2b5   :  { %v1355_v22 = vadd.f32 %v6827_v20, %v8038_v54  ;;  %6888 = vmatprep.mubr.msk.bf16.mxu1 %vm1679_vm6, %v1632_v18  ;;  %v1574_v28 = vmax.f32 %v1344_v21, 0.0 }
 0x2b6   :  { %v1346_v24 = vpop.f32.mrf.mxu0  ;;  %6889 = vmatmul.mubr.msk.bf16.gmra.mxu1 %vm1679_vm6, %v1633_v19 }
 0x2b7   :  { %v1347_v25 = vadd.f32 %v1346_v24, %v8038_v54  ;;  %v1577_v26 = vmax.f32 %v1355_v22, 0.0 }
 0x2b8   :  { %v6830_v27 = vpop.f32.mrf.mxu0 }
 0x2b9   :  { %v1575_v29 = vmax.f32 %v1347_v25, 0.0  ;;  %v1368_v31 = vadd.f32 %v6830_v27, %v8038_v54  ;;  %v1635_v35 = vpack.c.bf16 %v1577_v26, %v1576_v30 }
 0x2ba   :  { %v1359_v32 = vpop.f32.mrf.mxu0 }
 0x2bb   :  { %v1634_v33 = vpack.c.bf16 %v1575_v29, %v1574_v28  ;;  %v1360_v34 = vadd.f32 %v1359_v32, %v8038_v54  ;;  %v1580_v38 = vmax.f32 %v1368_v31, 0.0 }
 0x2bc   :  { %v6831_v36 = vpop.f32.mrf.mxu0 }
 0x2bd   :  { %v1371_v37 = vadd.f32 %v6831_v36, %v8038_v54  ;;  %6892 = vmatprep.mubr.msk.bf16.mxu1 %vm1679_vm6, %v1634_v33  ;;  %v1578_v40 = vmax.f32 %v1360_v34, 0.0 }
 0x2be   :  { %v1362_v39 = vpop.f32.mrf.mxu0  ;;  %6893 = vmatmul.mubr.msk.bf16.gmra.mxu1 %vm1679_vm6, %v1635_v35 }
 0x2bf   :  { %v1581_v41 = vmax.f32 %v1371_v37, 0.0  ;;  %v1363_v43 = vadd.f32 %v1362_v39, %v8038_v54 }
 0x2c0   :  { %v6834_v44 = vpop.f32.mrf.mxu0 }
 0x2c1   :  { %v1579_v45 = vmax.f32 %v1363_v43, 0.0  ;;  %v1637_v46 = vpack.c.bf16 %v1581_v41, %v1580_v38  ;;  %v1384_v47 = vadd.f32 %v6834_v44, %v8038_v54 }
 0x2c2   :  { %v1375_v48 = vpop.f32.mrf.mxu0 }
 0x2c3   :  { %v1636_v49 = vpack.c.bf16 %v1579_v45, %v1578_v40  ;;  %v1376_v50 = vadd.f32 %v1375_v48, %v8038_v54  ;;  %v1584_v52 = vmax.f32 %v1384_v47, 0.0 }
 0x2c4   :  { %v6835_v51 = vpop.f32.mrf.mxu0 }
 0x2c5   :  { %v1387_v15 = vadd.f32 %v6835_v51, %v8038_v54  ;;  %6896 = vmatprep.mubr.msk.bf16.mxu1 %vm1679_vm6, %v1636_v49  ;;  %v1582_v55 = vmax.f32 %v1376_v50, 0.0 }
 0x2c6   :  { %v1378_v53 = vpop.f32.mrf.mxu0  ;;  %6897 = vmatmul.mubr.msk.bf16.gmra.mxu1 %vm1679_vm6, %v1637_v46 }
 0x2c7   :  { %v1585_v56 = vmax.f32 %v1387_v15, 0.0  ;;  %v1379_v57 = vadd.f32 %v1378_v53, %v8038_v54 }
 0x2c8   :  { %v6838_v58 = vpop.f32.mrf.mxu0 }
 0x2c9   :  { %v1583_v59 = vmax.f32 %v1379_v57, 0.0  ;;  %v1639_v60 = vpack.c.bf16 %v1585_v56, %v1584_v52  ;;  %v1400_v61 = vadd.f32 %v6838_v58, %v8038_v54 }
 0x2ca   :  { %v1391_v62 = vpop.f32.mrf.mxu0 }
 0x2cb   :  { %v1638_v63 = vpack.c.bf16 %v1583_v59, %v1582_v55  ;;  %v1392_v0 = vadd.f32 %v1391_v62, %v8038_v54  ;;  %v1588_v3 = vmax.f32 %v1400_v61, 0.0 }
 0x2cc   :  { %v6839_v1 = vpop.f32.mrf.mxu0 }
 0x2cd   :  { %6900 = vmatprep.mubr.msk.bf16.mxu1 %vm1679_vm6, %v1638_v63  ;;  %v1403_v2 = vadd.f32 %v6839_v1, %v8038_v54  ;;  %v1586_v5 = vmax.f32 %v1392_v0, 0.0 }
 0x2ce   :  { %6901 = vmatmul.mubr.msk.bf16.gmra.mxu1 %vm1679_vm6, %v1639_v60  ;;  %v1394_v4 = vpop.f32.mrf.mxu0 }
 0x2cf   :  { %v1589_v6 = vmax.f32 %v1403_v2, 0.0  ;;  %v1395_v7 = vadd.f32 %v1394_v4, %v8038_v54 }
 0x2d0   :  { %v6842_v8 = vpop.f32.mrf.mxu0 }
 0x2d1   :  { %v1587_v9 = vmax.f32 %v1395_v7, 0.0  ;;  %v1641_v10 = vpack.c.bf16 %v1589_v6, %v1588_v3  ;;  %v1416_v11 = vadd.f32 %v6842_v8, %v8038_v54 }
 0x2d2   :  { %v1407_v12 = vpop.f32.mrf.mxu0 }
 0x2d3   :  { %v1640_v13 = vpack.c.bf16 %v1587_v9, %v1586_v5  ;;  %v1408_v14 = vadd.f32 %v1407_v12, %v8038_v54  ;;  %v1592_v17 = vmax.f32 %v1416_v11, 0.0 }
 0x2d4   :  { %v6843_v16 = vpop.f32.mrf.mxu0 }
 0x2d5   :  { %6904 = vmatprep.mubr.msk.bf16.mxu1 %vm1679_vm6, %v1640_v13  ;;  %v1419_v42 = vadd.f32 %v6843_v16, %v8038_v54  ;;  %v1590_v19 = vmax.f32 %v1408_v14, 0.0 }
 0x2d6   :  { %6905 = vmatmul.mubr.msk.bf16.gmra.mxu1 %vm1679_vm6, %v1641_v10  ;;  %v1410_v18 = vpop.f32.mrf.mxu0 }
 0x2d7   :  { %v1593_v20 = vmax.f32 %v1419_v42, 0.0  ;;  %v1411_v21 = vadd.f32 %v1410_v18, %v8038_v54 }
 0x2d8   :  { %v6846_v22 = vpop.f32.mrf.mxu0 }
 0x2d9   :  { %v1591_v23 = vmax.f32 %v1411_v21, 0.0  ;;  %v1643_v24 = vpack.c.bf16 %v1593_v20, %v1592_v17  ;;  %v1432_v25 = vadd.f32 %v6846_v22, %v8038_v54 }
 0x2da   :  { %v1423_v26 = vpop.f32.mrf.mxu0 }
 0x2db   :  { %v1642_v27 = vpack.c.bf16 %v1591_v23, %v1590_v19  ;;  %v1424_v28 = vadd.f32 %v1423_v26, %v8038_v54  ;;  %v1596_v31 = vmax.f32 %v1432_v25, 0.0 }
 0x2dc   :  { %v6847_v29 = vpop.f32.mrf.mxu0 }
 0x2dd   :  { %6908 = vmatprep.mubr.msk.bf16.mxu1 %vm1679_vm6, %v1642_v27  ;;  %v1435_v30 = vadd.f32 %v6847_v29, %v8038_v54  ;;  %v1594_v33 = vmax.f32 %v1424_v28, 0.0 }
 0x2de   :  { %6909 = vmatmul.mubr.msk.bf16.gmra.mxu1 %vm1679_vm6, %v1643_v24  ;;  %v1426_v32 = vpop.f32.mrf.mxu0 }
 0x2df   :  { %v1597_v34 = vmax.f32 %v1435_v30, 0.0  ;;  %v1427_v35 = vadd.f32 %v1426_v32, %v8038_v54 }
 0x2e0   :  { %v6850_v36 = vpop.f32.mrf.mxu0 }
 0x2e1   :  { %v1595_v37 = vmax.f32 %v1427_v35, 0.0  ;;  %v1645_v38 = vpack.c.bf16 %v1597_v34, %v1596_v31  ;;  %v1448_v39 = vadd.f32 %v6850_v36, %v8038_v54 }
 0x2e2   :  { %v1439_v40 = vpop.f32.mrf.mxu0 }
 0x2e3   :  { %v1644_v41 = vpack.c.bf16 %v1595_v37, %v1594_v33  ;;  %v1440_v43 = vadd.f32 %v1439_v40, %v8038_v54  ;;  %v1600_v46 = vmax.f32 %v1448_v39, 0.0 }
 0x2e4   :  { %v6851_v44 = vpop.f32.mrf.mxu0 }
 0x2e5   :  { %6912 = vmatprep.mubr.msk.bf16.mxu1 %vm1679_vm6, %v1644_v41  ;;  %v1451_v45 = vadd.f32 %v6851_v44, %v8038_v54  ;;  %v1598_v48 = vmax.f32 %v1440_v43, 0.0 }
 0x2e6   :  { %6913 = vmatmul.mubr.msk.bf16.gmra.mxu1 %vm1679_vm6, %v1645_v38  ;;  %v1442_v47 = vpop.f32.mrf.mxu0 }
 0x2e7   :  { %v1601_v49 = vmax.f32 %v1451_v45, 0.0  ;;  %v1443_v50 = vadd.f32 %v1442_v47, %v8038_v54 }
 0x2e8   :  { %v6854_v51 = vpop.f32.mrf.mxu0 }
 0x2e9   :  { %v1599_v15 = vmax.f32 %v1443_v50, 0.0  ;;  %v1647_v52 = vpack.c.bf16 %v1601_v49, %v1600_v46  ;;  %v1464_v53 = vadd.f32 %v6854_v51, %v8038_v54 }
 0x2ea   :  { %v1455_v55 = vpop.f32.mrf.mxu0 }
 0x2eb   :  { %v1646_v56 = vpack.c.bf16 %v1599_v15, %v1598_v48  ;;  %v1456_v57 = vadd.f32 %v1455_v55, %v8038_v54  ;;  %v1604_v60 = vmax.f32 %v1464_v53, 0.0 }
 0x2ec   :  { %v6855_v58 = vpop.f32.mrf.mxu0 }
 0x2ed   :  { %6916 = vmatprep.mubr.msk.bf16.mxu1 %vm1679_vm6, %v1646_v56  ;;  %v1467_v59 = vadd.f32 %v6855_v58, %v8038_v54  ;;  %v1602_v62 = vmax.f32 %v1456_v57, 0.0 }
 0x2ee   :  { %6917 = vmatmul.mubr.msk.bf16.gmra.mxu1 %vm1679_vm6, %v1647_v52  ;;  %v1458_v61 = vpop.f32.mrf.mxu0 }
 0x2ef   :  { %v1605_v63 = vmax.f32 %v1467_v59, 0.0  ;;  %v1459_v0 = vadd.f32 %v1458_v61, %v8038_v54 }
 0x2f0   :  { %v6858_v1 = vpop.f32.mrf.mxu0 }
 0x2f1   :  { %v1603_v2 = vmax.f32 %v1459_v0, 0.0  ;;  %v1649_v3 = vpack.c.bf16 %v1605_v63, %v1604_v60  ;;  %v1480_v4 = vadd.f32 %v6858_v1, %v8038_v54 }
 0x2f2   :  { %v1471_v5 = vpop.f32.mrf.mxu0 }
 0x2f3   :  { %v1648_v6 = vpack.c.bf16 %v1603_v2, %v1602_v62  ;;  %v1472_v7 = vadd.f32 %v1471_v5, %v8038_v54  ;;  %v1608_v10 = vmax.f32 %v1480_v4, 0.0 }
 0x2f4   :  { %v6859_v8 = vpop.f32.mrf.mxu0 }
 0x2f5   :  { %6920 = vmatprep.mubr.msk.bf16.mxu1 %vm1679_vm6, %v1648_v6  ;;  %v1483_v9 = vadd.f32 %v6859_v8, %v8038_v54  ;;  %v1606_v12 = vmax.f32 %v1472_v7, 0.0 }
 0x2f6   :  { %6921 = vmatmul.mubr.msk.bf16.gmra.mxu1 %vm1679_vm6, %v1649_v3  ;;  %v1474_v11 = vpop.f32.mrf.mxu0 }
 0x2f7   :  { %v1609_v13 = vmax.f32 %v1483_v9, 0.0  ;;  %v1475_v14 = vadd.f32 %v1474_v11, %v8038_v54 }
 0x2f8   :  { %v6862_v16 = vpop.f32.mrf.mxu0 }
 0x2f9   :  { %v1607_v42 = vmax.f32 %v1475_v14, 0.0  ;;  %v1651_v17 = vpack.c.bf16 %v1609_v13, %v1608_v10  ;;  %v1496_v18 = vadd.f32 %v6862_v16, %v8038_v54 }
 0x2fa   :  { %v1487_v19 = vpop.f32.mrf.mxu0 }
 0x2fb   :  { %v1650_v20 = vpack.c.bf16 %v1607_v42, %v1606_v12  ;;  %v1488_v21 = vadd.f32 %v1487_v19, %v8038_v54  ;;  %v1612_v24 = vmax.f32 %v1496_v18, 0.0 }
 0x2fc   :  { %v6863_v22 = vpop.f32.mrf.mxu0 }
 0x2fd   :  { %v1499_v23 = vadd.f32 %v6863_v22, %v8038_v54  ;;  %6924 = vmatprep.mubr.msk.bf16.mxu1 %vm1679_vm6, %v1650_v20  ;;  %v1610_v26 = vmax.f32 %v1488_v21, 0.0 }
 0x2fe   :  { %v1490_v25 = vpop.f32.mrf.mxu0  ;;  %6925 = vmatmul.mubr.msk.bf16.gmra.mxu1 %vm1679_vm6, %v1651_v17 }
 0x2ff   :  { %v1613_v27 = vmax.f32 %v1499_v23, 0.0  ;;  %v1491_v28 = vadd.f32 %v1490_v25, %v8038_v54  ;;  %v7040_v25 = vld [vmem:[%s11069_s6 + $0x70] ss:$8 sps:$4 sm:$0xff]  }
 0x300   :  { %v6866_v29 = vpop.f32.mrf.mxu0 }
 0x301   :  { %v1611_v30 = vmax.f32 %v1491_v28, 0.0  ;;  %v1653_v31 = vpack.c.bf16 %v1613_v27, %v1612_v24  ;;  %v1512_v32 = vadd.f32 %v6866_v29, %v8038_v54  ;;  %v7045_v27 = vld [vmem:[%s11069_s6 + $0x64] ss:$8 sps:$4 sm:$0xff]   ;;  %v7046_v28 = vld [vmem:[%s11069_s6 + $0x50] ss:$8 sps:$4 sm:$0xff]  }
 0x302   :  { %v1503_v33 = vpop.f32.mrf.mxu0  ;;  %v7048_v29 = vld [vmem:[%s11069_s6 + $0x54] ss:$8 sps:$4 sm:$0xff]  }
 0x303   :  { %v1652_v34 = vpack.c.bf16 %v1611_v30, %v1610_v26  ;;  %v1504_v35 = vadd.f32 %v1503_v33, %v8038_v54  ;;  %v1616_v38 = vmax.f32 %v1512_v32, 0.0  ;;  %v7042_v26 = vld [vmem:[%s11069_s6 + $0x74] ss:$8 sps:$4 sm:$0xff]   ;;  %v7049_v30 = vld [vmem:[%s11069_s6 + $0x40] ss:$8 sps:$4 sm:$0xff]  }
 0x304   :  { %v6867_v36 = vpop.f32.mrf.mxu0  ;;  %2785 = vmatprep.subr.bf16.mxu1 %v7042_v26  ;;  %v7052_v32 = vld [vmem:[%s11069_s6 + $0x30] ss:$8 sps:$4 sm:$0xff]   ;;  %v7054_v33 = vld [vmem:[%s11069_s6 + $0x34] ss:$8 sps:$4 sm:$0xff]  }
 0x305   :  { %v1515_v37 = vadd.f32 %v6867_v36, %v8038_v54  ;;  %6928 = vmatprep.mubr.msk.bf16.mxu1 %vm1679_vm6, %v1652_v34  ;;  %v1614_v40 = vmax.f32 %v1504_v35, 0.0  ;;  %2786 = vmatpush1.bf16.msra.mxu1 %v7040_v25  ;;  %v8169_v36 = vld [vmem:[#allocation9 + $0x3] ss:$0 sm:$0xff] }
 0x306   :  { %v1506_v39 = vpop.f32.mrf.mxu0  ;;  %6929 = vmatmul.mubr.msk.bf16.gmra.mxu1 %vm1679_vm6, %v1653_v31  ;;  %2787 = vmatprep.subr.bf16.mxu1 %v7045_v27  ;;  %v7051_v31 = vld [vmem:[%s11069_s6 + $0x44] ss:$8 sps:$4 sm:$0xff]  }
 0x307   :  { %v1617_v41 = vmax.f32 %v1515_v37, 0.0  ;;  %v1507_v43 = vadd.f32 %v1506_v39, %v8038_v54  ;;  %v7055_v37 = vld [vmem:[%s11069_s6 + $0x20] ss:$8 sps:$4 sm:$0xff]  }
 0x308   :  { %v6870_v44 = vpop.f32.mrf.mxu0 }
 0x309   :  { %v1615_v45 = vmax.f32 %v1507_v43, 0.0  ;;  %v1655_v46 = vpack.c.bf16 %v1617_v41, %v1616_v38  ;;  %v1528_v47 = vadd.f32 %v6870_v44, %v8038_v54  ;;  %v7057_v38 = vld [vmem:[%s11069_s6 + $0x24] ss:$8 sps:$4 sm:$0xff]  }
 0x30a   :  { %v1519_v48 = vpop.f32.mrf.mxu0 }
 0x30b   :  { %v1654_v49 = vpack.c.bf16 %v1615_v45, %v1614_v40  ;;  %v1520_v50 = vadd.f32 %v1519_v48, %v8038_v54  ;;  %v1620_v52 = vmax.f32 %v1528_v47, 0.0  ;;  %v7058_v45 = vld [vmem:[%s11069_s6 + $0x10] ss:$8 sps:$4 sm:$0xff]   ;;  %v7063_v48 = vld [vmem:[%s11069_s6 + $0x4] ss:$8 sps:$4 sm:$0xff]  }
 0x30c   :  { %v6871_v51 = vpop.f32.mrf.mxu0 }
 0x30d   :  { %v1531_v15 = vadd.f32 %v6871_v51, %v8038_v54  ;;  %6932 = vmatprep.mubr.msk.bf16.mxu1 %vm1679_vm6, %v1654_v49  ;;  %v1618_v55 = vmax.f32 %v1520_v50, 0.0 }
 0x30e   :  { %v1522_v53 = vpop.f32.mrf.mxu0  ;;  %6933 = vmatmul.mubr.msk.bf16.gmra.mxu1 %vm1679_vm6, %v1655_v46  ;;  %v7060_v46 = vld [vmem:[%s11069_s6 + $0x14] ss:$8 sps:$4 sm:$0xff]  }
 0x30f   :  { %v1621_v56 = vmax.f32 %v1531_v15, 0.0  ;;  %v1523_v57 = vadd.f32 %v1522_v53, %v8038_v54 }
 0x310   :  { %v6874_v58 = vpop.f32.mrf.mxu0 }
 0x311   :  { %v1619_v59 = vmax.f32 %v1523_v57, 0.0  ;;  %v1657_v60 = vpack.c.bf16 %v1621_v56, %v1620_v52  ;;  %v1544_v61 = vadd.f32 %v6874_v58, %v8038_v54 }
 0x312   :  { %v1535_v62 = vpop.f32.mrf.mxu0 }
 0x313   :  { %v1656_v63 = vpack.c.bf16 %v1619_v59, %v1618_v55  ;;  %v1536_v0 = vadd.f32 %v1535_v62, %v8038_v54  ;;  %v1624_v3 = vmax.f32 %v1544_v61, 0.0  ;;  %v7061_v55 = vld [vmem:[%s11069_s6] ss:$8 sps:$4 sm:$0xff]  }
 0x314   :  { %v6875_v1 = vpop.f32.mrf.mxu0 }
 0x315   :  { %v1547_v2 = vadd.f32 %v6875_v1, %v8038_v54  ;;  %6936 = vmatprep.mubr.msk.bf16.mxu1 %vm1679_vm6, %v1656_v63  ;;  %v1622_v5 = vmax.f32 %v1536_v0, 0.0 }
 0x316   :  { %v1538_v4 = vpop.f32.mrf.mxu0  ;;  %6937 = vmatmul.mubr.msk.bf16.gmra.mxu1 %vm1679_vm6, %v1657_v60 }
 0x317   :  { %v1625_v6 = vmax.f32 %v1547_v2, 0.0  ;;  %v1539_v7 = vadd.f32 %v1538_v4, %v8038_v54 }
 0x318   :  { %v6878_v8 = vpop.f32.mrf.mxu0 }
 0x319   :  { %v1623_v9 = vmax.f32 %v1539_v7, 0.0  ;;  %v1659_v10 = vpack.c.bf16 %v1625_v6, %v1624_v3  ;;  %v1560_v11 = vadd.f32 %v6878_v8, %v8038_v54 }
 0x31a   :  { %v1551_v12 = vpop.f32.mrf.mxu0 }
 0x31b   :  { %v1658_v13 = vpack.c.bf16 %v1623_v9, %v1622_v5  ;;  %v1552_v14 = vadd.f32 %v1551_v12, %v8038_v54  ;;  %v1628_v17 = vmax.f32 %v1560_v11, 0.0 }
 0x31c   :  { %v6879_v16 = vpop.f32.mrf.mxu0 }
 0x31d   :  { %v1563_v42 = vadd.f32 %v6879_v16, %v8038_v54  ;;  %6940 = vmatprep.mubr.msk.bf16.mxu1 %vm1679_vm6, %v1658_v13  ;;  %v1626_v19 = vmax.f32 %v1552_v14, 0.0 }
 0x31e   :  { %v1554_v18 = vpop.f32.mrf.mxu0  ;;  %6941 = vmatmul.mubr.msk.bf16.gmra.mxu1 %vm1679_vm6, %v1659_v10 }
 0x31f   :  { %v1629_v20 = vmax.f32 %v1563_v42, 0.0  ;;  %v1555_v21 = vadd.f32 %v1554_v18, %v8038_v54  ;;  %v7043_v54 = vld [vmem:[%s11069_s6 + $0x60] ss:$8 sps:$4 sm:$0xff]  }
 0x320   :  { %2788 = vmatpush1.bf16.msra.mxu1 %v7043_v54 }
 0x321   :  { %v1627_v22 = vmax.f32 %v1555_v21, 0.0  ;;  %v1661_v23 = vpack.c.bf16 %v1629_v20, %v1628_v17  ;;  %2789 = vmatprep.subr.bf16.mxu1 %v7048_v29 }
 0x323   :  { %v1660_v24 = vpack.c.bf16 %v1627_v22, %v1626_v19 }
 0x324   :  { %2790 = vmatpush1.bf16.msra.mxu1 %v7046_v28 }
 0x325   :  { %6944 = vmatprep.mubr.msk.bf16.mxu1 %vm1679_vm6, %v1660_v24  ;;  %2791 = vmatprep.subr.bf16.mxu1 %v7051_v31 }
 0x326   :  { %6945 = vmatmul.mubr.msk.bf16.gmra.mxu1 %vm1679_vm6, %v1661_v23 }
 0x328   :  { %2792 = vmatpush1.bf16.msra.mxu1 %v7049_v30 }
 0x329   :  { %2793 = vmatprep.subr.bf16.mxu1 %v7054_v33 }
 0x32c   :  { %2794 = vmatpush1.bf16.msra.mxu1 %v7052_v32 }
 0x32d   :  { %2795 = vmatprep.subr.bf16.mxu1 %v7057_v38 }
 0x330   :  { %2796 = vmatpush1.bf16.msra.mxu1 %v7055_v37 }
 0x331   :  { %2797 = vmatprep.subr.bf16.mxu1 %v7060_v46 }
 0x334   :  { %2798 = vmatpush1.bf16.msra.mxu1 %v7058_v45 }
 0x335   :  { %2799 = vmatprep.subr.bf16.mxu1 %v7063_v48 }
 0x338   :  { %2800 = vmatpush1.bf16.msra.mxu1 %v7061_v55 }
 0x36e   :  { %v6886_v34 = vpop.f32.mrf.mxu1 }
 0x36f   :  { %v1819_v43 = vadd.f32 %v6886_v34, %v8169_v36 }
 0x370   :  { %v1810_v35 = vpop.f32.mrf.mxu1 }
 0x371   :  { %v1811_v40 = vadd.f32 %v1810_v35, %v8169_v36  ;;  %v2067_v52 = vmax.f32 %v1819_v43, 0.0 }
 0x372   :  { %v6887_v39 = vpop.f32.mrf.mxu1 }
 0x373   :  { %v1822_v41 = vadd.f32 %v6887_v39, %v8169_v36  ;;  %v2065_v51 = vmax.f32 %v1811_v40, 0.0 }
 0x374   :  { %v1813_v44 = vpop.f32.mrf.mxu1 }
 0x375   :  { %v1814_v47 = vadd.f32 %v1813_v44, %v8169_v36  ;;  %v2068_v49 = vmax.f32 %v1822_v41, 0.0 }
 0x376   :  { %v6890_v50 = vpop.f32.mrf.mxu1 }
 0x377   :  { %v2066_v15 = vmax.f32 %v1814_v47, 0.0  ;;  %v2130_v57 = vpack.c.bf16 %v2068_v49, %v2067_v52  ;;  %v1835_v61 = vadd.f32 %v6890_v50, %v8169_v36 }
 0x378   :  { %v1826_v53 = vpop.f32.mrf.mxu1 }
 0x379   :  { %v2129_v56 = vpack.c.bf16 %v2066_v15, %v2065_v51  ;;  %v1827_v59 = vadd.f32 %v1826_v53, %v8169_v36  ;;  %v2071_v4 = vmax.f32 %v1835_v61, 0.0 }
 0x37a   :  { %v6891_v58 = vpop.f32.mrf.mxu1 }
 0x37b   :  { %v1838_v60 = vadd.f32 %v6891_v58, %v8169_v36  ;;  %6956 = vmatprep.mubr.msk.bf16.mxu0 %vm2194_vm7, %v2129_v56  ;;  %v2069_v2 = vmax.f32 %v1827_v59, 0.0 }
 0x37c   :  { %v1829_v62 = vpop.f32.mrf.mxu1  ;;  %6957 = vmatmul.mubr.msk.bf16.vlgmr.msra.gmra.mxu0 %vm2194_vm7, %v2130_v57 }
 0x37d   :  { %v1830_v63 = vadd.f32 %v1829_v62, %v8169_v36  ;;  %v2072_v0 = vmax.f32 %v1838_v60, 0.0 }
 0x37e   :  { %v6894_v1 = vpop.f32.mrf.mxu1 }
 0x37f   :  { %v2070_v3 = vmax.f32 %v1830_v63, 0.0  ;;  %v2132_v7 = vpack.c.bf16 %v2072_v0, %v2071_v4  ;;  %v1851_v11 = vadd.f32 %v6894_v1, %v8169_v36 }
 0x380   :  { %v1842_v5 = vpop.f32.mrf.mxu1 }
 0x381   :  { %v2131_v6 = vpack.c.bf16 %v2070_v3, %v2069_v2  ;;  %v1843_v9 = vadd.f32 %v1842_v5, %v8169_v36  ;;  %v2075_v18 = vmax.f32 %v1851_v11, 0.0 }
 0x382   :  { %v6895_v8 = vpop.f32.mrf.mxu1 }
 0x383   :  { %v1854_v10 = vadd.f32 %v6895_v8, %v8169_v36  ;;  %6960 = vmatprep.mubr.msk.bf16.mxu0 %vm2194_vm7, %v2131_v6  ;;  %v2073_v42 = vmax.f32 %v1843_v9, 0.0 }
 0x384   :  { %v1845_v12 = vpop.f32.mrf.mxu1  ;;  %6961 = vmatmul.mubr.msk.bf16.gmra.mxu0 %vm2194_vm7, %v2132_v7 }
 0x385   :  { %v1846_v13 = vadd.f32 %v1845_v12, %v8169_v36  ;;  %v2076_v14 = vmax.f32 %v1854_v10, 0.0 }
 0x386   :  { %v6898_v16 = vpop.f32.mrf.mxu1 }
 0x387   :  { %v2074_v17 = vmax.f32 %v1846_v13, 0.0  ;;  %v2134_v21 = vpack.c.bf16 %v2076_v14, %v2075_v18  ;;  %v1867_v22 = vadd.f32 %v6898_v16, %v8169_v36 }
 0x388   :  { %v1858_v19 = vpop.f32.mrf.mxu1 }
 0x389   :  { %v2133_v20 = vpack.c.bf16 %v2074_v17, %v2073_v42  ;;  %v1859_v24 = vadd.f32 %v1858_v19, %v8169_v36  ;;  %v2079_v27 = vmax.f32 %v1867_v22, 0.0 }
 0x38a   :  { %v6899_v23 = vpop.f32.mrf.mxu1 }
 0x38b   :  { %v1870_v25 = vadd.f32 %v6899_v23, %v8169_v36  ;;  %6964 = vmatprep.mubr.msk.bf16.mxu0 %vm2194_vm7, %v2133_v20  ;;  %v2077_v30 = vmax.f32 %v1859_v24, 0.0 }
 0x38c   :  { %v1861_v26 = vpop.f32.mrf.mxu1  ;;  %6965 = vmatmul.mubr.msk.bf16.gmra.mxu0 %vm2194_vm7, %v2134_v21 }
 0x38d   :  { %v1862_v54 = vadd.f32 %v1861_v26, %v8169_v36  ;;  %v2080_v28 = vmax.f32 %v1870_v25, 0.0 }
 0x38e   :  { %v6902_v29 = vpop.f32.mrf.mxu1 }
 0x38f   :  { %v2078_v31 = vmax.f32 %v1862_v54, 0.0  ;;  %v1883_v32 = vadd.f32 %v6902_v29, %v8169_v36  ;;  %v2136_v37 = vpack.c.bf16 %v2080_v28, %v2079_v27 }
 0x390   :  { %v1874_v33 = vpop.f32.mrf.mxu1 }
 0x391   :  { %v2135_v34 = vpack.c.bf16 %v2078_v31, %v2077_v30  ;;  %v1875_v35 = vadd.f32 %v1874_v33, %v8169_v36  ;;  %v2083_v40 = vmax.f32 %v1883_v32, 0.0 }
 0x392   :  { %v6903_v38 = vpop.f32.mrf.mxu1 }
 0x393   :  { %v1886_v39 = vadd.f32 %v6903_v38, %v8169_v36  ;;  %6968 = vmatprep.mubr.msk.bf16.mxu0 %vm2194_vm7, %v2135_v34  ;;  %v2081_v43 = vmax.f32 %v1875_v35, 0.0 }
 0x394   :  { %v1877_v41 = vpop.f32.mrf.mxu1  ;;  %6969 = vmatmul.mubr.msk.bf16.gmra.mxu0 %vm2194_vm7, %v2136_v37 }
 0x395   :  { %v2084_v44 = vmax.f32 %v1886_v39, 0.0  ;;  %v1878_v45 = vadd.f32 %v1877_v41, %v8169_v36 }
 0x396   :  { %v6906_v46 = vpop.f32.mrf.mxu1 }
 0x397   :  { %v2082_v47 = vmax.f32 %v1878_v45, 0.0  ;;  %v2138_v48 = vpack.c.bf16 %v2084_v44, %v2083_v40  ;;  %v1899_v49 = vadd.f32 %v6906_v46, %v8169_v36 }
 0x398   :  { %v1890_v50 = vpop.f32.mrf.mxu1 }
 0x399   :  { %v2137_v51 = vpack.c.bf16 %v2082_v47, %v2081_v43  ;;  %v1891_v15 = vadd.f32 %v1890_v50, %v8169_v36  ;;  %v2087_v55 = vmax.f32 %v1899_v49, 0.0 }
 0x39a   :  { %v6907_v52 = vpop.f32.mrf.mxu1 }
 0x39b   :  { %6972 = vmatprep.mubr.msk.bf16.mxu0 %vm2194_vm7, %v2137_v51  ;;  %v1902_v53 = vadd.f32 %v6907_v52, %v8169_v36  ;;  %v2085_v57 = vmax.f32 %v1891_v15, 0.0 }
 0x39c   :  { %6973 = vmatmul.mubr.msk.bf16.gmra.mxu0 %vm2194_vm7, %v2138_v48  ;;  %v1893_v56 = vpop.f32.mrf.mxu1 }
 0x39d   :  { %v2088_v58 = vmax.f32 %v1902_v53, 0.0  ;;  %v1894_v59 = vadd.f32 %v1893_v56, %v8169_v36 }
 0x39e   :  { %v6910_v60 = vpop.f32.mrf.mxu1 }
 0x39f   :  { %v2086_v61 = vmax.f32 %v1894_v59, 0.0  ;;  %v2140_v62 = vpack.c.bf16 %v2088_v58, %v2087_v55  ;;  %v1915_v63 = vadd.f32 %v6910_v60, %v8169_v36 }
 0x3a0   :  { %v1906_v0 = vpop.f32.mrf.mxu1 }
 0x3a1   :  { %v2139_v1 = vpack.c.bf16 %v2086_v61, %v2085_v57  ;;  %v1907_v2 = vadd.f32 %v1906_v0, %v8169_v36  ;;  %v2091_v5 = vmax.f32 %v1915_v63, 0.0 }
 0x3a2   :  { %v6911_v3 = vpop.f32.mrf.mxu1 }
 0x3a3   :  { %6976 = vmatprep.mubr.msk.bf16.mxu0 %vm2194_vm7, %v2139_v1  ;;  %v1918_v4 = vadd.f32 %v6911_v3, %v8169_v36  ;;  %v2089_v7 = vmax.f32 %v1907_v2, 0.0 }
 0x3a4   :  { %6977 = vmatmul.mubr.msk.bf16.gmra.mxu0 %vm2194_vm7, %v2140_v62  ;;  %v1909_v6 = vpop.f32.mrf.mxu1 }
 0x3a5   :  { %v2092_v8 = vmax.f32 %v1918_v4, 0.0  ;;  %v1910_v9 = vadd.f32 %v1909_v6, %v8169_v36 }
 0x3a6   :  { %v6914_v10 = vpop.f32.mrf.mxu1 }
 0x3a7   :  { %v2090_v11 = vmax.f32 %v1910_v9, 0.0  ;;  %v2142_v12 = vpack.c.bf16 %v2092_v8, %v2091_v5  ;;  %v1931_v13 = vadd.f32 %v6914_v10, %v8169_v36  ;;  %v7532_v8 = vmov 0  }
 0x3a8   :  { %v1922_v14 = vpop.f32.mrf.mxu1  ;;  %2817 = vmatprep.mubr.bf16.mxu1 %v7532_v8 }
 0x3a9   :  { %v2141_v16 = vpack.c.bf16 %v2090_v11, %v2089_v7  ;;  %v1923_v42 = vadd.f32 %v1922_v14, %v8169_v36  ;;  %v2095_v19 = vmax.f32 %v1931_v13, 0.0 }
 0x3aa   :  { %v6915_v17 = vpop.f32.mrf.mxu1 }
 0x3ab   :  { %6980 = vmatprep.mubr.msk.bf16.mxu0 %vm2194_vm7, %v2141_v16  ;;  %v1934_v18 = vadd.f32 %v6915_v17, %v8169_v36  ;;  %v2093_v21 = vmax.f32 %v1923_v42, 0.0 }
 0x3ac   :  { %6981 = vmatmul.mubr.msk.bf16.gmra.mxu0 %vm2194_vm7, %v2142_v12  ;;  %v1925_v20 = vpop.f32.mrf.mxu1 }
 0x3ad   :  { %v2096_v22 = vmax.f32 %v1934_v18, 0.0  ;;  %v1926_v23 = vadd.f32 %v1925_v20, %v8169_v36  ;;  %v7066_v18 = vld [vmem:[%s11070_s7 + $0xec] ss:$16 sps:$4 sm:$0xff]  }
 0x3ae   :  { %v6918_v24 = vpop.f32.mrf.mxu1  ;;  %4090 = vmatprep.subr.bf16.mxu1 %v7066_v18  ;;  %v8289_v18 = vld [vmem:[#allocation9 + $0x4] ss:$0 sm:$0xff] }
 0x3af   :  { %v2094_v25 = vmax.f32 %v1926_v23, 0.0  ;;  %v2144_v26 = vpack.c.bf16 %v2096_v22, %v2095_v19  ;;  %v1947_v54 = vadd.f32 %v6918_v24, %v8169_v36 }
 0x3b0   :  { %v1938_v27 = vpop.f32.mrf.mxu1 }
 0x3b1   :  { %v2143_v28 = vpack.c.bf16 %v2094_v25, %v2093_v21  ;;  %v1939_v29 = vadd.f32 %v1938_v27, %v8169_v36  ;;  %v2099_v32 = vmax.f32 %v1947_v54, 0.0 }
 0x3b2   :  { %v6919_v30 = vpop.f32.mrf.mxu1 }
 0x3b3   :  { %6984 = vmatprep.mubr.msk.bf16.mxu0 %vm2194_vm7, %v2143_v28  ;;  %v1950_v31 = vadd.f32 %v6919_v30, %v8169_v36  ;;  %v2097_v34 = vmax.f32 %v1939_v29, 0.0 }
 0x3b4   :  { %6985 = vmatmul.mubr.msk.bf16.gmra.mxu0 %vm2194_vm7, %v2144_v26  ;;  %v1941_v33 = vpop.f32.mrf.mxu1 }
 0x3b5   :  { %v2100_v35 = vmax.f32 %v1950_v31, 0.0  ;;  %v1942_v37 = vadd.f32 %v1941_v33, %v8169_v36 }
 0x3b6   :  { %v6922_v38 = vpop.f32.mrf.mxu1 }
 0x3b7   :  { %v2098_v39 = vmax.f32 %v1942_v37, 0.0  ;;  %v2146_v40 = vpack.c.bf16 %v2100_v35, %v2099_v32  ;;  %v1963_v41 = vadd.f32 %v6922_v38, %v8169_v36 }
 0x3b8   :  { %v1954_v43 = vpop.f32.mrf.mxu1 }
 0x3b9   :  { %v2145_v44 = vpack.c.bf16 %v2098_v39, %v2097_v34  ;;  %v1955_v45 = vadd.f32 %v1954_v43, %v8169_v36  ;;  %v2103_v48 = vmax.f32 %v1963_v41, 0.0 }
 0x3ba   :  { %v6923_v46 = vpop.f32.mrf.mxu1 }
 0x3bb   :  { %6988 = vmatprep.mubr.msk.bf16.mxu0 %vm2194_vm7, %v2145_v44  ;;  %v1966_v47 = vadd.f32 %v6923_v46, %v8169_v36  ;;  %v2101_v50 = vmax.f32 %v1955_v45, 0.0 }
 0x3bc   :  { %6989 = vmatmul.mubr.msk.bf16.gmra.mxu0 %vm2194_vm7, %v2146_v40  ;;  %v1957_v49 = vpop.f32.mrf.mxu1 }
 0x3bd   :  { %v2104_v51 = vmax.f32 %v1966_v47, 0.0  ;;  %v1958_v15 = vadd.f32 %v1957_v49, %v8169_v36 }
 0x3be   :  { %v6926_v52 = vpop.f32.mrf.mxu1 }
 0x3bf   :  { %v2102_v53 = vmax.f32 %v1958_v15, 0.0  ;;  %v2148_v55 = vpack.c.bf16 %v2104_v51, %v2103_v48  ;;  %v1979_v56 = vadd.f32 %v6926_v52, %v8169_v36 }
 0x3c0   :  { %v1970_v57 = vpop.f32.mrf.mxu1 }
 0x3c1   :  { %v2147_v58 = vpack.c.bf16 %v2102_v53, %v2101_v50  ;;  %v1971_v59 = vadd.f32 %v1970_v57, %v8169_v36  ;;  %v2107_v62 = vmax.f32 %v1979_v56, 0.0 }
 0x3c2   :  { %v6927_v60 = vpop.f32.mrf.mxu1 }
 0x3c3   :  { %6992 = vmatprep.mubr.msk.bf16.mxu0 %vm2194_vm7, %v2147_v58  ;;  %v1982_v61 = vadd.f32 %v6927_v60, %v8169_v36  ;;  %v2105_v0 = vmax.f32 %v1971_v59, 0.0 }
 0x3c4   :  { %6993 = vmatmul.mubr.msk.bf16.gmra.mxu0 %vm2194_vm7, %v2148_v55  ;;  %v1973_v63 = vpop.f32.mrf.mxu1 }
 0x3c5   :  { %v2108_v1 = vmax.f32 %v1982_v61, 0.0  ;;  %v1974_v2 = vadd.f32 %v1973_v63, %v8169_v36 }
 0x3c6   :  { %v6930_v3 = vpop.f32.mrf.mxu1 }
 0x3c7   :  { %v2106_v4 = vmax.f32 %v1974_v2, 0.0  ;;  %v2150_v5 = vpack.c.bf16 %v2108_v1, %v2107_v62  ;;  %v1995_v6 = vadd.f32 %v6930_v3, %v8169_v36 }
 0x3c8   :  { %v1986_v7 = vpop.f32.mrf.mxu1 }
 0x3c9   :  { %v2149_v9 = vpack.c.bf16 %v2106_v4, %v2105_v0  ;;  %v1987_v10 = vadd.f32 %v1986_v7, %v8169_v36  ;;  %v2111_v13 = vmax.f32 %v1995_v6, 0.0 }
 0x3ca   :  { %v6931_v11 = vpop.f32.mrf.mxu1 }
 0x3cb   :  { %v1998_v12 = vadd.f32 %v6931_v11, %v8169_v36  ;;  %6996 = vmatprep.mubr.msk.bf16.mxu0 %vm2194_vm7, %v2149_v9  ;;  %v2109_v16 = vmax.f32 %v1987_v10, 0.0 }
 0x3cc   :  { %v1989_v14 = vpop.f32.mrf.mxu1  ;;  %6997 = vmatmul.mubr.msk.bf16.gmra.mxu0 %vm2194_vm7, %v2150_v5 }
 0x3cd   :  { %v2112_v42 = vmax.f32 %v1998_v12, 0.0  ;;  %v1990_v17 = vadd.f32 %v1989_v14, %v8169_v36 }
 0x3ce   :  { %v6934_v19 = vpop.f32.mrf.mxu1 }
 0x3cf   :  { %v2110_v20 = vmax.f32 %v1990_v17, 0.0  ;;  %v2152_v21 = vpack.c.bf16 %v2112_v42, %v2111_v13  ;;  %v2011_v22 = vadd.f32 %v6934_v19, %v8169_v36 }
 0x3d0   :  { %v2002_v23 = vpop.f32.mrf.mxu1 }
 0x3d1   :  { %v2151_v24 = vpack.c.bf16 %v2110_v20, %v2109_v16  ;;  %v2003_v25 = vadd.f32 %v2002_v23, %v8169_v36  ;;  %v2115_v27 = vmax.f32 %v2011_v22, 0.0 }
 0x3d2   :  { %v6935_v26 = vpop.f32.mrf.mxu1 }
 0x3d3   :  { %v2014_v54 = vadd.f32 %v6935_v26, %v8169_v36  ;;  %7000 = vmatprep.mubr.msk.bf16.mxu0 %vm2194_vm7, %v2151_v24  ;;  %v2113_v29 = vmax.f32 %v2003_v25, 0.0 }
 0x3d4   :  { %v2005_v28 = vpop.f32.mrf.mxu1  ;;  %7001 = vmatmul.mubr.msk.bf16.gmra.mxu0 %vm2194_vm7, %v2152_v21  ;;  %v7088_v21 = vld [vmem:[%s11070_s7 + $0xe0] ss:$16 sps:$4 sm:$0xff]  }
 0x3d5   :  { %v2116_v30 = vmax.f32 %v2014_v54, 0.0  ;;  %v2006_v31 = vadd.f32 %v2005_v28, %v8169_v36 }
 0x3d6   :  { %v6938_v32 = vpop.f32.mrf.mxu1 }
 0x3d7   :  { %v2114_v33 = vmax.f32 %v2006_v31, 0.0  ;;  %v2154_v34 = vpack.c.bf16 %v2116_v30, %v2115_v27  ;;  %v2027_v35 = vadd.f32 %v6938_v32, %v8169_v36  ;;  %v7064_v27 = vld [vmem:[%s11070_s7 + $0xe8] ss:$16 sps:$4 sm:$0xff]   ;;  %v7069_v30 = vld [vmem:[%s11070_s7 + $0xcc] ss:$16 sps:$4 sm:$0xff]  }
 0x3d8   :  { %v2018_v37 = vpop.f32.mrf.mxu1 }
 0x3d9   :  { %v2153_v38 = vpack.c.bf16 %v2114_v33, %v2113_v29  ;;  %v2019_v39 = vadd.f32 %v2018_v37, %v8169_v36  ;;  %v2119_v43 = vmax.f32 %v2027_v35, 0.0  ;;  %v7094_v33 = vld [vmem:[%s11070_s7 + $0xc0] ss:$16 sps:$4 sm:$0xff]   ;;  %v7067_v35 = vld [vmem:[%s11070_s7 + $0xc8] ss:$16 sps:$4 sm:$0xff]  }
 0x3da   :  { %v6939_v40 = vpop.f32.mrf.mxu1 }
 0x3db   :  { %v2030_v41 = vadd.f32 %v6939_v40, %v8169_v36  ;;  %7004 = vmatprep.mubr.msk.bf16.mxu0 %vm2194_vm7, %v2153_v38  ;;  %v2117_v45 = vmax.f32 %v2019_v39, 0.0  ;;  %v7072_v38 = vld [vmem:[%s11070_s7 + $0xac] ss:$16 sps:$4 sm:$0xff]  }
 0x3dc   :  { %v2021_v44 = vpop.f32.mrf.mxu1  ;;  %7005 = vmatmul.mubr.msk.bf16.gmra.mxu0 %vm2194_vm7, %v2154_v34  ;;  %v7096_v34 = vld [vmem:[%s11070_s7 + $0xc4] ss:$16 sps:$4 sm:$0xff]  }
 0x3dd   :  { %v2120_v46 = vmax.f32 %v2030_v41, 0.0  ;;  %v2022_v47 = vadd.f32 %v2021_v44, %v8169_v36  ;;  %v7070_v41 = vld [vmem:[%s11070_s7 + $0xa8] ss:$16 sps:$4 sm:$0xff]  }
 0x3de   :  { %v6942_v48 = vpop.f32.mrf.mxu1 }
 0x3df   :  { %v2118_v49 = vmax.f32 %v2022_v47, 0.0  ;;  %v2156_v50 = vpack.c.bf16 %v2120_v46, %v2119_v43  ;;  %v2043_v51 = vadd.f32 %v6942_v48, %v8169_v36  ;;  %v7097_v48 = vld [vmem:[%s11070_s7 + $0xa0] ss:$16 sps:$4 sm:$0xff]  }
 0x3e0   :  { %v2034_v15 = vpop.f32.mrf.mxu1 }
 0x3e1   :  { %v2155_v52 = vpack.c.bf16 %v2118_v49, %v2117_v45  ;;  %v2035_v53 = vadd.f32 %v2034_v15, %v8169_v36  ;;  %v2123_v57 = vmax.f32 %v2043_v51, 0.0  ;;  %v7075_v45 = vld [vmem:[%s11070_s7 + $0x8c] ss:$16 sps:$4 sm:$0xff]   ;;  %v7099_v49 = vld [vmem:[%s11070_s7 + $0xa4] ss:$16 sps:$4 sm:$0xff]  }
 0x3e2   :  { %v6943_v55 = vpop.f32.mrf.mxu1  ;;  %v7078_v15 = vld [vmem:[%s11070_s7 + $0x6c] ss:$16 sps:$4 sm:$0xff]  }
 0x3e3   :  { %v2046_v56 = vadd.f32 %v6943_v55, %v8169_v36  ;;  %7008 = vmatprep.mubr.msk.bf16.mxu0 %vm2194_vm7, %v2155_v52  ;;  %v2121_v59 = vmax.f32 %v2035_v53, 0.0  ;;  %v7076_v55 = vld [vmem:[%s11070_s7 + $0x68] ss:$16 sps:$4 sm:$0xff]  }
 0x3e4   :  { %v2037_v58 = vpop.f32.mrf.mxu1  ;;  %7009 = vmatmul.mubr.msk.bf16.gmra.mxu0 %vm2194_vm7, %v2156_v50  ;;  %v7073_v50 = vld [vmem:[%s11070_s7 + $0x88] ss:$16 sps:$4 sm:$0xff]  }
 0x3e5   :  { %v2124_v60 = vmax.f32 %v2046_v56, 0.0  ;;  %v2038_v61 = vadd.f32 %v2037_v58, %v8169_v36  ;;  %v7081_v58 = vld [vmem:[%s11070_s7 + $0x4c] ss:$16 sps:$4 sm:$0xff]  }
 0x3e6   :  { %v6946_v62 = vpop.f32.mrf.mxu1 }
 0x3e7   :  { %v2122_v63 = vmax.f32 %v2038_v61, 0.0  ;;  %v2158_v0 = vpack.c.bf16 %v2124_v60, %v2123_v57  ;;  %v2059_v1 = vadd.f32 %v6946_v62, %v8169_v36  ;;  %v7103_v61 = vld [vmem:[%s11070_s7 + $0x80] ss:$16 sps:$4 sm:$0xff]   ;;  %v7105_v62 = vld [vmem:[%s11070_s7 + $0x84] ss:$16 sps:$4 sm:$0xff]  }
 0x3e8   :  { %v2050_v2 = vpop.f32.mrf.mxu1 }
 0x3e9   :  { %v2157_v3 = vpack.c.bf16 %v2122_v63, %v2121_v59  ;;  %v2051_v4 = vadd.f32 %v2050_v2, %v8169_v36  ;;  %v2127_v7 = vmax.f32 %v2059_v1, 0.0  ;;  %v7079_v63 = vld [vmem:[%s11070_s7 + $0x48] ss:$16 sps:$4 sm:$0xff]   ;;  %v7084_v1 = vld [vmem:[%s11070_s7 + $0x2c] ss:$16 sps:$4 sm:$0xff]  }
 0x3ea   :  { %v6947_v5 = vpop.f32.mrf.mxu1 }
 0x3eb   :  { %v2062_v6 = vadd.f32 %v6947_v5, %v8169_v36  ;;  %7012 = vmatprep.mubr.msk.bf16.mxu0 %vm2194_vm7, %v2157_v3  ;;  %v2125_v10 = vmax.f32 %v2051_v4, 0.0  ;;  %v7082_v4 = vld [vmem:[%s11070_s7 + $0x28] ss:$16 sps:$4 sm:$0xff]  }
 0x3ec   :  { %v2053_v9 = vpop.f32.mrf.mxu1  ;;  %7013 = vmatmul.mubr.msk.bf16.gmra.mxu0 %vm2194_vm7, %v2158_v0 }
 0x3ed   :  { %v2128_v11 = vmax.f32 %v2062_v6, 0.0  ;;  %v2054_v12 = vadd.f32 %v2053_v9, %v8169_v36  ;;  %v7090_v36 = vld [vmem:[%s11070_s7 + $0xe4] ss:$16 sps:$4 sm:$0xff]  }
 0x3ee   :  { %3737 = vmatprep.subr.bf16.mxu0 %v7090_v36  ;;  %v7102_v36 = vld [vmem:[%s11070_s7 + $0x1cc] ss:$16 sps:$4 sm:$0xff]  }
 0x3ef   :  { %v2126_v13 = vmax.f32 %v2054_v12, 0.0  ;;  %v2160_v14 = vpack.c.bf16 %v2128_v11, %v2127_v7  ;;  %3738 = vmatpush1.bf16.msra.mxu0 %v7088_v21  ;;  %v7087_v7 = vld [vmem:[%s11070_s7 + $0xc] ss:$16 sps:$4 sm:$0xff]   ;;  %v7106_v11 = vld [vmem:[%s11070_s7 + $0x60] ss:$16 sps:$4 sm:$0xff]  }
 0x3f0   :  { %3739 = vmatprep.subr.bf16.mxu0 %v7096_v34  ;;  %v7108_v12 = vld [vmem:[%s11070_s7 + $0x64] ss:$16 sps:$4 sm:$0xff]  }
 0x3f1   :  { %v2159_v16 = vpack.c.bf16 %v2126_v13, %v2125_v10  ;;  %v7085_v13 = vld [vmem:[%s11070_s7 + $0x8] ss:$16 sps:$4 sm:$0xff]  }
 0x3f3   :  { %7016 = vmatprep.mubr.msk.bf16.mxu0 %vm2194_vm7, %v2159_v16  ;;  %3740 = vmatpush1.bf16.msra.mxu0 %v7094_v33  ;;  %v7093_v16 = vld [vmem:[%s11070_s7 + $0x1ec] ss:$16 sps:$4 sm:$0xff]  }
 0x3f4   :  { %7017 = vmatmul.mubr.msk.bf16.gmra.mxu0 %vm2194_vm7, %v2160_v14  ;;  %3741 = vmatprep.subr.bf16.mxu0 %v7099_v49 }
 0x3f7   :  { %3742 = vmatpush1.bf16.msra.mxu0 %v7097_v48 }
 0x3f8   :  { %3743 = vmatprep.subr.bf16.mxu0 %v7105_v62 }
 0x3fb   :  { %3744 = vmatpush1.bf16.msra.mxu0 %v7103_v61 }
 0x3fc   :  { %3745 = vmatprep.subr.bf16.mxu0 %v7108_v12 }
 0x3ff   :  { %3746 = vmatpush1.bf16.msra.mxu0 %v7106_v11 }
 0x43c   :  { %v6958_v42 = vpop.f32.mrf.mxu0 }
 0x43d   :  { %v2334_v32 = vadd.f32 %v6958_v42, %v8289_v18 }
 0x43e   :  { %v2325_v17 = vpop.f32.mrf.mxu0 }
 0x43f   :  { %v2326_v20 = vadd.f32 %v2325_v17, %v8289_v18  ;;  %v2582_v40 = vmax.f32 %v2334_v32, 0.0  ;;  %v7109_v32 = vld [vmem:[%s11070_s7 + $0x1a8] ss:$16 sps:$4 sm:$0xff]  }
 0x440   :  { %v6959_v19 = vpop.f32.mrf.mxu0 }
 0x441   :  { %v2580_v25 = vmax.f32 %v2326_v20, 0.0  ;;  %v2337_v28 = vadd.f32 %v6959_v19, %v8289_v18  ;;  %v7091_v19 = vld [vmem:[%s11070_s7 + $0x1e8] ss:$16 sps:$4 sm:$0xff]  }
 0x442   :  { %v2328_v22 = vpop.f32.mrf.mxu0 }
 0x443   :  { %v2329_v23 = vadd.f32 %v2328_v22, %v8289_v18  ;;  %v2583_v37 = vmax.f32 %v2337_v28, 0.0  ;;  %v7111_v28 = vld [vmem:[%s11070_s7 + $0x1ac] ss:$16 sps:$4 sm:$0xff]  }
 0x444   :  { %v6962_v24 = vpop.f32.mrf.mxu0 }
 0x445   :  { %v2581_v26 = vmax.f32 %v2329_v23, 0.0  ;;  %v2645_v43 = vpack.c.bf16 %v2583_v37, %v2582_v40  ;;  %v2350_v60 = vadd.f32 %v6962_v24, %v8289_v18  ;;  %v7112_v24 = vld [vmem:[%s11070_s7 + $0x40] ss:$16 sps:$4 sm:$0xff]   ;;  %v7123_v40 = vld [vmem:[%s11070_s7 + $0x1e4] ss:$16 sps:$4 sm:$0xff]  }
 0x446   :  { %v2341_v54 = vpop.f32.mrf.mxu0 }
 0x447   :  { %v2644_v29 = vpack.c.bf16 %v2581_v26, %v2580_v25  ;;  %v2342_v47 = vadd.f32 %v2341_v54, %v8289_v18  ;;  %v2586_v3 = vmax.f32 %v2350_v60, 0.0  ;;  %v7114_v25 = vld [vmem:[%s11070_s7 + $0x44] ss:$16 sps:$4 sm:$0xff]   ;;  %v7100_v26 = vld [vmem:[%s11070_s7 + $0x1c8] ss:$16 sps:$4 sm:$0xff]  }
 0x448   :  { %v6963_v31 = vpop.f32.mrf.mxu0  ;;  %v7117_v54 = vld [vmem:[%s11070_s7 + $0x24] ss:$16 sps:$4 sm:$0xff]   ;;  %3747 = vmatprep.subr.bf16.mxu0 %v7114_v25  ;;  %v7148_v25 = vld [vmem:[%s11070_s7 + $0x100] ss:$16 sps:$4 sm:$0xff]  }
 0x449   :  { %2818 = vmatmul.mubr.bf16.vlgmr.msra.gmra.mxu1 %v2644_v29  ;;  %v2584_v53 = vmax.f32 %v2342_v47, 0.0  ;;  %v2353_v56 = vadd.f32 %v6963_v31, %v8289_v18  ;;  %3748 = vmatpush1.bf16.msra.mxu0 %v7112_v24  ;;  %v7150_v24 = vld [vmem:[%s11070_s7 + $0x104] ss:$16 sps:$4 sm:$0xff]  }
 0x44a   :  { %4091 = vmatpush1.bf16.msra.mxu1 %v7064_v27  ;;  %2827 = vmatprep.mubr.bf16.mxu1 %v7532_v8  ;;  %v2344_v39 = vpop.f32.mrf.mxu0 }
 0x44b   :  { %4092 = vmatprep.subr.bf16.mxu1 %v7069_v30  ;;  %v2345_v44 = vadd.f32 %v2344_v39, %v8289_v18  ;;  %v2587_v0 = vmax.f32 %v2353_v56, 0.0  ;;  %v7115_v30 = vld [vmem:[%s11070_s7 + $0x20] ss:$16 sps:$4 sm:$0xff]   ;;  %3749 = vmatprep.subr.bf16.mxu0 %v7117_v54  ;;  %v7120_v39 = vld [vmem:[%s11070_s7 + $0x4] ss:$16 sps:$4 sm:$0xff]  }
 0x44c   :  { %v8327_v46 = vpop.f32.mrf.mxu0 }
 0x44d   :  { %v2585_v51 = vmax.f32 %v2345_v44, 0.0  ;;  %v2647_v5 = vpack.c.bf16 %v2587_v0, %v2586_v3  ;;  %v2366_v23 = vadd.f32 %v8327_v46, %v8289_v18  ;;  %3750 = vmatpush1.bf16.msra.mxu0 %v7115_v30  ;;  %v7126_v44 = vld [vmem:[%s11070_s7 + $0x18c] ss:$16 sps:$4 sm:$0xff]   ;;  %v7121_v46 = vld [vmem:[%s11070_s7 + $0x1e0] ss:$16 sps:$4 sm:$0xff]  }
 0x44e   :  { %4093 = vmatpush1.bf16.msra.mxu1 %v7067_v35  ;;  %v2357_v52 = vpop.f32.mrf.mxu0  ;;  %3751 = vmatprep.subr.bf16.mxu0 %v7120_v39  ;;  %v7135_v0 = vld [vmem:[%s11070_s7 + $0x184] ss:$16 sps:$4 sm:$0xff]  }
 0x44f   :  { %4094 = vmatprep.subr.bf16.mxu1 %v7072_v38  ;;  %v2646_v57 = vpack.c.bf16 %v2585_v51, %v2584_v53  ;;  %v2358_v10 = vadd.f32 %v2357_v52, %v8289_v18  ;;  %v2590_v31 = vmax.f32 %v2366_v23, 0.0  ;;  %v7118_v38 = vld [vmem:[%s11070_s7] ss:$16 sps:$4 sm:$0xff]   ;;  %v7129_v52 = vld [vmem:[%s11070_s7 + $0x1c4] ss:$16 sps:$4 sm:$0xff]  }
 0x450   :  { %v6967_v59 = vpop.f32.mrf.mxu0  ;;  %v7132_v53 = vld [vmem:[%s11070_s7 + $0x1a4] ss:$16 sps:$4 sm:$0xff]  }
 0x451   :  { %2828 = vmatmul.mubr.bf16.gmra.mxu1 %v2645_v43  ;;  %v2588_v17 = vmax.f32 %v2358_v10, 0.0  ;;  %v2369_v20 = vadd.f32 %v6967_v59, %v8289_v18  ;;  %3752 = vmatpush1.bf16.msra.mxu0 %v7118_v38 }
 0x452   :  { %2837 = vmatprep.mubr.bf16.mxu1 %v7532_v8  ;;  %4095 = vmatpush1.bf16.msra.mxu1 %v7070_v41  ;;  %v2360_v2 = vpop.f32.mrf.mxu0  ;;  %v7124_v41 = vld [vmem:[%s11070_s7 + $0x188] ss:$16 sps:$4 sm:$0xff]  }
 0x453   :  { %4096 = vmatprep.subr.bf16.mxu1 %v7075_v45  ;;  %v2361_v6 = vadd.f32 %v2360_v2, %v8289_v18  ;;  %v2591_v27 = vmax.f32 %v2369_v20, 0.0  ;;  %3753 = vmatprep.subr.bf16.mxu0 %v7123_v40  ;;  %v7139_v2 = vld [vmem:[%s11070_s7 + $0x168] ss:$16 sps:$4 sm:$0xff]   ;;  %v7145_v20 = vld [vmem:[%s11070_s7 + $0x120] ss:$16 sps:$4 sm:$0xff]  }
 0x454   :  { %v8371_v9 = vpop.f32.mrf.mxu0 }
 0x455   :  { %v2589_v14 = vmax.f32 %v2361_v6, 0.0  ;;  %v2649_v33 = vpack.c.bf16 %v2591_v27, %v2590_v31  ;;  %3754 = vmatpush2.bf16.msra.mxu0 %v7121_v46  ;;  %v2382_v51 = vadd.f32 %v8371_v9, %v8289_v18  ;;  %v7136_v6 = vld [vmem:[%s11070_s7 + $0x160] ss:$16 sps:$4 sm:$0xff]  }
 0x456   :  { %4097 = vmatpush1.bf16.msra.mxu1 %v7073_v50  ;;  %v2373_v42 = vpop.f32.mrf.mxu0  ;;  %3755 = vmatprep.subr.bf16.mxu0 %v7129_v52 }
 0x457   :  { %4098 = vmatprep.subr.bf16.mxu1 %v7078_v15  ;;  %v2648_v21 = vpack.c.bf16 %v2589_v14, %v2588_v17  ;;  %v2374_v37 = vadd.f32 %v2373_v42, %v8289_v18  ;;  %v7127_v15 = vld [vmem:[%s11070_s7 + $0x1c0] ss:$16 sps:$4 sm:$0xff]  }
 0x458   :  { %v6971_v22 = vpop.f32.mrf.mxu0  ;;  %v7142_v14 = vld [vmem:[%s11070_s7 + $0x140] ss:$16 sps:$4 sm:$0xff]  }
 0x459   :  { %2838 = vmatmul.mubr.bf16.gmra.mxu1 %v2646_v57  ;;  %v2592_v47 = vmax.f32 %v2374_v37, 0.0  ;;  %v2385_v48 = vadd.f32 %v6971_v22, %v8289_v18  ;;  %3756 = vmatpush2.bf16.msra.mxu0 %v7127_v15  ;;  %v7130_v57 = vld [vmem:[%s11070_s7 + $0x1a0] ss:$16 sps:$4 sm:$0xff]  }
 0x45a   :  { %2847 = vmatprep.mubr.bf16.mxu1 %v7532_v8  ;;  %4099 = vmatpush1.bf16.msra.mxu1 %v7076_v55  ;;  %v2376_v29 = vpop.f32.mrf.mxu0 }
 0x45b   :  { %4100 = vmatprep.subr.bf16.mxu1 %v7081_v58  ;;  %v2377_v34 = vadd.f32 %v2376_v29, %v8289_v18  ;;  %v2595_v55 = vmax.f32 %v2385_v48, 0.0  ;;  %v2594_v58 = vmax.f32 %v2382_v51, 0.0  ;;  %3757 = vmatprep.subr.bf16.mxu0 %v7132_v53  ;;  %v7156_v51 = vld [vmem:[%s11070_s7 + $0x12c] ss:$16 sps:$4 sm:$0xff]  }
 0x45c   :  { %v6974_v35 = vpop.f32.mrf.mxu0 }
 0x45d   :  { %v2593_v43 = vmax.f32 %v2377_v34, 0.0  ;;  %v2651_v59 = vpack.c.bf16 %v2595_v55, %v2594_v58  ;;  %3758 = vmatpush2.bf16.msra.mxu0 %v7130_v57  ;;  %v2398_v9 = vadd.f32 %v6974_v35, %v8289_v18 }
 0x45e   :  { %4101 = vmatpush1.bf16.msra.mxu1 %v7079_v63  ;;  %v2389_v45 = vpop.f32.mrf.mxu0  ;;  %v7133_v63 = vld [vmem:[%s11070_s7 + $0x180] ss:$16 sps:$4 sm:$0xff]   ;;  %3759 = vmatprep.subr.bf16.mxu0 %v7135_v0 }
 0x45f   :  { %4102 = vmatprep.subr.bf16.mxu1 %v7084_v1  ;;  %v2650_v49 = vpack.c.bf16 %v2593_v43, %v2592_v47  ;;  %v2390_v62 = vadd.f32 %v2389_v45, %v8289_v18  ;;  %v7138_v1 = vld [vmem:[%s11070_s7 + $0x164] ss:$16 sps:$4 sm:$0xff]  }
 0x460   :  { %v6975_v50 = vpop.f32.mrf.mxu0 }
 0x461   :  { %2848 = vmatmul.mubr.bf16.gmra.mxu1 %v2647_v5  ;;  %3760 = vmatpush2.bf16.msra.mxu0 %v7133_v63  ;;  %v2401_v10 = vadd.f32 %v6975_v50, %v8289_v18  ;;  %v7154_v50 = vld [vmem:[%s11070_s7 + $0x128] ss:$16 sps:$4 sm:$0xff]  }
 0x462   :  { %2857 = vmatprep.mubr.bf16.mxu1 %v7532_v8  ;;  %4103 = vmatpush1.bf16.msra.mxu1 %v7082_v4  ;;  %v2392_v56 = vpop.f32.mrf.mxu0  ;;  %v7141_v4 = vld [vmem:[%s11070_s7 + $0x16c] ss:$16 sps:$4 sm:$0xff]  }
 0x463   :  { %4104 = vmatprep.subr.bf16.mxu1 %v7087_v7  ;;  %v2393_v60 = vadd.f32 %v2392_v56, %v8289_v18  ;;  %v2596_v7 = vmax.f32 %v2390_v62, 0.0  ;;  %3761 = vmatprep.subr.bf16.mxu0 %v7138_v1  ;;  %v2599_v42 = vmax.f32 %v2401_v10, 0.0 }
 0x464   :  { %v6978_v61 = vpop.f32.mrf.mxu0 }
 0x465   :  { %v2597_v3 = vmax.f32 %v2393_v60, 0.0  ;;  %3762 = vmatpush2.bf16.msra.mxu0 %v7136_v6 }
 0x466   :  { %4105 = vmatpush1.bf16.msra.mxu1 %v7085_v13  ;;  %v2405_v5 = vpop.f32.mrf.mxu0  ;;  %v7144_v13 = vld [vmem:[%s11070_s7 + $0x144] ss:$16 sps:$4 sm:$0xff]  }
 0x467   :  { %4106 = vmatprep.subr.bf16.mxu1 %v7093_v16  ;;  %v2652_v11 = vpack.c.bf16 %v2597_v3, %v2596_v7  ;;  %v2598_v16 = vmax.f32 %v2398_v9, 0.0  ;;  %3763 = vmatprep.subr.bf16.mxu0 %v7144_v13  ;;  %v7159_v3 = vld [vmem:[%s11070_s7 + $0x10c] ss:$16 sps:$4 sm:$0xff]  }
 0x468   :  { %v6979_v12 = vpop.f32.mrf.mxu0 }
 0x469   :  { %2858 = vmatmul.mubr.bf16.gmra.mxu1 %v2648_v21  ;;  %3764 = vmatpush2.bf16.msra.mxu0 %v7142_v14  ;;  %v2653_v21 = vpack.c.bf16 %v2599_v42, %v2598_v16  ;;  %v2417_v29 = vadd.f32 %v6979_v12, %v8289_v18 }
 0x46a   :  { %2867 = vmatprep.mubr.bf16.mxu1 %v7532_v8  ;;  %4107 = vmatpush2.bf16.msra.mxu1 %v7091_v19  ;;  %v2408_v17 = vpop.f32.mrf.mxu0  ;;  %v7147_v19 = vld [vmem:[%s11070_s7 + $0x124] ss:$16 sps:$4 sm:$0xff]  }
 0x46b   :  { %4108 = vmatprep.subr.bf16.mxu1 %v7102_v36  ;;  %v2406_v36 = vadd.f32 %v2405_v5, %v8289_v18  ;;  %v2409_v22 = vadd.f32 %v2408_v17, %v8289_v18  ;;  %3765 = vmatprep.subr.bf16.mxu0 %v7147_v19  ;;  %v2603_v35 = vmax.f32 %v2417_v29, 0.0 }
 0x46c   :  { %v6982_v23 = vpop.f32.mrf.mxu0 }
 0x46d   :  { %3766 = vmatpush2.bf16.msra.mxu0 %v7145_v20  ;;  %v2601_v54 = vmax.f32 %v2409_v22, 0.0  ;;  %v2430_v46 = vadd.f32 %v6982_v23, %v8289_v18 }
 0x46e   :  { %4109 = vmatpush2.bf16.msra.mxu1 %v7100_v26  ;;  %v2600_v26 = vmax.f32 %v2406_v36, 0.0  ;;  %3767 = vmatprep.subr.bf16.mxu0 %v7150_v24  ;;  %v2421_v27 = vpop.f32.mrf.mxu0 }
 0x46f   :  { %4110 = vmatprep.subr.bf16.mxu1 %v7111_v28  ;;  %v2414_v28 = vadd.f32 %v6978_v61, %v8289_v18  ;;  %v2422_v39 = vadd.f32 %v2421_v27, %v8289_v18  ;;  %v2606_v15 = vmax.f32 %v2430_v46, 0.0 }
 0x470   :  { %v2654_v30 = vpack.c.bf16 %v2601_v54, %v2600_v26  ;;  %v6983_v31 = vpop.f32.mrf.mxu0 }
 0x471   :  { %2868 = vmatmul.mubr.bf16.gmra.mxu1 %v2649_v33  ;;  %3768 = vmatpush2.bf16.msra.mxu0 %v7148_v25  ;;  %v7153_v33 = vld [vmem:[%s11070_s7 + $0x14c] ss:$16 sps:$4 sm:$0xff]   ;;  %v2602_v34 = vmax.f32 %v2414_v28, 0.0  ;;  %v2604_v43 = vmax.f32 %v2422_v39, 0.0  ;;  %v2433_v47 = vadd.f32 %v6983_v31, %v8289_v18 }
 0x472   :  { %2877 = vmatprep.mubr.bf16.mxu1 %v7532_v8  ;;  %4111 = vmatpush2.bf16.msra.mxu1 %v7109_v32  ;;  %v7151_v32 = vld [vmem:[%s11070_s7 + $0x148] ss:$16 sps:$4 sm:$0xff]   ;;  %v2424_v37 = vpop.f32.mrf.mxu0 }
 0x473   :  { %4112 = vmatprep.subr.bf16.mxu1 %v7126_v44  ;;  %v2655_v38 = vpack.c.bf16 %v2603_v35, %v2602_v34  ;;  %v2425_v40 = vadd.f32 %v2424_v37, %v8289_v18  ;;  %v2607_v52 = vmax.f32 %v2433_v47, 0.0 }
 0x475   :  { %v2605_v44 = vmax.f32 %v2425_v40, 0.0  ;;  %v2657_v55 = vpack.c.bf16 %v2607_v52, %v2606_v15 }
 0x476   :  { %4113 = vmatpush2.bf16.msra.mxu1 %v7124_v41  ;;  %v6986_v41 = vpop.f32.mrf.mxu0 }
 0x477   :  { %4114 = vmatprep.subr.bf16.mxu1 %v7141_v4  ;;  %v2656_v48 = vpack.c.bf16 %v2605_v44, %v2604_v43  ;;  %v2446_v62 = vadd.f32 %v6986_v41, %v8289_v18 }
 0x478   :  { %v2437_v45 = vpop.f32.mrf.mxu0 }
 0x479   :  { %2878 = vmatmul.mubr.bf16.gmra.mxu1 %v2650_v49  ;;  %v2438_v56 = vadd.f32 %v2437_v45, %v8289_v18  ;;  %v2610_v4 = vmax.f32 %v2446_v62, 0.0 }
 0x47a   :  { %2887 = vmatprep.mubr.bf16.mxu1 %v7532_v8  ;;  %4115 = vmatpush2.bf16.msra.mxu1 %v7139_v2  ;;  %v6987_v49 = vpop.f32.mrf.mxu0  ;;  %v7157_v2 = vld [vmem:[%s11070_s7 + $0x108] ss:$16 sps:$4 sm:$0xff]  }
 0x47b   :  { %4116 = vmatprep.subr.bf16.mxu1 %v7153_v33  ;;  %v2449_v63 = vadd.f32 %v6987_v49, %v8289_v18 }
 0x47c   :  { %v2440_v53 = vpop.f32.mrf.mxu0 }
 0x47d   :  { %v2441_v57 = vadd.f32 %v2440_v53, %v8289_v18  ;;  %v2611_v5 = vmax.f32 %v2449_v63, 0.0 }
 0x47e   :  { %4117 = vmatpush2.bf16.msra.mxu1 %v7151_v32  ;;  %v6990_v58 = vpop.f32.mrf.mxu0 }
 0x47f   :  { %4118 = vmatprep.subr.bf16.mxu1 %v7156_v51  ;;  %v2609_v60 = vmax.f32 %v2441_v57, 0.0  ;;  %v2659_v7 = vpack.c.bf16 %v2611_v5, %v2610_v4  ;;  %v2462_v16 = vadd.f32 %v6990_v58, %v8289_v18  ;;  %v2695_v4 = vlaneseq }
 0x480   :  { %v2453_v61 = vpop.f32.mrf.mxu0 }
 0x481   :  { %2888 = vmatmul.mubr.bf16.gmra.mxu1 %v2651_v59  ;;  %v2608_v59 = vmax.f32 %v2438_v56, 0.0  ;;  %v2454_v9 = vadd.f32 %v2453_v61, %v8289_v18  ;;  %v2614_v20 = vmax.f32 %v2462_v16, 0.0 }
 0x482   :  { %2897 = vmatprep.mubr.bf16.mxu1 %v7532_v8  ;;  %4119 = vmatpush2.bf16.msra.mxu1 %v7154_v50  ;;  %v6991_v1 = vpop.f32.mrf.mxu0 }
 0x483   :  { %v2658_v0 = vpack.c.bf16 %v2609_v60, %v2608_v59  ;;  %4120 = vmatprep.subr.bf16.mxu1 %v7159_v3  ;;  %v2612_v12 = vmax.f32 %v2454_v9, 0.0  ;;  %v2465_v42 = vadd.f32 %v6991_v1, %v8289_v18  ;;  %v8560_v9 = vshrl.u32 %v2695_v4, 7 }
 0x484   :  { %v2456_v6 = vpop.f32.mrf.mxu0 }
 0x485   :  { %v2457_v10 = vadd.f32 %v2456_v6, %v8289_v18  ;;  %v8568_v16 = vsub.s32 0, %v8560_v9 }
 0x486   :  { %4121 = vmatpush2.bf16.msra.mxu1 %v7157_v2 }
 0x487   :  { %v2613_v13 = vmax.f32 %v2457_v10, 0.0 }
 0x489   :  { %2898 = vmatmul.mubr.bf16.gmra.mxu1 %v2652_v11  ;;  %v6994_v11 = vpop.f32.mrf.mxu0  ;;  %v2660_v17 = vpack.c.bf16 %v2613_v13, %v2612_v12 }
 0x48a   :  { %2907 = vmatprep.mubr.bf16.mxu1 %v7532_v8  ;;  %v2478_v28 = vadd.f32 %v6994_v11, %v8289_v18  ;;  %v8563_v11 = vsub.s32 1, %v8560_v9 }
 0x48b   :  { %v2469_v14 = vpop.f32.mrf.mxu0 }
 0x48c   :  { %v2470_v23 = vadd.f32 %v2469_v14, %v8289_v18  ;;  %v2618_v32 = vmax.f32 %v2478_v28, 0.0 }
 0x48d   :  { %v6995_v19 = vpop.f32.mrf.mxu0 }
 0x48e   :  { %v2616_v26 = vmax.f32 %v2470_v23, 0.0  ;;  %v2481_v29 = vadd.f32 %v6995_v19, %v8289_v18 }
 0x48f   :  { %v2472_v36 = vpop.f32.mrf.mxu0 }
 0x490   :  { %v2473_v24 = vadd.f32 %v2472_v36, %v8289_v18  ;;  %v2619_v33 = vmax.f32 %v2481_v29, 0.0 }
 0x491   :  { %2908 = vmatmul.mubr.bf16.gmra.mxu1 %v2653_v21  ;;  %v2615_v21 = vmax.f32 %v2465_v42, 0.0  ;;  %v6998_v25 = vpop.f32.mrf.mxu0 }
 0x492   :  { %2917 = vmatprep.mubr.bf16.mxu1 %v7532_v8  ;;  %v2617_v54 = vmax.f32 %v2473_v24, 0.0  ;;  %v2663_v35 = vpack.c.bf16 %v2619_v33, %v2618_v32  ;;  %v2494_v44 = vadd.f32 %v6998_v25, %v8289_v18 }
 0x493   :  { %v2661_v22 = vpack.c.bf16 %v2615_v21, %v2614_v20  ;;  %v2485_v27 = vpop.f32.mrf.mxu0 }
 0x494   :  { %v2486_v37 = vadd.f32 %v2485_v27, %v8289_v18 }
 0x495   :  { %v6999_v31 = vpop.f32.mrf.mxu0 }
 0x496   :  { %v2620_v40 = vmax.f32 %v2486_v37, 0.0  ;;  %v2497_v45 = vadd.f32 %v6999_v31, %v8289_v18 }
 0x497   :  { %v2488_v34 = vpop.f32.mrf.mxu0 }
 0x498   :  { %v2623_v49 = vmax.f32 %v2497_v45, 0.0 }
 0x499   :  { %2918 = vmatmul.mubr.bf16.gmra.mxu1 %v2654_v30  ;;  %v2662_v30 = vpack.c.bf16 %v2617_v54, %v2616_v26  ;;  %v7002_v39 = vpop.f32.mrf.mxu0 }
 0x49a   :  { %2927 = vmatprep.mubr.bf16.mxu1 %v7532_v8  ;;  %v2510_v58 = vadd.f32 %v7002_v39, %v8289_v18 }
 0x49b   :  { %v2501_v43 = vpop.f32.mrf.mxu0 }
 0x49c   :  { %v2502_v15 = vadd.f32 %v2501_v43, %v8289_v18  ;;  %v2626_v62 = vmax.f32 %v2510_v58, 0.0 }
 0x49d   :  { %v7003_v47 = vpop.f32.mrf.mxu0 }
 0x49e   :  { %v2513_v59 = vadd.f32 %v7003_v47, %v8289_v18 }
 0x49f   :  { %v2504_v50 = vpop.f32.mrf.mxu0 }
 0x4a0   :  { %v2505_v52 = vadd.f32 %v2504_v50, %v8289_v18  ;;  %v2627_v63 = vmax.f32 %v2513_v59, 0.0 }
 0x4a1   :  { %2928 = vmatmul.mubr.bf16.gmra.mxu1 %v2655_v38  ;;  %v2489_v38 = vadd.f32 %v2488_v34, %v8289_v18  ;;  %v7006_v53 = vpop.f32.mrf.mxu0 }
 0x4a2   :  { %2937 = vmatprep.mubr.bf16.mxu1 %v7532_v8  ;;  %v2625_v56 = vmax.f32 %v2505_v52, 0.0  ;;  %v2667_v1 = vpack.c.bf16 %v2627_v63, %v2626_v62  ;;  %v2526_v12 = vadd.f32 %v7006_v53, %v8289_v18 }
 0x4a3   :  { %v2621_v41 = vmax.f32 %v2489_v38, 0.0  ;;  %v2517_v57 = vpop.f32.mrf.mxu0 }
 0x4a4   :  { %v2518_v2 = vadd.f32 %v2517_v57, %v8289_v18  ;;  %v2630_v21 = vmax.f32 %v2526_v12, 0.0 }
 0x4a5   :  { %v2664_v46 = vpack.c.bf16 %v2621_v41, %v2620_v40  ;;  %v7007_v61 = vpop.f32.mrf.mxu0 }
 0x4a6   :  { %v2628_v6 = vmax.f32 %v2518_v2, 0.0  ;;  %v2529_v13 = vadd.f32 %v7007_v61, %v8289_v18 }
 0x4a8   :  { %v2631_v36 = vmax.f32 %v2529_v13, 0.0 }
 0x4a9   :  { %2938 = vmatmul.mubr.bf16.gmra.mxu1 %v2656_v48  ;;  %v2622_v48 = vmax.f32 %v2494_v44, 0.0 }
 0x4aa   :  { %2947 = vmatprep.mubr.bf16.mxu1 %v7532_v8  ;;  %v2669_v27 = vpack.c.bf16 %v2631_v36, %v2630_v21 }
 0x4ab   :  { %v2665_v51 = vpack.c.bf16 %v2623_v49, %v2622_v48 }
 0x4b1   :  { %2948 = vmatmul.mubr.bf16.gmra.mxu1 %v2657_v55  ;;  %v2624_v55 = vmax.f32 %v2502_v15, 0.0 }
 0x4b2   :  { %2957 = vmatprep.mubr.bf16.mxu1 %v7532_v8 }
 0x4b3   :  { %v2666_v60 = vpack.c.bf16 %v2625_v56, %v2624_v55 }
 0x4b9   :  { %2958 = vmatmul.mubr.bf16.gmra.mxu1 %v2658_v0  ;;  %v2520_v0 = vpop.f32.mrf.mxu0 }
 0x4ba   :  { %2967 = vmatprep.mubr.bf16.mxu1 %v7532_v8  ;;  %v2521_v3 = vadd.f32 %v2520_v0, %v8289_v18 }
 0x4bb   :  { %v7010_v5 = vpop.f32.mrf.mxu0 }
 0x4bc   :  { %v2542_v50 = vadd.f32 %v7010_v5, %v8289_v18 }
 0x4bd   :  { %v2533_v10 = vpop.f32.mrf.mxu0 }
 0x4be   :  { %v2534_v28 = vadd.f32 %v2533_v10, %v8289_v18  ;;  %v2634_v61 = vmax.f32 %v2542_v50, 0.0 }
 0x4bf   :  { %v7011_v42 = vpop.f32.mrf.mxu0 }
 0x4c0   :  { %v2632_v39 = vmax.f32 %v2534_v28, 0.0 }
 0x4c1   :  { %2968 = vmatmul.mubr.bf16.gmra.mxu1 %v2659_v7  ;;  %v2629_v7 = vmax.f32 %v2521_v3, 0.0  ;;  %v2536_v24 = vpop.f32.mrf.mxu0 }
 0x4c2   :  { %2977 = vmatprep.mubr.bf16.mxu1 %v7532_v8  ;;  %v2537_v29 = vadd.f32 %v2536_v24, %v8289_v18 }
 0x4c3   :  { %v2668_v14 = vpack.c.bf16 %v2629_v7, %v2628_v6  ;;  %v8582_v32 = vpop.f32.mrf.mxu0 }
 0x4c4   :  { %v2633_v40 = vmax.f32 %v2537_v29, 0.0 }
 0x4c5   :  { %v2549_v44 = vpop.f32.mrf.mxu0 }
 0x4c6   :  { %v2670_v15 = vpack.c.bf16 %v2633_v40, %v2632_v39  ;;  %v2550_v10 = vadd.f32 %v2549_v44, %v8289_v18 }
 0x4c7   :  { %v7015_v55 = vpop.f32.mrf.mxu0 }
 0x4c8   :  { %v2636_v24 = vmax.f32 %v2550_v10, 0.0 }
 0x4c9   :  { %2978 = vmatmul.mubr.bf16.gmra.mxu1 %v2660_v17  ;;  %v2693_v17 = vld [vmem:[#allocation9 + $0x5] ss:$8 sm:$0x3] }
 0x4ca   :  { %2987 = vmatprep.mubr.bf16.mxu1 %v7532_v8  ;;  %v8571_v20 = vrot.slane %v2693_v17, %v8563_v11 }
 0x4d1   :  { %2988 = vmatmul.mubr.bf16.gmra.mxu1 %v2661_v22  ;;  %v8575_v22 = vrot.slane %v2693_v17, %v8568_v16 }
 0x4d2   :  { %2997 = vmatprep.mubr.bf16.mxu1 %v7532_v8 }
 0x4d9   :  { %2998 = vmatmul.mubr.bf16.gmra.mxu1 %v2662_v30 }
 0x4da   :  { %3007 = vmatprep.mubr.bf16.mxu1 %v7532_v8 }
 0x4e1   :  { %3008 = vmatmul.mubr.bf16.gmra.mxu1 %v2663_v35 }
 0x4e2   :  { %3017 = vmatprep.mubr.bf16.mxu1 %v7532_v8 }
 0x4e9   :  { %3018 = vmatmul.mubr.bf16.gmra.mxu1 %v2664_v46 }
 0x4ea   :  { %3027 = vmatprep.mubr.bf16.mxu1 %v7532_v8 }
 0x4f1   :  { %3028 = vmatmul.mubr.bf16.gmra.mxu1 %v2665_v51  ;;  %v2545_v51 = vadd.f32 %v7011_v42, %v8289_v18 }
 0x4f2   :  { %3037 = vmatprep.mubr.bf16.mxu1 %v7532_v8 }
 0x4f3   :  { %v2635_v62 = vmax.f32 %v2545_v51, 0.0 }
 0x4f5   :  { %v2671_v7 = vpack.c.bf16 %v2635_v62, %v2634_v61 }
 0x4f9   :  { %3038 = vmatmul.mubr.bf16.gmra.mxu1 %v2666_v60 }
 0x4fa   :  { %3047 = vmatprep.mubr.bf16.mxu1 %v7532_v8 }
 0x501   :  { %3048 = vmatmul.mubr.bf16.gmra.mxu1 %v2667_v1  ;;  %v2552_v1 = vpop.f32.mrf.mxu0 }
 0x502   :  { %3057 = vmatprep.mubr.bf16.mxu1 %v7532_v8  ;;  %v2553_v12 = vadd.f32 %v2552_v1, %v8289_v18 }
 0x503   :  { %v8610_v42 = vpop.f32.mrf.mxu0 }
 0x509   :  { %v2819_v19 = vpop.f32.mrf.mxu1  ;;  %3058 = vmatmul.mubr.bf16.gmra.mxu1 %v2668_v14 }
 0x50a   :  { %3067 = vmatprep.mubr.bf16.mxu1 %v7532_v8  ;;  %v2820_v30 = vadd.f32 %v2819_v19, %v8575_v22 }
 0x50b   :  { %v2821_v23 = vpop.f32.mrf.mxu1 }
 0x50c   :  { %v2822_v26 = vadd.f32 %v2821_v23, %v8571_v20  ;;  %v3138_v41 = vmax.f32 %v2820_v30, 0.0 }
 0x50d   :  { %v2823_v25 = vpop.f32.mrf.mxu1 }
 0x50e   :  { %v2824_v54 = vadd.f32 %v2823_v25, %v8575_v22  ;;  %v3139_v37 = vmax.f32 %v2822_v26, 0.0  ;;  %v2637_v25 = vmax.f32 %v2553_v12, 0.0 }
 0x50f   :  { %v2825_v31 = vpop.f32.mrf.mxu1 }
 0x510   :  { %v2826_v33 = vadd.f32 %v2825_v31, %v8571_v20  ;;  %v3140_v34 = vmax.f32 %v2824_v54, 0.0 }
 0x511   :  { %v2829_v35 = vpop.f32.mrf.mxu1  ;;  %3068 = vmatmul.mubr.bf16.gmra.mxu1 %v2669_v27  ;;  %v2565_v27 = vpop.f32.mrf.mxu0 }
 0x512   :  { %v3141_v38 = vmax.f32 %v2826_v33, 0.0  ;;  %3077 = vmatprep.mubr.bf16.mxu1 %v7532_v8  ;;  %v8588_v46 = vpack.c.bf16 %v3140_v34, %v3138_v41  ;;  %v2830_v52 = vadd.f32 %v2829_v35, %v8575_v22  ;;  %v2558_v34 = vadd.f32 %v8582_v32, %v8289_v18 }
 0x513   :  { %v2831_v43 = vpop.f32.mrf.mxu1  ;;  %v2561_v35 = vadd.f32 %v7015_v55, %v8289_v18  ;;  %v7019_v40 = vpop.f32.mrf.mxu0 }
 0x514   :  { %v8586_v45 = vpack.c.bf16 %v3141_v38, %v3139_v37  ;;  %v2832_v48 = vadd.f32 %v2831_v43, %v8571_v20  ;;  %v3142_v63 = vmax.f32 %v2830_v52, 0.0  ;;  %v2672_v37 = vpack.c.bf16 %v2637_v25, %v2636_v24 }
 0x515   :  { %v2833_v47 = vpop.f32.mrf.mxu1  ;;  %v2639_v32 = vmax.f32 %v2561_v35, 0.0 }
 0x516   :  { %v2834_v49 = vadd.f32 %v2833_v47, %v8575_v22  ;;  %3769 = vmatprep.mubr.bf16.mxu0 %v8586_v45  ;;  %v3143_v59 = vmax.f32 %v2832_v48, 0.0 }
 0x517   :  { %v2835_v53 = vpop.f32.mrf.mxu1  ;;  %3770 = vmatmul.mubr.bf16.vlgmr.msra.gmra.mxu0 %v8588_v46 }
 0x518   :  { %v2836_v56 = vadd.f32 %v2835_v53, %v8571_v20  ;;  %v3144_v57 = vmax.f32 %v2834_v49, 0.0  ;;  %v2638_v49 = vmax.f32 %v2558_v34, 0.0 }
 0x519   :  { %v2839_v58 = vpop.f32.mrf.mxu1  ;;  %3078 = vmatmul.mubr.bf16.gmra.mxu1 %v2670_v15  ;;  %v2568_v15 = vpop.f32.mrf.mxu0 }
 0x51a   :  { %v3145_v60 = vmax.f32 %v2836_v56, 0.0  ;;  %3087 = vmatprep.mubr.bf16.mxu1 %v7532_v8  ;;  %v8601_v3 = vpack.c.bf16 %v3144_v57, %v3142_v63  ;;  %v2840_v13 = vadd.f32 %v2839_v58, %v8575_v22  ;;  %v2673_v58 = vpack.c.bf16 %v2639_v32, %v2638_v49 }
 0x51b   :  { %v2841_v0 = vpop.f32.mrf.mxu1 }
 0x51c   :  { %v8599_v2 = vpack.c.bf16 %v3145_v60, %v3143_v59  ;;  %v2842_v5 = vadd.f32 %v2841_v0, %v8571_v20  ;;  %v3146_v26 = vmax.f32 %v2840_v13, 0.0  ;;  %v2566_v59 = vadd.f32 %v2565_v27, %v8289_v18 }
 0x51d   :  { %v2843_v4 = vpop.f32.mrf.mxu1  ;;  %v2569_v60 = vadd.f32 %v2568_v15, %v8289_v18 }
 0x51e   :  { %v2844_v6 = vadd.f32 %v2843_v4, %v8575_v22  ;;  %3779 = vmatprep.mubr.bf16.mxu0 %v8599_v2  ;;  %v3147_v36 = vmax.f32 %v2842_v5, 0.0 }
 0x51f   :  { %v2845_v14 = vpop.f32.mrf.mxu1  ;;  %3780 = vmatmul.mubr.bf16.gmra.mxu0 %v8601_v3 }
 0x520   :  { %v2846_v17 = vadd.f32 %v2845_v14, %v8571_v20  ;;  %v3148_v19 = vmax.f32 %v2844_v6, 0.0  ;;  %v2640_v6 = vmax.f32 %v2566_v59, 0.0 }
 0x521   :  { %v2849_v21 = vpop.f32.mrf.mxu1  ;;  %3088 = vmatmul.mubr.bf16.gmra.mxu1 %v2671_v7  ;;  %v2641_v7 = vmax.f32 %v2569_v60, 0.0 }
 0x522   :  { %v3149_v23 = vmax.f32 %v2846_v17, 0.0  ;;  %3097 = vmatprep.mubr.bf16.mxu1 %v7532_v8  ;;  %v8616_v29 = vpack.c.bf16 %v3148_v19, %v3146_v26  ;;  %v2850_v38 = vadd.f32 %v2849_v21, %v8575_v22 }
 0x523   :  { %v2851_v54 = vpop.f32.mrf.mxu1  ;;  %v2674_v24 = vpack.c.bf16 %v2641_v7, %v2640_v6 }
 0x524   :  { %v8614_v28 = vpack.c.bf16 %v3149_v23, %v3147_v36  ;;  %v2852_v31 = vadd.f32 %v2851_v54, %v8571_v20  ;;  %v3150_v50 = vmax.f32 %v2850_v38, 0.0  ;;  %v2574_v36 = vadd.f32 %v8610_v42, %v8289_v18 }
 0x525   :  { %v2853_v30 = vpop.f32.mrf.mxu1  ;;  %v2577_v23 = vadd.f32 %v7019_v40, %v8289_v18 }
 0x526   :  { %v2854_v33 = vadd.f32 %v2853_v30, %v8575_v22  ;;  %3789 = vmatprep.mubr.bf16.mxu0 %v8614_v28  ;;  %v3151_v47 = vmax.f32 %v2852_v31, 0.0  ;;  %v2642_v34 = vmax.f32 %v2574_v36, 0.0 }
 0x527   :  { %v2855_v39 = vpop.f32.mrf.mxu1  ;;  %3790 = vmatmul.mubr.bf16.gmra.mxu0 %v8616_v29  ;;  %v2643_v35 = vmax.f32 %v2577_v23, 0.0 }
 0x528   :  { %v2856_v41 = vadd.f32 %v2855_v39, %v8571_v20  ;;  %v3152_v43 = vmax.f32 %v2854_v33, 0.0 }
 0x529   :  { %v2859_v44 = vpop.f32.mrf.mxu1  ;;  %3098 = vmatmul.mubr.bf16.gmra.mxu1 %v2672_v37 }
 0x52a   :  { %v3153_v48 = vmax.f32 %v2856_v41, 0.0  ;;  %3107 = vmatprep.mubr.bf16.mxu1 %v7532_v8  ;;  %v8630_v53 = vpack.c.bf16 %v3152_v43, %v3150_v50  ;;  %v2860_v61 = vadd.f32 %v2859_v44, %v8575_v22  ;;  %v2675_v43 = vpack.c.bf16 %v2643_v35, %v2642_v34 }
 0x52b   :  { %v2861_v51 = vpop.f32.mrf.mxu1 }
 0x52c   :  { %v8628_v52 = vpack.c.bf16 %v3153_v48, %v3151_v47  ;;  %v2862_v56 = vadd.f32 %v2861_v51, %v8571_v20  ;;  %v3154_v10 = vmax.f32 %v2860_v61, 0.0 }
 0x52d   :  { %v2863_v55 = vpop.f32.mrf.mxu1 }
 0x52e   :  { %v2864_v57 = vadd.f32 %v2863_v55, %v8575_v22  ;;  %3799 = vmatprep.mubr.bf16.mxu0 %v8628_v52  ;;  %v3155_v4 = vmax.f32 %v2862_v56, 0.0 }
 0x52f   :  { %v2865_v62 = vpop.f32.mrf.mxu1  ;;  %3800 = vmatmul.mubr.bf16.gmra.mxu0 %v8630_v53 }
 0x530   :  { %v2866_v63 = vadd.f32 %v2865_v62, %v8571_v20  ;;  %v3156_v0 = vmax.f32 %v2864_v57, 0.0 }
 0x531   :  { %v2869_v1 = vpop.f32.mrf.mxu1  ;;  %3108 = vmatmul.mubr.bf16.gmra.mxu1 %v2673_v58 }
 0x532   :  { %v3157_v5 = vmax.f32 %v2866_v63, 0.0  ;;  %3117 = vmatprep.mubr.bf16.mxu1 %v7532_v8  ;;  %v8643_v14 = vpack.c.bf16 %v3156_v0, %v3154_v10  ;;  %v2870_v25 = vadd.f32 %v2869_v1, %v8575_v22 }
 0x533   :  { %v2871_v12 = vpop.f32.mrf.mxu1 }
 0x534   :  { %v8641_v13 = vpack.c.bf16 %v3157_v5, %v3155_v4  ;;  %v2872_v19 = vadd.f32 %v2871_v12, %v8571_v20  ;;  %v3158_v42 = vmax.f32 %v2870_v25, 0.0 }
 0x535   :  { %v2873_v17 = vpop.f32.mrf.mxu1 }
 0x536   :  { %v2874_v21 = vadd.f32 %v2873_v17, %v8575_v22  ;;  %3809 = vmatprep.mubr.bf16.mxu0 %v8641_v13  ;;  %v3159_v31 = vmax.f32 %v2872_v19, 0.0 }
 0x537   :  { %v2875_v26 = vpop.f32.mrf.mxu1  ;;  %3810 = vmatmul.mubr.bf16.gmra.mxu0 %v8643_v14 }
 0x538   :  { %v2876_v54 = vadd.f32 %v2875_v26, %v8571_v20  ;;  %v3160_v27 = vmax.f32 %v2874_v21, 0.0 }
 0x539   :  { %v2879_v30 = vpop.f32.mrf.mxu1  ;;  %3118 = vmatmul.mubr.bf16.gmra.mxu1 %v2674_v24 }
 0x53a   :  { %v3161_v33 = vmax.f32 %v2876_v54, 0.0  ;;  %3127 = vmatprep.mubr.bf16.mxu1 %v7532_v8  ;;  %v8657_v38 = vpack.c.bf16 %v3160_v27, %v3158_v42  ;;  %v2880_v44 = vadd.f32 %v2879_v30, %v8575_v22 }
 0x53b   :  { %v2881_v37 = vpop.f32.mrf.mxu1 }
 0x53c   :  { %v8655_v18 = vpack.c.bf16 %v3161_v33, %v3159_v31  ;;  %v2882_v40 = vadd.f32 %v2881_v37, %v8571_v20  ;;  %v3162_v51 = vmax.f32 %v2880_v44, 0.0 }
 0x53d   :  { %v2883_v39 = vpop.f32.mrf.mxu1 }
 0x53e   :  { %v2884_v41 = vadd.f32 %v2883_v39, %v8575_v22  ;;  %3819 = vmatprep.mubr.bf16.mxu0 %v8655_v18  ;;  %v3163_v32 = vmax.f32 %v2882_v40, 0.0 }
 0x53f   :  { %v2885_v47 = vpop.f32.mrf.mxu1  ;;  %3820 = vmatmul.mubr.bf16.gmra.mxu0 %v8657_v38 }
 0x540   :  { %v2886_v8 = vadd.f32 %v2885_v47, %v8571_v20  ;;  %v3164_v48 = vmax.f32 %v2884_v41, 0.0 }
 0x541   :  { %v2889_v49 = vpop.f32.mrf.mxu1  ;;  %3128 = vmatmul.mubr.bf16.gmra.mxu1 %v2675_v43 }
 0x542   :  { %v3165_v50 = vmax.f32 %v2886_v8, 0.0  ;;  %4122 = vmatprep.mubr.bf16.mxu1 %v8586_v45  ;;  %v8668_v56 = vpack.c.bf16 %v3164_v48, %v3162_v51  ;;  %v2890_v60 = vadd.f32 %v2889_v49, %v8575_v22 }
 0x543   :  { %v2891_v15 = vpop.f32.mrf.mxu1 }
 0x544   :  { %v8666_v55 = vpack.c.bf16 %v3165_v50, %v3163_v32  ;;  %v2892_v58 = vadd.f32 %v2891_v15, %v8571_v20  ;;  %v3166_v4 = vmax.f32 %v2890_v60, 0.0 }
 0x545   :  { %v2893_v57 = vpop.f32.mrf.mxu1 }
 0x546   :  { %v2894_v59 = vadd.f32 %v2893_v57, %v8575_v22  ;;  %3829 = vmatprep.mubr.bf16.mxu0 %v8666_v55  ;;  %v3167_v0 = vmax.f32 %v2892_v58, 0.0 }
 0x547   :  { %v2895_v61 = vpop.f32.mrf.mxu1  ;;  %3830 = vmatmul.mubr.bf16.gmra.mxu0 %v8668_v56 }
 0x548   :  { %v2896_v45 = vadd.f32 %v2895_v61, %v8571_v20  ;;  %v3168_v62 = vmax.f32 %v2894_v59, 0.0 }
 0x549   :  { %v2899_v63 = vpop.f32.mrf.mxu1  ;;  %4123 = vmatmul.mubr.bf16.vlgmr.msra.gmra.mxu1 %v8588_v46 }
 0x54a   :  { %v3169_v1 = vmax.f32 %v2896_v45, 0.0  ;;  %4132 = vmatprep.mubr.bf16.mxu1 %v8599_v2  ;;  %v8680_v7 = vpack.c.bf16 %v3168_v62, %v3166_v4  ;;  %v2900_v19 = vadd.f32 %v2899_v63, %v8575_v22 }
 0x54b   :  { %v2901_v5 = vpop.f32.mrf.mxu1 }
 0x54c   :  { %v8678_v6 = vpack.c.bf16 %v3169_v1, %v3167_v0  ;;  %v2902_v12 = vadd.f32 %v2901_v5, %v8571_v20  ;;  %v3170_v25 = vmax.f32 %v2900_v19, 0.0 }
 0x54d   :  { %v2903_v10 = vpop.f32.mrf.mxu1 }
 0x54e   :  { %v2904_v17 = vadd.f32 %v2903_v10, %v8575_v22  ;;  %3839 = vmatprep.mubr.bf16.mxu0 %v8678_v6  ;;  %v3171_v23 = vmax.f32 %v2902_v12, 0.0 }
 0x54f   :  { %v2905_v46 = vpop.f32.mrf.mxu1  ;;  %3840 = vmatmul.mubr.bf16.gmra.mxu0 %v8680_v7 }
 0x550   :  { %v2906_v2 = vadd.f32 %v2905_v46, %v8571_v20  ;;  %v3172_v21 = vmax.f32 %v2904_v17, 0.0 }
 0x551   :  { %v2909_v36 = vpop.f32.mrf.mxu1  ;;  %4133 = vmatmul.mubr.bf16.gmra.mxu1 %v8601_v3 }
 0x552   :  { %v3173_v24 = vmax.f32 %v2906_v2, 0.0  ;;  %4142 = vmatprep.mubr.bf16.mxu1 %v8614_v28  ;;  %v8692_v27 = vpack.c.bf16 %v3172_v21, %v3170_v25  ;;  %v2910_v34 = vadd.f32 %v2909_v36, %v8575_v22 }
 0x553   :  { %v2911_v26 = vpop.f32.mrf.mxu1 }
 0x554   :  { %v8690_v54 = vpack.c.bf16 %v3173_v24, %v3171_v23  ;;  %v2912_v31 = vadd.f32 %v2911_v26, %v8571_v20  ;;  %v3174_v40 = vmax.f32 %v2910_v34, 0.0 }
 0x555   :  { %v2913_v30 = vpop.f32.mrf.mxu1 }
 0x556   :  { %v2914_v33 = vadd.f32 %v2913_v30, %v8575_v22  ;;  %3849 = vmatprep.mubr.bf16.mxu0 %v8690_v54  ;;  %v3175_v37 = vmax.f32 %v2912_v31, 0.0 }
 0x557   :  { %v2915_v3 = vpop.f32.mrf.mxu1  ;;  %3850 = vmatmul.mubr.bf16.gmra.mxu0 %v8692_v27 }
 0x558   :  { %v2916_v28 = vadd.f32 %v2915_v3, %v8571_v20  ;;  %v3176_v35 = vmax.f32 %v2914_v33, 0.0 }
 0x559   :  { %v2919_v42 = vpop.f32.mrf.mxu1  ;;  %4143 = vmatmul.mubr.bf16.gmra.mxu1 %v8616_v29 }
 0x55a   :  { %v3177_v39 = vmax.f32 %v2916_v28, 0.0  ;;  %4152 = vmatprep.mubr.bf16.mxu1 %v8628_v52  ;;  %v8704_v44 = vpack.c.bf16 %v3176_v35, %v3174_v40  ;;  %v2920_v49 = vadd.f32 %v2919_v42, %v8575_v22 }
 0x55b   :  { %v2921_v41 = vpop.f32.mrf.mxu1 }
 0x55c   :  { %v8702_v43 = vpack.c.bf16 %v3177_v39, %v3175_v37  ;;  %v2922_v8 = vadd.f32 %v2921_v41, %v8571_v20  ;;  %v3178_v57 = vmax.f32 %v2920_v49, 0.0 }
 0x55d   :  { %v2923_v47 = vpop.f32.mrf.mxu1 }
 0x55e   :  { %v2924_v48 = vadd.f32 %v2923_v47, %v8575_v22  ;;  %3859 = vmatprep.mubr.bf16.mxu0 %v8702_v43  ;;  %v3179_v51 = vmax.f32 %v2922_v8, 0.0 }
 0x55f   :  { %v2925_v29 = vpop.f32.mrf.mxu1  ;;  %3860 = vmatmul.mubr.bf16.gmra.mxu0 %v8704_v44 }
 0x560   :  { %v2926_v52 = vadd.f32 %v2925_v29, %v8571_v20  ;;  %v3180_v32 = vmax.f32 %v2924_v48, 0.0 }
 0x561   :  { %v2929_v50 = vpop.f32.mrf.mxu1  ;;  %4153 = vmatmul.mubr.bf16.gmra.mxu1 %v8630_v53 }
 0x562   :  { %v3181_v15 = vmax.f32 %v2926_v52, 0.0  ;;  %4162 = vmatprep.mubr.bf16.mxu1 %v8641_v13  ;;  %v8716_v60 = vpack.c.bf16 %v3180_v32, %v3178_v57  ;;  %v2930_v63 = vadd.f32 %v2929_v50, %v8575_v22 }
 0x563   :  { %v2931_v58 = vpop.f32.mrf.mxu1 }
 0x564   :  { %v8714_v59 = vpack.c.bf16 %v3181_v15, %v3179_v51  ;;  %v2932_v45 = vadd.f32 %v2931_v58, %v8571_v20  ;;  %v3182_v10 = vmax.f32 %v2930_v63, 0.0 }
 0x565   :  { %v2933_v61 = vpop.f32.mrf.mxu1 }
 0x566   :  { %v2934_v62 = vadd.f32 %v2933_v61, %v8575_v22  ;;  %3869 = vmatprep.mubr.bf16.mxu0 %v8714_v59  ;;  %v3183_v4 = vmax.f32 %v2932_v45, 0.0 }
 0x567   :  { %v2935_v53 = vpop.f32.mrf.mxu1  ;;  %3870 = vmatmul.mubr.bf16.gmra.mxu0 %v8716_v60 }
 0x568   :  { %v2936_v13 = vadd.f32 %v2935_v53, %v8571_v20  ;;  %v3184_v0 = vmax.f32 %v2934_v62, 0.0 }
 0x569   :  { %v2939_v1 = vpop.f32.mrf.mxu1  ;;  %4163 = vmatmul.mubr.bf16.gmra.mxu1 %v8643_v14 }
 0x56a   :  { %v3185_v5 = vmax.f32 %v2936_v13, 0.0  ;;  %4172 = vmatprep.mubr.bf16.mxu1 %v8655_v18  ;;  %v8728_v19 = vpack.c.bf16 %v3184_v0, %v3182_v10  ;;  %v2940_v36 = vadd.f32 %v2939_v1, %v8575_v22 }
 0x56b   :  { %v2941_v12 = vpop.f32.mrf.mxu1 }
 0x56c   :  { %v8726_v17 = vpack.c.bf16 %v3185_v5, %v3183_v4  ;;  %v2942_v2 = vadd.f32 %v2941_v12, %v8571_v20  ;;  %v3186_v30 = vmax.f32 %v2940_v36, 0.0 }
 0x56d   :  { %v2943_v46 = vpop.f32.mrf.mxu1 }
 0x56e   :  { %v2944_v21 = vadd.f32 %v2943_v46, %v8575_v22  ;;  %3879 = vmatprep.mubr.bf16.mxu0 %v8726_v17  ;;  %v3187_v25 = vmax.f32 %v2942_v2, 0.0 }
 0x56f   :  { %v2945_v14 = vpop.f32.mrf.mxu1  ;;  %3880 = vmatmul.mubr.bf16.gmra.mxu0 %v8728_v19 }
 0x570   :  { %v2946_v18 = vadd.f32 %v2945_v14, %v8571_v20  ;;  %v3188_v23 = vmax.f32 %v2944_v21, 0.0 }
 0x571   :  { %v2949_v24 = vpop.f32.mrf.mxu1  ;;  %4173 = vmatmul.mubr.bf16.gmra.mxu1 %v8657_v38 }
 0x572   :  { %v3189_v26 = vmax.f32 %v2946_v18, 0.0  ;;  %4182 = vmatprep.mubr.bf16.mxu1 %v8666_v55  ;;  %v8740_v34 = vpack.c.bf16 %v3188_v23, %v3186_v30  ;;  %v2950_v42 = vadd.f32 %v2949_v24, %v8575_v22 }
 0x573   :  { %v2951_v31 = vpop.f32.mrf.mxu1 }
 0x574   :  { %v8738_v33 = vpack.c.bf16 %v3189_v26, %v3187_v25  ;;  %v2952_v28 = vadd.f32 %v2951_v31, %v8571_v20  ;;  %v3190_v47 = vmax.f32 %v2950_v42, 0.0 }
 0x575   :  { %v2953_v3 = vpop.f32.mrf.mxu1 }
 0x576   :  { %v2954_v35 = vadd.f32 %v2953_v3, %v8575_v22  ;;  %3889 = vmatprep.mubr.bf16.mxu0 %v8738_v33  ;;  %v3191_v40 = vmax.f32 %v2952_v28, 0.0 }
 0x577   :  { %v2955_v38 = vpop.f32.mrf.mxu1  ;;  %3890 = vmatmul.mubr.bf16.gmra.mxu0 %v8740_v34 }
 0x578   :  { %v2956_v55 = vadd.f32 %v2955_v38, %v8571_v20  ;;  %v3192_v37 = vmax.f32 %v2954_v35, 0.0 }
 0x579   :  { %v2959_v39 = vpop.f32.mrf.mxu1  ;;  %4183 = vmatmul.mubr.bf16.gmra.mxu1 %v8668_v56 }
 0x57a   :  { %v3193_v41 = vmax.f32 %v2956_v55, 0.0  ;;  %4192 = vmatprep.mubr.bf16.mxu1 %v8678_v6  ;;  %v8752_v49 = vpack.c.bf16 %v3192_v37, %v3190_v47  ;;  %v2960_v50 = vadd.f32 %v2959_v39, %v8575_v22 }
 0x57b   :  { %v2961_v8 = vpop.f32.mrf.mxu1 }
 0x57c   :  { %v8750_v48 = vpack.c.bf16 %v3193_v41, %v3191_v40  ;;  %v2962_v52 = vadd.f32 %v2961_v8, %v8571_v20  ;;  %v3194_v61 = vmax.f32 %v2960_v50, 0.0 }
 0x57d   :  { %v2963_v29 = vpop.f32.mrf.mxu1 }
 0x57e   :  { %v2964_v32 = vadd.f32 %v2963_v29, %v8575_v22  ;;  %3899 = vmatprep.mubr.bf16.mxu0 %v8750_v48  ;;  %v3195_v57 = vmax.f32 %v2962_v52, 0.0 }
 0x57f   :  { %v2965_v56 = vpop.f32.mrf.mxu1  ;;  %3900 = vmatmul.mubr.bf16.gmra.mxu0 %v8752_v49 }
 0x580   :  { %v2966_v6 = vadd.f32 %v2965_v56, %v8571_v20  ;;  %v3196_v51 = vmax.f32 %v2964_v32, 0.0 }
 0x581   :  { %v2969_v15 = vpop.f32.mrf.mxu1  ;;  %4193 = vmatmul.mubr.bf16.gmra.mxu1 %v8680_v7 }
 0x582   :  { %v3197_v58 = vmax.f32 %v2966_v6, 0.0  ;;  %4202 = vmatprep.mubr.bf16.mxu1 %v8690_v54  ;;  %v8764_v63 = vpack.c.bf16 %v3196_v51, %v3194_v61  ;;  %v2970_v1 = vadd.f32 %v2969_v15, %v8575_v22 }
 0x583   :  { %v2971_v45 = vpop.f32.mrf.mxu1 }
 0x584   :  { %v8762_v62 = vpack.c.bf16 %v3197_v58, %v3195_v57  ;;  %v2972_v13 = vadd.f32 %v2971_v45, %v8571_v20  ;;  %v3198_v46 = vmax.f32 %v2970_v1, 0.0 }
 0x585   :  { %v2973_v53 = vpop.f32.mrf.mxu1 }
 0x586   :  { %v2974_v0 = vadd.f32 %v2973_v53, %v8575_v22  ;;  %3909 = vmatprep.mubr.bf16.mxu0 %v8762_v62  ;;  %v3199_v10 = vmax.f32 %v2972_v13, 0.0 }
 0x587   :  { %v2975_v7 = vpop.f32.mrf.mxu1  ;;  %3910 = vmatmul.mubr.bf16.gmra.mxu0 %v8764_v63 }
 0x588   :  { %v2976_v54 = vadd.f32 %v2975_v7, %v8571_v20  ;;  %v3200_v4 = vmax.f32 %v2974_v0, 0.0 }
 0x589   :  { %v2979_v5 = vpop.f32.mrf.mxu1  ;;  %4203 = vmatmul.mubr.bf16.gmra.mxu1 %v8692_v27 }
 0x58a   :  { %v3201_v12 = vmax.f32 %v2976_v54, 0.0  ;;  %4212 = vmatprep.mubr.bf16.mxu1 %v8702_v43  ;;  %v8776_v36 = vpack.c.bf16 %v3200_v4, %v3198_v46  ;;  %v2980_v24 = vadd.f32 %v2979_v5, %v8575_v22 }
 0x58b   :  { %v2981_v2 = vpop.f32.mrf.mxu1 }
 0x58c   :  { %v8774_v21 = vpack.c.bf16 %v3201_v12, %v3199_v10  ;;  %v2982_v18 = vadd.f32 %v2981_v2, %v8571_v20  ;;  %v3202_v3 = vmax.f32 %v2980_v24, 0.0 }
 0x58d   :  { %v2983_v14 = vpop.f32.mrf.mxu1 }
 0x58e   :  { %v2984_v23 = vadd.f32 %v2983_v14, %v8575_v22  ;;  %3919 = vmatprep.mubr.bf16.mxu0 %v8774_v21  ;;  %v3203_v30 = vmax.f32 %v2982_v18, 0.0 }
 0x58f   :  { %v2985_v27 = vpop.f32.mrf.mxu1  ;;  %3920 = vmatmul.mubr.bf16.gmra.mxu0 %v8776_v36 }
 0x590   :  { %v2986_v43 = vadd.f32 %v2985_v27, %v8571_v20  ;;  %v3204_v25 = vmax.f32 %v2984_v23, 0.0 }
 0x591   :  { %v2989_v26 = vpop.f32.mrf.mxu1  ;;  %4213 = vmatmul.mubr.bf16.gmra.mxu1 %v8704_v44 }
 0x592   :  { %v3205_v31 = vmax.f32 %v2986_v43, 0.0  ;;  %4222 = vmatprep.mubr.bf16.mxu1 %v8714_v59  ;;  %v8788_v42 = vpack.c.bf16 %v3204_v25, %v3202_v3  ;;  %v2990_v39 = vadd.f32 %v2989_v26, %v8575_v22 }
 0x593   :  { %v2991_v28 = vpop.f32.mrf.mxu1 }
 0x594   :  { %v8786_v35 = vpack.c.bf16 %v3205_v31, %v3203_v30  ;;  %v2992_v55 = vadd.f32 %v2991_v28, %v8571_v20  ;;  %v3206_v29 = vmax.f32 %v2990_v39, 0.0 }
 0x595   :  { %v2993_v38 = vpop.f32.mrf.mxu1 }
 0x596   :  { %v2994_v37 = vadd.f32 %v2993_v38, %v8575_v22  ;;  %3929 = vmatprep.mubr.bf16.mxu0 %v8786_v35  ;;  %v3207_v47 = vmax.f32 %v2992_v55, 0.0 }
 0x597   :  { %v2995_v44 = vpop.f32.mrf.mxu1  ;;  %3930 = vmatmul.mubr.bf16.gmra.mxu0 %v8788_v42 }
 0x598   :  { %v2996_v59 = vadd.f32 %v2995_v44, %v8571_v20  ;;  %v3208_v40 = vmax.f32 %v2994_v37, 0.0 }
 0x599   :  { %v2999_v41 = vpop.f32.mrf.mxu1  ;;  %4223 = vmatmul.mubr.bf16.gmra.mxu1 %v8716_v60 }
 0x59a   :  { %v3209_v8 = vmax.f32 %v2996_v59, 0.0  ;;  %4232 = vmatprep.mubr.bf16.mxu1 %v8726_v17  ;;  %v8800_v50 = vpack.c.bf16 %v3208_v40, %v3206_v29  ;;  %v3000_v15 = vadd.f32 %v2999_v41, %v8575_v22 }
 0x59b   :  { %v3001_v52 = vpop.f32.mrf.mxu1 }
 0x59c   :  { %v8798_v32 = vpack.c.bf16 %v3209_v8, %v3207_v47  ;;  %v3002_v6 = vadd.f32 %v3001_v52, %v8571_v20  ;;  %v3210_v53 = vmax.f32 %v3000_v15, 0.0 }
 0x59d   :  { %v3003_v56 = vpop.f32.mrf.mxu1 }
 0x59e   :  { %v3004_v51 = vadd.f32 %v3003_v56, %v8575_v22  ;;  %3939 = vmatprep.mubr.bf16.mxu0 %v8798_v32  ;;  %v3211_v61 = vmax.f32 %v3002_v6, 0.0 }
 0x59f   :  { %v3005_v60 = vpop.f32.mrf.mxu1  ;;  %3940 = vmatmul.mubr.bf16.gmra.mxu0 %v8800_v50 }
 0x5a0   :  { %v3006_v17 = vadd.f32 %v3005_v60, %v8571_v20  ;;  %v3212_v57 = vmax.f32 %v3004_v51, 0.0 }
 0x5a1   :  { %v3009_v58 = vpop.f32.mrf.mxu1  ;;  %4233 = vmatmul.mubr.bf16.gmra.mxu1 %v8728_v19 }
 0x5a2   :  { %v3213_v45 = vmax.f32 %v3006_v17, 0.0  ;;  %4242 = vmatprep.mubr.bf16.mxu1 %v8738_v33  ;;  %v8812_v1 = vpack.c.bf16 %v3212_v57, %v3210_v53  ;;  %v3010_v5 = vadd.f32 %v3009_v58, %v8575_v22 }
 0x5a3   :  { %v3011_v13 = vpop.f32.mrf.mxu1 }
 0x5a4   :  { %v8810_v0 = vpack.c.bf16 %v3213_v45, %v3211_v61  ;;  %v3012_v54 = vadd.f32 %v3011_v13, %v8571_v20  ;;  %v3214_v14 = vmax.f32 %v3010_v5, 0.0 }
 0x5a5   :  { %v3013_v7 = vpop.f32.mrf.mxu1 }
 0x5a6   :  { %v3014_v4 = vadd.f32 %v3013_v7, %v8575_v22  ;;  %3949 = vmatprep.mubr.bf16.mxu0 %v8810_v0  ;;  %v3215_v46 = vmax.f32 %v3012_v54, 0.0 }
 0x5a7   :  { %v3015_v19 = vpop.f32.mrf.mxu1  ;;  %3950 = vmatmul.mubr.bf16.gmra.mxu0 %v8812_v1 }
 0x5a8   :  { %v3016_v33 = vadd.f32 %v3015_v19, %v8571_v20  ;;  %v3216_v10 = vmax.f32 %v3014_v4, 0.0 }
 0x5a9   :  { %v3019_v12 = vpop.f32.mrf.mxu1  ;;  %4243 = vmatmul.mubr.bf16.gmra.mxu1 %v8740_v34 }
 0x5aa   :  { %v3217_v2 = vmax.f32 %v3016_v33, 0.0  ;;  %4252 = vmatprep.mubr.bf16.mxu1 %v8750_v48  ;;  %v8824_v24 = vpack.c.bf16 %v3216_v10, %v3214_v14  ;;  %v3020_v26 = vadd.f32 %v3019_v12, %v8575_v22 }
 0x5ab   :  { %v3021_v18 = vpop.f32.mrf.mxu1 }
 0x5ac   :  { %v8822_v23 = vpack.c.bf16 %v3217_v2, %v3215_v46  ;;  %v3022_v43 = vadd.f32 %v3021_v18, %v8571_v20  ;;  %v3218_v38 = vmax.f32 %v3020_v26, 0.0 }
 0x5ad   :  { %v3023_v27 = vpop.f32.mrf.mxu1 }
 0x5ae   :  { %v3024_v25 = vadd.f32 %v3023_v27, %v8575_v22  ;;  %3959 = vmatprep.mubr.bf16.mxu0 %v8822_v23  ;;  %v3219_v3 = vmax.f32 %v3022_v43, 0.0 }
 0x5af   :  { %v3025_v34 = vpop.f32.mrf.mxu1  ;;  %3960 = vmatmul.mubr.bf16.gmra.mxu0 %v8824_v24 }
 0x5b0   :  { %v3026_v48 = vadd.f32 %v3025_v34, %v8571_v20  ;;  %v3220_v30 = vmax.f32 %v3024_v25, 0.0 }
 0x5b1   :  { %v3029_v31 = vpop.f32.mrf.mxu1  ;;  %4253 = vmatmul.mubr.bf16.gmra.mxu1 %v8752_v49 }
 0x5b2   :  { %v3221_v28 = vmax.f32 %v3026_v48, 0.0  ;;  %4262 = vmatprep.mubr.bf16.mxu1 %v8762_v62  ;;  %v8836_v39 = vpack.c.bf16 %v3220_v30, %v3218_v38  ;;  %v3030_v41 = vadd.f32 %v3029_v31, %v8575_v22 }
 0x5b3   :  { %v3031_v55 = vpop.f32.mrf.mxu1 }
 0x5b4   :  { %v8834_v37 = vpack.c.bf16 %v3221_v28, %v3219_v3  ;;  %v3032_v59 = vadd.f32 %v3031_v55, %v8571_v20  ;;  %v3222_v56 = vmax.f32 %v3030_v41, 0.0  ;;  %v8884_v41 = vld [vmem:[#allocation9 + $0x6] ss:$8 sm:$0xf] }
 0x5b5   :  { %v3033_v44 = vpop.f32.mrf.mxu1 }
 0x5b6   :  { %v3034_v40 = vadd.f32 %v3033_v44, %v8575_v22  ;;  %3969 = vmatprep.mubr.bf16.mxu0 %v8834_v37  ;;  %v3223_v29 = vmax.f32 %v3032_v59, 0.0 }
 0x5b7   :  { %v3035_v49 = vpop.f32.mrf.mxu1  ;;  %3970 = vmatmul.mubr.bf16.gmra.mxu0 %v8836_v39 }
 0x5b8   :  { %v3036_v62 = vadd.f32 %v3035_v49, %v8571_v20  ;;  %v3224_v47 = vmax.f32 %v3034_v40, 0.0 }
 0x5b9   :  { %v3039_v8 = vpop.f32.mrf.mxu1  ;;  %4263 = vmatmul.mubr.bf16.gmra.mxu1 %v8764_v63 }
 0x5ba   :  { %v3225_v52 = vmax.f32 %v3036_v62, 0.0  ;;  %4272 = vmatprep.mubr.bf16.mxu1 %v8774_v21  ;;  %v8848_v15 = vpack.c.bf16 %v3224_v47, %v3222_v56  ;;  %v3040_v58 = vadd.f32 %v3039_v8, %v8575_v22 }
 0x5bb   :  { %v3041_v6 = vpop.f32.mrf.mxu1 }
 0x5bc   :  { %v8846_v51 = vpack.c.bf16 %v3225_v52, %v3223_v29  ;;  %v3042_v17 = vadd.f32 %v3041_v6, %v8571_v20  ;;  %v3226_v7 = vmax.f32 %v3040_v58, 0.0 }
 0x5bd   :  { %v3043_v60 = vpop.f32.mrf.mxu1 }
 0x5be   :  { %v3044_v57 = vadd.f32 %v3043_v60, %v8575_v22  ;;  %3979 = vmatprep.mubr.bf16.mxu0 %v8846_v51  ;;  %v3227_v53 = vmax.f32 %v3042_v17, 0.0  ;;  %v8900_v17 = vrot.slane %v8884_v41, %v8563_v11 }
 0x5bf   :  { %v3045_v63 = vpop.f32.mrf.mxu1  ;;  %3980 = vmatmul.mubr.bf16.gmra.mxu0 %v8848_v15 }
 0x5c0   :  { %v3046_v21 = vadd.f32 %v3045_v63, %v8571_v20  ;;  %v3228_v61 = vmax.f32 %v3044_v57, 0.0 }
 0x5c1   :  { %v3049_v45 = vpop.f32.mrf.mxu1  ;;  %4273 = vmatmul.mubr.bf16.gmra.mxu1 %v8776_v36 }
 0x5c2   :  { %v3229_v13 = vmax.f32 %v3046_v21, 0.0  ;;  %4282 = vmatprep.mubr.bf16.mxu1 %v8786_v35  ;;  %v8860_v5 = vpack.c.bf16 %v3228_v61, %v3226_v7  ;;  %v3050_v12 = vadd.f32 %v3049_v45, %v8575_v22 }
 0x5c3   :  { %v3051_v54 = vpop.f32.mrf.mxu1 }
 0x5c4   :  { %v8858_v4 = vpack.c.bf16 %v3229_v13, %v3227_v53  ;;  %v3052_v33 = vadd.f32 %v3051_v54, %v8571_v20  ;;  %v3230_v27 = vmax.f32 %v3050_v12, 0.0 }
 0x5c5   :  { %v3053_v19 = vpop.f32.mrf.mxu1 }
 0x5c6   :  { %v3054_v10 = vadd.f32 %v3053_v19, %v8575_v22  ;;  %3989 = vmatprep.mubr.bf16.mxu0 %v8858_v4  ;;  %v3231_v14 = vmax.f32 %v3052_v33, 0.0 }
 0x5c7   :  { %v3055_v36 = vpop.f32.mrf.mxu1  ;;  %3990 = vmatmul.mubr.bf16.gmra.mxu0 %v8860_v5 }
 0x5c8   :  { %v3056_v35 = vadd.f32 %v3055_v36, %v8571_v20  ;;  %v3232_v46 = vmax.f32 %v3054_v10, 0.0 }
 0x5c9   :  { %v3059_v2 = vpop.f32.mrf.mxu1  ;;  %4283 = vmatmul.mubr.bf16.gmra.mxu1 %v8788_v42 }
 0x5ca   :  { %v3233_v18 = vmax.f32 %v3056_v35, 0.0  ;;  %4292 = vmatprep.mubr.bf16.mxu1 %v8798_v32  ;;  %v8872_v26 = vpack.c.bf16 %v3232_v46, %v3230_v27  ;;  %v3060_v31 = vadd.f32 %v3059_v2, %v8575_v22  ;;  %v8915_v46 = vld [vmem:[#allocation7] sm:$0xf] }
 0x5cb   :  { %v3061_v43 = vpop.f32.mrf.mxu1 }
 0x5cc   :  { %v8870_v25 = vpack.c.bf16 %v3233_v18, %v3231_v14  ;;  %v3062_v48 = vadd.f32 %v3061_v43, %v8571_v20  ;;  %v3234_v44 = vmax.f32 %v3060_v31, 0.0 }
 0x5cd   :  { %v3063_v34 = vpop.f32.mrf.mxu1 }
 0x5ce   :  { %v3064_v30 = vadd.f32 %v3063_v34, %v8575_v22  ;;  %3999 = vmatprep.mubr.bf16.mxu0 %v8870_v25  ;;  %v3235_v38 = vmax.f32 %v3062_v48, 0.0  ;;  %v3407_v34 = vsub.s32 2, %v8560_v9 }
 0x5cf   :  { %v3065_v42 = vpop.f32.mrf.mxu1  ;;  %4000 = vmatmul.mubr.bf16.gmra.mxu0 %v8872_v26 }
 0x5d0   :  { %v3066_v32 = vadd.f32 %v3065_v42, %v8571_v20  ;;  %v3236_v3 = vmax.f32 %v3064_v30, 0.0 }
 0x5d1   :  { %v3069_v28 = vpop.f32.mrf.mxu1  ;;  %4293 = vmatmul.mubr.bf16.gmra.mxu1 %v8800_v50 }
 0x5d2   :  { %v3237_v55 = vmax.f32 %v3066_v32, 0.0  ;;  %4302 = vmatprep.mubr.bf16.mxu1 %v8810_v0  ;;  %v8886_v49 = vpack.c.bf16 %v3236_v3, %v3234_v44  ;;  %v3070_v50 = vadd.f32 %v3069_v28, %v8575_v22  ;;  %v8894_v0 = vrot.slane %v8884_v41, %v8568_v16 }
 0x5d3   :  { %v3071_v59 = vpop.f32.mrf.mxu1  ;;  %v8924_v32 = vrot.slane %v8915_v46, %v8568_v16  ;;  %v8934_v16 = vrot.slane %v8884_v41, %v3407_v34 }
 0x5d4   :  { %v8882_v40 = vpack.c.bf16 %v3237_v55, %v3235_v38  ;;  %v3072_v47 = vadd.f32 %v3071_v59, %v8571_v20  ;;  %v3238_v21 = vmax.f32 %v3070_v50, 0.0  ;;  %v3411_v50 = vsub.s32 3, %v8560_v9 }
 0x5d5   :  { %v3073_v62 = vpop.f32.mrf.mxu1 }
 0x5d6   :  { %v3074_v8 = vadd.f32 %v3073_v62, %v8575_v22  ;;  %4009 = vmatprep.mubr.bf16.mxu0 %v8882_v40  ;;  %v3239_v58 = vmax.f32 %v3072_v47, 0.0  ;;  %v8930_v47 = vrot.slane %v8915_v46, %v8563_v11 }
 0x5d7   :  { %v3075_v29 = vpop.f32.mrf.mxu1  ;;  %v3771_v52 = vpop.f32.mrf.mxu0  ;;  %4010 = vmatmul.mubr.bf16.gmra.mxu0 %v8886_v49 }
 0x5d8   :  { %v3076_v56 = vadd.f32 %v3075_v29, %v8571_v20  ;;  %v3240_v6 = vmax.f32 %v3074_v8, 0.0  ;;  %v3772_v61 = vadd.f32 %v3771_v52, %v8894_v0 }
 0x5d9   :  { %v3079_v60 = vpop.f32.mrf.mxu1  ;;  %v3773_v57 = vpop.f32.mrf.mxu0  ;;  %4303 = vmatmul.mubr.bf16.gmra.mxu1 %v8812_v1 }
 0x5da   :  { %v3241_v63 = vmax.f32 %v3076_v56, 0.0  ;;  %4312 = vmatprep.mubr.bf16.mxu1 %v8822_v23  ;;  %v8908_v54 = vpack.c.bf16 %v3240_v6, %v3238_v21  ;;  %v3774_v19 = vadd.f32 %v3773_v57, %v8900_v17  ;;  %v4443_v36 = vmax.f32 %v3772_v61, 0.0 }
 0x5db   :  { %v3081_v45 = vpop.f32.mrf.mxu1  ;;  %v3775_v53 = vpop.f32.mrf.mxu0  ;;  %v3080_v18 = vadd.f32 %v3079_v60, %v8575_v22 }
 0x5dc   :  { %v3776_v13 = vadd.f32 %v3775_v53, %v8894_v0  ;;  %v8906_v7 = vpack.c.bf16 %v3241_v63, %v3239_v58  ;;  %v3082_v35 = vadd.f32 %v3081_v45, %v8571_v20  ;;  %v4444_v48 = vmax.f32 %v3774_v19, 0.0 }
 0x5dd   :  { %v3083_v33 = vpop.f32.mrf.mxu1  ;;  %v3777_v10 = vpop.f32.mrf.mxu0  ;;  %v3242_v8 = vmax.f32 %v3080_v18, 0.0  ;;  %v8954_v18 = vrot.slane %v8884_v41, %v3411_v50 }
 0x5de   :  { %v4447_v1 = vmax.f32 %v3776_v13, 0.0  ;;  %v3084_v12 = vadd.f32 %v3083_v33, %v8575_v22  ;;  %v3778_v23 = vadd.f32 %v3777_v10, %v8900_v17  ;;  %4019 = vmatprep.mubr.bf16.mxu0 %v8906_v7  ;;  %v3243_v38 = vmax.f32 %v3082_v35, 0.0 }
 0x5df   :  { %v3085_v2 = vpop.f32.mrf.mxu1  ;;  %v3781_v14 = vpop.f32.mrf.mxu0  ;;  %4020 = vmatmul.mubr.bf16.gmra.mxu0 %v8908_v54 }
 0x5e0   :  { %v4448_v27 = vmax.f32 %v3778_v23, 0.0  ;;  %v3086_v43 = vadd.f32 %v3085_v2, %v8571_v20  ;;  %v4699_v30 = vpack.c.bf16 %v4447_v1, %v4443_v36  ;;  %v3244_v3 = vmax.f32 %v3084_v12, 0.0 }
 0x5e1   :  { %v3089_v31 = vpop.f32.mrf.mxu1  ;;  %v3783_v42 = vpop.f32.mrf.mxu0  ;;  %4313 = vmatmul.mubr.bf16.gmra.mxu1 %v8824_v24  ;;  %v3782_v28 = vadd.f32 %v3781_v14, %v8894_v0 }
 0x5e2   :  { %4322 = vmatprep.mubr.bf16.mxu1 %v8834_v37  ;;  %v4700_v55 = vpack.c.bf16 %v4448_v27, %v4444_v48  ;;  %v3245_v44 = vmax.f32 %v3086_v43, 0.0  ;;  %v3784_v24 = vadd.f32 %v3783_v42, %v8900_v17  ;;  %v4827_v29 = vunpack.c.l.bf16 %v4699_v30 }
 0x5e3   :  { %v3091_v59 = vpop.f32.mrf.mxu1  ;;  %v3785_v62 = vpop.f32.mrf.mxu0  ;;  %v4831_v52 = vunpack.c.h.bf16 %v4699_v30  ;;  %v8940_v57 = vpack.c.bf16 %v3244_v3, %v3242_v8  ;;  %v4451_v11 = vmax.f32 %v3782_v28, 0.0  ;;  %v3090_v61 = vadd.f32 %v3089_v31, %v8575_v22 }
 0x5e4   :  { %v3786_v37 = vadd.f32 %v3785_v62, %v8894_v0  ;;  %v8938_v60 = vpack.c.bf16 %v3245_v44, %v3243_v38  ;;  %v4828_v21 = vunpack.c.l.bf16 %v4700_v55  ;;  %v3092_v45 = vadd.f32 %v3091_v59, %v8571_v20 }
 0x5e5   :  { %v3093_v56 = vpop.f32.mrf.mxu1  ;;  %v3787_v6 = vpop.f32.mrf.mxu0  ;;  %v4832_v33 = vunpack.c.h.bf16 %v4700_v55  ;;  %v4452_v10 = vmax.f32 %v3784_v24, 0.0  ;;  %v5109_v27 = vmul.f32 %v8924_v32, %v4831_v52  ;;  %v8959_v30 = vrot.slane %v8915_v46, %v3407_v34 }
 0x5e6   :  { %v3094_v58 = vadd.f32 %v3093_v56, %v8575_v22  ;;  %v3788_v63 = vadd.f32 %v3787_v6, %v8900_v17  ;;  %v4455_v53 = vmax.f32 %v3786_v37, 0.0  ;;  %4029 = vmatprep.mubr.bf16.mxu0 %v8938_v60  ;;  %v3246_v31 = vmax.f32 %v3090_v61, 0.0 }
 0x5e7   :  { %v3095_v13 = vpop.f32.mrf.mxu1  ;;  %v3791_v19 = vpop.f32.mrf.mxu0  ;;  %4030 = vmatmul.mubr.bf16.gmra.mxu0 %v8940_v57  ;;  %v3247_v42 = vmax.f32 %v3092_v45, 0.0  ;;  %v5105_v38 = vmul.f32 %v8924_v32, %v4827_v29  ;;  %v5106_v44 = vmul.f32 %v8930_v47, %v4828_v21  ;;  %v5110_v59 = vmul.f32 %v8930_v47, %v4832_v33 }
 0x5e8   :  { %v4456_v1 = vmax.f32 %v3788_v63, 0.0  ;;  %v3096_v12 = vadd.f32 %v3095_v13, %v8571_v20  ;;  %v4703_v23 = vpack.c.bf16 %v4455_v53, %v4451_v11  ;;  %v3248_v36 = vmax.f32 %v3094_v58, 0.0 }
 0x5e9   :  { %v3792_v35 = vadd.f32 %v3791_v19, %v8894_v0  ;;  %v3099_v2 = vpop.f32.mrf.mxu1  ;;  %v3793_v14 = vpop.f32.mrf.mxu0  ;;  %4323 = vmatmul.mubr.bf16.gmra.mxu1 %v8836_v39 }
 0x5ea   :  { %v4704_v43 = vpack.c.bf16 %v4456_v1, %v4452_v10  ;;  %v3249_v48 = vmax.f32 %v3096_v12, 0.0  ;;  %4332 = vmatprep.mubr.bf16.mxu1 %v8846_v51  ;;  %v3794_v3 = vadd.f32 %v3793_v14, %v8900_v17  ;;  %v4835_v62 = vunpack.c.l.bf16 %v4703_v23 }
 0x5eb   :  { %v3101_v28 = vpop.f32.mrf.mxu1  ;;  %v3795_v39 = vpop.f32.mrf.mxu0  ;;  %v8966_v51 = vpack.c.bf16 %v3248_v36, %v3246_v31  ;;  %v4459_v34 = vmax.f32 %v3792_v35, 0.0  ;;  %v4839_v37 = vunpack.c.h.bf16 %v4703_v23  ;;  %v3100_v58 = vadd.f32 %v3099_v2, %v8575_v22 }
 0x5ec   :  { %v4836_v55 = vunpack.c.l.bf16 %v4704_v43  ;;  %v3796_v41 = vadd.f32 %v3795_v39, %v8894_v0  ;;  %v8968_v52 = vpack.c.bf16 %v3249_v48, %v3247_v42  ;;  %v4840_v11 = vunpack.c.h.bf16 %v4704_v43 }
 0x5ed   :  { %v3103_v8 = vpop.f32.mrf.mxu1  ;;  %v3797_v24 = vpop.f32.mrf.mxu0  ;;  %v4460_v63 = vmax.f32 %v3794_v3, 0.0  ;;  %v3102_v21 = vadd.f32 %v3101_v28, %v8571_v20  ;;  %v8983_v36 = vrot.slane %v8915_v46, %v3411_v50  ;;  %v8985_v35 = vadd.f32 %v5106_v44, %v5105_v38 }
 0x5ee   :  { %v4463_v56 = vmax.f32 %v3796_v41, 0.0  ;;  %v3104_v6 = vadd.f32 %v3103_v8, %v8575_v22  ;;  %v3798_v29 = vadd.f32 %v3797_v24, %v8900_v17  ;;  %4039 = vmatprep.mubr.bf16.mxu0 %v8968_v52  ;;  %v5114_v33 = vmul.f32 %v8930_v47, %v4836_v55 }
 0x5ef   :  { %v3105_v61 = vpop.f32.mrf.mxu1  ;;  %v3801_v45 = vpop.f32.mrf.mxu0  ;;  %4040 = vmatmul.mubr.bf16.gmra.mxu0 %v8966_v51  ;;  %v5117_v2 = vmul.f32 %v8924_v32, %v4839_v37  ;;  %v8989_v43 = vadd.f32 %v5110_v59, %v5109_v27  ;;  %v5113_v48 = vmul.f32 %v8924_v32, %v4835_v62  ;;  %v3250_v31 = vmax.f32 %v3100_v58, 0.0 }
 0x5f0   :  { %v4707_v53 = vpack.c.bf16 %v4463_v56, %v4459_v34  ;;  %v4464_v13 = vmax.f32 %v3798_v29, 0.0  ;;  %v3106_v19 = vadd.f32 %v3105_v61, %v8571_v20  ;;  %v3252_v10 = vmax.f32 %v3104_v6, 0.0 }
 0x5f1   :  { %v3802_v1 = vadd.f32 %v3801_v45, %v8894_v0  ;;  %v3109_v12 = vpop.f32.mrf.mxu1  ;;  %v3803_v23 = vpop.f32.mrf.mxu0  ;;  %4333 = vmatmul.mubr.bf16.gmra.mxu1 %v8848_v15  ;;  %v3251_v42 = vmax.f32 %v3102_v21, 0.0  ;;  %v5118_v9 = vmul.f32 %v8930_v47, %v4840_v11  ;;  %v8994_v38 = vadd.f32 %v5114_v33, %v5113_v48 }
 0x5f2   :  { %v4708_v14 = vpack.c.bf16 %v4464_v13, %v4460_v63  ;;  %4342 = vmatprep.mubr.bf16.mxu1 %v8858_v4  ;;  %v3253_v3 = vmax.f32 %v3106_v19, 0.0  ;;  %v4843_v46 = vunpack.c.l.bf16 %v4707_v53  ;;  %v3804_v39 = vadd.f32 %v3803_v23, %v8900_v17 }
 0x5f3   :  { %v3111_v15 = vpop.f32.mrf.mxu1  ;;  %v3805_v28 = vpop.f32.mrf.mxu0  ;;  %v4847_v55 = vunpack.c.h.bf16 %v4707_v53  ;;  %v8996_v41 = vpack.c.bf16 %v3252_v10, %v3250_v31  ;;  %v4467_v4 = vmax.f32 %v3802_v1, 0.0  ;;  %v3110_v62 = vadd.f32 %v3109_v12, %v8575_v22 }
 0x5f4   :  { %v4848_v50 = vunpack.c.h.bf16 %v4708_v14  ;;  %v3806_v27 = vadd.f32 %v3805_v28, %v8894_v0  ;;  %v3112_v34 = vadd.f32 %v3111_v15, %v8571_v20  ;;  %v9002_v24 = vpack.c.bf16 %v3253_v3, %v3251_v42 }
 0x5f5   :  { %v3113_v44 = vpop.f32.mrf.mxu1  ;;  %v3807_v59 = vpop.f32.mrf.mxu0  ;;  %v4844_v37 = vunpack.c.l.bf16 %v4708_v14  ;;  %v4468_v63 = vmax.f32 %v3804_v39, 0.0  ;;  %v9008_v45 = vadd.f32 %v5118_v9, %v5117_v2  ;;  %v5125_v53 = vmul.f32 %v8924_v32, %v4847_v55 }
 0x5f6   :  { %v3808_v8 = vadd.f32 %v3807_v59, %v8900_v17  ;;  %v4471_v56 = vmax.f32 %v3806_v27, 0.0  ;;  %v3114_v6 = vadd.f32 %v3113_v44, %v8575_v22  ;;  %v5126_v58 = vmul.f32 %v8930_v47, %v4848_v50  ;;  %4049 = vmatprep.mubr.bf16.mxu0 %v9002_v24 }
 0x5f7   :  { %v3115_v29 = vpop.f32.mrf.mxu1  ;;  %v3811_v11 = vpop.f32.mrf.mxu0  ;;  %4050 = vmatmul.mubr.bf16.gmra.mxu0 %v8996_v41  ;;  %v5121_v1 = vmul.f32 %v8924_v32, %v4843_v46  ;;  %v3254_v12 = vmax.f32 %v3110_v62, 0.0  ;;  %v3255_v23 = vmax.f32 %v3112_v34, 0.0  ;;  %v5122_v15 = vmul.f32 %v8930_v47, %v4844_v37 }
 0x5f8   :  { %v4472_v21 = vmax.f32 %v3808_v8, 0.0  ;;  %v3116_v61 = vadd.f32 %v3115_v29, %v8571_v20  ;;  %v4711_v13 = vpack.c.bf16 %v4471_v56, %v4467_v4  ;;  %v3812_v19 = vadd.f32 %v3811_v11, %v8894_v0 }
 0x5f9   :  { %v3119_v33 = vpop.f32.mrf.mxu1  ;;  %v3813_v10 = vpop.f32.mrf.mxu0  ;;  %4343 = vmatmul.mubr.bf16.gmra.mxu1 %v8860_v5  ;;  %v3256_v2 = vmax.f32 %v3114_v6, 0.0  ;;  %v9016_v3 = vadd.f32 %v5126_v58, %v5125_v53 }
 0x5fa   :  { %v4712_v14 = vpack.c.bf16 %v4472_v21, %v4468_v63  ;;  %4352 = vmatprep.mubr.bf16.mxu1 %v8870_v25  ;;  %v3257_v48 = vmax.f32 %v3116_v61, 0.0  ;;  %v3814_v50 = vadd.f32 %v3813_v10, %v8900_v17  ;;  %v4851_v46 = vunpack.c.l.bf16 %v4711_v13 }
 0x5fb   :  { %v3121_v31 = vpop.f32.mrf.mxu1  ;;  %v3815_v42 = vpop.f32.mrf.mxu0  ;;  %v4855_v39 = vunpack.c.h.bf16 %v4711_v13  ;;  %v4475_v55 = vmax.f32 %v3812_v19, 0.0  ;;  %v3120_v4 = vadd.f32 %v3119_v33, %v8575_v22  ;;  %v9025_v8 = vpack.c.bf16 %v3256_v2, %v3254_v12 }
 0x5fc   :  { %v4852_v28 = vunpack.c.l.bf16 %v4712_v14  ;;  %v4856_v9 = vunpack.c.h.bf16 %v4712_v14  ;;  %v3816_v5 = vadd.f32 %v3815_v42, %v8894_v0  ;;  %v3122_v44 = vadd.f32 %v3121_v31, %v8571_v20 }
 0x5fd   :  { %v3123_v25 = vpop.f32.mrf.mxu1  ;;  %v3817_v27 = vpop.f32.mrf.mxu0  ;;  %v9027_v37 = vpack.c.bf16 %v3257_v48, %v3255_v23  ;;  %v4476_v58 = vmax.f32 %v3814_v50, 0.0  ;;  %v5129_v53 = vmul.f32 %v8924_v32, %v4851_v46  ;;  %v5133_v13 = vmul.f32 %v8924_v32, %v4855_v39 }
 0x5fe   :  { %v4479_v59 = vmax.f32 %v3816_v5, 0.0  ;;  %v3124_v62 = vadd.f32 %v3123_v25, %v8575_v22  ;;  %v3818_v34 = vadd.f32 %v3817_v27, %v8900_v17  ;;  %v5134_v29 = vmul.f32 %v8930_v47, %v4856_v9 }
 0x5ff   :  { %v3125_v56 = vpop.f32.mrf.mxu1  ;;  %v3821_v6 = vpop.f32.mrf.mxu0  ;;  %v5130_v11 = vmul.f32 %v8930_v47, %v4852_v28  ;;  %4059 = vmatprep.mubr.bf16.mxu0 %v9027_v37  ;;  %v9036_v12 = vadd.f32 %v5122_v15, %v5121_v1  ;;  %v3258_v23 = vmax.f32 %v3120_v4, 0.0  ;;  %v3259_v14 = vmax.f32 %v3122_v44, 0.0 }
 0x600   :  { %v4715_v63 = vpack.c.bf16 %v4479_v59, %v4475_v55  ;;  %v4480_v21 = vmax.f32 %v3818_v34, 0.0  ;;  %v3126_v61 = vadd.f32 %v3125_v56, %v8571_v20  ;;  %v3260_v19 = vmax.f32 %v3124_v62, 0.0  ;;  %4060 = vmatmul.mubr.bf16.gmra.mxu0 %v9025_v8 }
 0x601   :  { %v3129_v33 = vpop.f32.mrf.mxu1  ;;  %v3823_v10 = vpop.f32.mrf.mxu0  ;;  %4353 = vmatmul.mubr.bf16.gmra.mxu1 %v8872_v26  ;;  %v3822_v48 = vadd.f32 %v3821_v6, %v8894_v0  ;;  %v9041_v50 = vadd.f32 %v5134_v29, %v5133_v13  ;;  %v9043_v5 = vadd.f32 %v5130_v11, %v5129_v53 }
 0x602   :  { %v4716_v2 = vpack.c.bf16 %v4480_v21, %v4476_v58  ;;  %4362 = vmatprep.mubr.bf16.mxu1 %v8882_v40  ;;  %v4859_v31 = vunpack.c.l.bf16 %v4715_v63  ;;  %v3261_v42 = vmax.f32 %v3126_v61, 0.0  ;;  %v4863_v26 = vunpack.c.h.bf16 %v4715_v63 }
 0x603   :  { %v3131_v28 = vpop.f32.mrf.mxu1  ;;  %v3825_v9 = vpop.f32.mrf.mxu0  ;;  %v3824_v46 = vadd.f32 %v3823_v10, %v8900_v17  ;;  %v9046_v39 = vpack.c.bf16 %v3260_v19, %v3258_v23  ;;  %v3130_v55 = vadd.f32 %v3129_v33, %v8575_v22  ;;  %v4483_v6 = vmax.f32 %v3822_v48, 0.0 }
 0x604   :  { %v4860_v1 = vunpack.c.l.bf16 %v4716_v2  ;;  %v4864_v15 = vunpack.c.h.bf16 %v4716_v2  ;;  %v3132_v4 = vadd.f32 %v3131_v28, %v8571_v20  ;;  %v3826_v40 = vadd.f32 %v3825_v9, %v8894_v0 }
 0x605   :  { %v3133_v25 = vpop.f32.mrf.mxu1  ;;  %v3827_v27 = vpop.f32.mrf.mxu0  ;;  %v5137_v56 = vmul.f32 %v8924_v32, %v4859_v31  ;;  %v9056_v11 = vpack.c.bf16 %v3261_v42, %v3259_v14  ;;  %v5141_v21 = vmul.f32 %v8924_v32, %v4863_v26  ;;  %v4484_v61 = vmax.f32 %v3824_v46, 0.0 }
 0x606   :  { %v5138_v44 = vmul.f32 %v8930_v47, %v4860_v1  ;;  %v5142_v59 = vmul.f32 %v8930_v47, %v4864_v15  ;;  %v3134_v62 = vadd.f32 %v3133_v25, %v8575_v22  ;;  %v3828_v34 = vadd.f32 %v3827_v27, %v8900_v17 }
 0x607   :  { %v4487_v29 = vmax.f32 %v3826_v40, 0.0  ;;  %v3135_v58 = vpop.f32.mrf.mxu1  ;;  %v3831_v63 = vpop.f32.mrf.mxu0  ;;  %v3262_v19 = vmax.f32 %v3130_v55, 0.0  ;;  %4069 = vmatprep.mubr.bf16.mxu0 %v9056_v11  ;;  %v3263_v14 = vmax.f32 %v3132_v4, 0.0 }
 0x608   :  { %v4488_v53 = vmax.f32 %v3828_v34, 0.0  ;;  %v3136_v13 = vadd.f32 %v3135_v58, %v8571_v20  ;;  %v3264_v10 = vmax.f32 %v3134_v62, 0.0  ;;  %v3832_v22 = vadd.f32 %v3831_v63, %v8894_v0  ;;  %4070 = vmatmul.mubr.bf16.gmra.mxu0 %v9046_v39 }
 0x609   :  { %v4719_v33 = vpack.c.bf16 %v4487_v29, %v4483_v6  ;;  %v3833_v23 = vpop.f32.mrf.mxu0  ;;  %v4124_v2 = vpop.f32.mrf.mxu1  ;;  %4363 = vmatmul.mubr.bf16.gmra.mxu1 %v8886_v49  ;;  %v9065_v31 = vadd.f32 %v5142_v59, %v5141_v21  ;;  %v9067_v20 = vadd.f32 %v5138_v44, %v5137_v56 }
 0x60a   :  { %v4720_v48 = vpack.c.bf16 %v4488_v53, %v4484_v61  ;;  %4372 = vmatprep.mubr.bf16.mxu1 %v8906_v7  ;;  %v3265_v9 = vmax.f32 %v3136_v13, 0.0  ;;  %v3834_v26 = vadd.f32 %v3833_v23, %v8900_v17  ;;  %v4125_v49 = vadd.f32 %v4124_v2, %v8934_v16 }
 0x60b   :  { %v4867_v42 = vunpack.c.l.bf16 %v4719_v33  ;;  %v4871_v28 = vunpack.c.h.bf16 %v4719_v33  ;;  %v3835_v1 = vpop.f32.mrf.mxu0  ;;  %v4126_v15 = vpop.f32.mrf.mxu1  ;;  %v9073_v7 = vpack.c.bf16 %v3264_v10, %v3262_v19  ;;  %v4491_v25 = vmax.f32 %v3832_v22, 0.0 }
 0x60c   :  { %v4868_v46 = vunpack.c.l.bf16 %v4720_v48  ;;  %v4872_v55 = vunpack.c.h.bf16 %v4720_v48  ;;  %v3836_v4 = vadd.f32 %v3835_v1, %v8894_v0  ;;  %v4127_v27 = vadd.f32 %v4126_v15, %v8954_v18 }
 0x60d   :  { %v5145_v40 = vmul.f32 %v8924_v32, %v4867_v42  ;;  %v3837_v44 = vpop.f32.mrf.mxu0  ;;  %v4128_v59 = vpop.f32.mrf.mxu1  ;;  %v5149_v62 = vmul.f32 %v8924_v32, %v4871_v28  ;;  %v4492_v29 = vmax.f32 %v3834_v26, 0.0  ;;  %v9081_v21 = vpack.c.bf16 %v3265_v9, %v3263_v14 }
 0x60e   :  { %v5146_v34 = vmul.f32 %v8930_v47, %v4868_v46  ;;  %v5150_v56 = vmul.f32 %v8930_v47, %v4872_v55  ;;  %v4495_v6 = vmax.f32 %v3836_v4, 0.0  ;;  %v3838_v58 = vadd.f32 %v3837_v44, %v8900_v17 }
 0x60f   :  { %v4129_v63 = vadd.f32 %v4128_v59, %v8934_v16  ;;  %v3841_v61 = vpop.f32.mrf.mxu0  ;;  %v4130_v53 = vpop.f32.mrf.mxu1  ;;  %v4445_v13 = vmax.f32 %v4125_v49, 0.0  ;;  %v4446_v22 = vmax.f32 %v4127_v27, 0.0  ;;  %4079 = vmatprep.mubr.bf16.mxu0 %v9081_v21 }
 0x610   :  { %v4723_v19 = vpack.c.bf16 %v4495_v6, %v4491_v25  ;;  %v3842_v33 = vadd.f32 %v3841_v61, %v8894_v0  ;;  %v4131_v10 = vadd.f32 %v4130_v53, %v8954_v18  ;;  %v4496_v23 = vmax.f32 %v3838_v58, 0.0  ;;  %4080 = vmatmul.mubr.bf16.gmra.mxu0 %v9073_v7 }
 0x611   :  { %v4449_v2 = vmax.f32 %v4129_v63, 0.0  ;;  %v3843_v48 = vpop.f32.mrf.mxu0  ;;  %v4134_v42 = vpop.f32.mrf.mxu1  ;;  %4373 = vmatmul.mubr.bf16.gmra.mxu1 %v8908_v54  ;;  %v9087_v28 = vadd.f32 %v5150_v56, %v5149_v62  ;;  %v9091_v1 = vadd.f32 %v5146_v34, %v5145_v40 }
 0x612   :  { %v4875_v14 = vunpack.c.l.bf16 %v4723_v19  ;;  %v4879_v9 = vunpack.c.h.bf16 %v4723_v19  ;;  %v4450_v26 = vmax.f32 %v4131_v10, 0.0  ;;  %4382 = vmatprep.mubr.bf16.mxu1 %v8938_v60  ;;  %v4724_v15 = vpack.c.bf16 %v4496_v23, %v4492_v29 }
 0x613   :  { %v9093_v46 = vpack.c.bf16 %v4449_v2, %v4445_v13  ;;  %v3844_v55 = vadd.f32 %v3843_v48, %v8900_v17  ;;  %v4135_v49 = vadd.f32 %v4134_v42, %v8934_v16  ;;  %v3845_v4 = vpop.f32.mrf.mxu0  ;;  %v4136_v54 = vpop.f32.mrf.mxu1  ;;  %v4499_v44 = vmax.f32 %v3842_v33, 0.0 }
 0x614   :  { %v9098_v25 = vmul.f32 %v8924_v32, %v4875_v14  ;;  %v9101_v27 = vmul.f32 %v8924_v32, %v4879_v9  ;;  %v3846_v60 = vadd.f32 %v3845_v4, %v8894_v0  ;;  %v4876_v40 = vunpack.c.l.bf16 %v4724_v15 }
 0x615   :  { %v4880_v59 = vunpack.c.h.bf16 %v4724_v15  ;;  %v4829_v62 = vunpack.c.l.bf16 %v9093_v46  ;;  %v9105_v34 = vpack.c.bf16 %v4450_v26, %v4446_v22  ;;  %v3847_v56 = vpop.f32.mrf.mxu0  ;;  %v4138_v6 = vpop.f32.mrf.mxu1  ;;  %v4500_v58 = vmax.f32 %v3844_v55, 0.0 }
 0x616   :  { %v4503_v63 = vmax.f32 %v3846_v60, 0.0  ;;  %v4137_v61 = vadd.f32 %v4136_v54, %v8954_v18  ;;  %v9110_v53 = vmul.f32 %v8930_v47, %v4876_v40  ;;  %v4453_v13 = vmax.f32 %v4135_v49, 0.0 }
 0x617   :  { %v3848_v19 = vadd.f32 %v3847_v56, %v8900_v17  ;;  %v4139_v33 = vadd.f32 %v4138_v6, %v8934_v16  ;;  %v3851_v10 = vpop.f32.mrf.mxu0  ;;  %v4140_v23 = vpop.f32.mrf.mxu1  ;;  %v9115_v22 = vmul.f32 %v8930_v47, %v4880_v59  ;;  %v4830_v49 = vunpack.c.l.bf16 %v9105_v34 }
 0x618   :  { %v4727_v2 = vpack.c.bf16 %v4503_v63, %v4499_v44  ;;  %v3852_v48 = vadd.f32 %v3851_v10, %v8894_v0  ;;  %v4141_v42 = vadd.f32 %v4140_v23, %v8954_v18  ;;  %v4454_v14 = vmax.f32 %v4137_v61, 0.0 }
 0x619   :  { %v4504_v9 = vmax.f32 %v3848_v19, 0.0  ;;  %v4457_v26 = vmax.f32 %v4139_v33, 0.0  ;;  %v3853_v15 = vpop.f32.mrf.mxu0  ;;  %v4144_v55 = vpop.f32.mrf.mxu1  ;;  %4383 = vmatmul.mubr.bf16.gmra.mxu1 %v8940_v57  ;;  %v5107_v44 = vmul.f32 %v8959_v30, %v4829_v62 }
 0x61a   :  { %v4883_v4 = vunpack.c.l.bf16 %v4727_v2  ;;  %v4887_v54 = vunpack.c.h.bf16 %v4727_v2  ;;  %v4458_v60 = vmax.f32 %v4141_v42, 0.0  ;;  %4392 = vmatprep.mubr.bf16.mxu1 %v8968_v52  ;;  %v3854_v56 = vadd.f32 %v3853_v15, %v8900_v17 }
 0x61b   :  { %v4728_v40 = vpack.c.bf16 %v4504_v9, %v4500_v58  ;;  %v9123_v59 = vpack.c.bf16 %v4457_v26, %v4453_v13  ;;  %v4145_v6 = vadd.f32 %v4144_v55, %v8934_v16  ;;  %v3855_v63 = vpop.f32.mrf.mxu0  ;;  %v4146_v61 = vpop.f32.mrf.mxu1  ;;  %v4507_v33 = vmax.f32 %v3852_v48, 0.0 }
 0x61c   :  { %v9128_v57 = vmul.f32 %v8924_v32, %v4883_v4  ;;  %v9131_v19 = vmul.f32 %v8924_v32, %v4887_v54  ;;  %v3856_v52 = vadd.f32 %v3855_v63, %v8894_v0  ;;  %v9135_v13 = vpack.c.bf16 %v4458_v60, %v4454_v14 }
 0x61d   :  { %v4884_v10 = vunpack.c.l.bf16 %v4728_v40  ;;  %v4888_v62 = vunpack.c.h.bf16 %v4728_v40  ;;  %v3857_v23 = vpop.f32.mrf.mxu0  ;;  %v4148_v2 = vpop.f32.mrf.mxu1  ;;  %v4508_v9 = vmax.f32 %v3854_v56, 0.0  ;;  %v4461_v26 = vmax.f32 %v4145_v6, 0.0 }
 0x61e   :  { %v4511_v15 = vmax.f32 %v3856_v52, 0.0  ;;  %v4147_v48 = vadd.f32 %v4146_v61, %v8954_v18  ;;  %v5108_v4 = vmul.f32 %v8983_v36, %v4830_v49  ;;  %v5362_v54 = vadd.f32 %v8985_v35, %v5107_v44 }
 0x61f   :  { %v9139_v55 = vmul.f32 %v8930_v47, %v4884_v10  ;;  %v3861_v40 = vpop.f32.mrf.mxu0  ;;  %v4150_v63 = vpop.f32.mrf.mxu1  ;;  %v9145_v14 = vmul.f32 %v8930_v47, %v4888_v62  ;;  %v3858_v42 = vadd.f32 %v3857_v23, %v8900_v17  ;;  %v4149_v56 = vadd.f32 %v4148_v2, %v8934_v16 }
 0x620   :  { %v4731_v60 = vpack.c.bf16 %v4511_v15, %v4507_v33  ;;  %v5363_v6 = vadd.f32 %v5362_v54, %v5108_v4  ;;  %v3862_v52 = vadd.f32 %v3861_v40, %v8894_v0  ;;  %v4151_v10 = vadd.f32 %v4150_v63, %v8954_v18 }
 0x621   :  { %v4834_v61 = vunpack.c.h.bf16 %v9105_v34  ;;  %v3863_v49 = vpop.f32.mrf.mxu0  ;;  %v4154_v58 = vpop.f32.mrf.mxu1  ;;  %4393 = vmatmul.mubr.bf16.gmra.mxu1 %v8966_v51  ;;  %v4512_v62 = vmax.f32 %v3858_v42, 0.0  ;;  %v4465_v29 = vmax.f32 %v4149_v56, 0.0  ;;  %v4462_v33 = vmax.f32 %v4147_v48, 0.0 }
 0x622   :  { %v4891_v35 = vunpack.c.l.bf16 %v4731_v60  ;;  %v4895_v44 = vunpack.c.h.bf16 %v4731_v60  ;;  %4402 = vmatprep.mubr.bf16.mxu1 %v9002_v24  ;;  %5364 = vadd.xlane.f32.xlu0 %v5363_v6  ;;  %v4466_v23 = vmax.f32 %v4151_v10, 0.0  ;;  %v11074_v2 = vunpack.c.h.bf16 %v9093_v46 }
 0x623   :  { %v5112_v4 = vmul.f32 %v8983_v36, %v4834_v61  ;;  %v3865_v34 = vpop.f32.mrf.mxu0  ;;  %v4156_v54 = vpop.f32.mrf.mxu1  ;;  %v4732_v51 = vpack.c.bf16 %v4512_v62, %v4508_v9  ;;  %v9161_v63 = vpack.c.bf16 %v4465_v29, %v4461_v26  ;;  %v4515_v42 = vmax.f32 %v3862_v52, 0.0 }
 0x624   :  { %v5111_v15 = vmul.f32 %v8959_v30, %v11074_v2  ;;  %v9159_v40 = vmul.f32 %v8924_v32, %v4891_v35  ;;  %v9164_v24 = vmul.f32 %v8924_v32, %v4895_v44  ;;  %v3864_v46 = vadd.f32 %v3863_v49, %v8900_v17 }
 0x625   :  { %v4155_v60 = vadd.f32 %v4154_v58, %v8934_v16  ;;  %v3867_v56 = vpop.f32.mrf.mxu0  ;;  %v4158_v6 = vpop.f32.mrf.mxu1  ;;  %v4892_v10 = vunpack.c.l.bf16 %v4732_v51  ;;  %v4896_v61 = vunpack.c.h.bf16 %v4732_v51  ;;  %v9170_v2 = vpack.c.bf16 %v4466_v23, %v4462_v33 }
 0x626   :  { %11075 = vst [vmem:[#allocation13_spill] sm:$0xff] %v9159_v40  ;;  %11076 = vst [vmem:[#allocation14_spill] sm:$0xff] %v9164_v24  ;;  %v5367_v48 = vadd.f32 %v8989_v43, %v5111_v15  ;;  %v4516_v26 = vmax.f32 %v3864_v46, 0.0  ;;  %v3866_v52 = vadd.f32 %v3865_v34, %v8894_v0  ;;  %v4157_v62 = vadd.f32 %v4156_v54, %v8954_v18 }
 0x627   :  { %v3871_v44 = vpop.f32.mrf.mxu0  ;;  %v4160_v43 = vpop.f32.mrf.mxu1  ;;  %v9175_v49 = vmul.f32 %v8930_v47, %v4892_v10  ;;  %v4469_v58 = vmax.f32 %v4155_v60, 0.0  ;;  %v4838_v15 = vunpack.c.l.bf16 %v9135_v13  ;;  %v11078_v33 = vunpack.c.l.bf16 %v9123_v59 }
 0x628   :  { %v5368_v9 = vadd.f32 %v5367_v48, %v5112_v4  ;;  %v4519_v51 = vmax.f32 %v3866_v52, 0.0  ;;  %v3868_v4 = vadd.f32 %v3867_v56, %v8900_v17  ;;  %v4159_v34 = vadd.f32 %v4158_v6, %v8934_v16 }
 0x629   :  { %11077 = vst [vmem:[#allocation15_spill] sm:$0xff] %v9175_v49  ;;  %v5115_v23 = vmul.f32 %v8959_v30, %v11078_v33  ;;  %v3873_v48 = vpop.f32.mrf.mxu0  ;;  %v4164_v46 = vpop.f32.mrf.mxu1  ;;  %4403 = vmatmul.mubr.bf16.gmra.mxu1 %v8996_v41  ;;  %v9186_v60 = vmul.f32 %v8930_v47, %v4896_v61  ;;  %v5116_v54 = vmul.f32 %v8983_v36, %v4838_v15  ;;  %v4470_v49 = vmax.f32 %v4157_v62, 0.0 }
 0x62a   :  { %5369 = vadd.xlane.f32.xlu0 %v5368_v9  ;;  %v3872_v10 = vadd.f32 %v3871_v44, %v8894_v0  ;;  %v4161_v9 = vadd.f32 %v4160_v43, %v8954_v18  ;;  %4412 = vmatprep.mubr.bf16.mxu1 %v9027_v37  ;;  %v4735_v52 = vpack.c.bf16 %v4519_v51, %v4515_v42  ;;  %v4520_v33 = vmax.f32 %v3868_v4, 0.0 }
 0x62b   :  { %11079 = vst [vmem:[#allocation16_spill] sm:$0xff] %v9186_v60  ;;  %v5372_v56 = vadd.f32 %v8994_v38, %v5115_v23  ;;  %v4473_v6 = vmax.f32 %v4159_v34, 0.0  ;;  %v3875_v35 = vpop.f32.mrf.mxu0  ;;  %v4166_v29 = vpop.f32.mrf.mxu1  ;;  %v4842_v61 = vunpack.c.h.bf16 %v9135_v13  ;;  %v11080_v40 = vunpack.c.h.bf16 %v9123_v59 }
 0x62c   :  { %v4474_v41 = vmax.f32 %v4161_v9, 0.0  ;;  %v4899_v44 = vunpack.c.l.bf16 %v4735_v52  ;;  %v4903_v60 = vunpack.c.h.bf16 %v4735_v52  ;;  %v4736_v24 = vpack.c.bf16 %v4520_v33, %v4516_v26 }
 0x62d   :  { %v5119_v15 = vmul.f32 %v8959_v30, %v11080_v40  ;;  %v5373_v43 = vadd.f32 %v5372_v56, %v5116_v54  ;;  %v3877_v37 = vpop.f32.mrf.mxu0  ;;  %v4168_v42 = vpop.f32.mrf.mxu1  ;;  %v9197_v51 = vpack.c.bf16 %v4473_v6, %v4469_v58  ;;  %v4523_v38 = vmax.f32 %v3872_v10, 0.0 }
 0x62e   :  { %v5120_v23 = vmul.f32 %v8983_v36, %v4842_v61  ;;  %v9202_v4 = vmul.f32 %v8924_v32, %v4899_v44  ;;  %v4900_v59 = vunpack.c.l.bf16 %v4736_v24  ;;  %v4904_v13 = vunpack.c.h.bf16 %v4736_v24 }
 0x62f   :  { %v5377_v62 = vadd.f32 %v9008_v45, %v5119_v15  ;;  %5374 = vadd.xlane.f32.xlu1 %v5373_v43  ;;  %v9204_v40 = vpack.c.bf16 %v4474_v41, %v4470_v49  ;;  %v3881_v34 = vpop.f32.mrf.mxu0  ;;  %v4170_v54 = vpop.f32.mrf.mxu1  ;;  %v9207_v26 = vmul.f32 %v8924_v32, %v4903_v60  ;;  %v3874_v9 = vadd.f32 %v3873_v48, %v8900_v17 }
 0x630   :  { %v9213_v45 = vmul.f32 %v8930_v47, %v4900_v59  ;;  %v4165_v56 = vadd.f32 %v4164_v46, %v8934_v16  ;;  %v3876_v24 = vadd.f32 %v3875_v35, %v8894_v0  ;;  %v9219_v60 = vmul.f32 %v8930_v47, %v4904_v13 }
 0x631   :  { %v5378_v52 = vadd.f32 %v5377_v62, %v5120_v23  ;;  %v3883_v49 = vpop.f32.mrf.mxu0  ;;  %v4174_v33 = vpop.f32.mrf.mxu1  ;;  %4413 = vmatmul.mubr.bf16.gmra.mxu1 %v9025_v8  ;;  %v4524_v6 = vmax.f32 %v3874_v9, 0.0  ;;  %v4850_v41 = vunpack.c.h.bf16 %v9170_v2  ;;  %v11082_v48 = vunpack.c.h.bf16 %v9161_v63 }
 0x632   :  { %11081 = vst [vmem:[#allocation17_spill] sm:$0xff] %v9213_v45  ;;  %4422 = vmatprep.mubr.bf16.mxu1 %v9056_v11  ;;  %v4527_v46 = vmax.f32 %v3876_v24, 0.0  ;;  %v4167_v35 = vadd.f32 %v4166_v29, %v8954_v18  ;;  %v4846_v15 = vunpack.c.l.bf16 %v9170_v2  ;;  %v11083_v8 = vunpack.c.l.bf16 %v9161_v63 }
 0x633   :  { %v5127_v61 = vmul.f32 %v8959_v30, %v11082_v48  ;;  %5379 = vadd.xlane.f32.xlu1 %v5378_v52  ;;  %v3885_v43 = vpop.f32.mrf.mxu0  ;;  %v4176_v23 = vpop.f32.mrf.mxu1  ;;  %v4477_v62 = vmax.f32 %v4165_v56, 0.0  ;;  %v5128_v59 = vmul.f32 %v8983_v36, %v4850_v41  ;;  %v3878_v9 = vadd.f32 %v3877_v37, %v8900_v17 }
 0x634   :  { %v5123_v44 = vmul.f32 %v8959_v30, %v11083_v8  ;;  %v4739_v11 = vpack.c.bf16 %v4527_v46, %v4523_v38  ;;  %v5124_v52 = vmul.f32 %v8983_v36, %v4846_v15  ;;  %v4169_v2 = vadd.f32 %v4168_v42, %v8934_v16 }
 0x635   :  { %v5387_v13 = vadd.f32 %v9016_v3, %v5127_v61  ;;  %v3887_v24 = vpop.f32.mrf.mxu0  ;;  %v4178_v63 = vpop.f32.mrf.mxu1  ;;  %v4528_v8 = vmax.f32 %v3878_v9, 0.0  ;;  %v3882_v58 = vadd.f32 %v3881_v34, %v8894_v0  ;;  %v4171_v56 = vadd.f32 %v4170_v54, %v8954_v18 }
 0x636   :  { %v5382_v29 = vadd.f32 %v9036_v12, %v5123_v44  ;;  %v4907_v41 = vunpack.c.l.bf16 %v4739_v11  ;;  %v4911_v10 = vunpack.c.h.bf16 %v4739_v11  ;;  %v4481_v61 = vmax.f32 %v4169_v2, 0.0 }
 0x637   :  { %v5388_v48 = vadd.f32 %v5387_v13, %v5128_v59  ;;  %v3891_v37 = vpop.f32.mrf.mxu0  ;;  %v4180_v38 = vpop.f32.mrf.mxu1  ;;  %v4478_v46 = vmax.f32 %v4167_v35, 0.0  ;;  %v4740_v15 = vpack.c.bf16 %v4528_v8, %v4524_v6  ;;  %v4482_v12 = vmax.f32 %v4171_v56, 0.0 }
 0x638   :  { %v5383_v3 = vadd.f32 %v5382_v29, %v5124_v52  ;;  %v3884_v42 = vadd.f32 %v3883_v49, %v8900_v17  ;;  %v9241_v44 = vmul.f32 %v8924_v32, %v4907_v41  ;;  %v9243_v59 = vpack.c.bf16 %v4481_v61, %v4477_v62 }
 0x639   :  { %5389 = vadd.xlane.f32.xlu1 %v5388_v48  ;;  %v4531_v34 = vmax.f32 %v3882_v58, 0.0  ;;  %v4175_v54 = vadd.f32 %v4174_v33, %v8934_v16  ;;  %v3893_v13 = vpop.f32.mrf.mxu0  ;;  %v4184_v9 = vpop.f32.mrf.mxu1  ;;  %v9247_v11 = vmul.f32 %v8924_v32, %v4911_v10  ;;  %v4908_v35 = vunpack.c.l.bf16 %v4740_v15  ;;  %4423 = vmatmul.mubr.bf16.gmra.mxu1 %v9046_v39 }
 0x63a   :  { %11084 = vst [vmem:[#allocation18_spill] sm:$0xff] %v9241_v44  ;;  %5384 = vadd.xlane.f32.xlu0 %v5383_v3  ;;  %v4912_v52 = vunpack.c.h.bf16 %v4740_v15  ;;  %v9249_v6 = vpack.c.bf16 %v4482_v12, %v4478_v46  ;;  %v4865_v29 = vunpack.c.h.bf16 %v9243_v59  ;;  %v4532_v62 = vmax.f32 %v3884_v42, 0.0  ;;  %4432 = vmatprep.mubr.bf16.mxu1 %v9081_v21 }
 0x63b   :  { %11085 = vst [vmem:[#allocation19_spill] sm:$0xff] %v9247_v11  ;;  %v3886_v58 = vadd.f32 %v3885_v43, %v8894_v0  ;;  %v3895_v33 = vpop.f32.mrf.mxu0  ;;  %v4186_v2 = vpop.f32.mrf.mxu1  ;;  %v9257_v10 = vmul.f32 %v8930_v47, %v4908_v35  ;;  %v4485_v39 = vmax.f32 %v4175_v54, 0.0  ;;  %v4858_v3 = vunpack.c.h.bf16 %v9204_v40 }
 0x63c   :  { %v9260_v48 = vmul.f32 %v8930_v47, %v4912_v52  ;;  %v4866_v56 = vunpack.c.h.bf16 %v9249_v6  ;;  %v11088_v43 = vunpack.c.h.bf16 %v9197_v51  ;;  %v4854_v15 = vunpack.c.l.bf16 %v9204_v40 }
 0x63d   :  { %11086 = vst [vmem:[#allocation20_spill] sm:$0xff] %v9257_v10  ;;  %v4535_v41 = vmax.f32 %v3886_v58, 0.0  ;;  %v3897_v61 = vpop.f32.mrf.mxu0  ;;  %v9268_v46 = vpop.f32.mrf.mxu1  ;;  %v11089_v12 = vunpack.c.l.bf16 %v9197_v51  ;;  %v3888_v54 = vadd.f32 %v3887_v24, %v8900_v17  ;;  %v4179_v35 = vadd.f32 %v4178_v63, %v8934_v16 }
 0x63e   :  { %11087 = vst [vmem:[#allocation21_spill] sm:$0xff] %v9260_v48  ;;  %v5135_v21 = vmul.f32 %v8959_v30, %v11088_v43  ;;  %v4177_v58 = vadd.f32 %v4176_v23, %v8954_v18  ;;  %v5136_v8 = vmul.f32 %v8983_v36, %v4858_v3  ;;  %v5132_v44 = vmul.f32 %v8983_v36, %v4854_v15 }
 0x63f   :  { %v5131_v42 = vmul.f32 %v8959_v30, %v11089_v12  ;;  %v4743_v52 = vpack.c.bf16 %v4535_v41, %v4531_v34  ;;  %v3901_v49 = vpop.f32.mrf.mxu0  ;;  %v4190_v10 = vpop.f32.mrf.mxu1  ;;  %v4536_v51 = vmax.f32 %v3888_v54, 0.0  ;;  %v4489_v48 = vmax.f32 %v4179_v35, 0.0 }
 0x640   :  { %v5397_v43 = vadd.f32 %v9041_v50, %v5135_v21  ;;  %v3892_v63 = vadd.f32 %v3891_v37, %v8894_v0  ;;  %v4181_v50 = vadd.f32 %v4180_v38, %v8954_v18  ;;  %v3894_v37 = vadd.f32 %v3893_v13, %v8900_v17 }
 0x641   :  { %v5392_v40 = vadd.f32 %v9043_v5, %v5131_v42  ;;  %v4915_v12 = vunpack.c.l.bf16 %v4743_v52  ;;  %v4919_v11 = vunpack.c.h.bf16 %v4743_v52  ;;  %v3903_v34 = vpop.f32.mrf.mxu0  ;;  %v9282_v41 = vpop.f32.mrf.mxu1  ;;  %v4744_v3 = vpack.c.bf16 %v4536_v51, %v4532_v62  ;;  %4433 = vmatmul.mubr.bf16.gmra.mxu1 %v9073_v7 }
 0x642   :  { %v5398_v24 = vadd.f32 %v5397_v43, %v5136_v8  ;;  %v9284_v45 = vpack.c.bf16 %v4489_v48, %v4485_v39  ;;  %v4486_v8 = vmax.f32 %v4177_v58, 0.0  ;;  %v4539_v48 = vmax.f32 %v3892_v63, 0.0 }
 0x643   :  { %v5393_v23 = vadd.f32 %v5392_v40, %v5132_v44  ;;  %v9289_v5 = vmul.f32 %v8924_v32, %v4915_v12  ;;  %v9292_v21 = vmul.f32 %v8924_v32, %v4919_v11  ;;  %v3905_v15 = vpop.f32.mrf.mxu0  ;;  %v9295_v42 = vpop.f32.mrf.mxu1  ;;  %v4916_v44 = vunpack.c.l.bf16 %v4744_v3 }
 0x644   :  { %5399 = vadd.xlane.f32.xlu1 %v5398_v24  ;;  %v4920_v62 = vunpack.c.h.bf16 %v4744_v3  ;;  %v4873_v7 = vunpack.c.h.bf16 %v9284_v45  ;;  %v4490_v39 = vmax.f32 %v4181_v50, 0.0  ;;  %v4185_v54 = vadd.f32 %v4184_v9, %v8934_v16 }
 0x645   :  { %5394 = vadd.xlane.f32.xlu0 %v5393_v23  ;;  %v3896_v11 = vadd.f32 %v3895_v33, %v8894_v0  ;;  %v9301_v35 = vpop.f32.mrf.mxu0  ;;  %v9303_v52 = vpop.f32.mrf.mxu1  ;;  %v9306_v13 = vmul.f32 %v8930_v47, %v4916_v44  ;;  %v4540_v58 = vmax.f32 %v3894_v37, 0.0  ;;  %v4187_v43 = vadd.f32 %v4186_v2, %v8954_v18 }
 0x646   :  { %v5143_v40 = vmul.f32 %v8959_v30, %v4865_v29  ;;  %v9311_v51 = vmul.f32 %v8930_v47, %v4920_v62  ;;  %v9313_v12 = vpack.c.bf16 %v4490_v39, %v4486_v8  ;;  %v5144_v33 = vmul.f32 %v8983_v36, %v4866_v56 }
 0x647   :  { %11090 = vst [vmem:[#allocation22_spill] sm:$0xff] %v9306_v13  ;;  %v4543_v9 = vmax.f32 %v3896_v11, 0.0  ;;  %v9316_v24 = vpop.f32.mrf.mxu0  ;;  %v9318_v63 = vpop.f32.mrf.mxu1  ;;  %v4493_v23 = vmax.f32 %v4185_v54, 0.0  ;;  %v11091_v50 = vunpack.c.l.bf16 %v9243_v59  ;;  %v11092_v29 = vunpack.c.l.bf16 %v9249_v6 }
 0x648   :  { %v5407_v3 = vadd.f32 %v9065_v31, %v5143_v40  ;;  %v4870_v8 = vunpack.c.l.bf16 %v9313_v12  ;;  %v4494_v62 = vmax.f32 %v4187_v43, 0.0  ;;  %v3898_v56 = vadd.f32 %v3897_v61, %v8900_v17 }
 0x649   :  { %v5139_v2 = vmul.f32 %v8959_v30, %v11091_v50  ;;  %v5140_v37 = vmul.f32 %v8983_v36, %v11092_v29  ;;  %v4747_v44 = vpack.c.bf16 %v4543_v9, %v4539_v48  ;;  %v9329_v39 = vpop.f32.mrf.mxu0  ;;  %v9331_v11 = vpop.f32.mrf.mxu1  ;;  %v4189_v59 = vadd.f32 %v9268_v46, %v8934_v16 }
 0x64a   :  { %v5408_v54 = vadd.f32 %v5407_v3, %v5144_v33  ;;  %v3902_v6 = vadd.f32 %v3901_v49, %v8894_v0  ;;  %v4544_v29 = vmax.f32 %v3898_v56, 0.0  ;;  %v4191_v48 = vadd.f32 %v4190_v10, %v8954_v18 }
 0x64b   :  { %v5402_v31 = vadd.f32 %v9067_v20, %v5139_v2  ;;  %v4923_v40 = vunpack.c.l.bf16 %v4747_v44  ;;  %v4927_v50 = vunpack.c.h.bf16 %v4747_v44  ;;  %v9338_v43 = vpop.f32.mrf.mxu0  ;;  %v9340_v61 = vpop.f32.mrf.mxu1  ;;  %v4874_v9 = vunpack.c.h.bf16 %v9313_v12 }
 0x64c   :  { %5409 = vadd.xlane.f32.xlu1 %v5408_v54  ;;  %v4497_v3 = vmax.f32 %v4189_v59, 0.0  ;;  %v3904_v20 = vadd.f32 %v3903_v34, %v8900_v17  ;;  %v4748_v49 = vpack.c.bf16 %v4544_v29, %v4540_v58  ;;  %v4547_v2 = vmax.f32 %v3902_v6, 0.0 }
 0x64d   :  { %v5403_v33 = vadd.f32 %v5402_v31, %v5140_v37  ;;  %v9345_v46 = vmul.f32 %v8924_v32, %v4923_v40  ;;  %v4498_v44 = vmax.f32 %v4191_v48, 0.0  ;;  %v9347_v56 = vpop.f32.mrf.mxu0  ;;  %v9349_v10 = vpop.f32.mrf.mxu1  ;;  %v9352_v38 = vmul.f32 %v8924_v32, %v4927_v50 }
 0x64e   :  { %v9354_v12 = vpack.c.bf16 %v4497_v3, %v4493_v23  ;;  %v4195_v37 = vadd.f32 %v9282_v41, %v8934_v16  ;;  %v3906_v34 = vadd.f32 %v3905_v15, %v8894_v0  ;;  %v4924_v54 = vunpack.c.l.bf16 %v4748_v49 }
 0x64f   :  { %11093 = vst [vmem:[#allocation23_spill] sm:$0xff] %v9345_v46  ;;  %11094 = vst [vmem:[#allocation24_spill] sm:$0xff] %v9352_v38  ;;  %5404 = vadd.xlane.f32.xlu0 %v5403_v33  ;;  %v4928_v31 = vunpack.c.h.bf16 %v4748_v49  ;;  %v9359_v58 = vpack.c.bf16 %v4498_v44, %v4494_v62  ;;  %v4548_v59 = vmax.f32 %v3904_v20, 0.0  ;;  %v9361_v6 = vpop.f32.mrf.mxu0  ;;  %v9363_v40 = vpop.f32.mrf.mxu1  ;;  %v4197_v48 = vadd.f32 %v9295_v42, %v8954_v18 }
 0x650   :  { %v4881_v29 = vunpack.c.h.bf16 %v9354_v12  ;;  %v4551_v23 = vmax.f32 %v3906_v34, 0.0  ;;  %v9370_v41 = vmul.f32 %v8930_v47, %v4924_v54  ;;  %v4501_v33 = vmax.f32 %v4195_v37, 0.0 }
 0x651   :  { %v9373_v15 = vmul.f32 %v8930_v47, %v4928_v31  ;;  %v4878_v62 = vunpack.c.l.bf16 %v9359_v58  ;;  %v9376_v3 = vpop.f32.mrf.mxu0  ;;  %v9378_v20 = vpop.f32.mrf.mxu1  ;;  %v4882_v49 = vunpack.c.h.bf16 %v9359_v58  ;;  %v5151_v42 = vmul.f32 %v8959_v30, %v4873_v7 }
 0x652   :  { %11095 = vst [vmem:[#allocation25_spill] sm:$0xff] %v9370_v41  ;;  %v4751_v44 = vpack.c.bf16 %v4551_v23, %v4547_v2  ;;  %v5152_v34 = vmul.f32 %v8983_v36, %v4874_v9  ;;  %v11097_v54 = vunpack.c.l.bf16 %v9284_v45  ;;  %v5148_v50 = vmul.f32 %v8983_v36, %v4870_v8 }
 0x653   :  { %11096 = vst [vmem:[#allocation26_spill] sm:$0xff] %v9373_v15  ;;  %v3908_v37 = vadd.f32 %v9301_v35, %v8900_v17  ;;  %v4199_v41 = vadd.f32 %v9303_v52, %v8934_v16  ;;  %v9393_v58 = vpop.f32.mrf.mxu0  ;;  %v9395_v2 = vpop.f32.mrf.mxu1  ;;  %v5417_v9 = vadd.f32 %v9087_v28, %v5151_v42  ;;  %v3912_v45 = vadd.f32 %v9316_v24, %v8894_v0 }
 0x654   :  { %v5147_v31 = vmul.f32 %v8959_v30, %v11097_v54  ;;  %v4931_v23 = vunpack.c.l.bf16 %v4751_v44  ;;  %v4935_v7 = vunpack.c.h.bf16 %v4751_v44  ;;  %v4201_v35 = vadd.f32 %v9318_v63, %v8954_v18 }
 0x655   :  { %v4552_v8 = vmax.f32 %v3908_v37, 0.0  ;;  %v4505_v46 = vmax.f32 %v4199_v41, 0.0  ;;  %v9403_v15 = vpop.f32.mrf.mxu0  ;;  %v9405_v52 = vpop.f32.mrf.mxu1  ;;  %v4502_v28 = vmax.f32 %v4197_v48, 0.0  ;;  %v5418_v42 = vadd.f32 %v5417_v9, %v5152_v34 }
 0x656   :  { %v5412_v54 = vadd.f32 %v9091_v1, %v5147_v31  ;;  %v9408_v38 = vmul.f32 %v8924_v32, %v4931_v23  ;;  %v9411_v44 = vmul.f32 %v8924_v32, %v4935_v7  ;;  %v4506_v41 = vmax.f32 %v4201_v35, 0.0 }
 0x657   :  { %v4752_v13 = vpack.c.bf16 %v4552_v8, %v4548_v59  ;;  %v9413_v1 = vpack.c.bf16 %v4505_v46, %v4501_v33  ;;  %v9415_v31 = vpop.f32.mrf.mxu0  ;;  %v9417_v63 = vpop.f32.mrf.mxu1  ;;  %5419 = vadd.xlane.f32.xlu1 %v5418_v42  ;;  %v3914_v37 = vadd.f32 %v9329_v39, %v8900_v17  ;;  %v4205_v23 = vadd.f32 %v9331_v11, %v8934_v16 }
 0x658   :  { %11098 = vst [vmem:[#allocation27_spill] sm:$0xff] %v9408_v38  ;;  %v5413_v24 = vadd.f32 %v5412_v54, %v5148_v50  ;;  %v3916_v48 = vadd.f32 %v9338_v43, %v8894_v0  ;;  %v4207_v59 = vadd.f32 %v9340_v61, %v8954_v18  ;;  %v4555_v34 = vmax.f32 %v3912_v45, 0.0 }
 0x659   :  { %v4932_v46 = vunpack.c.l.bf16 %v4752_v13  ;;  %v4936_v50 = vunpack.c.h.bf16 %v4752_v13  ;;  %v9428_v7 = vpop.f32.mrf.mxu0  ;;  %v9430_v9 = vpop.f32.mrf.mxu1  ;;  %v9433_v54 = vpack.c.bf16 %v4506_v41, %v4502_v28  ;;  %v4556_v11 = vmax.f32 %v3914_v37, 0.0 }
 0x65a   :  { %5414 = vadd.xlane.f32.xlu0 %v5413_v24  ;;  %v4559_v8 = vmax.f32 %v3916_v48, 0.0  ;;  %v4509_v13 = vmax.f32 %v4205_v23, 0.0  ;;  %v5159_v35 = vmul.f32 %v8959_v30, %v4881_v29  ;;  %v4510_v28 = vmax.f32 %v4207_v59, 0.0 }
 0x65b   :  { %v9436_v43 = vmul.f32 %v8930_v47, %v4932_v46  ;;  %v9439_v61 = vmul.f32 %v8930_v47, %v4936_v50  ;;  %v9442_v45 = vpop.f32.mrf.mxu0  ;;  %v9444_v42 = vpop.f32.mrf.mxu1  ;;  %v5160_v41 = vmul.f32 %v8983_v36, %v4882_v49  ;;  %v5426_v37 = vadd.f32 %v9115_v22, %v9101_v27 }
 0x65c   :  { %v4755_v33 = vpack.c.bf16 %v4559_v8, %v4555_v34  ;;  %v11101_v48 = vunpack.c.l.bf16 %v9354_v12  ;;  %v5156_v23 = vmul.f32 %v8983_v36, %v4878_v62  ;;  %v5421_v29 = vadd.f32 %v9110_v53, %v9098_v25 }
 0x65d   :  { %11099 = vst [vmem:[#allocation28_spill] sm:$0xff] %v9436_v43  ;;  %11100 = vst [vmem:[#allocation29_spill] sm:$0xff] %v9439_v61  ;;  %v9456_v50 = vpop.f32.mrf.mxu0  ;;  %v9458_v39 = vpop.f32.mrf.mxu1  ;;  %v3918_v49 = vadd.f32 %v9347_v56, %v8900_v17  ;;  %v4209_v27 = vadd.f32 %v9349_v10, %v8934_v16  ;;  %v5427_v22 = vadd.f32 %v5426_v37, %v5159_v35 }
 0x65e   :  { %v5155_v46 = vmul.f32 %v8959_v30, %v11101_v48  ;;  %v4939_v34 = vunpack.c.l.bf16 %v4755_v33  ;;  %v4943_v59 = vunpack.c.h.bf16 %v4755_v33  ;;  %v3922_v62 = vadd.f32 %v9361_v6, %v8894_v0 }
 0x65f   :  { %v4211_v25 = vadd.f32 %v9363_v40, %v8954_v18  ;;  %v9468_v53 = vpop.f32.mrf.mxu0  ;;  %v9470_v8 = vpop.f32.mrf.mxu1  ;;  %v4890_v33 = vunpack.c.h.bf16 %v9433_v54  ;;  %v4560_v56 = vmax.f32 %v3918_v49, 0.0  ;;  %v4513_v24 = vmax.f32 %v4209_v27, 0.0 }
 0x660   :  { %v5422_v12 = vadd.f32 %v5421_v29, %v5155_v46  ;;  %v9474_v48 = vmul.f32 %v8924_v32, %v4939_v34  ;;  %v9477_v10 = vmul.f32 %v8924_v32, %v4943_v59  ;;  %v5428_v35 = vadd.f32 %v5427_v22, %v5160_v41 }
 0x661   :  { %v4514_v6 = vmax.f32 %v4211_v25, 0.0  ;;  %v9479_v46 = vpop.f32.mrf.mxu0  ;;  %v9481_v40 = vpop.f32.mrf.mxu1  ;;  %v4756_v29 = vpack.c.bf16 %v4560_v56, %v4556_v11  ;;  %v9483_v43 = vpack.c.bf16 %v4513_v24, %v4509_v13  ;;  %v3924_v38 = vadd.f32 %v9376_v3, %v8900_v17 }
 0x662   :  { %11102 = vst [vmem:[#allocation30_spill] sm:$0xff] %v9474_v48  ;;  %11103 = vst [vmem:[#allocation31_spill] sm:$0xff] %v9477_v10  ;;  %v5423_v37 = vadd.f32 %v5422_v12, %v5156_v23  ;;  %v4215_v34 = vadd.f32 %v9378_v20, %v8934_v16  ;;  %5429 = vadd.xlane.f32.xlu1 %v5428_v35  ;;  %v4563_v59 = vmax.f32 %v3922_v62, 0.0 }
 0x663   :  { %v9489_v49 = vpack.c.bf16 %v4514_v6, %v4510_v28  ;;  %v3926_v41 = vadd.f32 %v9393_v58, %v8894_v0  ;;  %v4217_v23 = vadd.f32 %v9395_v2, %v8954_v18  ;;  %v9495_v11 = vpop.f32.mrf.mxu0  ;;  %v9497_v13 = vpop.f32.mrf.mxu1  ;;  %v4940_v24 = vunpack.c.l.bf16 %v4756_v29 }
 0x664   :  { %5424 = vadd.xlane.f32.xlu0 %v5423_v37  ;;  %v4944_v3 = vunpack.c.h.bf16 %v4756_v29  ;;  %v4564_v12 = vmax.f32 %v3924_v38, 0.0  ;;  %v4517_v62 = vmax.f32 %v4215_v34, 0.0  ;;  %v11106_v6 = vunpack.c.h.bf16 %v9413_v1 }
 0x665   :  { %v9503_v58 = vpop.f32.mrf.mxu0  ;;  %v9505_v25 = vpop.f32.mrf.mxu1  ;;  %v9508_v2 = vmul.f32 %v8930_v47, %v4940_v24  ;;  %v4567_v35 = vmax.f32 %v3926_v41, 0.0  ;;  %v4518_v37 = vmax.f32 %v4217_v23, 0.0  ;;  %v5168_v22 = vmul.f32 %v8983_v36, %v4890_v33 }
 0x666   :  { %v9511_v56 = vmul.f32 %v8930_v47, %v4944_v3  ;;  %v5167_v29 = vmul.f32 %v8959_v30, %v11106_v6  ;;  %v5436_v38 = vadd.f32 %v9145_v14, %v9131_v19  ;;  %v11107_v34 = vunpack.c.l.bf16 %v9413_v1 }
 0x667   :  { %11104 = vst [vmem:[#allocation32_spill] sm:$0xff] %v9508_v2  ;;  %v9522_v24 = vpop.f32.mrf.mxu0  ;;  %v9524_v28 = vpop.f32.mrf.mxu1  ;;  %v4759_v3 = vpack.c.bf16 %v4567_v35, %v4563_v59  ;;  %v11108_v41 = vunpack.c.l.bf16 %v9433_v54  ;;  %v5431_v6 = vadd.f32 %v9139_v55, %v9128_v57  ;;  %v3928_v33 = vadd.f32 %v9403_v15, %v8900_v17 }
 0x668   :  { %11105 = vst [vmem:[#allocation33_spill] sm:$0xff] %v9511_v56  ;;  %v5163_v27 = vmul.f32 %v8959_v30, %v11107_v34  ;;  %v5437_v19 = vadd.f32 %v5436_v38, %v5167_v29  ;;  %v4219_v14 = vadd.f32 %v9405_v52, %v8934_v16  ;;  %v3932_v1 = vadd.f32 %v9415_v31, %v8894_v0 }
 0x669   :  { %v5164_v23 = vmul.f32 %v8983_v36, %v11108_v41  ;;  %v4221_v59 = vadd.f32 %v9417_v63, %v8954_v18  ;;  %v9539_v35 = vpop.f32.mrf.mxu0  ;;  %v9541_v54 = vpop.f32.mrf.mxu1  ;;  %v4947_v34 = vunpack.c.l.bf16 %v4759_v3  ;;  %v4951_v41 = vunpack.c.h.bf16 %v4759_v3 }
 0x66a   :  { %v5432_v57 = vadd.f32 %v5431_v6, %v5163_v27  ;;  %v4568_v55 = vmax.f32 %v3928_v33, 0.0  ;;  %v5438_v20 = vadd.f32 %v5437_v19, %v5168_v22  ;;  %v4521_v15 = vmax.f32 %v4219_v14, 0.0 }
 0x66b   :  { %v4571_v29 = vmax.f32 %v3932_v1, 0.0  ;;  %v4522_v38 = vmax.f32 %v4221_v59, 0.0  ;;  %v9543_v2 = vpop.f32.mrf.mxu0  ;;  %v9545_v52 = vpop.f32.mrf.mxu1  ;;  %v9548_v31 = vmul.f32 %v8924_v32, %v4947_v34  ;;  %v9551_v63 = vmul.f32 %v8924_v32, %v4951_v41 }
 0x66c   :  { %v5433_v48 = vadd.f32 %v5432_v57, %v5164_v23  ;;  %v4760_v56 = vpack.c.bf16 %v4568_v55, %v4564_v12  ;;  %5439 = vadd.xlane.f32.xlu1 %v5438_v20  ;;  %v9553_v3 = vpack.c.bf16 %v4521_v15, %v4517_v62  ;;  %v3934_v22 = vadd.f32 %v9428_v7, %v8900_v17  ;;  %v11120_v7 = vld [vmem:[#allocation15_spill] sm:$0xff] }
 0x66d   :  { %11109 = vst [vmem:[#allocation34_spill] sm:$0xff] %v9548_v31  ;;  %11110 = vst [vmem:[#allocation35_spill] sm:$0xff] %v9551_v63  ;;  %v9555_v27 = vpack.c.bf16 %v4522_v38, %v4518_v37  ;;  %v4225_v6 = vadd.f32 %v9430_v9, %v8934_v16  ;;  %v9561_v33 = vpop.f32.mrf.mxu0  ;;  %v9563_v19 = vpop.f32.mrf.mxu1  ;;  %v3936_v20 = vadd.f32 %v9442_v45, %v8894_v0  ;;  %v11113_v57 = vunpack.c.h.bf16 %v9483_v43  ;;  %v11116_v9 = vld [vmem:[#allocation16_spill] sm:$0xff] }
 0x66e   :  { %5434 = vadd.xlane.f32.xlu0 %v5433_v48  ;;  %v4948_v14 = vunpack.c.l.bf16 %v4760_v56  ;;  %v4952_v1 = vunpack.c.h.bf16 %v4760_v56  ;;  %v4227_v12 = vadd.f32 %v9444_v42, %v8954_v18  ;;  %v4572_v56 = vmax.f32 %v3934_v22, 0.0 }
 0x66f   :  { %v9573_v23 = vpop.f32.mrf.mxu0  ;;  %v9575_v59 = vpop.f32.mrf.mxu1  ;;  %v4525_v42 = vmax.f32 %v4225_v6, 0.0  ;;  %v4575_v34 = vmax.f32 %v3936_v20, 0.0  ;;  %v5175_v55 = vmul.f32 %v8959_v30, %v11113_v57  ;;  %v11114_v15 = vunpack.c.h.bf16 %v9489_v49  ;;  %v11119_v57 = vld [vmem:[#allocation13_spill] sm:$0xff] }
 0x670   :  { %v9578_v48 = vmul.f32 %v8930_v47, %v4948_v14  ;;  %v9581_v45 = vmul.f32 %v8930_v47, %v4952_v1  ;;  %v4526_v41 = vmax.f32 %v4227_v12, 0.0  ;;  %v11115_v14 = vld [vmem:[#allocation14_spill] sm:$0xff]  ;;  %v11117_v22 = vunpack.c.l.bf16 %v9483_v43 }
 0x671   :  { %v5176_v38 = vmul.f32 %v8983_v36, %v11114_v15  ;;  %v9589_v37 = vpop.f32.mrf.mxu0  ;;  %v9591_v62 = vpop.f32.mrf.mxu1  ;;  %v5446_v1 = vadd.f32 %v11116_v9, %v11115_v14  ;;  %v11118_v20 = vunpack.c.l.bf16 %v9489_v49  ;;  %v4763_v31 = vpack.c.bf16 %v4575_v34, %v4571_v29 }
 0x672   :  { %11111 = vst [vmem:[#allocation36_spill] sm:$0xff] %v9578_v48  ;;  %11112 = vst [vmem:[#allocation37_spill] sm:$0xff] %v9581_v45  ;;  %v5171_v6 = vmul.f32 %v8959_v30, %v11117_v22  ;;  %v5441_v48 = vadd.f32 %v11120_v7, %v11119_v57  ;;  %v3938_v15 = vadd.f32 %v9456_v50, %v8900_v17 }
 0x673   :  { %v5172_v12 = vmul.f32 %v8983_v36, %v11118_v20  ;;  %v4229_v45 = vadd.f32 %v9458_v39, %v8934_v16  ;;  %v3942_v9 = vadd.f32 %v9468_v53, %v8894_v0  ;;  %v9609_v43 = vpop.f32.mrf.mxu0  ;;  %v9611_v14 = vpop.f32.mrf.mxu1  ;;  %v5447_v49 = vadd.f32 %v5446_v1, %v5175_v55 }
 0x674   :  { %v5442_v22 = vadd.f32 %v5441_v48, %v5171_v6  ;;  %v4231_v20 = vadd.f32 %v9470_v8, %v8954_v18  ;;  %v9617_v29 = vadd.f32 %v9479_v46, %v8900_v17  ;;  %v4955_v50 = vunpack.c.l.bf16 %v4763_v31 }
 0x675   :  { %v4959_v7 = vunpack.c.h.bf16 %v4763_v31  ;;  %v4576_v34 = vmax.f32 %v3938_v15, 0.0  ;;  %v4529_v39 = vmax.f32 %v4229_v45, 0.0  ;;  %v9619_v57 = vpop.f32.mrf.mxu0  ;;  %v9621_v53 = vpop.f32.mrf.mxu1  ;;  %v5448_v63 = vadd.f32 %v5447_v49, %v5176_v38 }
 0x676   :  { %v5443_v10 = vadd.f32 %v5442_v22, %v5172_v12  ;;  %v4579_v61 = vmax.f32 %v3942_v9, 0.0  ;;  %v4530_v55 = vmax.f32 %v4231_v20, 0.0  ;;  %v9624_v48 = vmul.f32 %v8924_v32, %v4955_v50 }
 0x677   :  { %v9627_v8 = vmul.f32 %v8924_v32, %v4959_v7  ;;  %v4764_v46 = vpack.c.bf16 %v4576_v34, %v4572_v56  ;;  %v9629_v1 = vpack.c.bf16 %v4529_v39, %v4525_v42  ;;  %v9631_v31 = vpop.f32.mrf.mxu0  ;;  %v9633_v45 = vpop.f32.mrf.mxu1  ;;  %5449 = vadd.xlane.f32.xlu1 %v5448_v63  ;;  %v4580_v38 = vmax.f32 %v9617_v29, 0.0 }
 0x678   :  { %11121 = vst [vmem:[#allocation14_spill] sm:$0xff] %v9624_v48  ;;  %5444 = vadd.xlane.f32.xlu0 %v5443_v10  ;;  %v9635_v6 = vpack.c.bf16 %v4530_v55, %v4526_v41  ;;  %v4235_v12 = vadd.f32 %v9481_v40, %v8934_v16  ;;  %v3946_v15 = vadd.f32 %v9495_v11, %v8894_v0  ;;  %v11125_v7 = vunpack.c.h.bf16 %v9553_v3  ;;  %v11129_v41 = vld [vmem:[#allocation17_spill] sm:$0xff] }
 0x679   :  { %11122 = vst [vmem:[#allocation16_spill] sm:$0xff] %v9627_v8  ;;  %v4956_v9 = vunpack.c.l.bf16 %v4764_v46  ;;  %v4960_v56 = vunpack.c.h.bf16 %v4764_v46  ;;  %v9644_v22 = vpop.f32.mrf.mxu0  ;;  %v9646_v63 = vpop.f32.mrf.mxu1  ;;  %v4237_v50 = vadd.f32 %v9497_v13, %v8954_v18  ;;  %v11128_v42 = vunpack.c.l.bf16 %v9555_v27 }
 0x67a   :  { %v4533_v20 = vmax.f32 %v4235_v12, 0.0  ;;  %v4583_v29 = vmax.f32 %v3946_v15, 0.0  ;;  %v5183_v34 = vmul.f32 %v8959_v30, %v11125_v7  ;;  %v11126_v12 = vunpack.c.h.bf16 %v9555_v27 }
 0x67b   :  { %v9651_v40 = vmul.f32 %v8930_v47, %v4956_v9  ;;  %v9654_v11 = vmul.f32 %v8930_v47, %v4960_v56  ;;  %v9661_v39 = vpop.f32.mrf.mxu0  ;;  %v9663_v55 = vpop.f32.mrf.mxu1  ;;  %v5456_v9 = vadd.f32 %v9219_v60, %v9207_v26  ;;  %v11127_v56 = vunpack.c.l.bf16 %v9553_v3 }
 0x67c   :  { %v4767_v46 = vpack.c.bf16 %v4583_v29, %v4579_v61  ;;  %v5184_v15 = vmul.f32 %v8983_v36, %v11126_v12  ;;  %v4534_v10 = vmax.f32 %v4237_v50, 0.0  ;;  %v5180_v7 = vmul.f32 %v8983_v36, %v11128_v42 }
 0x67d   :  { %11123 = vst [vmem:[#allocation13_spill] sm:$0xff] %v9651_v40  ;;  %11124 = vst [vmem:[#allocation15_spill] sm:$0xff] %v9654_v11  ;;  %v5179_v13 = vmul.f32 %v8959_v30, %v11127_v56  ;;  %v5451_v49 = vadd.f32 %v11129_v41, %v9202_v4  ;;  %v3948_v61 = vadd.f32 %v9503_v58, %v8900_v17  ;;  %v9680_v29 = vpop.f32.mrf.mxu0  ;;  %v9682_v12 = vpop.f32.mrf.mxu1 }
 0x67e   :  { %v4963_v26 = vunpack.c.l.bf16 %v4767_v46  ;;  %v4967_v60 = vunpack.c.h.bf16 %v4767_v46  ;;  %v5457_v3 = vadd.f32 %v5456_v9, %v5183_v34  ;;  %v4239_v50 = vadd.f32 %v9505_v25, %v8934_v16 }
 0x67f   :  { %v5452_v56 = vadd.f32 %v5451_v49, %v5179_v13  ;;  %v4584_v27 = vmax.f32 %v3948_v61, 0.0  ;;  %v3952_v42 = vadd.f32 %v9522_v24, %v8894_v0  ;;  %v4241_v4 = vadd.f32 %v9524_v28, %v8954_v18  ;;  %v9690_v41 = vpop.f32.mrf.mxu0  ;;  %v9692_v58 = vpop.f32.mrf.mxu1 }
 0x680   :  { %v9695_v40 = vmul.f32 %v8924_v32, %v4963_v26  ;;  %v9698_v34 = vmul.f32 %v8924_v32, %v4967_v60  ;;  %v5458_v46 = vadd.f32 %v5457_v3, %v5184_v15  ;;  %v4537_v25 = vmax.f32 %v4239_v50, 0.0 }
 0x681   :  { %v5453_v49 = vadd.f32 %v5452_v56, %v5180_v7  ;;  %v4768_v9 = vpack.c.bf16 %v4584_v27, %v4580_v38  ;;  %v4587_v13 = vmax.f32 %v3952_v42, 0.0  ;;  %v4538_v61 = vmax.f32 %v4241_v4, 0.0  ;;  %v9700_v24 = vpop.f32.mrf.mxu0  ;;  %v9702_v48 = vpop.f32.mrf.mxu1 }
 0x682   :  { %11130 = vst [vmem:[#allocation17_spill] sm:$0xff] %v9695_v40  ;;  %11131 = vst [vmem:[#allocation38_spill] sm:$0xff] %v9698_v34  ;;  %5459 = vadd.xlane.f32.xlu1 %v5458_v46  ;;  %v9704_v28 = vpack.c.bf16 %v4537_v25, %v4533_v20  ;;  %v3954_v26 = vadd.f32 %v9539_v35, %v8900_v17  ;;  %v4245_v60 = vadd.f32 %v9541_v54, %v8934_v16  ;;  %v11137_v35 = vld [vmem:[#allocation21_spill] sm:$0xff] }
 0x683   :  { %v3956_v15 = vadd.f32 %v9543_v2, %v8894_v0  ;;  %5454 = vadd.xlane.f32.xlu0 %v5453_v49  ;;  %v4964_v38 = vunpack.c.l.bf16 %v4768_v9  ;;  %v4968_v7 = vunpack.c.h.bf16 %v4768_v9  ;;  %v9712_v3 = vpack.c.bf16 %v4538_v61, %v4534_v10  ;;  %v9716_v56 = vpop.f32.mrf.mxu0  ;;  %v9718_v20 = vpop.f32.mrf.mxu1 }
 0x684   :  { %v4247_v50 = vadd.f32 %v9545_v52, %v8954_v18  ;;  %v4588_v54 = vmax.f32 %v3954_v26, 0.0  ;;  %v4541_v42 = vmax.f32 %v4245_v60, 0.0  ;;  %v11134_v61 = vunpack.c.h.bf16 %v9629_v1 }
 0x685   :  { %v9723_v2 = vmul.f32 %v8930_v47, %v4964_v38  ;;  %v9726_v4 = vmul.f32 %v8930_v47, %v4968_v7  ;;  %v4922_v52 = vunpack.c.h.bf16 %v9712_v3  ;;  %v9730_v46 = vpop.f32.mrf.mxu0  ;;  %v9732_v25 = vpop.f32.mrf.mxu1  ;;  %v4591_v49 = vmax.f32 %v3956_v15, 0.0  ;;  %v11136_v7 = vld [vmem:[#allocation19_spill] sm:$0xff] }
 0x686   :  { %v4542_v9 = vmax.f32 %v4247_v50, 0.0  ;;  %v5191_v26 = vmul.f32 %v8959_v30, %v11134_v61  ;;  %v11135_v60 = vunpack.c.h.bf16 %v9635_v6  ;;  %v5466_v27 = vadd.f32 %v11137_v35, %v11136_v7  ;;  %v11140_v50 = vld [vmem:[#allocation18_spill] sm:$0xff] }
 0x687   :  { %11132 = vst [vmem:[#allocation39_spill] sm:$0xff] %v9723_v2  ;;  %11133 = vst [vmem:[#allocation40_spill] sm:$0xff] %v9726_v4  ;;  %v11138_v10 = vunpack.c.l.bf16 %v9629_v1  ;;  %v11139_v40 = vunpack.c.l.bf16 %v9635_v6  ;;  %v11141_v4 = vld [vmem:[#allocation20_spill] sm:$0xff]  ;;  %v9750_v11 = vpop.f32.mrf.mxu0  ;;  %v9752_v61 = vpop.f32.mrf.mxu1  ;;  %v4771_v8 = vpack.c.bf16 %v4591_v49, %v4587_v13  ;;  %v4249_v1 = vadd.f32 %v9563_v19, %v8934_v16 }
 0x688   :  { %v5192_v38 = vmul.f32 %v8983_v36, %v11135_v60  ;;  %v5461_v34 = vadd.f32 %v11141_v4, %v11140_v50  ;;  %11142 = vst [vmem:[#allocation19_spill] sm:$0xff] %v9750_v11  ;;  %11143 = vst [vmem:[#allocation21_spill] sm:$0xff] %v9752_v61  ;;  %v3958_v60 = vadd.f32 %v9561_v33, %v8900_v17 }
 0x689   :  { %v5187_v2 = vmul.f32 %v8959_v30, %v11138_v10  ;;  %v5188_v15 = vmul.f32 %v8983_v36, %v11139_v40  ;;  %v3962_v35 = vadd.f32 %v9573_v23, %v8894_v0  ;;  %v5467_v6 = vadd.f32 %v5466_v27, %v5191_v26  ;;  %v9766_v7 = vpop.f32.mrf.mxu0  ;;  %v9768_v13 = vpop.f32.mrf.mxu1 }
 0x68a   :  { %v4251_v40 = vadd.f32 %v9575_v59, %v8954_v18  ;;  %v9764_v4 = vadd.f32 %v9589_v37, %v8900_v17  ;;  %11144 = vst [vmem:[#allocation18_spill] sm:$0xff] %v9768_v13  ;;  %v4971_v33 = vunpack.c.l.bf16 %v4771_v8  ;;  %v4975_v49 = vunpack.c.h.bf16 %v4771_v8 }
 0x68b   :  { %v5462_v10 = vadd.f32 %v5461_v34, %v5187_v2  ;;  %v4592_v50 = vmax.f32 %v3958_v60, 0.0  ;;  %v4545_v19 = vmax.f32 %v4249_v1, 0.0  ;;  %v5468_v61 = vadd.f32 %v5467_v6, %v5192_v38  ;;  %v9770_v34 = vpop.f32.mrf.mxu0  ;;  %v9772_v2 = vpop.f32.mrf.mxu1 }
 0x68c   :  { %v4595_v23 = vmax.f32 %v3962_v35, 0.0  ;;  %v4546_v27 = vmax.f32 %v4251_v40, 0.0  ;;  %v9775_v59 = vmul.f32 %v8924_v32, %v4971_v33  ;;  %v9778_v37 = vmul.f32 %v8924_v32, %v4975_v49 }
 0x68d   :  { %v5463_v11 = vadd.f32 %v5462_v10, %v5188_v15  ;;  %v4772_v26 = vpack.c.bf16 %v4592_v50, %v4588_v54  ;;  %v9780_v13 = vpack.c.bf16 %v4545_v19, %v4541_v42  ;;  %5469 = vadd.xlane.f32.xlu1 %v5468_v61  ;;  %v4596_v38 = vmax.f32 %v9764_v4, 0.0  ;;  %v9789_v1 = vpop.f32.mrf.mxu0  ;;  %v9791_v35 = vpop.f32.mrf.mxu1 }
 0x68e   :  { %11145 = vst [vmem:[#allocation20_spill] sm:$0xff] %v9775_v59  ;;  %v9782_v8 = vpack.c.bf16 %v4546_v27, %v4542_v9  ;;  %v4255_v15 = vadd.f32 %v9591_v62, %v8934_v16  ;;  %v3966_v60 = vadd.f32 %v9609_v43, %v8894_v0  ;;  %v4257_v49 = vadd.f32 %v9611_v14, %v8954_v18 }
 0x68f   :  { %5464 = vadd.xlane.f32.xlu0 %v5463_v11  ;;  %v4972_v6 = vunpack.c.l.bf16 %v4772_v26  ;;  %v4976_v54 = vunpack.c.h.bf16 %v4772_v26  ;;  %v9797_v62 = vpop.f32.mrf.mxu0  ;;  %v9799_v4 = vpop.f32.mrf.mxu1  ;;  %v11148_v50 = vunpack.c.h.bf16 %v9704_v28  ;;  %v5200_v26 = vmul.f32 %v8983_v36, %v4922_v52  ;;  %v11151_v11 = vld [vmem:[#allocation22_spill] sm:$0xff] }
 0x690   :  { %v4930_v61 = vunpack.c.h.bf16 %v9782_v8  ;;  %v4549_v10 = vmax.f32 %v4255_v15, 0.0  ;;  %v4599_v40 = vmax.f32 %v3966_v60, 0.0  ;;  %v5476_v15 = vadd.f32 %v9311_v51, %v9292_v21 }
 0x691   :  { %v9802_v43 = vmul.f32 %v8930_v47, %v4972_v6  ;;  %v9805_v33 = vmul.f32 %v8930_v47, %v4976_v54  ;;  %v5199_v19 = vmul.f32 %v8959_v30, %v11148_v50  ;;  %v11149_v60 = vunpack.c.l.bf16 %v9704_v28  ;;  %v9818_v9 = vpop.f32.mrf.mxu1 }
 0x692   :  { %v4775_v27 = vpack.c.bf16 %v4599_v40, %v4595_v23  ;;  %v4550_v54 = vmax.f32 %v4257_v49, 0.0  ;;  %v11150_v42 = vunpack.c.l.bf16 %v9712_v3  ;;  %v5471_v50 = vadd.f32 %v11151_v11, %v9289_v5  ;;  %v9827_v23 = vpop.f32.mrf.mxu0 }
 0x693   :  { %11146 = vst [vmem:[#allocation41_spill] sm:$0xff] %v9802_v43  ;;  %11147 = vst [vmem:[#allocation42_spill] sm:$0xff] %v9805_v33  ;;  %v5195_v6 = vmul.f32 %v8959_v30, %v11149_v60  ;;  %v3968_v52 = vadd.f32 %v9619_v57, %v8900_v17  ;;  %v5477_v28 = vadd.f32 %v5476_v15, %v5199_v19  ;;  %v9831_v60 = vpop.f32.mrf.mxu1 }
 0x694   :  { %v5196_v14 = vmul.f32 %v8983_v36, %v11150_v42  ;;  %v4979_v21 = vunpack.c.l.bf16 %v4775_v27  ;;  %v4983_v51 = vunpack.c.h.bf16 %v4775_v27  ;;  %v4259_v40 = vadd.f32 %v9621_v53, %v8934_v16 }
 0x695   :  { %v5472_v49 = vadd.f32 %v5471_v50, %v5195_v6  ;;  %v4600_v3 = vmax.f32 %v3968_v52, 0.0  ;;  %v3972_v42 = vadd.f32 %v9631_v31, %v8894_v0  ;;  %v4261_v5 = vadd.f32 %v9633_v45, %v8954_v18  ;;  %v9843_v15 = vpop.f32.mrf.mxu1  ;;  %v9845_v52 = vpop.f32.mrf.mxu0 }
 0x696   :  { %v9838_v57 = vmul.f32 %v8924_v32, %v4979_v21  ;;  %v9841_v11 = vmul.f32 %v8924_v32, %v4983_v51  ;;  %v5478_v19 = vadd.f32 %v5477_v28, %v5200_v26  ;;  %v4553_v27 = vmax.f32 %v4259_v40, 0.0 }
 0x697   :  { %v5473_v53 = vadd.f32 %v5472_v49, %v5196_v14  ;;  %v4776_v43 = vpack.c.bf16 %v4600_v3, %v4596_v38  ;;  %v4603_v6 = vmax.f32 %v3972_v42, 0.0  ;;  %v4554_v50 = vmax.f32 %v4261_v5, 0.0  ;;  %v9855_v51 = vpop.f32.mrf.mxu1  ;;  %v9873_v5 = vpop.f32.mrf.mxu0 }
 0x698   :  { %11152 = vst [vmem:[#allocation22_spill] sm:$0xff] %v9838_v57  ;;  %11153 = vst [vmem:[#allocation43_spill] sm:$0xff] %v9841_v11  ;;  %5479 = vadd.xlane.f32.xlu1 %v5478_v19  ;;  %v9847_v31 = vpack.c.bf16 %v4553_v27, %v4549_v10  ;;  %v3974_v45 = vadd.f32 %v9644_v22, %v8900_v17  ;;  %v4265_v21 = vadd.f32 %v9646_v63, %v8934_v16  ;;  %v11162_v57 = vld [vmem:[#allocation25_spill] sm:$0xff] }
 0x699   :  { %v3976_v26 = vadd.f32 %v9661_v39, %v8894_v0  ;;  %5474 = vadd.xlane.f32.xlu0 %v5473_v53  ;;  %v4980_v38 = vunpack.c.l.bf16 %v4776_v43  ;;  %v4984_v14 = vunpack.c.h.bf16 %v4776_v43  ;;  %v9857_v28 = vpack.c.bf16 %v4554_v50, %v4550_v54  ;;  %v9863_v63 = vpop.f32.mrf.mxu1 }
 0x69a   :  { %v4267_v10 = vadd.f32 %v9663_v55, %v8954_v18  ;;  %v4937_v22 = vunpack.c.h.bf16 %v9847_v31  ;;  %v4604_v49 = vmax.f32 %v3974_v45, 0.0  ;;  %v4557_v3 = vmax.f32 %v4265_v21, 0.0  ;;  %v11157_v21 = vld [vmem:[#allocation24_spill] sm:$0xff] }
 0x69b   :  { %v9866_v39 = vmul.f32 %v8930_v47, %v4980_v38  ;;  %v9869_v42 = vmul.f32 %v8930_v47, %v4984_v14  ;;  %v4938_v54 = vunpack.c.h.bf16 %v9857_v28  ;;  %v4607_v55 = vmax.f32 %v3976_v26, 0.0  ;;  %v9879_v45 = vpop.f32.mrf.mxu1  ;;  %v11158_v38 = vld [vmem:[#allocation26_spill] sm:$0xff] }
 0x69c   :  { %v4558_v19 = vmax.f32 %v4267_v10, 0.0  ;;  %v11156_v27 = vunpack.c.h.bf16 %v9780_v13  ;;  %v5208_v50 = vmul.f32 %v8983_v36, %v4930_v61  ;;  %v5486_v14 = vadd.f32 %v11158_v38, %v11157_v21  ;;  %v11161_v10 = vld [vmem:[#allocation23_spill] sm:$0xff] }
 0x69d   :  { %11154 = vst [vmem:[#allocation44_spill] sm:$0xff] %v9866_v39  ;;  %11155 = vst [vmem:[#allocation45_spill] sm:$0xff] %v9869_v42  ;;  %v11159_v40 = vunpack.c.l.bf16 %v9780_v13  ;;  %v11160_v39 = vunpack.c.l.bf16 %v9782_v8  ;;  %v5481_v42 = vadd.f32 %v11162_v57, %v11161_v10  ;;  %v4779_v11 = vpack.c.bf16 %v4607_v55, %v4603_v6  ;;  %v9897_v13 = vpop.f32.mrf.mxu1  ;;  %v9905_v6 = vpop.f32.mrf.mxu0 }
 0x69e   :  { %v5207_v53 = vmul.f32 %v8959_v30, %v11156_v27  ;;  %v3978_v61 = vadd.f32 %v9680_v29, %v8900_v17  ;;  %v4269_v27 = vadd.f32 %v9682_v12, %v8934_v16  ;;  %v3982_v21 = vadd.f32 %v9690_v41, %v8894_v0 }
 0x69f   :  { %v5203_v43 = vmul.f32 %v8959_v30, %v11159_v40  ;;  %v5204_v26 = vmul.f32 %v8983_v36, %v11160_v39  ;;  %v4271_v8 = vadd.f32 %v9692_v58, %v8954_v18  ;;  %v9903_v57 = vadd.f32 %v9700_v24, %v8900_v17  ;;  %v9907_v10 = vpop.f32.mrf.mxu1 }
 0x6a0   :  { %v5487_v40 = vadd.f32 %v5486_v14, %v5207_v53  ;;  %v4987_v29 = vunpack.c.l.bf16 %v4779_v11  ;;  %v4991_v39 = vunpack.c.h.bf16 %v4779_v11  ;;  %v4608_v55 = vmax.f32 %v3978_v61, 0.0 }
 0x6a1   :  { %v5482_v38 = vadd.f32 %v5481_v42, %v5203_v43  ;;  %v4561_v12 = vmax.f32 %v4269_v27, 0.0  ;;  %v4611_v33 = vmax.f32 %v3982_v21, 0.0  ;;  %v4562_v53 = vmax.f32 %v4271_v8, 0.0  ;;  %v9917_v14 = vpop.f32.mrf.mxu1  ;;  %v9926_v27 = vpop.f32.mrf.mxu0 }
 0x6a2   :  { %v5488_v41 = vadd.f32 %v5487_v40, %v5208_v50  ;;  %v9910_v42 = vmul.f32 %v8924_v32, %v4987_v29  ;;  %v9913_v58 = vmul.f32 %v8924_v32, %v4991_v39  ;;  %v4780_v24 = vpack.c.bf16 %v4608_v55, %v4604_v49 }
 0x6a3   :  { %v5483_v59 = vadd.f32 %v5482_v38, %v5204_v26  ;;  %v9915_v43 = vpack.c.bf16 %v4561_v12, %v4557_v3  ;;  %v9919_v11 = vpack.c.bf16 %v4562_v53, %v4558_v19  ;;  %v4612_v50 = vmax.f32 %v9903_v57, 0.0  ;;  %v9930_v38 = vpop.f32.mrf.mxu1  ;;  %v11167_v53 = vld [vmem:[#allocation29_spill] sm:$0xff]  ;;  %v11171_v3 = vld [vmem:[#allocation28_spill] sm:$0xff] }
 0x6a4   :  { %11163 = vst [vmem:[#allocation24_spill] sm:$0xff] %v9910_v42  ;;  %11164 = vst [vmem:[#allocation26_spill] sm:$0xff] %v9913_v58  ;;  %5489 = vadd.xlane.f32.xlu1 %v5488_v41  ;;  %v4275_v26 = vadd.f32 %v9702_v48, %v8934_v16  ;;  %v3986_v61 = vadd.f32 %v9716_v56, %v8894_v0  ;;  %v4988_v21 = vunpack.c.l.bf16 %v4780_v24  ;;  %v4992_v49 = vunpack.c.h.bf16 %v4780_v24 }
 0x6a5   :  { %5484 = vadd.xlane.f32.xlu0 %v5483_v59  ;;  %v4946_v19 = vunpack.c.h.bf16 %v9919_v11  ;;  %v4277_v29 = vadd.f32 %v9718_v20, %v8954_v18  ;;  %v5215_v39 = vmul.f32 %v8959_v30, %v4937_v22  ;;  %v9943_v55 = vpop.f32.mrf.mxu1  ;;  %v5216_v41 = vmul.f32 %v8983_v36, %v4938_v54  ;;  %v11170_v22 = vld [vmem:[#allocation27_spill] sm:$0xff] }
 0x6a6   :  { %v4565_v8 = vmax.f32 %v4275_v26, 0.0  ;;  %v4615_v57 = vmax.f32 %v3986_v61, 0.0  ;;  %v9935_v48 = vmul.f32 %v8930_v47, %v4988_v21  ;;  %v9938_v56 = vmul.f32 %v8930_v47, %v4992_v49  ;;  %v9951_v21 = vpop.f32.mrf.mxu0 }
 0x6a7   :  { %v5496_v24 = vadd.f32 %v11167_v53, %v9411_v44  ;;  %v11168_v26 = vunpack.c.l.bf16 %v9847_v31  ;;  %v4566_v49 = vmax.f32 %v4277_v29, 0.0  ;;  %v11169_v59 = vunpack.c.l.bf16 %v9857_v28  ;;  %v9960_v54 = vpop.f32.mrf.mxu1  ;;  %v11172_v28 = vld [vmem:[#allocation19_spill] sm:$0xff] }
 0x6a8   :  { %11165 = vst [vmem:[#allocation23_spill] sm:$0xff] %v9935_v48  ;;  %11166 = vst [vmem:[#allocation25_spill] sm:$0xff] %v9938_v56  ;;  %v4783_v12 = vpack.c.bf16 %v4615_v57, %v4611_v33  ;;  %v5491_v40 = vadd.f32 %v11171_v3, %v11170_v22  ;;  %v3988_v33 = vadd.f32 %v9730_v46, %v8900_v17 }
 0x6a9   :  { %v5211_v61 = vmul.f32 %v8959_v30, %v11168_v26  ;;  %v5212_v20 = vmul.f32 %v8983_v36, %v11169_v59  ;;  %v5497_v31 = vadd.f32 %v5496_v24, %v5215_v39  ;;  %v4279_v53 = vadd.f32 %v9732_v25, %v8934_v16  ;;  %v11173_v59 = vld [vmem:[#allocation21_spill] sm:$0xff]  ;;  %v9968_v3 = vpop.f32.mrf.mxu1  ;;  %v9976_v24 = vpop.f32.mrf.mxu0 }
 0x6aa   :  { %v4995_v44 = vunpack.c.l.bf16 %v4783_v12  ;;  %v4999_v57 = vunpack.c.h.bf16 %v4783_v12  ;;  %v4616_v29 = vmax.f32 %v3988_v33, 0.0  ;;  %v3992_v48 = vadd.f32 %v11172_v28, %v8894_v0 }
 0x6ab   :  { %v5492_v26 = vadd.f32 %v5491_v40, %v5211_v61  ;;  %v4281_v42 = vadd.f32 %v11173_v59, %v8954_v18  ;;  %v5498_v39 = vadd.f32 %v5497_v31, %v5216_v41  ;;  %v4569_v12 = vmax.f32 %v4279_v53, 0.0  ;;  %v9978_v28 = vpop.f32.mrf.mxu1 }
 0x6ac   :  { %v9971_v46 = vmul.f32 %v8924_v32, %v4995_v44  ;;  %v9974_v22 = vmul.f32 %v8924_v32, %v4999_v57  ;;  %v4784_v40 = vpack.c.bf16 %v4616_v29, %v4612_v50  ;;  %v4619_v61 = vmax.f32 %v3992_v48, 0.0  ;;  %v9996_v29 = vpop.f32.mrf.mxu0 }
 0x6ad   :  { %v5493_v25 = vadd.f32 %v5492_v26, %v5212_v20  ;;  %v4570_v33 = vmax.f32 %v4281_v42, 0.0  ;;  %5499 = vadd.xlane.f32.xlu1 %v5498_v39  ;;  %v9980_v59 = vpack.c.bf16 %v4569_v12, %v4565_v8  ;;  %v3994_v44 = vadd.f32 %v9766_v7, %v8900_v17  ;;  %v9992_v48 = vpop.f32.mrf.mxu1 }
 0x6ae   :  { %11174 = vst [vmem:[#allocation29_spill] sm:$0xff] %v9971_v46  ;;  %11175 = vst [vmem:[#allocation27_spill] sm:$0xff] %v9974_v22  ;;  %v11176_v46 = vld [vmem:[#allocation18_spill] sm:$0xff]  ;;  %v3996_v41 = vadd.f32 %v9770_v34, %v8894_v0  ;;  %v4996_v31 = vunpack.c.l.bf16 %v4784_v40  ;;  %v5000_v20 = vunpack.c.h.bf16 %v4784_v40  ;;  %v4287_v42 = vadd.f32 %v9772_v2, %v8954_v18 }
 0x6af   :  { %v4285_v57 = vadd.f32 %v11176_v46, %v8934_v16  ;;  %5494 = vadd.xlane.f32.xlu0 %v5493_v25  ;;  %v9988_v50 = vpack.c.bf16 %v4570_v33, %v4566_v49  ;;  %11177 = vst [vmem:[#allocation28_spill] sm:$0xff] %v9992_v48  ;;  %v4953_v7 = vunpack.c.h.bf16 %v9980_v59  ;;  %v4620_v53 = vmax.f32 %v3994_v44, 0.0  ;;  %v10006_v39 = vpop.f32.mrf.mxu1  ;;  %v11186_v22 = vld [vmem:[#allocation30_spill] sm:$0xff] }
 0x6b0   :  { %v9999_v34 = vmul.f32 %v8930_v47, %v4996_v31  ;;  %v10002_v46 = vmul.f32 %v8930_v47, %v5000_v20  ;;  %11180 = vst [vmem:[#allocation18_spill] sm:$0xff] %v10006_v39  ;;  %v4623_v12 = vmax.f32 %v3996_v41, 0.0  ;;  %v4574_v25 = vmax.f32 %v4287_v42, 0.0  ;;  %v11183_v31 = vld [vmem:[#allocation33_spill] sm:$0xff]  ;;  %v11187_v41 = vld [vmem:[#allocation32_spill] sm:$0xff] }
 0x6b1   :  { %v4573_v26 = vmax.f32 %v4285_v57, 0.0  ;;  %v4954_v2 = vunpack.c.h.bf16 %v9988_v50  ;;  %v11181_v40 = vunpack.c.h.bf16 %v9915_v43  ;;  %v5224_v44 = vmul.f32 %v8983_v36, %v4946_v19  ;;  %v11182_v57 = vld [vmem:[#allocation31_spill] sm:$0xff]  ;;  %v10022_v56 = vpop.f32.mrf.mxu1 }
 0x6b2   :  { %11178 = vst [vmem:[#allocation19_spill] sm:$0xff] %v9999_v34  ;;  %11179 = vst [vmem:[#allocation21_spill] sm:$0xff] %v10002_v46  ;;  %v5506_v8 = vadd.f32 %v11183_v31, %v11182_v57  ;;  %v11184_v20 = vunpack.c.l.bf16 %v9915_v43  ;;  %v11185_v49 = vunpack.c.l.bf16 %v9919_v11  ;;  %v5501_v42 = vadd.f32 %v11187_v41, %v11186_v22  ;;  %v10030_v57 = vpop.f32.mrf.mxu0 }
 0x6b3   :  { %v5223_v33 = vmul.f32 %v8959_v30, %v11181_v40  ;;  %11188 = vst [vmem:[#allocation31_spill] sm:$0xff] %v10022_v56  ;;  %v4787_v58 = vpack.c.bf16 %v4623_v12, %v4619_v61  ;;  %v3998_v19 = vadd.f32 %v9789_v1, %v8900_v17  ;;  %v4289_v40 = vadd.f32 %v9791_v35, %v8934_v16  ;;  %v10036_v61 = vpop.f32.mrf.mxu1 }
 0x6b4   :  { %v5219_v34 = vmul.f32 %v8959_v30, %v11184_v20  ;;  %v5220_v46 = vmul.f32 %v8983_v36, %v11185_v49  ;;  %v4002_v43 = vadd.f32 %v9797_v62, %v8894_v0  ;;  %v4291_v49 = vadd.f32 %v9799_v4, %v8954_v18 }
 0x6b5   :  { %v5507_v11 = vadd.f32 %v5506_v8, %v5223_v33  ;;  %v4004_v22 = vadd.f32 %v9827_v23, %v8900_v17  ;;  %v5003_v12 = vunpack.c.l.bf16 %v4787_v58  ;;  %v5007_v1 = vunpack.c.h.bf16 %v4787_v58  ;;  %v10038_v48 = vpop.f32.mrf.mxu1  ;;  %v10048_v33 = vpop.f32.mrf.mxu0 }
 0x6b6   :  { %v5502_v31 = vadd.f32 %v5501_v42, %v5219_v34  ;;  %v4624_v20 = vmax.f32 %v3998_v19, 0.0  ;;  %v4577_v41 = vmax.f32 %v4289_v40, 0.0  ;;  %v4627_v39 = vmax.f32 %v4002_v43, 0.0 }
 0x6b7   :  { %v5508_v35 = vadd.f32 %v5507_v11, %v5224_v44  ;;  %v4578_v62 = vmax.f32 %v4291_v49, 0.0  ;;  %v10041_v8 = vmul.f32 %v8924_v32, %v5003_v12  ;;  %v10044_v4 = vmul.f32 %v8924_v32, %v5007_v1  ;;  %v10056_v19 = vpop.f32.mrf.mxu1  ;;  %v10073_v1 = vpop.f32.mrf.mxu0 }
 0x6b8   :  { %v5503_v56 = vadd.f32 %v5502_v31, %v5220_v46  ;;  %v4788_v34 = vpack.c.bf16 %v4624_v20, %v4620_v53  ;;  %v10046_v23 = vpack.c.bf16 %v4577_v41, %v4573_v26  ;;  %v4628_v46 = vmax.f32 %v4004_v22, 0.0  ;;  %v11196_v53 = vld [vmem:[#allocation36_spill] sm:$0xff] }
 0x6b9   :  { %11189 = vst [vmem:[#allocation33_spill] sm:$0xff] %v10041_v8  ;;  %5509 = vadd.xlane.f32.xlu1 %v5508_v35  ;;  %v10050_v58 = vpack.c.bf16 %v4578_v62, %v4574_v25  ;;  %v4295_v44 = vadd.f32 %v9818_v9, %v8934_v16  ;;  %v4006_v42 = vadd.f32 %v9845_v52, %v8894_v0  ;;  %v10062_v49 = vpop.f32.mrf.mxu1  ;;  %v11191_v35 = vld [vmem:[#allocation35_spill] sm:$0xff]  ;;  %v11192_v62 = vld [vmem:[#allocation37_spill] sm:$0xff]  ;;  %v11194_v11 = vunpack.c.l.bf16 %v9988_v50 }
 0x6ba   :  { %5504 = vadd.xlane.f32.xlu0 %v5503_v56  ;;  %v5004_v40 = vunpack.c.l.bf16 %v4788_v34  ;;  %v5008_v43 = vunpack.c.h.bf16 %v4788_v34  ;;  %v4961_v26 = vunpack.c.h.bf16 %v10046_v23  ;;  %v4297_v22 = vadd.f32 %v9831_v60, %v8954_v18 }
 0x6bb   :  { %v4962_v56 = vunpack.c.h.bf16 %v10050_v58  ;;  %v4581_v25 = vmax.f32 %v4295_v44, 0.0  ;;  %v4631_v31 = vmax.f32 %v4006_v42, 0.0  ;;  %v5231_v12 = vmul.f32 %v8959_v30, %v4953_v7  ;;  %v11195_v7 = vld [vmem:[#allocation34_spill] sm:$0xff] }
 0x6bc   :  { %v10065_v9 = vmul.f32 %v8930_v47, %v5004_v40  ;;  %v10068_v52 = vmul.f32 %v8930_v47, %v5008_v43  ;;  %v5232_v41 = vmul.f32 %v8983_v36, %v4954_v2  ;;  %v5516_v34 = vadd.f32 %v11192_v62, %v11191_v35  ;;  %v10081_v40 = vpop.f32.mrf.mxu1 }
 0x6bd   :  { %v4791_v20 = vpack.c.bf16 %v4631_v31, %v4627_v39  ;;  %v11193_v44 = vunpack.c.l.bf16 %v9980_v59  ;;  %v4582_v43 = vmax.f32 %v4297_v22, 0.0  ;;  %v5228_v60 = vmul.f32 %v8983_v36, %v11194_v11 }
 0x6be   :  { %11190 = vst [vmem:[#allocation30_spill] sm:$0xff] %v10065_v9  ;;  %v5511_v9 = vadd.f32 %v11196_v53, %v11195_v7  ;;  %v4008_v2 = vadd.f32 %v9873_v5, %v8900_v17  ;;  %v5517_v35 = vadd.f32 %v5516_v34, %v5231_v12  ;;  %v4299_v59 = vadd.f32 %v9843_v15, %v8934_v16  ;;  %v10092_v62 = vpop.f32.mrf.mxu1  ;;  %v10098_v53 = vpop.f32.mrf.mxu0 }
 0x6bf   :  { %v5227_v42 = vmul.f32 %v8959_v30, %v11193_v44  ;;  %v5011_v39 = vunpack.c.l.bf16 %v4791_v20  ;;  %v5015_v31 = vunpack.c.h.bf16 %v4791_v20  ;;  %v4012_v50 = vadd.f32 %v9905_v6, %v8894_v0 }
 0x6c0   :  { %v4632_v22 = vmax.f32 %v4008_v2, 0.0  ;;  %v4301_v11 = vadd.f32 %v9855_v51, %v8954_v18  ;;  %v5518_v20 = vadd.f32 %v5517_v35, %v5232_v41  ;;  %v4585_v15 = vmax.f32 %v4299_v59, 0.0  ;;  %v10120_v35 = vpop.f32.mrf.mxu0 }
 0x6c1   :  { %v5512_v44 = vadd.f32 %v5511_v9, %v5227_v42  ;;  %v10101_v5 = vmul.f32 %v8924_v32, %v5011_v39  ;;  %v10104_v12 = vmul.f32 %v8924_v32, %v5015_v31  ;;  %v4635_v9 = vmax.f32 %v4012_v50, 0.0  ;;  %v10114_v31 = vpop.f32.mrf.mxu1 }
 0x6c2   :  { %v4792_v7 = vpack.c.bf16 %v4632_v22, %v4628_v46  ;;  %v4586_v42 = vmax.f32 %v4301_v11, 0.0  ;;  %5519 = vadd.xlane.f32.xlu1 %v5518_v20  ;;  %v10106_v2 = vpack.c.bf16 %v4585_v15, %v4581_v25  ;;  %v4014_v51 = vadd.f32 %v9926_v27, %v8900_v17 }
 0x6c3   :  { %11197 = vst [vmem:[#allocation32_spill] sm:$0xff] %v10101_v5  ;;  %11198 = vst [vmem:[#allocation35_spill] sm:$0xff] %v10104_v12  ;;  %v5513_v34 = vadd.f32 %v5512_v44, %v5228_v60  ;;  %v4305_v6 = vadd.f32 %v9863_v63, %v8934_v16  ;;  %v4016_v39 = vadd.f32 %v9951_v21, %v8894_v0 }
 0x6c4   :  { %v5012_v41 = vunpack.c.l.bf16 %v4792_v7  ;;  %v5016_v60 = vunpack.c.h.bf16 %v4792_v7  ;;  %v10116_v46 = vpack.c.bf16 %v4586_v42, %v4582_v43  ;;  %v4307_v25 = vadd.f32 %v9879_v45, %v8954_v18  ;;  %v11201_v7 = vld [vmem:[#allocation16_spill] sm:$0xff]  ;;  %v11202_v42 = vld [vmem:[#allocation15_spill] sm:$0xff] }
 0x6c5   :  { %5514 = vadd.xlane.f32.xlu0 %v5513_v34  ;;  %v4969_v59 = vunpack.c.h.bf16 %v10106_v2  ;;  %v4636_v63 = vmax.f32 %v4014_v51, 0.0  ;;  %v4589_v44 = vmax.f32 %v4305_v6, 0.0  ;;  %v4639_v11 = vmax.f32 %v4016_v39, 0.0  ;;  %v10134_v34 = vpop.f32.mrf.mxu1  ;;  %v11206_v39 = vld [vmem:[#allocation13_spill] sm:$0xff] }
 0x6c6   :  { %v10125_v21 = vmul.f32 %v8930_v47, %v5012_v41  ;;  %v10128_v22 = vmul.f32 %v8930_v47, %v5016_v60  ;;  %v4966_v43 = vunpack.c.l.bf16 %v10116_v46  ;;  %v4970_v50 = vunpack.c.h.bf16 %v10116_v46  ;;  %v11205_v46 = vld [vmem:[#allocation14_spill] sm:$0xff] }
 0x6c7   :  { %v4590_v45 = vmax.f32 %v4307_v25, 0.0  ;;  %v5239_v20 = vmul.f32 %v8959_v30, %v4961_v26  ;;  %v5240_v15 = vmul.f32 %v8983_v36, %v4962_v56  ;;  %v5526_v51 = vadd.f32 %v11202_v42, %v11201_v7  ;;  %v10158_v5 = vpop.f32.mrf.mxu1 }
 0x6c8   :  { %11199 = vst [vmem:[#allocation37_spill] sm:$0xff] %v10125_v21  ;;  %11200 = vst [vmem:[#allocation34_spill] sm:$0xff] %v10128_v22  ;;  %v11203_v6 = vunpack.c.l.bf16 %v10046_v23  ;;  %v11204_v60 = vunpack.c.l.bf16 %v10050_v58  ;;  %v5521_v25 = vadd.f32 %v11206_v39, %v11205_v46  ;;  %v10146_v21 = vpop.f32.mrf.mxu0  ;;  %v4795_v26 = vpack.c.bf16 %v4639_v11, %v4635_v9 }
 0x6c9   :  { %v4018_v56 = vadd.f32 %v9976_v24, %v8900_v17  ;;  %v4309_v7 = vadd.f32 %v9897_v13, %v8934_v16  ;;  %v4022_v23 = vadd.f32 %v9996_v29, %v8894_v0  ;;  %v5527_v42 = vadd.f32 %v5526_v51, %v5239_v20 }
 0x6ca   :  { %v5235_v41 = vmul.f32 %v8959_v30, %v11203_v6  ;;  %v5236_v27 = vmul.f32 %v8983_v36, %v11204_v60  ;;  %v4311_v58 = vadd.f32 %v9907_v10, %v8954_v18  ;;  %v4024_v60 = vadd.f32 %v10030_v57, %v8900_v17  ;;  %v10160_v8 = vpop.f32.mrf.mxu0 }
 0x6cb   :  { %v5019_v46 = vunpack.c.l.bf16 %v4795_v26  ;;  %v5023_v39 = vunpack.c.h.bf16 %v4795_v26  ;;  %v4640_v9 = vmax.f32 %v4018_v56, 0.0  ;;  %v4593_v11 = vmax.f32 %v4309_v7, 0.0 }
 0x6cc   :  { %v5522_v6 = vadd.f32 %v5521_v25, %v5235_v41  ;;  %v5528_v24 = vadd.f32 %v5527_v42, %v5240_v15  ;;  %v4643_v13 = vmax.f32 %v4022_v23, 0.0  ;;  %v4594_v12 = vmax.f32 %v4311_v58, 0.0  ;;  %v5365_v23 = vpop.xlane.xlu0 %5364  ;;  %v10182_v42 = vpop.f32.mrf.mxu0 }
 0x6cd   :  { %v10163_v29 = vmul.f32 %v8924_v32, %v5019_v46  ;;  %v10166_v10 = vmul.f32 %v8924_v32, %v5023_v39  ;;  %v4796_v20 = vpack.c.bf16 %v4640_v9, %v4636_v63  ;;  %v10168_v57 = vpack.c.bf16 %v4593_v11, %v4589_v44  ;;  %v10178_v63 = vpop.f32.mrf.mxu1  ;;  %v11209_v39 = vld [vmem:[#allocation38_spill] sm:$0xff]  ;;  %v11210_v9 = vld [vmem:[#allocation40_spill] sm:$0xff]  ;;  %v11213_v44 = vld [vmem:[#allocation39_spill] sm:$0xff] }
 0x6ce   :  { %v5523_v22 = vadd.f32 %v5522_v6, %v5236_v27  ;;  %5529 = vadd.xlane.f32.xlu1 %v5528_v24  ;;  %v10170_v51 = vpack.c.bf16 %v4594_v12, %v4590_v45  ;;  %v4644_v41 = vmax.f32 %v4024_v60, 0.0  ;;  %v4315_v27 = vadd.f32 %v9917_v14, %v8934_v16 }
 0x6cf   :  { %11207 = vst [vmem:[#allocation36_spill] sm:$0xff] %v10163_v29  ;;  %v4026_v15 = vadd.f32 %v10048_v33, %v8894_v0  ;;  %v5020_v25 = vunpack.c.l.bf16 %v4796_v20  ;;  %v5024_v26 = vunpack.c.h.bf16 %v4796_v20  ;;  %v4317_v6 = vadd.f32 %v9930_v38, %v8954_v18 }
 0x6d0   :  { %5524 = vadd.xlane.f32.xlu0 %v5523_v22  ;;  %v4597_v22 = vmax.f32 %v4315_v27, 0.0  ;;  %v5247_v58 = vmul.f32 %v8959_v30, %v4969_v59  ;;  %v5248_v46 = vmul.f32 %v8983_v36, %v4970_v50  ;;  %v5536_v11 = vadd.f32 %v11210_v9, %v11209_v39  ;;  %v10199_v27 = vld [vmem:[#allocation9 + $0x7] ss:$0 sm:$0xff]  ;;  %v10210_v9 = vpop.f32.mrf.mxu0 }
 0x6d1   :  { %v4647_v45 = vmax.f32 %v4026_v15, 0.0  ;;  %v10185_v14 = vmul.f32 %v8930_v47, %v5020_v25  ;;  %v10188_v33 = vmul.f32 %v8930_v47, %v5024_v26  ;;  %v11211_v24 = vunpack.c.l.bf16 %v10106_v2  ;;  %v11212_v26 = vld [vmem:[#allocation17_spill] sm:$0xff] }
 0x6d2   :  { %v4598_v15 = vmax.f32 %v4317_v6, 0.0  ;;  %v5244_v25 = vmul.f32 %v8983_v36, %v4966_v43  ;;  %v5531_v38 = vadd.f32 %v11213_v44, %v11212_v26  ;;  %v4028_v59 = vadd.f32 %v10073_v1, %v8900_v17 }
 0x6d3   :  { %11208 = vst [vmem:[#allocation16_spill] sm:$0xff] %v10185_v14  ;;  %v4799_v60 = vpack.c.bf16 %v4647_v45, %v4643_v13  ;;  %v5243_v20 = vmul.f32 %v8959_v30, %v11211_v24  ;;  %v10206_v13 = vpop.f32.mrf.mxu1  ;;  %v5537_v39 = vadd.f32 %v5536_v11, %v5247_v58  ;;  %v4319_v2 = vadd.f32 %v9943_v55, %v8934_v16  ;;  %v5370_v11 = vpop.xlane.xlu0 %5369 }
 0x6d4   :  { %v4648_v6 = vmax.f32 %v4028_v59, 0.0  ;;  %v5682_v43 = vadd.f32 %v10199_v27, %v5365_v23  ;;  %v4032_v44 = vadd.f32 %v10098_v53, %v8894_v0  ;;  %v4321_v53 = vadd.f32 %v9960_v54, %v8954_v18  ;;  %v10231_v59 = vpop.f32.mrf.mxu0 }
 0x6d5   :  { %v5027_v50 = vunpack.c.l.bf16 %v4799_v60  ;;  %v5031_v45 = vunpack.c.h.bf16 %v4799_v60  ;;  %v5532_v24 = vadd.f32 %v5531_v38, %v5243_v20  ;;  %v5538_v60 = vadd.f32 %v5537_v39, %v5248_v46  ;;  %v10221_v20 = vpop.f32.mrf.mxu1 }
 0x6d6   :  { %v4601_v58 = vmax.f32 %v4319_v2, 0.0  ;;  %v4800_v55 = vpack.c.bf16 %v4648_v6, %v4644_v41  ;;  %v6449_v12 = vmul.f32 -1.442695, %v5682_v43  ;;  %v4651_v7 = vmax.f32 %v4032_v44, 0.0 }
 0x6d7   :  { %v10216_v26 = vmul.f32 %v8924_v32, %v5027_v50  ;;  %v10219_v1 = vmul.f32 %v8924_v32, %v5031_v45  ;;  %v5533_v56 = vadd.f32 %v5532_v24, %v5244_v25  ;;  %5539 = vadd.xlane.f32.xlu1 %v5538_v60  ;;  %v4034_v38 = vadd.f32 %v10120_v35, %v8900_v17 }
 0x6d8   :  { %v10223_v23 = vpack.c.bf16 %v4601_v58, %v4597_v22  ;;  %v4325_v46 = vadd.f32 %v9968_v3, %v8934_v16  ;;  %v5028_v41 = vunpack.c.l.bf16 %v4800_v55  ;;  %v5032_v25 = vunpack.c.h.bf16 %v4800_v55  ;;  %v10253_v58 = vpop.f32.mrf.mxu0  ;;  %v11224_v22 = vld [vmem:[#allocation41_spill] sm:$0xff] }
 0x6d9   :  { %11214 = vst [vmem:[#allocation15_spill] sm:$0xff] %v10216_v26  ;;  %11215 = vst [vmem:[#allocation14_spill] sm:$0xff] %v10219_v1  ;;  %5534 = vadd.xlane.f32.xlu0 %v5533_v56  ;;  %7160 = vpow2.f32 %v6449_v12  ;;  %v5683_v50 = vadd.f32 %v10199_v27, %v5370_v11  ;;  %v4602_v39 = vmax.f32 %v4321_v53, 0.0  ;;  %v4652_v54 = vmax.f32 %v4034_v38, 0.0  ;;  %v10242_v56 = vpop.f32.mrf.mxu1 }
 0x6da   :  { %v10237_v2 = vmul.f32 %v8930_v47, %v5028_v41  ;;  %v10240_v35 = vmul.f32 %v8930_v47, %v5032_v25  ;;  %v4605_v3 = vmax.f32 %v4325_v46, 0.0  ;;  %v4036_v12 = vadd.f32 %v10146_v21, %v8894_v0  ;;  %v5375_v46 = vpop.xlane.xlu1 %5374 }
 0x6db   :  { %v6450_v24 = vmul.f32 -1.442695, %v5683_v50  ;;  %v10244_v6 = vpack.c.bf16 %v4602_v39, %v4598_v15  ;;  %v4327_v43 = vadd.f32 %v9978_v28, %v8954_v18  ;;  %v11218_v44 = vunpack.c.h.bf16 %v10168_v57  ;;  %v11220_v15 = vld [vmem:[#allocation42_spill] sm:$0xff] }
 0x6dc   :  { %11216 = vst [vmem:[#allocation13_spill] sm:$0xff] %v10237_v2  ;;  %11217 = vst [vmem:[#allocation38_spill] sm:$0xff] %v10240_v35  ;;  %v11219_v11 = vunpack.c.h.bf16 %v10170_v51  ;;  %v5546_v53 = vadd.f32 %v11220_v15, %v9778_v37  ;;  %v11221_v38 = vunpack.c.l.bf16 %v10168_v57  ;;  %v4655_v25 = vmax.f32 %v4036_v12, 0.0  ;;  %v10272_v57 = vpop.f32.mrf.mxu1 }
 0x6dd   :  { %v5255_v60 = vmul.f32 %v8959_v30, %v11218_v44  ;;  %7162 = vpow2.f32 %v6450_v24  ;;  %v4986_v41 = vunpack.c.h.bf16 %v10244_v6  ;;  %v4606_v50 = vmax.f32 %v4327_v43, 0.0 }
 0x6de   :  { %v5256_v55 = vmul.f32 %v8983_v36, %v11219_v11  ;;  %v5251_v21 = vmul.f32 %v8959_v30, %v11221_v38  ;;  %v11222_v24 = vunpack.c.l.bf16 %v10170_v51  ;;  %v11223_v11 = vld [vmem:[#allocation20_spill] sm:$0xff]  ;;  %v4038_v37 = vadd.f32 %v10160_v8, %v8900_v17  ;;  %v10281_v51 = vpop.f32.mrf.mxu0  ;;  %v10286_v1 = vpop.f32.mrf.mxu1 }
 0x6df   :  { %v5547_v39 = vadd.f32 %v5546_v53, %v5255_v60  ;;  %v5541_v45 = vadd.f32 %v11224_v22, %v11223_v11  ;;  %v4803_v15 = vpack.c.bf16 %v4655_v25, %v4651_v7  ;;  %v11225_v38 = vld [vmem:[#allocation28_spill] sm:$0xff]  ;;  %v5684_v12 = vadd.f32 %v10199_v27, %v5375_v46 }
 0x6e0   :  { %v5252_v44 = vmul.f32 %v8983_v36, %v11222_v24  ;;  %v4329_v28 = vadd.f32 %v11225_v38, %v8934_v16  ;;  %v10279_v43 = vadd.f32 %v10182_v42, %v8894_v0  ;;  %v4656_v22 = vmax.f32 %v4038_v37, 0.0  ;;  %v11226_v24 = vld [vmem:[#allocation18_spill] sm:$0xff]  ;;  %v5380_v42 = vpop.xlane.xlu1 %5379 }
 0x6e1   :  { %v5548_v60 = vadd.f32 %v5547_v39, %v5256_v55  ;;  %v5542_v53 = vadd.f32 %v5541_v45, %v5251_v21  ;;  %v4331_v8 = vadd.f32 %v11226_v24, %v8954_v18  ;;  %v5035_v11 = vunpack.c.l.bf16 %v4803_v15 }
 0x6e2   :  { %v5039_v2 = vunpack.c.h.bf16 %v4803_v15  ;;  %v4609_v7 = vmax.f32 %v4329_v28, 0.0  ;;  %v6451_v25 = vmul.f32 -1.442695, %v5684_v12  ;;  %v4804_v26 = vpack.c.bf16 %v4656_v22, %v4652_v54  ;;  %v10296_v28 = vpop.f32.mrf.mxu0 }
 0x6e3   :  { %5549 = vadd.xlane.f32.xlu1 %v5548_v60  ;;  %v5543_v38 = vadd.f32 %v5542_v53, %v5252_v44  ;;  %v4659_v46 = vmax.f32 %v10279_v43, 0.0  ;;  %v4610_v35 = vmax.f32 %v4331_v8, 0.0  ;;  %v10289_v55 = vmul.f32 %v8924_v32, %v5035_v11 }
 0x6e4   :  { %v10292_v45 = vmul.f32 %v8924_v32, %v5039_v2  ;;  %v10294_v21 = vpack.c.bf16 %v4609_v7, %v4605_v3  ;;  %7164 = vpow2.f32 %v6451_v25  ;;  %v5036_v39 = vunpack.c.l.bf16 %v4804_v26  ;;  %v11229_v2 = vld [vmem:[#allocation31_spill] sm:$0xff]  ;;  %v10317_v7 = vpop.f32.mrf.mxu0 }
 0x6e5   :  { %11227 = vst [vmem:[#allocation40_spill] sm:$0xff] %v10289_v55  ;;  %5544 = vadd.xlane.f32.xlu0 %v5543_v38  ;;  %v5040_v54 = vunpack.c.h.bf16 %v4804_v26  ;;  %v10298_v44 = vpack.c.bf16 %v4610_v35, %v4606_v50  ;;  %v4044_v37 = vadd.f32 %v10210_v9, %v8900_v17  ;;  %v4335_v3 = vadd.f32 %v11229_v2, %v8934_v16  ;;  %v10314_v9 = vpop.f32.mrf.mxu1  ;;  %v11234_v2 = vld [vmem:[#allocation45_spill] sm:$0xff]  ;;  %v5390_v35 = vpop.xlane.xlu1 %5389  ;;  %v11238_v55 = vld [vmem:[#allocation44_spill] sm:$0xff] }
 0x6e6   :  { %11228 = vst [vmem:[#allocation17_spill] sm:$0xff] %v10292_v45  ;;  %v7161_v15 = vpop.eup %7160  ;;  %v5685_v60 = vadd.f32 %v10199_v27, %v5380_v42  ;;  %v10308_v22 = vmul.f32 %v8930_v47, %v5036_v39  ;;  %v4046_v25 = vadd.f32 %v10231_v59, %v8894_v0  ;;  %v4337_v38 = vadd.f32 %v10036_v61, %v8954_v18  ;;  %v5385_v59 = vpop.xlane.xlu0 %5384 }
 0x6e7   :  { %v5938_v53 = vadd.f32 1.0, %v7161_v15  ;;  %v10311_v26 = vmul.f32 %v8930_v47, %v5040_v54  ;;  %v4660_v24 = vmax.f32 %v4044_v37, 0.0  ;;  %v4613_v8 = vmax.f32 %v4335_v3, 0.0  ;;  %v11233_v37 = vld [vmem:[#allocation43_spill] sm:$0xff] }
 0x6e8   :  { %11230 = vst [vmem:[#allocation39_spill] sm:$0xff] %v10308_v22  ;;  %v6452_v11 = vmul.f32 -1.442695, %v5685_v60  ;;  %v11232_v42 = vunpack.c.h.bf16 %v10223_v23  ;;  %v5264_v15 = vmul.f32 %v8983_v36, %v4986_v41  ;;  %v5556_v3 = vadd.f32 %v11234_v2, %v11233_v37  ;;  %v10335_v22 = vpop.f32.mrf.mxu1 }
 0x6e9   :  { %11231 = vst [vmem:[#allocation42_spill] sm:$0xff] %v10311_v26  ;;  %7166 = vrcp.f32 %v5938_v53  ;;  %v11235_v60 = vunpack.c.l.bf16 %v10223_v23  ;;  %v4663_v50 = vmax.f32 %v4046_v25, 0.0  ;;  %v4614_v61 = vmax.f32 %v4337_v38, 0.0 }
 0x6ea   :  { %v5263_v39 = vmul.f32 %v8959_v30, %v11232_v42  ;;  %v7163_v54 = vpop.eup %7162  ;;  %7168 = vpow2.f32 %v6452_v11  ;;  %v11236_v43 = vunpack.c.l.bf16 %v10244_v6  ;;  %v11237_v11 = vld [vmem:[#allocation22_spill] sm:$0xff]  ;;  %v4048_v23 = vadd.f32 %v10253_v58, %v8900_v17  ;;  %v10347_v58 = vpop.f32.mrf.mxu1 }
 0x6eb   :  { %v5259_v53 = vmul.f32 %v8959_v30, %v11235_v60  ;;  %v5939_v12 = vadd.f32 1.0, %v7163_v54  ;;  %v5551_v37 = vadd.f32 %v11238_v55, %v11237_v11  ;;  %v4339_v2 = vadd.f32 %v10038_v48, %v8934_v16  ;;  %v10343_v54 = vpop.f32.mrf.mxu0 }
 0x6ec   :  { %v5260_v42 = vmul.f32 %v8983_v36, %v11236_v43  ;;  %v5557_v41 = vadd.f32 %v5556_v3, %v5263_v39  ;;  %v4807_v25 = vpack.c.bf16 %v4663_v50, %v4659_v46  ;;  %v5687_v6 = vadd.f32 %v10199_v27, %v5390_v35 }
 0x6ed   :  { %7170 = vrcp.f32 %v5939_v12  ;;  %v5686_v43 = vadd.f32 %v10199_v27, %v5385_v59  ;;  %v5552_v60 = vadd.f32 %v5551_v37, %v5259_v53  ;;  %v4664_v39 = vmax.f32 %v4048_v23, 0.0  ;;  %v10353_v12 = vpop.f32.mrf.mxu0 }
 0x6ee   :  { %v5558_v38 = vadd.f32 %v5557_v41, %v5264_v15  ;;  %v4617_v3 = vmax.f32 %v4339_v2, 0.0  ;;  %v5043_v26 = vunpack.c.l.bf16 %v4807_v25  ;;  %v5047_v55 = vunpack.c.h.bf16 %v4807_v25 }
 0x6ef   :  { %v6454_v11 = vmul.f32 -1.442695, %v5687_v6  ;;  %v6453_v45 = vmul.f32 -1.442695, %v5686_v43  ;;  %v5553_v48 = vadd.f32 %v5552_v60, %v5260_v42  ;;  %v4808_v14 = vpack.c.bf16 %v4664_v39, %v4660_v24 }
 0x6f0   :  { %5559 = vadd.xlane.f32.xlu1 %v5558_v38  ;;  %v10349_v29 = vpack.c.bf16 %v4617_v3, %v4613_v8  ;;  %v4052_v46 = vadd.f32 %v10281_v51, %v8894_v0  ;;  %v10356_v50 = vmul.f32 %v8924_v32, %v5043_v26  ;;  %v10359_v15 = vmul.f32 %v8924_v32, %v5047_v55  ;;  %v10365_v26 = vpop.f32.mrf.mxu1  ;;  %v11241_v55 = vld [vmem:[#allocation26_spill] sm:$0xff] }
 0x6f1   :  { %v7165_v35 = vpop.eup %7164  ;;  %7172 = vpow2.f32 %v6454_v11  ;;  %v4341_v53 = vadd.f32 %v10056_v19, %v8954_v18  ;;  %5554 = vadd.xlane.f32.xlu0 %v5553_v48  ;;  %v5044_v24 = vunpack.c.l.bf16 %v4808_v14  ;;  %v5048_v8 = vunpack.c.h.bf16 %v4808_v14  ;;  %v10375_v14 = vpop.f32.mrf.mxu0  ;;  %v11242_v11 = vld [vmem:[#allocation25_spill] sm:$0xff] }
 0x6f2   :  { %v5940_v59 = vadd.f32 1.0, %v7165_v35  ;;  %v5001_v51 = vunpack.c.h.bf16 %v10349_v29  ;;  %7174 = vpow2.f32 %v6453_v45  ;;  %v4667_v41 = vmax.f32 %v4052_v46, 0.0 }
 0x6f3   :  { %v4618_v37 = vmax.f32 %v4341_v53, 0.0  ;;  %v10368_v23 = vmul.f32 %v8930_v47, %v5044_v24  ;;  %v10371_v2 = vmul.f32 %v8930_v47, %v5048_v8  ;;  %v4054_v19 = vadd.f32 %v10296_v28, %v8900_v17  ;;  %v5400_v53 = vpop.xlane.xlu1 %5399 }
 0x6f4   :  { %7176 = vrcp.f32 %v5940_v59  ;;  %v4345_v45 = vadd.f32 %v10062_v49, %v8934_v16  ;;  %v4056_v6 = vadd.f32 %v10317_v7, %v8894_v0  ;;  %v10385_v43 = vadd.f32 %v10081_v40, %v8954_v18  ;;  %v10401_v59 = vpop.f32.mrf.mxu1  ;;  %v11245_v40 = vld [vmem:[#allocation24_spill] sm:$0xff] }
 0x6f5   :  { %v10377_v25 = vpack.c.bf16 %v4618_v37, %v4614_v61  ;;  %v4668_v60 = vmax.f32 %v4054_v19, 0.0  ;;  %v11239_v39 = vunpack.c.h.bf16 %v10294_v21  ;;  %v11240_v3 = vunpack.c.h.bf16 %v10298_v44 }
 0x6f6   :  { %v7167_v38 = vpop.eup %7166  ;;  %v5566_v49 = vadd.f32 %v11242_v11, %v11241_v55  ;;  %v4621_v46 = vmax.f32 %v4345_v45, 0.0  ;;  %v4671_v35 = vmax.f32 %v4056_v6, 0.0  ;;  %v4622_v8 = vmax.f32 %v10385_v43, 0.0  ;;  %v11246_v45 = vld [vmem:[#allocation23_spill] sm:$0xff] }
 0x6f7   :  { %v5271_v28 = vmul.f32 %v8959_v30, %v11239_v39  ;;  %v5272_v61 = vmul.f32 %v8983_v36, %v11240_v3  ;;  %v7169_v48 = vpop.eup %7168  ;;  %6131 = vst.msk [vmem:[%s11073_s10] sm:$0xff] %vm6130_vm8, %v7167_v38  ;;  %v11243_v19 = vunpack.c.l.bf16 %v10294_v21  ;;  %v4065_v3 = vpop.f32.mrf.mxu0  ;;  %v11244_v38 = vunpack.c.l.bf16 %v10298_v44 }
 0x6f8   :  { %v5941_v24 = vadd.f32 1.0, %v7169_v48  ;;  %v4811_v55 = vpack.c.bf16 %v4671_v35, %v4667_v41  ;;  %v5561_v6 = vadd.f32 %v11246_v45, %v11245_v40  ;;  %v4058_v42 = vadd.f32 %v10343_v54, %v8900_v17  ;;  %v5395_v48 = vpop.xlane.xlu0 %5394  ;;  %v10421_v35 = vpop.f32.mrf.mxu1 }
 0x6f9   :  { %v5567_v37 = vadd.f32 %v5566_v49, %v5271_v28  ;;  %v5267_v39 = vmul.f32 %v8959_v30, %v11243_v19  ;;  %v5268_v11 = vmul.f32 %v8983_v36, %v11244_v38  ;;  %v4349_v21 = vadd.f32 %v10092_v62, %v8934_v16 }
 0x6fa   :  { %v7171_v7 = vpop.eup %7170  ;;  %7178 = vrcp.f32 %v5941_v24  ;;  %v5689_v28 = vadd.f32 %v10199_v27, %v5400_v53  ;;  %v5051_v44 = vunpack.c.l.bf16 %v4811_v55  ;;  %v5055_v41 = vunpack.c.h.bf16 %v4811_v55  ;;  %v4067_v53 = vpop.f32.mrf.mxu0 }
 0x6fb   :  { %v5568_v43 = vadd.f32 %v5567_v37, %v5272_v61  ;;  %6132 = vst.msk [vmem:[%s11073_s10 + $0x8] sm:$0xff] %vm6130_vm8, %v7171_v7  ;;  %v5562_v49 = vadd.f32 %v5561_v6, %v5267_v39  ;;  %v4672_v40 = vmax.f32 %v4058_v42, 0.0  ;;  %v4625_v54 = vmax.f32 %v4349_v21, 0.0  ;;  %v10436_v21 = vpop.f32.mrf.mxu1 }
 0x6fc   :  { %v6456_v24 = vmul.f32 -1.442695, %v5689_v28  ;;  %v5688_v61 = vadd.f32 %v10199_v27, %v5395_v48  ;;  %v4062_v62 = vadd.f32 %v10353_v12, %v8894_v0  ;;  %v10427_v37 = vmul.f32 %v8924_v32, %v5051_v44  ;;  %v11254_v44 = vld [vmem:[#allocation29_spill] sm:$0xff] }
 0x6fd   :  { %5569 = vadd.xlane.f32.xlu1 %v5568_v43  ;;  %v10430_v7 = vmul.f32 %v8924_v32, %v5055_v41  ;;  %v5563_v19 = vadd.f32 %v5562_v49, %v5268_v11  ;;  %v4812_v39 = vpack.c.bf16 %v4672_v40, %v4668_v60  ;;  %v10432_v55 = vpack.c.bf16 %v4625_v54, %v4621_v46  ;;  %v4071_v11 = vpop.f32.mrf.mxu0 }
 0x6fe   :  { %11247 = vst [vmem:[#allocation20_spill] sm:$0xff] %v10427_v37  ;;  %v7173_v42 = vpop.eup %7172  ;;  %7180 = vpow2.f32 %v6456_v24  ;;  %v6455_v38 = vmul.f32 -1.442695, %v5688_v61  ;;  %v4675_v45 = vmax.f32 %v4062_v62, 0.0  ;;  %v4351_v12 = vadd.f32 %v10114_v31, %v8954_v18 }
 0x6ff   :  { %v5943_v6 = vadd.f32 1.0, %v7173_v42  ;;  %5564 = vadd.xlane.f32.xlu0 %v5563_v19  ;;  %v5052_v48 = vunpack.c.l.bf16 %v4812_v39  ;;  %v5056_v43 = vunpack.c.h.bf16 %v4812_v39  ;;  %v7175_v28 = vpop.eup %7174  ;;  %v4064_v46 = vadd.f32 %v10375_v14, %v8900_v17 }
 0x700   :  { %7182 = vpow2.f32 %v6455_v38  ;;  %v5942_v49 = vadd.f32 1.0, %v7175_v28  ;;  %v4626_v54 = vmax.f32 %v4351_v12, 0.0  ;;  %v4355_v14 = vadd.f32 %v10134_v34, %v8934_v16  ;;  %v10465_v38 = vpop.f32.mrf.mxu1  ;;  %v5410_v28 = vpop.xlane.xlu1 %5409 }
 0x701   :  { %v7177_v41 = vpop.eup %7176  ;;  %7184 = vrcp.f32 %v5943_v6  ;;  %v10443_v40 = vmul.f32 %v8930_v47, %v5052_v48  ;;  %v10446_v31 = vmul.f32 %v8930_v47, %v5056_v43  ;;  %v4676_v24 = vmax.f32 %v4064_v46, 0.0  ;;  %v11251_v43 = vld [vmem:[#allocation21_spill] sm:$0xff] }
 0x702   :  { %6133 = vst.msk [vmem:[%s11073_s10 + $0x10] sm:$0xff] %vm6130_vm8, %v7177_v41  ;;  %v4066_v61 = vadd.f32 %v4065_v3, %v8894_v0  ;;  %7186 = vrcp.f32 %v5942_v49  ;;  %v10457_v62 = vadd.f32 %v10158_v5, %v8954_v18  ;;  %v5279_v19 = vmul.f32 %v8959_v30, %v5001_v51  ;;  %v11250_v3 = vld [vmem:[#allocation27_spill] sm:$0xff]  ;;  %v4073_v5 = vpop.f32.mrf.mxu0 }
 0x703   :  { %11248 = vst [vmem:[#allocation41_spill] sm:$0xff] %v10443_v40  ;;  %v11249_v39 = vunpack.c.h.bf16 %v10377_v25  ;;  %v10467_v6 = vpack.c.bf16 %v4626_v54, %v4622_v8  ;;  %v4629_v34 = vmax.f32 %v4355_v14, 0.0  ;;  %v5576_v12 = vadd.f32 %v11251_v43, %v11250_v3  ;;  %v11255_v8 = vld [vmem:[#allocation19_spill] sm:$0xff]  ;;  %v5405_v14 = vpop.xlane.xlu0 %5404 }
 0x704   :  { %v4679_v48 = vmax.f32 %v4066_v61, 0.0  ;;  %v4630_v46 = vmax.f32 %v10457_v62, 0.0  ;;  %v11252_v41 = vunpack.c.l.bf16 %v10349_v29  ;;  %v11253_v49 = vunpack.c.l.bf16 %v10377_v25 }
 0x705   :  { %v5280_v42 = vmul.f32 %v8983_v36, %v11249_v39  ;;  %v5571_v54 = vadd.f32 %v11255_v8, %v11254_v44  ;;  %v5010_v3 = vunpack.c.h.bf16 %v10467_v6  ;;  %v5577_v60 = vadd.f32 %v5576_v12, %v5279_v19 }
 0x706   :  { %v5275_v51 = vmul.f32 %v8959_v30, %v11252_v41  ;;  %v5276_v39 = vmul.f32 %v8983_v36, %v11253_v49  ;;  %v4815_v43 = vpack.c.bf16 %v4679_v48, %v4675_v45  ;;  %v4068_v29 = vadd.f32 %v4067_v53, %v8900_v17  ;;  %v10486_v49 = vpop.f32.mrf.mxu1  ;;  %v4075_v48 = vpop.f32.mrf.mxu0 }
 0x707   :  { %v7179_v40 = vpop.eup %7178  ;;  %v4359_v41 = vadd.f32 %v10178_v63, %v8934_v16  ;;  %v5691_v25 = vadd.f32 %v10199_v27, %v5410_v28  ;;  %v5578_v45 = vadd.f32 %v5577_v60, %v5280_v42  ;;  %v5690_v19 = vadd.f32 %v10199_v27, %v5405_v14 }
 0x708   :  { %v5572_v62 = vadd.f32 %v5571_v54, %v5275_v51  ;;  %6134 = vst.msk [vmem:[%s11073_s10 + $0x18] sm:$0xff] %vm6130_vm8, %v7179_v40  ;;  %v5059_v44 = vunpack.c.l.bf16 %v4815_v43  ;;  %v5063_v8 = vunpack.c.h.bf16 %v4815_v43  ;;  %v4680_v53 = vmax.f32 %v4068_v29, 0.0  ;;  %v10504_v14 = vpop.f32.mrf.mxu1 }
 0x709   :  { %v4633_v51 = vmax.f32 %v4359_v41, 0.0  ;;  %v6458_v54 = vmul.f32 -1.442695, %v5691_v25  ;;  %5579 = vadd.xlane.f32.xlu1 %v5578_v45  ;;  %v6457_v61 = vmul.f32 -1.442695, %v5690_v19  ;;  %v4072_v40 = vadd.f32 %v4071_v11, %v8894_v0  ;;  %v4077_v41 = vpop.f32.mrf.mxu0 }
 0x70a   :  { %v5573_v12 = vadd.f32 %v5572_v62, %v5276_v39  ;;  %v10494_v63 = vmul.f32 %v8924_v32, %v5059_v44  ;;  %v10497_v28 = vmul.f32 %v8924_v32, %v5063_v8  ;;  %v4816_v60 = vpack.c.bf16 %v4680_v53, %v4676_v24  ;;  %v10522_v53 = vpop.f32.mrf.mxu1 }
 0x70b   :  { %v7181_v37 = vpop.eup %7180  ;;  %v10500_v42 = vpack.c.bf16 %v4633_v51, %v4629_v34  ;;  %7188 = vpow2.f32 %v6458_v54  ;;  %v4361_v39 = vadd.f32 %v10206_v13, %v8954_v18  ;;  %v4683_v62 = vmax.f32 %v4072_v40, 0.0 }
 0x70c   :  { %5574 = vadd.xlane.f32.xlu0 %v5573_v12  ;;  %v5945_v43 = vadd.f32 1.0, %v7181_v37  ;;  %7190 = vpow2.f32 %v6457_v61  ;;  %v4074_v29 = vadd.f32 %v4073_v5, %v8900_v17  ;;  %v5060_v44 = vunpack.c.l.bf16 %v4816_v60  ;;  %v10551_v8 = vpop.f32.mrf.mxu1 }
 0x70d   :  { %v7183_v25 = vpop.eup %7182  ;;  %v5064_v11 = vunpack.c.h.bf16 %v4816_v60  ;;  %v4634_v19 = vmax.f32 %v4361_v39, 0.0  ;;  %v4365_v61 = vadd.f32 %v10221_v20, %v8934_v16  ;;  %v4076_v12 = vadd.f32 %v4075_v48, %v8894_v0 }
 0x70e   :  { %v7185_v34 = vpop.eup %7184  ;;  %7192 = vrcp.f32 %v5945_v43  ;;  %v5944_v45 = vadd.f32 1.0, %v7183_v25  ;;  %v4684_v13 = vmax.f32 %v4074_v29, 0.0  ;;  %v10514_v37 = vmul.f32 %v8930_v47, %v5060_v44  ;;  %v4081_v43 = vpop.f32.mrf.mxu0 }
 0x70f   :  { %6136 = vst.msk [vmem:[%s11073_s10 + $0x28] sm:$0xff] %vm6130_vm8, %v7185_v34  ;;  %v10517_v5 = vmul.f32 %v8930_v47, %v5064_v11  ;;  %v7187_v51 = vpop.eup %7186  ;;  %v10524_v54 = vpack.c.bf16 %v4634_v19, %v4630_v46  ;;  %v10528_v40 = vadd.f32 %v10242_v56, %v8954_v18  ;;  %v11257_v60 = vunpack.c.h.bf16 %v10432_v55  ;;  %v5420_v25 = vpop.xlane.xlu1 %5419 }
 0x710   :  { %11256 = vst [vmem:[#allocation28_spill] sm:$0xff] %v10514_v37  ;;  %7194 = vrcp.f32 %v5944_v45  ;;  %6135 = vst.msk [vmem:[%s11073_s10 + $0x20] sm:$0xff] %vm6130_vm8, %v7187_v51  ;;  %v4637_v20 = vmax.f32 %v4365_v61, 0.0  ;;  %v4687_v48 = vmax.f32 %v4076_v12, 0.0  ;;  %v5288_v29 = vmul.f32 %v8983_v36, %v5010_v3  ;;  %v5415_v56 = vpop.xlane.xlu0 %5414 }
 0x711   :  { %v5287_v39 = vmul.f32 %v8959_v30, %v11257_v60  ;;  %v5586_v46 = vadd.f32 %v10068_v52, %v10044_v4  ;;  %v5018_v11 = vunpack.c.h.bf16 %v10524_v54  ;;  %v4638_v34 = vmax.f32 %v10528_v40, 0.0  ;;  %v11260_v60 = vld [vmem:[#allocation33_spill] sm:$0xff]  ;;  %v11261_v4 = vld [vmem:[#allocation30_spill] sm:$0xff] }
 0x712   :  { %v11258_v45 = vunpack.c.l.bf16 %v10432_v55  ;;  %v4819_v51 = vpack.c.bf16 %v4687_v48, %v4683_v62  ;;  %v11259_v12 = vunpack.c.l.bf16 %v10467_v6  ;;  %v5581_v52 = vadd.f32 %v11261_v4, %v11260_v60 }
 0x713   :  { %v5587_v61 = vadd.f32 %v5586_v46, %v5287_v39  ;;  %v4078_v44 = vadd.f32 %v4077_v41, %v8900_v17  ;;  %v4369_v40 = vadd.f32 %v10272_v57, %v8934_v16  ;;  %v5693_v55 = vadd.f32 %v10199_v27, %v5420_v25  ;;  %v4083_v46 = vpop.f32.mrf.mxu0 }
 0x714   :  { %v5283_v19 = vmul.f32 %v8959_v30, %v11258_v45  ;;  %v5284_v3 = vmul.f32 %v8983_v36, %v11259_v12  ;;  %v5692_v45 = vadd.f32 %v10199_v27, %v5415_v56  ;;  %v5067_v62 = vunpack.c.l.bf16 %v4819_v51  ;;  %v10565_v56 = vpop.f32.mrf.mxu1 }
 0x715   :  { %v5071_v39 = vunpack.c.h.bf16 %v4819_v51  ;;  %v5588_v48 = vadd.f32 %v5587_v61, %v5288_v29  ;;  %v4688_v12 = vmax.f32 %v4078_v44, 0.0  ;;  %v4641_v24 = vmax.f32 %v4369_v40, 0.0 }
 0x716   :  { %v5582_v6 = vadd.f32 %v5581_v52, %v5283_v19  ;;  %v6460_v37 = vmul.f32 -1.442695, %v5693_v55  ;;  %v6459_v60 = vmul.f32 -1.442695, %v5692_v45  ;;  %v10559_v4 = vmul.f32 %v8924_v32, %v5067_v62 }
 0x717   :  { %v10562_v41 = vmul.f32 %v8924_v32, %v5071_v39  ;;  %5589 = vadd.xlane.f32.xlu1 %v5588_v48  ;;  %v4082_v25 = vadd.f32 %v4081_v43, %v8894_v0  ;;  %v4820_v29 = vpack.c.bf16 %v4688_v12, %v4684_v13  ;;  %v10567_v19 = vpack.c.bf16 %v4641_v24, %v4637_v20 }
 0x718   :  { %11262 = vst [vmem:[#allocation18_spill] sm:$0xff] %v10559_v4  ;;  %v5583_v57 = vadd.f32 %v5582_v6, %v5284_v3  ;;  %v7189_v51 = vpop.eup %7188  ;;  %7196 = vpow2.f32 %v6460_v37  ;;  %v4371_v44 = vadd.f32 %v10286_v1, %v8954_v18  ;;  %v4084_v55 = vadd.f32 %v4083_v46, %v8900_v17  ;;  %v4085_v3 = vpop.f32.mrf.mxu0 }
 0x719   :  { %v7191_v61 = vpop.eup %7190  ;;  %v5947_v52 = vadd.f32 1.0, %v7189_v51  ;;  %7198 = vpow2.f32 %v6459_v60  ;;  %v4691_v40 = vmax.f32 %v4082_v25, 0.0  ;;  %v5068_v43 = vunpack.c.l.bf16 %v4820_v29  ;;  %v10574_v1 = vpop.f32.mrf.mxu1 }
 0x71a   :  { %5584 = vadd.xlane.f32.xlu0 %v5583_v57  ;;  %v5946_v45 = vadd.f32 1.0, %v7191_v61  ;;  %v5072_v62 = vunpack.c.h.bf16 %v4820_v29  ;;  %v4642_v37 = vmax.f32 %v4371_v44, 0.0  ;;  %v4692_v20 = vmax.f32 %v4084_v55, 0.0  ;;  %v4087_v44 = vpop.f32.mrf.mxu0 }
 0x71b   :  { %v7193_v13 = vpop.eup %7192  ;;  %7200 = vrcp.f32 %v5947_v52  ;;  %v10581_v48 = vmul.f32 %v8930_v47, %v5068_v43  ;;  %v4375_v46 = vadd.f32 %v10314_v9, %v8934_v16  ;;  %v4086_v57 = vadd.f32 %v4085_v3, %v8894_v0  ;;  %v11266_v52 = vld [vmem:[#allocation34_spill] sm:$0xff]  ;;  %v5430_v3 = vpop.xlane.xlu1 %5429 }
 0x71c   :  { %6138 = vst.msk [vmem:[%s11073_s10 + $0x38] sm:$0xff] %vm6130_vm8, %v7193_v13  ;;  %7202 = vrcp.f32 %v5946_v45  ;;  %v10584_v6 = vmul.f32 %v8930_v47, %v5072_v62  ;;  %v10588_v60 = vpack.c.bf16 %v4642_v37, %v4638_v34  ;;  %v4377_v25 = vadd.f32 %v10335_v22, %v8954_v18  ;;  %v11265_v34 = vld [vmem:[#allocation35_spill] sm:$0xff]  ;;  %v5425_v45 = vpop.xlane.xlu0 %5424 }
 0x71d   :  { %11263 = vst [vmem:[#allocation31_spill] sm:$0xff] %v10581_v48  ;;  %v7195_v12 = vpop.eup %7194  ;;  %v11264_v51 = vunpack.c.h.bf16 %v10500_v42  ;;  %v4645_v61 = vmax.f32 %v4375_v46, 0.0  ;;  %v5296_v9 = vmul.f32 %v8983_v36, %v5018_v11  ;;  %v5596_v55 = vadd.f32 %v11266_v52, %v11265_v34  ;;  %v11269_v34 = vld [vmem:[#allocation32_spill] sm:$0xff]  ;;  %v11270_v52 = vld [vmem:[#allocation37_spill] sm:$0xff] }
 0x71e   :  { %6137 = vst.msk [vmem:[%s11073_s10 + $0x30] sm:$0xff] %vm6130_vm8, %v7195_v12  ;;  %v11267_v0 = vunpack.c.l.bf16 %v10500_v42  ;;  %v5026_v62 = vunpack.c.h.bf16 %v10588_v60  ;;  %v4695_v13 = vmax.f32 %v4086_v57, 0.0  ;;  %v4646_v37 = vmax.f32 %v4377_v25, 0.0 }
 0x71f   :  { %v5295_v29 = vmul.f32 %v8959_v30, %v11264_v51  ;;  %v10608_v51 = vpop.f32.mrf.mxu1  ;;  %v11268_v11 = vunpack.c.l.bf16 %v10524_v54  ;;  %v5591_v42 = vadd.f32 %v11270_v52, %v11269_v34  ;;  %v4379_v43 = vadd.f32 %v10347_v58, %v8934_v16 }
 0x720   :  { %v5291_v22 = vmul.f32 %v8959_v30, %v11267_v0  ;;  %v4088_v0 = vadd.f32 %v4087_v44, %v8900_v17  ;;  %v4823_v39 = vpack.c.bf16 %v4695_v13, %v4691_v40  ;;  %v5695_v24 = vadd.f32 %v10199_v27, %v5430_v3 }
 0x721   :  { %v5597_v46 = vadd.f32 %v5596_v55, %v5295_v29  ;;  %v5292_v12 = vmul.f32 %v8983_v36, %v11268_v11  ;;  %v5694_v57 = vadd.f32 %v10199_v27, %v5425_v45  ;;  %v4381_v54 = vadd.f32 %v10365_v26, %v8954_v18  ;;  %v10622_v52 = vpop.f32.mrf.mxu1 }
 0x722   :  { %v5592_v48 = vadd.f32 %v5591_v42, %v5291_v22  ;;  %v4696_v29 = vmax.f32 %v4088_v0, 0.0  ;;  %v5075_v55 = vunpack.c.l.bf16 %v4823_v39  ;;  %v5079_v11 = vunpack.c.h.bf16 %v4823_v39 }
 0x723   :  { %v5598_v25 = vadd.f32 %v5597_v46, %v5296_v9  ;;  %v4649_v4 = vmax.f32 %v4379_v43, 0.0  ;;  %v6462_v34 = vmul.f32 -1.442695, %v5695_v24  ;;  %v6461_v58 = vmul.f32 -1.442695, %v5694_v57 }
 0x724   :  { %v5593_v17 = vadd.f32 %v5592_v48, %v5292_v12  ;;  %v4824_v40 = vpack.c.bf16 %v4696_v29, %v4692_v20  ;;  %v4650_v44 = vmax.f32 %v4381_v54, 0.0  ;;  %v10625_v45 = vmul.f32 %v8924_v32, %v5075_v55  ;;  %v10634_v12 = vpop.f32.mrf.mxu1  ;;  %v5440_v29 = vpop.xlane.xlu1 %5439 }
 0x725   :  { %5599 = vadd.xlane.f32.xlu1 %v5598_v25  ;;  %v7197_v3 = vpop.eup %7196  ;;  %v10628_v9 = vmul.f32 %v8924_v32, %v5079_v11  ;;  %v10630_v22 = vpack.c.bf16 %v4649_v4, %v4645_v61  ;;  %7204 = vpow2.f32 %v6462_v34  ;;  %v4385_v61 = vadd.f32 %v10401_v59, %v8934_v16  ;;  %v5435_v54 = vpop.xlane.xlu0 %5434 }
 0x726   :  { %v7199_v26 = vpop.eup %7198  ;;  %v5949_v39 = vadd.f32 1.0, %v7197_v3  ;;  %5594 = vadd.xlane.f32.xlu0 %v5593_v17  ;;  %v5076_v24 = vunpack.c.l.bf16 %v4824_v40  ;;  %v5080_v43 = vunpack.c.h.bf16 %v4824_v40  ;;  %7206 = vpow2.f32 %v6461_v58  ;;  %v11274_v3 = vld [vmem:[#allocation36_spill] sm:$0xff] }
 0x727   :  { %v5948_v48 = vadd.f32 1.0, %v7199_v26  ;;  %v5029_v20 = vunpack.c.l.bf16 %v10630_v22  ;;  %v5033_v13 = vunpack.c.h.bf16 %v10630_v22  ;;  %v4802_v46 = vpack.c.bf16 %v4650_v44, %v4646_v37  ;;  %v11275_v22 = vld [vmem:[#allocation16_spill] sm:$0xff] }
 0x728   :  { %v7201_v42 = vpop.eup %7200  ;;  %7208 = vrcp.f32 %v5949_v39  ;;  %v10637_v32 = vmul.f32 %v8930_v47, %v5076_v24  ;;  %v10640_v4 = vmul.f32 %v8930_v47, %v5080_v43  ;;  %v4387_v25 = vadd.f32 %v10421_v35, %v8954_v18  ;;  %v10668_v39 = vpop.f32.mrf.mxu1 }
 0x729   :  { %v7203_v0 = vpop.eup %7202  ;;  %6140 = vst.msk [vmem:[%s11073_s10 + $0x48] sm:$0xff] %vm6130_vm8, %v7201_v42  ;;  %7210 = vrcp.f32 %v5948_v48  ;;  %v5030_v37 = vunpack.c.l.bf16 %v4802_v46  ;;  %v5034_v57 = vunpack.c.h.bf16 %v4802_v46  ;;  %v4653_v47 = vmax.f32 %v4385_v61, 0.0 }
 0x72a   :  { %6139 = vst.msk [vmem:[%s11073_s10 + $0x40] sm:$0xff] %vm6130_vm8, %v7203_v0  ;;  %v11271_v59 = vunpack.c.h.bf16 %v10567_v19  ;;  %v5304_v11 = vmul.f32 %v8983_v36, %v5026_v62  ;;  %v5606_v34 = vadd.f32 %v10188_v33, %v10166_v10  ;;  %v4654_v17 = vmax.f32 %v4387_v25, 0.0 }
 0x72b   :  { %v11272_v35 = vunpack.c.l.bf16 %v10567_v19  ;;  %v11273_v58 = vunpack.c.l.bf16 %v10588_v60  ;;  %v5601_v26 = vadd.f32 %v11275_v22, %v11274_v3  ;;  %v4389_v62 = vadd.f32 %v10436_v21, %v8934_v16 }
 0x72c   :  { %v5303_v55 = vmul.f32 %v8959_v30, %v11271_v59  ;;  %v5697_v10 = vadd.f32 %v10199_v27, %v5440_v29  ;;  %v5696_v33 = vadd.f32 %v10199_v27, %v5435_v54  ;;  %v4391_v43 = vadd.f32 %v10465_v38, %v8954_v18 }
 0x72d   :  { %v5299_v40 = vmul.f32 %v8959_v30, %v11272_v35  ;;  %v5300_v44 = vmul.f32 %v8983_v36, %v11273_v58  ;;  %v4395_v60 = vadd.f32 %v10486_v49, %v8934_v16  ;;  %v4397_v48 = vadd.f32 %v10504_v14, %v8954_v18  ;;  %v5450_v58 = vpop.xlane.xlu1 %5449 }
 0x72e   :  { %v5607_v24 = vadd.f32 %v5606_v34, %v5303_v55  ;;  %v4657_v42 = vmax.f32 %v4389_v62, 0.0  ;;  %v6464_v61 = vmul.f32 -1.442695, %v5697_v10  ;;  %v6463_v0 = vmul.f32 -1.442695, %v5696_v33  ;;  %v10680_v55 = vpop.f32.mrf.mxu1  ;;  %v11277_v34 = vld [vmem:[#allocation38_spill] sm:$0xff] }
 0x72f   :  { %v5602_v19 = vadd.f32 %v5601_v26, %v5299_v40  ;;  %v4658_v21 = vmax.f32 %v4391_v43, 0.0  ;;  %v4661_v59 = vmax.f32 %v4395_v60, 0.0  ;;  %v4662_v29 = vmax.f32 %v4397_v48, 0.0 }
 0x730   :  { %v5608_v46 = vadd.f32 %v5607_v24, %v5304_v11  ;;  %v4805_v54 = vpack.c.bf16 %v4657_v42, %v4653_v47  ;;  %7212 = vpow2.f32 %v6464_v61  ;;  %v5311_v38 = vmul.f32 %v8959_v30, %v5033_v13  ;;  %v11276_v11 = vld [vmem:[#allocation14_spill] sm:$0xff]  ;;  %v11278_v47 = vld [vmem:[#allocation15_spill] sm:$0xff]  ;;  %v11279_v24 = vld [vmem:[#allocation13_spill] sm:$0xff]  ;;  %v5445_v13 = vpop.xlane.xlu0 %5444  ;;  %v10690_v43 = vpop.f32.mrf.mxu1 }
 0x731   :  { %v5603_v25 = vadd.f32 %v5602_v19, %v5300_v44  ;;  %v5312_v49 = vmul.f32 %v8983_v36, %v5034_v57  ;;  %7214 = vpow2.f32 %v6463_v0  ;;  %v4806_v14 = vpack.c.bf16 %v4658_v21, %v4654_v17 }
 0x732   :  { %5609 = vadd.xlane.f32.xlu1 %v5608_v46  ;;  %v5616_v35 = vadd.f32 %v11277_v34, %v11276_v11  ;;  %v5307_v40 = vmul.f32 %v8959_v30, %v5029_v20  ;;  %v7205_v44 = vpop.eup %7204  ;;  %v5037_v3 = vunpack.c.l.bf16 %v4805_v54  ;;  %v5041_v22 = vunpack.c.h.bf16 %v4805_v54 }
 0x733   :  { %5604 = vadd.xlane.f32.xlu0 %v5603_v25  ;;  %v5308_v26 = vmul.f32 %v8983_v36, %v5030_v37  ;;  %v5611_v62 = vadd.f32 %v11279_v24, %v11278_v47  ;;  %v7207_v10 = vpop.eup %7206  ;;  %v5951_v57 = vadd.f32 1.0, %v7205_v44  ;;  %v5038_v33 = vunpack.c.l.bf16 %v4806_v14 }
 0x734   :  { %v5042_v19 = vunpack.c.h.bf16 %v4806_v14  ;;  %v5617_v17 = vadd.f32 %v5616_v35, %v5311_v38  ;;  %v5950_v60 = vadd.f32 1.0, %v7207_v10  ;;  %v4399_v20 = vadd.f32 %v10522_v53, %v8934_v16  ;;  %v10710_v14 = vpop.f32.mrf.mxu1  ;;  %v5455_v47 = vpop.xlane.xlu0 %5454 }
 0x735   :  { %v5612_v48 = vadd.f32 %v5611_v62, %v5307_v40  ;;  %v5699_v46 = vadd.f32 %v10199_v27, %v5450_v58  ;;  %v7209_v42 = vpop.eup %7208  ;;  %7216 = vrcp.f32 %v5951_v57  ;;  %v5698_v61 = vadd.f32 %v10199_v27, %v5445_v13  ;;  %v11280_v62 = vld [vmem:[#allocation17_spill] sm:$0xff]  ;;  %v11281_v13 = vld [vmem:[#allocation42_spill] sm:$0xff] }
 0x736   :  { %v5618_v37 = vadd.f32 %v5617_v17, %v5312_v49  ;;  %v4401_v0 = vadd.f32 %v10551_v8, %v8954_v18  ;;  %v7211_v25 = vpop.eup %7210  ;;  %6142 = vst.msk [vmem:[%s11073_s10 + $0x58] sm:$0xff] %vm6130_vm8, %v7209_v42  ;;  %7218 = vrcp.f32 %v5950_v60  ;;  %v4665_v54 = vmax.f32 %v4399_v20, 0.0  ;;  %v11283_v60 = vld [vmem:[#allocation39_spill] sm:$0xff] }
 0x737   :  { %v5613_v21 = vadd.f32 %v5612_v48, %v5308_v26  ;;  %v6466_v53 = vmul.f32 -1.442695, %v5699_v46  ;;  %6141 = vst.msk [vmem:[%s11073_s10 + $0x50] sm:$0xff] %vm6130_vm8, %v7211_v25  ;;  %v6465_v27 = vmul.f32 -1.442695, %v5698_v61  ;;  %v4405_v8 = vadd.f32 %v10565_v56, %v8934_v16  ;;  %v5460_v26 = vpop.xlane.xlu1 %5459  ;;  %v10720_v48 = vpop.f32.mrf.mxu1 }
 0x738   :  { %5619 = vadd.xlane.f32.xlu1 %v5618_v37  ;;  %v4666_v38 = vmax.f32 %v4401_v0, 0.0  ;;  %v4407_v49 = vadd.f32 %v10574_v1, %v8954_v18  ;;  %v4809_v11 = vpack.c.bf16 %v4665_v54, %v4661_v59  ;;  %v5319_v34 = vmul.f32 %v8959_v30, %v5041_v22  ;;  %v11282_v22 = vld [vmem:[#allocation40_spill] sm:$0xff]  ;;  %v10724_v46 = vld [vmem:[#allocation9 + $0x7] ss:$0 sm:$0xff] }
 0x739   :  { %5614 = vadd.xlane.f32.xlu0 %v5613_v21  ;;  %7220 = vpow2.f32 %v6466_v53  ;;  %v5320_v35 = vmul.f32 %v8983_v36, %v5042_v19  ;;  %v4669_v58 = vmax.f32 %v4405_v8, 0.0  ;;  %v5626_v1 = vadd.f32 %v11281_v13, %v11280_v62 }
 0x73a   :  { %7222 = vpow2.f32 %v6465_v27  ;;  %v4810_v40 = vpack.c.bf16 %v4666_v38, %v4662_v29  ;;  %v4670_v44 = vmax.f32 %v4407_v49, 0.0  ;;  %v5045_v24 = vunpack.c.l.bf16 %v4809_v11 }
 0x73b   :  { %v5049_v56 = vunpack.c.h.bf16 %v4809_v11  ;;  %v5315_v10 = vmul.f32 %v8959_v30, %v5037_v3  ;;  %v5316_v17 = vmul.f32 %v8983_v36, %v5038_v33  ;;  %v5621_v19 = vadd.f32 %v11283_v60, %v11282_v22 }
 0x73c   :  { %v5046_v57 = vunpack.c.l.bf16 %v4810_v40  ;;  %v5050_v59 = vunpack.c.h.bf16 %v4810_v40  ;;  %v5627_v29 = vadd.f32 %v5626_v1, %v5319_v34  ;;  %v4409_v20 = vadd.f32 %v10608_v51, %v8934_v16  ;;  %v10734_v34 = vpop.f32.mrf.mxu1 }
 0x73d   :  { %v5701_v42 = vadd.f32 %v10724_v46, %v5460_v26  ;;  %v5700_v37 = vadd.f32 %v10724_v46, %v5455_v47  ;;  %v7213_v3 = vpop.eup %7212  ;;  %v5622_v61 = vadd.f32 %v5621_v19, %v5315_v10  ;;  %v4411_v33 = vadd.f32 %v10622_v52, %v8954_v18  ;;  %v5465_v10 = vpop.xlane.xlu0 %5464 }
 0x73e   :  { %v4415_v0 = vadd.f32 %v10634_v12, %v8934_v16  ;;  %v4417_v25 = vadd.f32 %v10668_v39, %v8954_v18  ;;  %v7215_v21 = vpop.eup %7214  ;;  %v5953_v54 = vadd.f32 1.0, %v7213_v3  ;;  %v5628_v51 = vadd.f32 %v5627_v29, %v5320_v35  ;;  %v4430_v22 = vpop.f32.mrf.mxu1 }
 0x73f   :  { %v4673_v53 = vmax.f32 %v4409_v20, 0.0  ;;  %v6468_v27 = vmul.f32 -1.442695, %v5701_v42  ;;  %v5952_v38 = vadd.f32 1.0, %v7215_v21  ;;  %v5623_v8 = vadd.f32 %v5622_v61, %v5316_v17 }
 0x740   :  { %v6467_v49 = vmul.f32 -1.442695, %v5700_v37  ;;  %v4674_v11 = vmax.f32 %v4411_v33, 0.0  ;;  %7224 = vrcp.f32 %v5953_v54  ;;  %5629 = vadd.xlane.f32.xlu1 %v5628_v51  ;;  %v4677_v40 = vmax.f32 %v4415_v0, 0.0  ;;  %v4434_v21 = vpop.f32.mrf.mxu1 }
 0x741   :  { %v10736_v52 = vpack.c.bf16 %v4673_v53, %v4669_v58  ;;  %v4678_v12 = vmax.f32 %v4417_v25, 0.0  ;;  %7226 = vrcp.f32 %v5952_v38  ;;  %5624 = vadd.xlane.f32.xlu0 %v5623_v8  ;;  %v5327_v26 = vmul.f32 %v8959_v30, %v5049_v56  ;;  %v5470_v58 = vpop.xlane.xlu1 %5469 }
 0x742   :  { %v4814_v39 = vpack.c.bf16 %v4674_v11, %v4670_v44  ;;  %v5328_v35 = vmul.f32 %v8983_v36, %v5050_v59  ;;  %v7217_v47 = vpop.eup %7216  ;;  %7228 = vpow2.f32 %v6468_v27  ;;  %v5636_v1 = vadd.f32 %v10371_v2, %v10359_v15 }
 0x743   :  { %v5053_v62 = vunpack.c.l.bf16 %v10736_v52  ;;  %v5057_v13 = vunpack.c.h.bf16 %v10736_v52  ;;  %v7219_v17 = vpop.eup %7218  ;;  %6144 = vst.msk [vmem:[%s11073_s10 + $0x68] sm:$0xff] %vm6130_vm8, %v7217_v47  ;;  %7230 = vpow2.f32 %v6467_v49  ;;  %v5323_v59 = vmul.f32 %v8959_v30, %v5045_v24  ;;  %v5475_v52 = vpop.xlane.xlu0 %5474 }
 0x744   :  { %v5054_v44 = vunpack.c.l.bf16 %v4814_v39  ;;  %v5058_v56 = vunpack.c.h.bf16 %v4814_v39  ;;  %6143 = vst.msk [vmem:[%s11073_s10 + $0x60] sm:$0xff] %vm6130_vm8, %v7219_v17  ;;  %v5637_v15 = vadd.f32 %v5636_v1, %v5327_v26  ;;  %v5324_v2 = vmul.f32 %v8983_v36, %v5046_v57  ;;  %v4436_v26 = vpop.f32.mrf.mxu1  ;;  %v11285_v1 = vld [vmem:[#allocation41_spill] sm:$0xff] }
 0x745   :  { %v5631_v60 = vadd.f32 %v10368_v23, %v10356_v50  ;;  %v4419_v19 = vadd.f32 %v10680_v55, %v8934_v16  ;;  %v5703_v20 = vadd.f32 %v10724_v46, %v5470_v58  ;;  %v5702_v24 = vadd.f32 %v10724_v46, %v5465_v10  ;;  %v5480_v11 = vpop.xlane.xlu1 %5479 }
 0x746   :  { %v7221_v29 = vpop.eup %7220  ;;  %v4421_v42 = vadd.f32 %v10690_v43, %v8954_v18  ;;  %v10764_v37 = vadd.f32 %v10710_v14, %v8934_v16  ;;  %v5638_v61 = vadd.f32 %v5637_v15, %v5328_v35  ;;  %v4427_v53 = vadd.f32 %v10720_v48, %v8954_v18 }
 0x747   :  { %v7223_v3 = vpop.eup %7222  ;;  %v5955_v57 = vadd.f32 1.0, %v7221_v29  ;;  %v5632_v33 = vadd.f32 %v5631_v60, %v5323_v59  ;;  %v4681_v50 = vmax.f32 %v4419_v19, 0.0  ;;  %v6470_v0 = vmul.f32 -1.442695, %v5703_v20 }
 0x748   :  { %v5954_v23 = vadd.f32 1.0, %v7223_v3  ;;  %v6469_v55 = vmul.f32 -1.442695, %v5702_v24  ;;  %v4682_v25 = vmax.f32 %v4421_v42, 0.0  ;;  %5639 = vadd.xlane.f32.xlu1 %v5638_v61  ;;  %v4685_v43 = vmax.f32 %v10764_v37, 0.0  ;;  %v4438_v24 = vpop.f32.mrf.mxu1  ;;  %v5485_v42 = vpop.xlane.xlu0 %5484 }
 0x749   :  { %7232 = vrcp.f32 %v5955_v57  ;;  %v5633_v54 = vadd.f32 %v5632_v33, %v5324_v2  ;;  %v10766_v51 = vpack.c.bf16 %v4681_v50, %v4677_v40  ;;  %v5335_v27 = vmul.f32 %v8959_v30, %v5057_v13  ;;  %v11284_v13 = vld [vmem:[#allocation20_spill] sm:$0xff] }
 0x74a   :  { %7234 = vrcp.f32 %v5954_v23  ;;  %v10769_v14 = vpack.c.bf16 %v4682_v25, %v4678_v12  ;;  %v5336_v49 = vmul.f32 %v8983_v36, %v5058_v56  ;;  %v4686_v39 = vmax.f32 %v4427_v53, 0.0 }
 0x74b   :  { %5634 = vadd.xlane.f32.xlu0 %v5633_v54  ;;  %v5061_v38 = vunpack.c.l.bf16 %v10766_v51  ;;  %v5065_v8 = vunpack.c.h.bf16 %v10766_v51  ;;  %7236 = vpow2.f32 %v6470_v0  ;;  %v5646_v48 = vadd.f32 %v10446_v31, %v10430_v7 }
 0x74c   :  { %7238 = vpow2.f32 %v6469_v55  ;;  %v5062_v40 = vunpack.c.l.bf16 %v10769_v14  ;;  %v5066_v12 = vunpack.c.h.bf16 %v10769_v14  ;;  %v5331_v35 = vmul.f32 %v8959_v30, %v5053_v62 }
 0x74d   :  { %v5332_v47 = vmul.f32 %v8983_v36, %v5054_v44  ;;  %v5641_v58 = vadd.f32 %v11285_v1, %v11284_v13  ;;  %v7225_v10 = vpop.eup %7224  ;;  %v4429_v17 = vadd.f32 %v10734_v34, %v8934_v16  ;;  %v5705_v56 = vadd.f32 %v10724_v46, %v5480_v11  ;;  %v5490_v34 = vpop.xlane.xlu1 %5489 }
 0x74e   :  { %v5704_v59 = vadd.f32 %v10724_v46, %v5475_v52  ;;  %v4431_v15 = vadd.f32 %v4430_v22, %v8954_v18  ;;  %v7227_v2 = vpop.eup %7226  ;;  %6146 = vst.msk [vmem:[%s11073_s10 + $0x78] sm:$0xff] %vm6130_vm8, %v7225_v10  ;;  %v5647_v7 = vadd.f32 %v5646_v48, %v5335_v27  ;;  %v10795_v62 = vadd.f32 %v4434_v21, %v8934_v16  ;;  %v4440_v27 = vpop.f32.mrf.mxu1 }
 0x74f   :  { %v5642_v31 = vadd.f32 %v5641_v58, %v5331_v35  ;;  %v10798_v44 = vadd.f32 %v4436_v26, %v8954_v18  ;;  %v7229_v60 = vpop.eup %7228  ;;  %6145 = vst.msk [vmem:[%s11073_s10 + $0x70] sm:$0xff] %vm6130_vm8, %v7227_v2  ;;  %v4689_v22 = vmax.f32 %v4429_v17, 0.0  ;;  %v6472_v19 = vmul.f32 -1.442695, %v5705_v56 }
 0x750   :  { %v6471_v29 = vmul.f32 -1.442695, %v5704_v59  ;;  %v4690_v20 = vmax.f32 %v4431_v15, 0.0  ;;  %v7231_v37 = vpop.eup %7230  ;;  %v5957_v3 = vadd.f32 1.0, %v7229_v60  ;;  %v5648_v57 = vadd.f32 %v5647_v7, %v5336_v49  ;;  %v5495_v49 = vpop.xlane.xlu0 %5494 }
 0x751   :  { %v5643_v61 = vadd.f32 %v5642_v31, %v5332_v47  ;;  %v4693_v33 = vmax.f32 %v10795_v62, 0.0  ;;  %v5956_v50 = vadd.f32 1.0, %v7231_v37  ;;  %v4821_v23 = vpack.c.bf16 %v4689_v22, %v4685_v43  ;;  %v5500_v54 = vpop.xlane.xlu1 %5499 }
 0x752   :  { %7240 = vpow2.f32 %v6472_v19  ;;  %v4822_v0 = vpack.c.bf16 %v4690_v20, %v4686_v39  ;;  %5649 = vadd.xlane.f32.xlu1 %v5648_v57  ;;  %v4694_v55 = vmax.f32 %v10798_v44, 0.0  ;;  %v5343_v25 = vmul.f32 %v8959_v30, %v5065_v8  ;;  %v11286_v8 = vld [vmem:[#allocation28_spill] sm:$0xff]  ;;  %v11287_v57 = vld [vmem:[#allocation18_spill] sm:$0xff] }
 0x753   :  { %7242 = vrcp.f32 %v5957_v3  ;;  %5644 = vadd.xlane.f32.xlu0 %v5643_v61  ;;  %v5344_v21 = vmul.f32 %v8983_v36, %v5066_v12  ;;  %v5069_v51 = vunpack.c.l.bf16 %v4821_v23  ;;  %v5073_v14 = vunpack.c.h.bf16 %v4821_v23  ;;  %v11288_v61 = vld [vmem:[#allocation31_spill] sm:$0xff] }
 0x754   :  { %7244 = vrcp.f32 %v5956_v50  ;;  %v5070_v53 = vunpack.c.l.bf16 %v4822_v0  ;;  %v5074_v43 = vunpack.c.h.bf16 %v4822_v0  ;;  %v5656_v11 = vadd.f32 %v10517_v5, %v10497_v28  ;;  %v5505_v17 = vpop.xlane.xlu0 %5504 }
 0x755   :  { %7246 = vpow2.f32 %v6471_v29  ;;  %v5339_v52 = vmul.f32 %v8959_v30, %v5061_v38  ;;  %v5340_v26 = vmul.f32 %v8983_v36, %v5062_v40  ;;  %v5651_v12 = vadd.f32 %v11286_v8, %v10494_v63  ;;  %v5510_v40 = vpop.xlane.xlu1 %5509 }
 0x756   :  { %v7233_v39 = vpop.eup %7232  ;;  %v4439_v48 = vadd.f32 %v4438_v24, %v8934_v16  ;;  %v5707_v35 = vadd.f32 %v10724_v46, %v5490_v34  ;;  %v5657_v13 = vadd.f32 %v5656_v11, %v5343_v25  ;;  %v5706_v28 = vadd.f32 %v10724_v46, %v5485_v42 }
 0x757   :  { %v7235_v47 = vpop.eup %7234  ;;  %6148 = vst.msk [vmem:[%s11073_s10 + $0x88] sm:$0xff] %vm6130_vm8, %v7233_v39  ;;  %v4441_v5 = vadd.f32 %v4440_v27, %v8954_v18  ;;  %v5351_v38 = vmul.f32 %v8959_v30, %v5073_v14  ;;  %v5652_v16 = vadd.f32 %v5651_v12, %v5339_v52  ;;  %v5352_v10 = vmul.f32 %v8983_v36, %v5074_v43 }
 0x758   :  { %v7237_v1 = vpop.eup %7236  ;;  %6147 = vst.msk [vmem:[%s11073_s10 + $0x80] sm:$0xff] %vm6130_vm8, %v7235_v47  ;;  %v4697_v63 = vmax.f32 %v4439_v48, 0.0  ;;  %v6474_v58 = vmul.f32 -1.442695, %v5707_v35  ;;  %v5658_v15 = vadd.f32 %v5657_v13, %v5344_v21  ;;  %v6473_v2 = vmul.f32 -1.442695, %v5706_v28  ;;  %v5515_v24 = vpop.xlane.xlu0 %5514 }
 0x759   :  { %v7239_v56 = vpop.eup %7238  ;;  %v5959_v59 = vadd.f32 1.0, %v7237_v1  ;;  %v4698_v18 = vmax.f32 %v4441_v5, 0.0  ;;  %v5653_v31 = vadd.f32 %v5652_v16, %v5340_v26  ;;  %v5666_v34 = vadd.f32 %v10584_v6, %v10562_v41  ;;  %v5520_v22 = vpop.xlane.xlu1 %5519 }
 0x75a   :  { %v5958_v7 = vadd.f32 1.0, %v7239_v56  ;;  %v4825_v62 = vpack.c.bf16 %v4697_v63, %v4693_v33  ;;  %7248 = vpow2.f32 %v6474_v58  ;;  %5659 = vadd.xlane.f32.xlu1 %v5658_v15  ;;  %v5347_v60 = vmul.f32 %v8959_v30, %v5069_v51 }
 0x75b   :  { %7250 = vrcp.f32 %v5959_v59  ;;  %v4826_v44 = vpack.c.bf16 %v4698_v18, %v4694_v55  ;;  %5654 = vadd.xlane.f32.xlu0 %v5653_v31  ;;  %v5348_v20 = vmul.f32 %v8983_v36, %v5070_v53  ;;  %v5667_v3 = vadd.f32 %v5666_v34, %v5351_v38 }
 0x75c   :  { %7252 = vrcp.f32 %v5958_v7  ;;  %v5077_v19 = vunpack.c.l.bf16 %v4825_v62  ;;  %v5081_v29 = vunpack.c.h.bf16 %v4825_v62  ;;  %v5661_v33 = vadd.f32 %v11288_v61, %v11287_v57 }
 0x75d   :  { %7254 = vpow2.f32 %v6473_v2  ;;  %v5078_v42 = vunpack.c.l.bf16 %v4826_v44  ;;  %v5082_v37 = vunpack.c.h.bf16 %v4826_v44  ;;  %v5709_v50 = vadd.f32 %v10724_v46, %v5500_v54  ;;  %v5530_v51 = vpop.xlane.xlu1 %5529  ;;  %v5525_v54 = vpop.xlane.xlu0 %5524 }
 0x75e   :  { %v5708_v41 = vadd.f32 %v10724_v46, %v5495_v49  ;;  %v5359_v6 = vmul.f32 %v8959_v30, %v5081_v29  ;;  %v5668_v0 = vadd.f32 %v5667_v3, %v5352_v10  ;;  %v5676_v25 = vadd.f32 %v10640_v4, %v10628_v9 }
 0x75f   :  { %v7241_v23 = vpop.eup %7240  ;;  %v5360_v55 = vmul.f32 %v8983_v36, %v5082_v37  ;;  %v5355_v21 = vmul.f32 %v8959_v30, %v5077_v19  ;;  %v5662_v27 = vadd.f32 %v5661_v33, %v5347_v60  ;;  %v6476_v43 = vmul.f32 -1.442695, %v5709_v50 }
 0x760   :  { %v7243_v14 = vpop.eup %7242  ;;  %v5961_v53 = vadd.f32 1.0, %v7241_v23  ;;  %v6475_v11 = vmul.f32 -1.442695, %v5708_v41  ;;  %5669 = vadd.xlane.f32.xlu1 %v5668_v0  ;;  %v5677_v49 = vadd.f32 %v5676_v25, %v5359_v6  ;;  %v5356_v39 = vmul.f32 %v8983_v36, %v5078_v42 }
 0x761   :  { %v7245_v52 = vpop.eup %7244  ;;  %6150 = vst.msk [vmem:[%s11073_s10 + $0x98] sm:$0xff] %vm6130_vm8, %v7243_v14  ;;  %v5671_v30 = vadd.f32 %v10637_v32, %v10625_v45  ;;  %v5711_v9 = vadd.f32 %v10724_v46, %v5510_v40  ;;  %v5663_v26 = vadd.f32 %v5662_v27, %v5348_v20  ;;  %v5710_v8 = vadd.f32 %v10724_v46, %v5505_v17  ;;  %v5540_v47 = vpop.xlane.xlu1 %5539 }
 0x762   :  { %v7247_v4 = vpop.eup %7246  ;;  %6149 = vst.msk [vmem:[%s11073_s10 + $0x90] sm:$0xff] %vm6130_vm8, %v7245_v52  ;;  %7256 = vrcp.f32 %v5961_v53  ;;  %v5713_v12 = vadd.f32 %v10724_v46, %v5520_v22  ;;  %v5678_v36 = vadd.f32 %v5677_v49, %v5360_v55  ;;  %v5535_v28 = vpop.xlane.xlu0 %5534  ;;  %v5712_v38 = vadd.f32 %v10724_v46, %v5515_v24 }
 0x763   :  { %v5960_v48 = vadd.f32 1.0, %v7247_v4  ;;  %7258 = vpow2.f32 %v6476_v43  ;;  %v5672_v35 = vadd.f32 %v5671_v30, %v5355_v21  ;;  %5664 = vadd.xlane.f32.xlu0 %v5663_v26  ;;  %v6478_v45 = vmul.f32 -1.442695, %v5711_v9 }
 0x764   :  { %7260 = vpow2.f32 %v6475_v11  ;;  %v6477_v32 = vmul.f32 -1.442695, %v5710_v8  ;;  %v6480_v13 = vmul.f32 -1.442695, %v5713_v12  ;;  %5679 = vadd.xlane.f32.xlu1 %v5678_v36  ;;  %v5715_v40 = vadd.f32 %v10724_v46, %v5530_v51 }
 0x765   :  { %7262 = vrcp.f32 %v5960_v48  ;;  %v5673_v5 = vadd.f32 %v5672_v35, %v5356_v39  ;;  %v5714_v1 = vadd.f32 %v10724_v46, %v5525_v54  ;;  %v5717_v16 = vadd.f32 %v10724_v46, %v5540_v47 }
 0x766   :  { %7264 = vpow2.f32 %v6478_v45  ;;  %v6479_v58 = vmul.f32 -1.442695, %v5712_v38  ;;  %v6482_v10 = vmul.f32 -1.442695, %v5715_v40  ;;  %v5716_v17 = vadd.f32 %v10724_v46, %v5535_v28 }
 0x767   :  { %v7249_v63 = vpop.eup %7248  ;;  %7266 = vpow2.f32 %v6477_v32  ;;  %5674 = vadd.xlane.f32.xlu0 %v5673_v5  ;;  %v6481_v15 = vmul.f32 -1.442695, %v5714_v1  ;;  %v6484_v7 = vmul.f32 -1.442695, %v5717_v16 }
 0x768   :  { %v7251_v56 = vpop.eup %7250  ;;  %v5963_v59 = vadd.f32 1.0, %v7249_v63  ;;  %7268 = vpow2.f32 %v6480_v13  ;;  %v6483_v62 = vmul.f32 -1.442695, %v5716_v17 }
 0x769   :  { %v7253_v2 = vpop.eup %7252  ;;  %6152 = vst.msk [vmem:[%s11073_s10 + $0xa8] sm:$0xff] %vm6130_vm8, %v7251_v56  ;;  %7270 = vpow2.f32 %v6479_v58 }
 0x76a   :  { %v7255_v18 = vpop.eup %7254  ;;  %6151 = vst.msk [vmem:[%s11073_s10 + $0xa0] sm:$0xff] %vm6130_vm8, %v7253_v2  ;;  %7272 = vrcp.f32 %v5963_v59 }
 0x76b   :  { %v5962_v31 = vadd.f32 1.0, %v7255_v18  ;;  %7274 = vpow2.f32 %v6482_v10 }
 0x76c   :  { %7276 = vpow2.f32 %v6481_v15  ;;  %v5550_v44 = vpop.xlane.xlu1 %5549 }
 0x76d   :  { %7278 = vrcp.f32 %v5962_v31  ;;  %v5719_v34 = vadd.f32 %v10724_v46, %v5550_v44 }
 0x76e   :  { %7280 = vpow2.f32 %v6484_v7  ;;  %v5545_v22 = vpop.xlane.xlu0 %5544 }
 0x76f   :  { %v7257_v60 = vpop.eup %7256  ;;  %7282 = vpow2.f32 %v6483_v62  ;;  %v6486_v29 = vmul.f32 -1.442695, %v5719_v34  ;;  %v5718_v20 = vadd.f32 %v10724_v46, %v5545_v22 }
 0x770   :  { %v7259_v19 = vpop.eup %7258  ;;  %6154 = vst.msk [vmem:[%s11073_s10 + $0xb8] sm:$0xff] %vm6130_vm8, %v7257_v60 }
 0x771   :  { %v7261_v24 = vpop.eup %7260  ;;  %v5965_v42 = vadd.f32 1.0, %v7259_v19  ;;  %7284 = vpow2.f32 %v6486_v29  ;;  %v6485_v57 = vmul.f32 -1.442695, %v5718_v20 }
 0x772   :  { %v7263_v37 = vpop.eup %7262  ;;  %v5964_v3 = vadd.f32 1.0, %v7261_v24 }
 0x773   :  { %v7265_v61 = vpop.eup %7264  ;;  %6153 = vst.msk [vmem:[%s11073_s10 + $0xb0] sm:$0xff] %vm6130_vm8, %v7263_v37  ;;  %7286 = vrcp.f32 %v5965_v42 }
 0x774   :  { %v7267_v33 = vpop.eup %7266  ;;  %7288 = vrcp.f32 %v5964_v3  ;;  %v5967_v50 = vadd.f32 1.0, %v7265_v61 }
 0x775   :  { %v7269_v41 = vpop.eup %7268  ;;  %v5966_v6 = vadd.f32 1.0, %v7267_v33  ;;  %7290 = vpow2.f32 %v6485_v57 }
 0x776   :  { %v7271_v23 = vpop.eup %7270  ;;  %7292 = vrcp.f32 %v5967_v50  ;;  %v5969_v0 = vadd.f32 1.0, %v7269_v41 }
 0x777   :  { %v7273_v55 = vpop.eup %7272  ;;  %7294 = vrcp.f32 %v5966_v6  ;;  %v5968_v25 = vadd.f32 1.0, %v7271_v23 }
 0x778   :  { %v7275_v21 = vpop.eup %7274  ;;  %6156 = vst.msk [vmem:[%s11073_s10 + $0xc8] sm:$0xff] %vm6130_vm8, %v7273_v55  ;;  %7296 = vrcp.f32 %v5969_v0 }
 0x779   :  { %v7277_v51 = vpop.eup %7276  ;;  %7298 = vrcp.f32 %v5968_v25  ;;  %v5971_v14 = vadd.f32 1.0, %v7275_v21  ;;  %v5560_v43 = vpop.xlane.xlu1 %5559 }
 0x77a   :  { %v7279_v53 = vpop.eup %7278  ;;  %v5970_v27 = vadd.f32 1.0, %v7277_v51  ;;  %v5721_v54 = vadd.f32 %v10724_v46, %v5560_v43  ;;  %v5555_v39 = vpop.xlane.xlu0 %5554 }
 0x77b   :  { %v7281_v11 = vpop.eup %7280  ;;  %6155 = vst.msk [vmem:[%s11073_s10 + $0xc0] sm:$0xff] %vm6130_vm8, %v7279_v53  ;;  %7300 = vrcp.f32 %v5971_v14  ;;  %v5720_v4 = vadd.f32 %v10724_v46, %v5555_v39 }
 0x77c   :  { %v7283_v52 = vpop.eup %7282  ;;  %7302 = vrcp.f32 %v5970_v27  ;;  %v5973_v49 = vadd.f32 1.0, %v7281_v11  ;;  %v6488_v9 = vmul.f32 -1.442695, %v5721_v54 }
 0x77d   :  { %v5972_v30 = vadd.f32 1.0, %v7283_v52  ;;  %v6487_v8 = vmul.f32 -1.442695, %v5720_v4 }
 0x77e   :  { %7304 = vrcp.f32 %v5973_v49  ;;  %v7285_v26 = vpop.eup %7284 }
 0x77f   :  { %7306 = vrcp.f32 %v5972_v30  ;;  %v5975_v48 = vadd.f32 1.0, %v7285_v26 }
 0x780   :  { %v7287_v12 = vpop.eup %7286  ;;  %7308 = vpow2.f32 %v6488_v9 }
 0x781   :  { %v7289_v36 = vpop.eup %7288  ;;  %6158 = vst.msk [vmem:[%s11073_s10 + $0xd8] sm:$0xff] %vm6130_vm8, %v7287_v12  ;;  %7310 = vpow2.f32 %v6487_v8 }
 0x782   :  { %v7291_v35 = vpop.eup %7290  ;;  %6157 = vst.msk [vmem:[%s11073_s10 + $0xd0] sm:$0xff] %vm6130_vm8, %v7289_v36  ;;  %7312 = vrcp.f32 %v5975_v48 }
 0x783   :  { %v7293_v47 = vpop.eup %7292  ;;  %v5974_v45 = vadd.f32 1.0, %v7291_v35 }
 0x784   :  { %v7295_v32 = vpop.eup %7294  ;;  %6160 = vst.msk [vmem:[%s11073_s10 + $0xe8] sm:$0xff] %vm6130_vm8, %v7293_v47 }
 0x785   :  { %v7297_v13 = vpop.eup %7296  ;;  %6159 = vst.msk [vmem:[%s11073_s10 + $0xe0] sm:$0xff] %vm6130_vm8, %v7295_v32  ;;  %7314 = vrcp.f32 %v5974_v45 }
 0x786   :  { %v7299_v28 = vpop.eup %7298  ;;  %6162 = vst.msk [vmem:[%s11073_s10 + $0xf8] sm:$0xff] %vm6130_vm8, %v7297_v13  ;;  %v5570_v5 = vpop.xlane.xlu1 %5569 }
 0x787   :  { %6161 = vst.msk [vmem:[%s11073_s10 + $0xf0] sm:$0xff] %vm6130_vm8, %v7299_v28  ;;  %v5723_v38 = vadd.f32 %v10724_v46, %v5570_v5 }
 0x788   :  { %v7301_v40 = vpop.eup %7300  ;;  %v5565_v63 = vpop.xlane.xlu0 %5564 }
 0x789   :  { %v7303_v1 = vpop.eup %7302  ;;  %6164 = vst.msk [vmem:[%s11073_s10 + $0x108] sm:$0xff] %vm6130_vm8, %v7301_v40  ;;  %v6490_v16 = vmul.f32 -1.442695, %v5723_v38  ;;  %v5722_v58 = vadd.f32 %v10724_v46, %v5565_v63 }
 0x78a   :  { %6163 = vst.msk [vmem:[%s11073_s10 + $0x100] sm:$0xff] %vm6130_vm8, %v7303_v1 }
 0x78b   :  { %v7305_v10 = vpop.eup %7304  ;;  %7316 = vpow2.f32 %v6490_v16  ;;  %v6489_v56 = vmul.f32 -1.442695, %v5722_v58 }
 0x78c   :  { %v7307_v17 = vpop.eup %7306  ;;  %6166 = vst.msk [vmem:[%s11073_s10 + $0x118] sm:$0xff] %vm6130_vm8, %v7305_v10 }
 0x78d   :  { %v7309_v59 = vpop.eup %7308  ;;  %6165 = vst.msk [vmem:[%s11073_s10 + $0x110] sm:$0xff] %vm6130_vm8, %v7307_v17  ;;  %7318 = vpow2.f32 %v6489_v56 }
 0x78e   :  { %v7311_v15 = vpop.eup %7310  ;;  %v5977_v2 = vadd.f32 1.0, %v7309_v59 }
 0x78f   :  { %v7313_v18 = vpop.eup %7312  ;;  %v5976_v7 = vadd.f32 1.0, %v7311_v15 }
 0x790   :  { %6168 = vst.msk [vmem:[%s11073_s10 + $0x128] sm:$0xff] %vm6130_vm8, %v7313_v18  ;;  %7320 = vrcp.f32 %v5977_v2 }
 0x791   :  { %7322 = vrcp.f32 %v5976_v7 }
 0x792   :  { %v7315_v31 = vpop.eup %7314  ;;  %v5580_v62 = vpop.xlane.xlu1 %5579 }
 0x793   :  { %6167 = vst.msk [vmem:[%s11073_s10 + $0x120] sm:$0xff] %vm6130_vm8, %v7315_v31  ;;  %v5725_v44 = vadd.f32 %v10724_v46, %v5580_v62 }
 0x795   :  { %v5575_v34 = vpop.xlane.xlu0 %5574  ;;  %v6492_v22 = vmul.f32 -1.442695, %v5725_v44 }
 0x796   :  { %v5724_v60 = vadd.f32 %v10724_v46, %v5575_v34 }
 0x797   :  { %7324 = vpow2.f32 %v6492_v22 }
 0x798   :  { %v7317_v19 = vpop.eup %7316  ;;  %v6491_v29 = vmul.f32 -1.442695, %v5724_v60 }
 0x799   :  { %v5979_v20 = vadd.f32 1.0, %v7317_v19 }
 0x79a   :  { %7326 = vpow2.f32 %v6491_v29  ;;  %v7319_v24 = vpop.eup %7318 }
 0x79b   :  { %7328 = vrcp.f32 %v5979_v20  ;;  %v5978_v42 = vadd.f32 1.0, %v7319_v24 }
 0x79d   :  { %v7321_v37 = vpop.eup %7320  ;;  %7330 = vrcp.f32 %v5978_v42 }
 0x79e   :  { %v7323_v3 = vpop.eup %7322  ;;  %6170 = vst.msk [vmem:[%s11073_s10 + $0x138] sm:$0xff] %vm6130_vm8, %v7321_v37 }
 0x79f   :  { %6169 = vst.msk [vmem:[%s11073_s10 + $0x130] sm:$0xff] %vm6130_vm8, %v7323_v3 }
 0x7a0   :  { %v5590_v57 = vpop.xlane.xlu1 %5589 }
 0x7a1   :  { %v5727_v61 = vadd.f32 %v10724_v46, %v5590_v57 }
 0x7a3   :  { %v5585_v33 = vpop.xlane.xlu0 %5584  ;;  %v6494_v50 = vmul.f32 -1.442695, %v5727_v61 }
 0x7a4   :  { %v5726_v41 = vadd.f32 %v10724_v46, %v5585_v33  ;;  %v7325_v6 = vpop.eup %7324 }
 0x7a5   :  { %7332 = vpow2.f32 %v6494_v50  ;;  %v5981_v55 = vadd.f32 1.0, %v7325_v6 }
 0x7a6   :  { %v6493_v23 = vmul.f32 -1.442695, %v5726_v41 }
 0x7a7   :  { %v7327_v0 = vpop.eup %7326 }
 0x7a8   :  { %v7329_v25 = vpop.eup %7328  ;;  %v5980_v21 = vadd.f32 1.0, %v7327_v0  ;;  %7334 = vpow2.f32 %v6493_v23 }
 0x7a9   :  { %6172 = vst.msk [vmem:[%s11073_s10 + $0x148] sm:$0xff] %vm6130_vm8, %v7329_v25  ;;  %7336 = vrcp.f32 %v5981_v55 }
 0x7aa   :  { %7338 = vrcp.f32 %v5980_v21  ;;  %v7331_v51 = vpop.eup %7330 }
 0x7ab   :  { %6171 = vst.msk [vmem:[%s11073_s10 + $0x140] sm:$0xff] %vm6130_vm8, %v7331_v51 }
 0x7ae   :  { %v5600_v14 = vpop.xlane.xlu1 %5599 }
 0x7af   :  { %v5729_v53 = vadd.f32 %v10724_v46, %v5600_v14  ;;  %v5595_v27 = vpop.xlane.xlu0 %5594 }
 0x7b0   :  { %v5728_v11 = vadd.f32 %v10724_v46, %v5595_v27 }
 0x7b1   :  { %v6496_v43 = vmul.f32 -1.442695, %v5729_v53 }
 0x7b2   :  { %v7333_v54 = vpop.eup %7332  ;;  %v6495_v52 = vmul.f32 -1.442695, %v5728_v11 }
 0x7b3   :  { %7340 = vpow2.f32 %v6496_v43  ;;  %v5983_v49 = vadd.f32 1.0, %v7333_v54 }
 0x7b4   :  { %7342 = vpow2.f32 %v6495_v52 }
 0x7b5   :  { %v7335_v39 = vpop.eup %7334  ;;  %7344 = vrcp.f32 %v5983_v49 }
 0x7b6   :  { %v7337_v30 = vpop.eup %7336  ;;  %v5982_v9 = vadd.f32 1.0, %v7335_v39 }
 0x7b7   :  { %v7339_v4 = vpop.eup %7338  ;;  %6174 = vst.msk [vmem:[%s11073_s10 + $0x158] sm:$0xff] %vm6130_vm8, %v7337_v30 }
 0x7b8   :  { %6173 = vst.msk [vmem:[%s11073_s10 + $0x150] sm:$0xff] %vm6130_vm8, %v7339_v4  ;;  %7346 = vrcp.f32 %v5982_v9 }
 0x7bb   :  { %v5610_v26 = vpop.xlane.xlu1 %5609 }
 0x7bc   :  { %v5731_v8 = vadd.f32 %v10724_v46, %v5610_v26  ;;  %v5605_v12 = vpop.xlane.xlu0 %5604 }
 0x7bd   :  { %v5730_v48 = vadd.f32 %v10724_v46, %v5605_v12 }
 0x7be   :  { %v6498_v36 = vmul.f32 -1.442695, %v5731_v8 }
 0x7bf   :  { %v6497_v35 = vmul.f32 -1.442695, %v5730_v48 }
 0x7c0   :  { %7348 = vpow2.f32 %v6498_v36  ;;  %v7341_v47 = vpop.eup %7340 }
 0x7c1   :  { %7350 = vpow2.f32 %v6497_v35  ;;  %v5985_v45 = vadd.f32 1.0, %v7341_v47  ;;  %v5620_v32 = vpop.xlane.xlu1 %5619  ;;  %v7343_v13 = vpop.eup %7342 }
 0x7c2   :  { %v5733_v28 = vadd.f32 %v10724_v46, %v5620_v32  ;;  %v5615_v5 = vpop.xlane.xlu0 %5614  ;;  %v7345_v38 = vpop.eup %7344  ;;  %v5984_v40 = vadd.f32 1.0, %v7343_v13 }
 0x7c3   :  { %7352 = vrcp.f32 %v5985_v45  ;;  %v5732_v1 = vadd.f32 %v10724_v46, %v5615_v5  ;;  %6176 = vst.msk [vmem:[%s11073_s10 + $0x168] sm:$0xff] %vm6130_vm8, %v7345_v38 }
 0x7c4   :  { %v6500_v16 = vmul.f32 -1.442695, %v5733_v28  ;;  %7354 = vrcp.f32 %v5984_v40 }
 0x7c5   :  { %v7347_v63 = vpop.eup %7346  ;;  %v6499_v58 = vmul.f32 -1.442695, %v5732_v1 }
 0x7c6   :  { %6175 = vst.msk [vmem:[%s11073_s10 + $0x160] sm:$0xff] %vm6130_vm8, %v7347_v63  ;;  %7356 = vpow2.f32 %v6500_v16 }
 0x7c7   :  { %7358 = vpow2.f32 %v6499_v58  ;;  %v7417_v58 = vld [vmem:[#allocation9 + $0x7] ss:$0 sm:$0xff] }
 0x7c9   :  { %v5630_v10 = vpop.xlane.xlu1 %5629 }
 0x7ca   :  { %v5735_v17 = vadd.f32 %v10724_v46, %v5630_v10  ;;  %v5625_v56 = vpop.xlane.xlu0 %5624 }
 0x7cb   :  { %v5734_v15 = vadd.f32 %v10724_v46, %v5625_v56 }
 0x7cc   :  { %v6502_v7 = vmul.f32 -1.442695, %v5735_v17 }
 0x7cd   :  { %v7349_v59 = vpop.eup %7348  ;;  %v6501_v62 = vmul.f32 -1.442695, %v5734_v15 }
 0x7ce   :  { %v7351_v2 = vpop.eup %7350  ;;  %v5987_v18 = vadd.f32 1.0, %v7349_v59 }
 0x7cf   :  { %v5986_v31 = vadd.f32 1.0, %v7351_v2 }
 0x7d0   :  { %7360 = vrcp.f32 %v5987_v18  ;;  %v7353_v44 = vpop.eup %7352 }
 0x7d1   :  { %7362 = vrcp.f32 %v5986_v31  ;;  %6178 = vst.msk [vmem:[%s11073_s10 + $0x178] sm:$0xff] %vm6130_vm8, %v7353_v44  ;;  %v7355_v34 = vpop.eup %7354  ;;  %v5640_v60 = vpop.xlane.xlu1 %5639 }
 0x7d2   :  { %7364 = vpow2.f32 %v6502_v7  ;;  %6177 = vst.msk [vmem:[%s11073_s10 + $0x170] sm:$0xff] %vm6130_vm8, %v7355_v34  ;;  %v5737_v19 = vadd.f32 %v10724_v46, %v5640_v60 }
 0x7d3   :  { %7366 = vpow2.f32 %v6501_v62  ;;  %v7357_v22 = vpop.eup %7356 }
 0x7d4   :  { %v7359_v29 = vpop.eup %7358  ;;  %v5989_v20 = vadd.f32 1.0, %v7357_v22  ;;  %v5635_v24 = vpop.xlane.xlu0 %5634  ;;  %v6504_v37 = vmul.f32 -1.442695, %v5737_v19 }
 0x7d5   :  { %v5988_v42 = vadd.f32 1.0, %v7359_v29  ;;  %v5736_v3 = vadd.f32 %v10724_v46, %v5635_v24 }
 0x7d6   :  { %7368 = vrcp.f32 %v5989_v20 }
 0x7d7   :  { %7370 = vrcp.f32 %v5988_v42  ;;  %v6503_v57 = vmul.f32 -1.442695, %v5736_v3 }
 0x7d8   :  { %7372 = vpow2.f32 %v6504_v37 }
 0x7d9   :  { %7374 = vpow2.f32 %v6503_v57 }
 0x7db   :  { %v5650_v33 = vpop.xlane.xlu1 %5649 }
 0x7dc   :  { %v5645_v50 = vpop.xlane.xlu0 %5644  ;;  %v5739_v6 = vadd.f32 %v10724_v46, %v5650_v33 }
 0x7dd   :  { %v7361_v61 = vpop.eup %7360  ;;  %v5738_v23 = vadd.f32 %v10724_v46, %v5645_v50 }
 0x7de   :  { %v7363_v41 = vpop.eup %7362  ;;  %6180 = vst.msk [vmem:[%s11073_s10 + $0x188] sm:$0xff] %vm6130_vm8, %v7361_v61  ;;  %v6506_v21 = vmul.f32 -1.442695, %v5739_v6 }
 0x7df   :  { %v7365_v0 = vpop.eup %7364  ;;  %6179 = vst.msk [vmem:[%s11073_s10 + $0x180] sm:$0xff] %vm6130_vm8, %v7363_v41  ;;  %v6505_v14 = vmul.f32 -1.442695, %v5738_v23 }
 0x7e0   :  { %v7367_v55 = vpop.eup %7366  ;;  %v5991_v25 = vadd.f32 1.0, %v7365_v0 }
 0x7e1   :  { %v5990_v51 = vadd.f32 1.0, %v7367_v55 }
 0x7e2   :  { %7376 = vrcp.f32 %v5991_v25 }
 0x7e3   :  { %7378 = vrcp.f32 %v5990_v51  ;;  %v7369_v53 = vpop.eup %7368  ;;  %v5660_v43 = vpop.xlane.xlu1 %5659 }
 0x7e4   :  { %7380 = vpow2.f32 %v6506_v21  ;;  %v7371_v27 = vpop.eup %7370  ;;  %6182 = vst.msk [vmem:[%s11073_s10 + $0x198] sm:$0xff] %vm6130_vm8, %v7369_v53  ;;  %v5741_v54 = vadd.f32 %v10724_v46, %v5660_v43  ;;  %v5655_v52 = vpop.xlane.xlu0 %5654 }
 0x7e5   :  { %7382 = vpow2.f32 %v6505_v14  ;;  %v7373_v11 = vpop.eup %7372  ;;  %6181 = vst.msk [vmem:[%s11073_s10 + $0x190] sm:$0xff] %vm6130_vm8, %v7371_v27  ;;  %v5740_v30 = vadd.f32 %v10724_v46, %v5655_v52 }
 0x7e6   :  { %v7375_v49 = vpop.eup %7374  ;;  %v5993_v39 = vadd.f32 1.0, %v7373_v11  ;;  %v6508_v4 = vmul.f32 -1.442695, %v5741_v54 }
 0x7e7   :  { %v5992_v9 = vadd.f32 1.0, %v7375_v49  ;;  %v6507_v26 = vmul.f32 -1.442695, %v5740_v30 }
 0x7e8   :  { %7384 = vrcp.f32 %v5993_v39 }
 0x7e9   :  { %7386 = vrcp.f32 %v5992_v9  ;;  %v5670_v8 = vpop.xlane.xlu1 %5669 }
 0x7ea   :  { %7388 = vpow2.f32 %v6508_v4  ;;  %v5743_v12 = vadd.f32 %v10724_v46, %v5670_v8 }
 0x7eb   :  { %7390 = vpow2.f32 %v6507_v26 }
 0x7ec   :  { %v6510_v48 = vmul.f32 -1.442695, %v5743_v12  ;;  %v5665_v36 = vpop.xlane.xlu0 %5664 }
 0x7ed   :  { %v5742_v47 = vadd.f32 %v10724_v46, %v5665_v36  ;;  %v5680_v45 = vpop.xlane.xlu1 %5679 }
 0x7ee   :  { %7392 = vpow2.f32 %v6510_v48  ;;  %v5745_v13 = vadd.f32 %v10724_v46, %v5680_v45 }
 0x7ef   :  { %v7377_v35 = vpop.eup %7376  ;;  %v6509_v5 = vmul.f32 -1.442695, %v5742_v47 }
 0x7f0   :  { %v7379_v32 = vpop.eup %7378  ;;  %6184 = vst.msk [vmem:[%s11073_s10 + $0x1a8] sm:$0xff] %vm6130_vm8, %v7377_v35  ;;  %v6512_v1 = vmul.f32 -1.442695, %v5745_v13  ;;  %v5675_v16 = vpop.xlane.xlu0 %5674 }
 0x7f1   :  { %v7381_v28 = vpop.eup %7380  ;;  %6183 = vst.msk [vmem:[%s11073_s10 + $0x1a0] sm:$0xff] %vm6130_vm8, %v7379_v32  ;;  %7394 = vpow2.f32 %v6509_v5  ;;  %v5744_v10 = vadd.f32 %v7417_v58, %v5675_v16 }
 0x7f2   :  { %v7383_v38 = vpop.eup %7382  ;;  %v5995_v40 = vadd.f32 1.0, %v7381_v28 }
 0x7f3   :  { %v5994_v63 = vadd.f32 1.0, %v7383_v38  ;;  %v6511_v17 = vmul.f32 -1.442695, %v5744_v10 }
 0x7f4   :  { %7396 = vrcp.f32 %v5995_v40 }
 0x7f5   :  { %7398 = vrcp.f32 %v5994_v63  ;;  %v7385_v56 = vpop.eup %7384 }
 0x7f6   :  { %7400 = vpow2.f32 %v6512_v1  ;;  %v7387_v46 = vpop.eup %7386  ;;  %6186 = vst.msk [vmem:[%s11073_s10 + $0x1b8] sm:$0xff] %vm6130_vm8, %v7385_v56 }
 0x7f7   :  { %7402 = vpow2.f32 %v6511_v17  ;;  %v7389_v59 = vpop.eup %7388  ;;  %6185 = vst.msk [vmem:[%s11073_s10 + $0x1b0] sm:$0xff] %vm6130_vm8, %v7387_v46 }
 0x7f8   :  { %v7391_v15 = vpop.eup %7390  ;;  %v5997_v2 = vadd.f32 1.0, %v7389_v59 }
 0x7f9   :  { %v5996_v18 = vadd.f32 1.0, %v7391_v15 }
 0x7fa   :  { %7404 = vrcp.f32 %v5997_v2 }
 0x7fb   :  { %7406 = vrcp.f32 %v5996_v18  ;;  %v7393_v7 = vpop.eup %7392 }
 0x7fc   :  { %v5999_v31 = vadd.f32 1.0, %v7393_v7 }
 0x7fe   :  { %v7395_v62 = vpop.eup %7394  ;;  %7408 = vrcp.f32 %v5999_v31 }
 0x7ff   :  { %v5998_v34 = vadd.f32 1.0, %v7395_v62 }
 0x801   :  { %v7397_v44 = vpop.eup %7396  ;;  %7410 = vrcp.f32 %v5998_v34 }
 0x802   :  { %v7399_v60 = vpop.eup %7398  ;;  %6188 = vst.msk [vmem:[%s11073_s10 + $0x1c8] sm:$0xff] %vm6130_vm8, %v7397_v44 }
 0x803   :  { %v7401_v22 = vpop.eup %7400  ;;  %6187 = vst.msk [vmem:[%s11073_s10 + $0x1c0] sm:$0xff] %vm6130_vm8, %v7399_v60 }
 0x804   :  { %v7403_v19 = vpop.eup %7402  ;;  %v6001_v29 = vadd.f32 1.0, %v7401_v22 }
 0x805   :  { %v6000_v20 = vadd.f32 1.0, %v7403_v19 }
 0x806   :  { %7412 = vrcp.f32 %v6001_v29 }
 0x807   :  { %7414 = vrcp.f32 %v6000_v20  ;;  %v7405_v24 = vpop.eup %7404 }
 0x808   :  { %v7407_v42 = vpop.eup %7406  ;;  %6190 = vst.msk [vmem:[%s11073_s10 + $0x1d8] sm:$0xff] %vm6130_vm8, %v7405_v24 }
 0x809   :  { %6189 = vst.msk [vmem:[%s11073_s10 + $0x1d0] sm:$0xff] %vm6130_vm8, %v7407_v42 }
 0x80b   :  { %v7409_v37 = vpop.eup %7408 }
 0x80c   :  { %6192 = vst.msk [vmem:[%s11073_s10 + $0x1e8] sm:$0xff] %vm6130_vm8, %v7409_v37 }
 0x80e   :  { %v7411_v3 = vpop.eup %7410 }
 0x80f   :  { %6191 = vst.msk [vmem:[%s11073_s10 + $0x1e0] sm:$0xff] %vm6130_vm8, %v7411_v3 }
 0x813   :  { %v7413_v57 = vpop.eup %7412 }
 0x814   :  { %v7415_v61 = vpop.eup %7414  ;;  %6194 = vst.msk [vmem:[%s11073_s10 + $0x1f8] sm:$0xff] %vm6130_vm8, %v7413_v57 }
 0x815   :  { %6193 = vst.msk [vmem:[%s11073_s10 + $0x1f0] sm:$0xff] %vm6130_vm8, %v7415_v61 }
 0x816   :  { %6199 = vsyncpa [#allocation3], 1 }
 0x817   :  { %6200 = vsyncpa [#allocation5], 1 }
 0x818   :  { %6201 = vsyncpa [#allocation8], 1 }

</bundles_post_ra>
